<compile_context>
chip_gen: v5e
topology: v5e:2x2
jax: 0.10.0
libtpu: 0.0.40
codegen_flags: <defaults>
</compile_context>

<pallas_src>
import math

import jax
import jax.numpy as jnp
from jax import lax
from jax.experimental import pallas as pl
from jax.experimental.pallas import tpu as pltpu

# ----------------------------- synthetic config -----------------------------
NUM_ATOM = 8            # cfg.model.num_atom        (atom-type one-hot dim)
HIDDEN = 32             # cfg.model.hidden_dim
NUM_CONVS = 2           # cfg.model.num_convs
SOFT_EDGE = True        # cfg.model.soft_edge
NORM_COORS = True       # cfg.model.norm_coors
NUM_BOND_TYPES = 100    # Embedding(100, hidden) in the edge encoder
POS_PAD = 8             # coords padded 3 -> 8 so gather/scatter slices stay 8-aligned
EDGE_TILE = 128         # edge-tile size (lane-dense output blocks)


# --------------------------------- kernel ------------------------------------
def _fused_dual_edge_egnn_kernel(
        # E-tiled inputs (blocked (TE, ·))
        row_ref, col_ref, elen_ref, tyemb_ref, e2g_ref,
        # resident graph data
        emb_ref, n2g_ref, atom_ref, pos_in_ref, cnt_inv_ref,
        # timestep-embedding MLP
        tw0, tb0, tw1, tb1, twp, tbp,
        # edge encoder
        ee_w1, ee_b1, ee_w2, ee_b2,
        # EGNN input embedding
        w_emb, b_emb,
        # EGNN stacked per-layer weights
        wij, wd, wa, be1, we2, be2, wg, bg,
        wc1, bc1, wc2, bc2, cscale, wn1, bn1, wn2, bn2,
        # pair-feature / grad_global_dist MLP
        gw1, gb1, gw2, gb2, gw3t, gb3,
        # output: lane-dense (1, TE) block
        out_ref,
        # scratch (persists across grid steps)
        temb_s, h_s, pos_s, slab_s, acc_s):
    f32 = jnp.float32
    bf16 = jnp.bfloat16
    L = NUM_CONVS
    M = HIDDEN

    l = pl.program_id(0)            # 0..L-1: conv layers; L: pair/grad-MLP phase
    t = pl.program_id(1)            # edge-tile index
    n_et = pl.num_programs(1)
    TE = row_ref.shape[0]
    NN = h_s.shape[0]

    def mxu(a, b):                  # bf16 inputs, f32 accumulation
        return jnp.dot(a.astype(bf16), b.astype(bf16), preferred_element_type=f32)

    def mxu_tn(a, b):               # a.T @ b (contract axis 0 of both) — edge scatter
        return lax.dot_general(a.astype(bf16), b.astype(bf16),
                               (((0,), (0,)), ((), ())), preferred_element_type=f32)

    def mxu_nt(a, b):               # a @ b.T (contract axis 1 of both) — lane-dense out
        return lax.dot_general(a.astype(bf16), b.astype(bf16),
                               (((1,), (1,)), ((), ())), preferred_element_type=f32)

    def silu(x):
        return x * jax.nn.sigmoid(x)

    def incidence(idx):             # (TE,1) int32 -> (TE, N) bf16 one-hot; -1 rows -> 0
        iota = lax.broadcasted_iota(jnp.int32, (TE, NN), 1)
        return (idx == iota).astype(bf16)

    def edge_attr():                # MLP(edge_length)*bond_emb(edge_type) + temb_edge
        d = jnp.maximum(elen_ref[...] * ee_w1[...] + ee_b1[...], 0.0)
        d = mxu(d, ee_w2[...]) + ee_b2[...]
        temb_e = jnp.dot(e2g_ref[...], temb_s[...], preferred_element_type=f32)
        return d * tyemb_ref[...] + temb_e                       # (TE, H) f32

    # ---- 1. one-time init: timestep MLP, node embedding, position copy ----
    @pl.when(jnp.logical_and(l == 0, t == 0))
    def _():
        x = emb_ref[...]                                         # (G, H)
        x = jnp.maximum(jnp.dot(x, tw0[...], preferred_element_type=f32) + tb0[...], 0.0)
        x = jnp.maximum(jnp.dot(x, tw1[...], preferred_element_type=f32) + tb1[...], 0.0)
        temb = jnp.dot(x, twp[...], preferred_element_type=f32) + tbp[...]
        temb_s[...] = temb
        temb_node = jnp.dot(n2g_ref[...], temb, preferred_element_type=f32)   # (N, H)
        feat = jnp.concatenate([atom_ref[...], temb_node], axis=1)
        h_s[...] = jnp.dot(feat, w_emb[...], preferred_element_type=f32) + b_emb[...]
        pos_s[...] = pos_in_ref[...]

    # ---- 2. per-layer setup at the first edge tile ----
    @pl.when(jnp.logical_and(l < L, t == 0))
    def _():
        # widened node-level projection: h @ [wi | wj] -> (N, 2M)
        hw = jnp.dot(h_s[...], wij[l], preferred_element_type=f32)
        p = pos_s[...]
        slab_s[0] = jnp.concatenate([hw[:, :M], p], axis=1)      # [hwi | pos], wide first
        slab_s[1] = jnp.concatenate([hw[:, M:], p], axis=1)      # [hwj | pos]
        acc_s[...] = jnp.zeros_like(acc_s)

    # ---- 3. conv layer: per edge tile (gather -> message MLP -> scatter) ----
    @pl.when(l < L)
    def _():
        gr = incidence(row_ref[...])                             # (TE, N) bf16
        gc = incidence(col_ref[...])
        src = mxu(gr, slab_s[0])                                 # (TE, M+8)
        dst = mxu(gc, slab_s[1])
        rel = src[:, M:] - dst[:, M:]                            # (TE, 8), cols 3..7 == 0
        dist2 = jnp.sum(rel * rel, axis=-1, keepdims=True)       # (TE, 1)
        eattr = edge_attr()

        # edge message MLP on cat([h_i, h_j, dist2, edge_attr]) (weights pre-split)
        m = (src[:, :M] + dst[:, :M]
             + dist2 * wd[l]
             + mxu(eattr, wa[l])
             + be1[l])
        m = silu(m)
        m = silu(mxu(m, we2[l]) + be2[l])                        # (TE, M)
        if SOFT_EDGE:
            m = m * jax.nn.sigmoid(mxu(m, wg[l]) + bg[l])

        # coordinate weight (dead on the last conv layer but l is dynamic; tiny)
        c = silu(mxu(m, wc1[l]) + bc1[l])
        cw = mxu(c, wc2[l]) + bc2[l]                             # (TE, 1)
        if NORM_COORS:
            inv = lax.rsqrt(jnp.maximum(dist2, 1e-16))           # single EUP op
            rel_use = rel * inv * cscale[l]
        else:
            rel_use = rel

        # fused scatter: one MXU push for [messages | coord deltas], wide first
        scat = mxu_tn(gr, jnp.concatenate([m, rel_use * cw], axis=1))   # (N, M+8)
        acc_s[...] += scat

    # ---- 4. node + coordinate update at the last edge tile of each layer ----
    @pl.when(jnp.logical_and(l < L, t == n_et - 1))
    def _():
        acc = acc_s[...]
        h = h_s[...]
        nin = jnp.concatenate([h, acc[:, :M]], axis=1)           # (N, H+M), fused K
        nm = silu(jnp.dot(nin, wn1[l], preferred_element_type=f32) + bn1[l])
        h_s[...] = h + jnp.dot(nm, wn2[l], preferred_element_type=f32) + bn2[l]
        pos_s[...] = pos_s[...] + acc[:, M:] * cnt_inv_ref[...]  # mean over incident edges

    # ---- 5. final phase: pair features + grad_global_dist_mlp ----
    @pl.when(l == L)
    def _():
        gr = incidence(row_ref[...])
        gc = incidence(col_ref[...])
        hb = h_s[...].astype(bf16)
        h_row = jnp.dot(gr, hb, preferred_element_type=f32)      # (TE, H)
        h_col = jnp.dot(gc, hb, preferred_element_type=f32)
        eattr = edge_attr()
        x = mxu(jnp.concatenate([h_row * h_col, eattr], axis=1), gw1[...]) + gb1[...]
        x = jnp.maximum(x, 0.0)
        x = jnp.maximum(mxu(x, gw2[...]) + gb2[...], 0.0)        # (TE, H//2)
        # lane-dense output: (1, H//2) @ (TE, H//2)^T -> (1, TE)
        out_ref[...] = mxu_nt(gw3t[...], x) + gb3[...]


# --------------------------- parameter construction --------------------------
def _linear(key, fan_in, in_dim, out_dim):
    k1, k2 = jax.random.split(key)
    bound = 1.0 / math.sqrt(fan_in)
    w = jax.random.uniform(k1, (in_dim, out_dim), jnp.float32, -bound, bound)
    b = jax.random.uniform(k2, (1, out_dim), jnp.float32, -bound, bound)
    return w, b


def _stacked_linear(key, num_layers, fan_in, in_dim, out_dim):
    ks = jax.random.split(key, 2 * num_layers)
    bound = 1.0 / math.sqrt(fan_in)
    w = jnp.stack([jax.random.uniform(ks[2 * i], (in_dim, out_dim), jnp.float32, -bound, bound)
                   for i in range(num_layers)])
    b = jnp.stack([jax.random.uniform(ks[2 * i + 1], (1, out_dim), jnp.float32, -bound, bound)
                   for i in range(num_layers)])
    return w, b


def init_params(key):
    H, M, L = HIDDEN, HIDDEN, NUM_CONVS
    fin = NUM_ATOM + H                      # atom one-hot cat temb (no context)
    keys = iter(jax.random.split(key, 64))
    p = {}
    # timestep MLP: Linear(H,4H) -> relu -> Linear(4H,4H) -> relu -> Linear(4H,H)
    p['temb_w0'], p['temb_b0'] = _linear(next(keys), H, H, 4 * H)
    p['temb_w1'], p['temb_b1'] = _linear(next(keys), 4 * H, 4 * H, 4 * H)
    p['temb_wp'], p['temb_bp'] = _linear(next(keys), 4 * H, 4 * H, H)
    # edge encoder: Embedding(100,H) and MLP(1,[H,H])
    p['bond_emb'] = 0.1 * jax.random.normal(next(keys), (NUM_BOND_TYPES, H), jnp.float32)
    p['ee_w1'], p['ee_b1'] = _linear(next(keys), 1, 1, H)
    p['ee_w2'], p['ee_b2'] = _linear(next(keys), H, H, H)
    # EGNN input embedding (kernel does concat([atom, temb]) @ w_emb once)
    p['egnn_w_emb'], p['egnn_b_emb'] = _linear(next(keys), fin, fin, H)
    edge_in = 2 * H + 1 + H
    wi, be1 = _stacked_linear(next(keys), L, edge_in, H, M)
    wj, _ = _stacked_linear(next(keys), L, edge_in, H, M)
    p['egnn_wij'] = jnp.concatenate([wi, wj], axis=2)            # (L, H, 2M) fused
    p['egnn_be1'] = be1
    p['egnn_wd'], _ = _stacked_linear(next(keys), L, edge_in, 1, M)
    p['egnn_wa'], _ = _stacked_linear(next(keys), L, edge_in, H, M)
    p['egnn_we2'], p['egnn_be2'] = _stacked_linear(next(keys), L, M, M, M)
    p['egnn_wg'], p['egnn_bg'] = _stacked_linear(next(keys), L, M, M, 1)
    p['egnn_wc1'], p['egnn_bc1'] = _stacked_linear(next(keys), L, M, M, M)
    p['egnn_wc2'], p['egnn_bc2'] = _stacked_linear(next(keys), L, M, M, 1)
    p['egnn_coors_scale'] = jnp.full((L, 1, 1), 1e-2, jnp.float32)   # CoorsNorm scale
    node_in = H + M
    wn1h, bn1 = _stacked_linear(next(keys), L, node_in, H, 2 * M)
    wn1m, _ = _stacked_linear(next(keys), L, node_in, M, 2 * M)
    p['egnn_wn1'] = jnp.concatenate([wn1h, wn1m], axis=1)        # (L, H+M, 2M) fused
    p['egnn_bn1'] = bn1
    p['egnn_wn2'], p['egnn_bn2'] = _stacked_linear(next(keys), L, 2 * M, 2 * M, H)
    # grad_global_dist_mlp: MLP(2H, [H, H//2, 1]) — first weight fused over concat
    kw = jax.random.split(next(keys), 3)
    bound = 1.0 / math.sqrt(2 * H)
    gw1a = jax.random.uniform(kw[0], (H, H), jnp.float32, -bound, bound)
    gw1b = jax.random.uniform(kw[1], (H, H), jnp.float32, -bound, bound)
    p['grad_w1'] = jnp.concatenate([gw1a, gw1b], axis=0)         # (2H, H)
    p['grad_b1'] = jax.random.uniform(kw[2], (1, H), jnp.float32, -bound, bound)
    p['grad_w2'], p['grad_b2'] = _linear(next(keys), H, H, H // 2)
    p['grad_w3'], p['grad_b3'] = _linear(next(keys), H // 2, H // 2, 1)
    return p


# ------------------------------- forward glue --------------------------------
def get_timestep_embedding(timesteps, embedding_dim):
    half = embedding_dim // 2
    scale = math.log(10000.0) / (half - 1)
    freqs = jnp.exp(-scale * jnp.arange(half, dtype=jnp.float32))
    args = timesteps.astype(jnp.float32)[:, None] * freqs[None, :]
    emb = jnp.concatenate([jnp.sin(args), jnp.cos(args)], axis=1)
    if embedding_dim % 2 == 1:
        emb = jnp.pad(emb, ((0, 0), (0, 1)))
    return emb


def dual_edge_egnn_forward(params, atom_type, pos, bond_index, bond_type, batch,
                           time_step, edge_index, edge_type, edge_length,
                           edge_tile=EDGE_TILE):
    """Returns (edge_inv_global, edge_index, edge_type, edge_length)."""
    del bond_index, bond_type   # only used when edges are not provided
    G = time_step.shape[0]
    N = pos.shape[0]
    E = edge_index.shape[1]
    H = HIDDEN
    M = HIDDEN
    L = NUM_CONVS

    TE = edge_tile
    E_pad = ((E + TE - 1) // TE) * TE        # lane-dense output, unmasked stores
    n_et = E_pad // TE
    pad_e = E_pad - E

    emb = get_timestep_embedding(time_step, H)                     # (G, H)

    row = edge_index[0].astype(jnp.int32)
    col = edge_index[1].astype(jnp.int32)
    n2g = jax.nn.one_hot(batch, G, dtype=jnp.float32)              # (N, G) node->graph
    e2g = jax.nn.one_hot(batch[row], G, dtype=jnp.float32)         # (E, G) edge->graph
    type_emb = params['bond_emb'][edge_type].astype(jnp.bfloat16)  # (E, H) bond-type emb

    # node degrees (scatter to source node) precomputed outside the kernel
    deg = jnp.zeros((N,), jnp.float32).at[row].add(1.0)
    cnt_inv = (1.0 / jnp.maximum(deg, 1.0))[:, None]               # (N, 1)
    pos8 = jnp.pad(pos, ((0, 0), (0, POS_PAD - 3)))                # (N, 8)

    # pad E to tile multiple; padded edges get index -1 -> zero incidence rows
    row_p = jnp.pad(row, (0, pad_e), constant_values=-1)[:, None]
    col_p = jnp.pad(col, (0, pad_e), constant_values=-1)[:, None]
    elen_p = jnp.pad(edge_length.astype(jnp.float32), ((0, pad_e), (0, 0)))
    tyemb_p = jnp.pad(type_emb, ((0, pad_e), (0, 0)))
    e2g_p = jnp.pad(e2g, ((0, pad_e), (0, 0)))

    args = (
        row_p, col_p, elen_p, tyemb_p, e2g_p,
        emb, n2g, atom_type, pos8, cnt_inv,
        params['temb_w0'], params['temb_b0'], params['temb_w1'], params['temb_b1'],
        params['temb_wp'], params['temb_bp'],
        params['ee_w1'], params['ee_b1'], params['ee_w2'], params['ee_b2'],
        params['egnn_w_emb'], params['egnn_b_emb'],
        params['egnn_wij'], params['egnn_wd'], params['egnn_wa'], params['egnn_be1'],
        params['egnn_we2'], params['egnn_be2'], params['egnn_wg'], params['egnn_bg'],
        params['egnn_wc1'], params['egnn_bc1'], params['egnn_wc2'], params['egnn_bc2'],
        params['egnn_coors_scale'],
        params['egnn_wn1'], params['egnn_bn1'], params['egnn_wn2'], params['egnn_bn2'],
        params['grad_w1'], params['grad_b1'], params['grad_w2'], params['grad_b2'],
        params['grad_w3'].T, params['grad_b3'],
    )

    def etile(width):                       # streamed, double-buffered edge tiles
        return pl.BlockSpec((TE, width), lambda l, t: (t, 0))

    def resident(arr):                      # full block, constant index -> loaded once
        shape = arr.shape
        return pl.BlockSpec(shape, lambda l, t: (0,) * len(shape))

    in_specs = [etile(1), etile(1), etile(1), etile(H), etile(G)]
    in_specs += [resident(a) for a in args[5:]]
    out_specs = pl.BlockSpec((1, TE), lambda l, t: (0, t))

    scratch_shapes = [
        pltpu.VMEM((G, H), jnp.float32),                 # timestep embedding
        pltpu.VMEM((N, H), jnp.float32),                 # node features h
        pltpu.VMEM((N, POS_PAD), jnp.float32),           # coordinates
        pltpu.VMEM((2, N, M + POS_PAD), jnp.float32),    # gather slabs [hw|pos]
        pltpu.VMEM((N, M + POS_PAD), jnp.float32),       # scatter accumulator [msg|coord]
    ]

    # advisory cost estimate
    gath = 2 * E_pad * N * (M + POS_PAD)
    flops = (L * (3 * gath + 2 * E_pad * (H * M + 2 * M * M + 2 * M + H * H))
             + 2 * 2 * E_pad * N * H
             + 2 * E_pad * (2 * H * H + H * (H // 2) + (H // 2) + H * H)
             + 2 * N * L * (H * 2 * M + (H + M) * 2 * M + 2 * M * H))
    transcendentals = (L + 1) * E_pad * (4 * M + 8)
    bytes_accessed = ((L + 1) * E_pad * (4 + 4 + 4 + 2 * H + 4 * G)
                      + 4 * (N * (G + NUM_ATOM + POS_PAD + 1) + G * H)
                      + 4 * E_pad)

    out_1e = pl.pallas_call(
        _fused_dual_edge_egnn_kernel,
        out_shape=jax.ShapeDtypeStruct((1, E_pad), jnp.float32),   # lane-dense output
        grid_spec=pltpu.PrefetchScalarGridSpec(
            num_scalar_prefetch=0,
            grid=(L + 1, n_et),                      # (conv layers + final phase, edge tiles)
            in_specs=in_specs,
            out_specs=out_specs,
            scratch_shapes=scratch_shapes),
        compiler_params=pltpu.CompilerParams(
            dimension_semantics=("arbitrary", "arbitrary"),
            vmem_limit_bytes=64 * 1024 * 1024),
        cost_estimate=pl.CostEstimate(flops=flops,
                                      transcendentals=transcendentals,
                                      bytes_accessed=bytes_accessed),
    )(*args)

    edge_inv_global = out_1e[0, :E][:, None]                        # (E, 1)
    return edge_inv_global, edge_index, edge_type, edge_length


# ----------------------------------- main ------------------------------------
if __name__ == "__main__":
    key = jax.random.PRNGKey(0)
    k_pos, k_atom = jax.random.split(key, 2)

    G = 2                      # graphs in batch
    n_per = 8
    N = G * n_per
    batch = jnp.repeat(jnp.arange(G, dtype=jnp.int32), n_per)

    pos = jax.random.normal(k_pos, (N, 3), jnp.float32)
    atom_ids = jax.random.randint(k_atom, (N,), 0, NUM_ATOM)
    atom_type = jax.nn.one_hot(atom_ids, NUM_ATOM, dtype=jnp.float32)
    time_step = jnp.array([17, 423], dtype=jnp.int32)

    # deterministic per-graph fully-connected edge set (stands in for radius graph)
    rows, cols = [], []
    for g in range(G):
        base = g * n_per
        for a in range(n_per):
            for b in range(n_per):
                if a != b:
                    rows.append(base + a)
                    cols.append(base + b)
    edge_index = jnp.array([rows, cols], dtype=jnp.int32)
    E = edge_index.shape[1]
    edge_type = (jnp.arange(E, dtype=jnp.int32) % 3)
    edge_length = jnp.linalg.norm(
        pos[edge_index[0]] - pos[edge_index[1]], axis=-1, keepdims=True)
    bond_index = edge_index[:, :4]
    bond_type = edge_type[:4]

    params = init_params(jax.random.PRNGKey(0))

    fwd = jax.jit(dual_edge_egnn_forward)
    edge_inv_global, ei, et, el = fwd(params, atom_type, pos, bond_index, bond_type,
                                      batch, time_step, edge_index, edge_type, edge_length)
    jax.block_until_ready(edge_inv_global)

    assert edge_inv_global.shape == (E, 1)
    assert bool(jnp.all(jnp.isfinite(edge_inv_global)))
    print("KERNEL_OK")
</pallas_src>

<mosaic_0001>
module attributes {stable_mosaic.version = 11 : i64} {
  func.func @_fused_dual_edge_egnn_kernel(%arg0: i32, %arg1: i32, %arg2: memref<128x1xi32, #tpu.memory_space<vmem>>, %arg3: memref<128x1xi32, #tpu.memory_space<vmem>>, %arg4: memref<128x1xf32, #tpu.memory_space<vmem>>, %arg5: memref<128x32xbf16, #tpu.memory_space<vmem>>, %arg6: memref<128x2xf32, #tpu.memory_space<vmem>>, %arg7: memref<2x32xf32, #tpu.memory_space<vmem>>, %arg8: memref<16x2xf32, #tpu.memory_space<vmem>>, %arg9: memref<16x8xf32, #tpu.memory_space<vmem>>, %arg10: memref<16x8xf32, #tpu.memory_space<vmem>>, %arg11: memref<16x1xf32, #tpu.memory_space<vmem>>, %arg12: memref<32x128xf32, #tpu.memory_space<vmem>>, %arg13: memref<1x128xf32, #tpu.memory_space<vmem>>, %arg14: memref<128x128xf32, #tpu.memory_space<vmem>>, %arg15: memref<1x128xf32, #tpu.memory_space<vmem>>, %arg16: memref<128x32xf32, #tpu.memory_space<vmem>>, %arg17: memref<1x32xf32, #tpu.memory_space<vmem>>, %arg18: memref<1x32xf32, #tpu.memory_space<vmem>>, %arg19: memref<1x32xf32, #tpu.memory_space<vmem>>, %arg20: memref<32x32xf32, #tpu.memory_space<vmem>>, %arg21: memref<1x32xf32, #tpu.memory_space<vmem>>, %arg22: memref<40x32xf32, #tpu.memory_space<vmem>>, %arg23: memref<1x32xf32, #tpu.memory_space<vmem>>, %arg24: memref<2x32x64xf32, #tpu.memory_space<vmem>>, %arg25: memref<2x1x32xf32, #tpu.memory_space<vmem>>, %arg26: memref<2x32x32xf32, #tpu.memory_space<vmem>>, %arg27: memref<2x1x32xf32, #tpu.memory_space<vmem>>, %arg28: memref<2x32x32xf32, #tpu.memory_space<vmem>>, %arg29: memref<2x1x32xf32, #tpu.memory_space<vmem>>, %arg30: memref<2x32x1xf32, #tpu.memory_space<vmem>>, %arg31: memref<2x1x1xf32, #tpu.memory_space<vmem>>, %arg32: memref<2x32x32xf32, #tpu.memory_space<vmem>>, %arg33: memref<2x1x32xf32, #tpu.memory_space<vmem>>, %arg34: memref<2x32x1xf32, #tpu.memory_space<vmem>>, %arg35: memref<2x1x1xf32, #tpu.memory_space<vmem>>, %arg36: memref<2x1x1xf32, #tpu.memory_space<vmem>>, %arg37: memref<2x64x64xf32, #tpu.memory_space<vmem>>, %arg38: memref<2x1x64xf32, #tpu.memory_space<vmem>>, %arg39: memref<2x64x32xf32, #tpu.memory_space<vmem>>, %arg40: memref<2x1x32xf32, #tpu.memory_space<vmem>>, %arg41: memref<64x32xf32, #tpu.memory_space<vmem>>, %arg42: memref<1x32xf32, #tpu.memory_space<vmem>>, %arg43: memref<32x16xf32, #tpu.memory_space<vmem>>, %arg44: memref<1x16xf32, #tpu.memory_space<vmem>>, %arg45: memref<1x16xf32, #tpu.memory_space<vmem>>, %arg46: memref<1x1xf32, #tpu.memory_space<vmem>>, %arg47: memref<1x128xf32, #tpu.memory_space<vmem>>, %arg48: memref<2x32xf32, #tpu.memory_space<vmem>>, %arg49: memref<16x32xf32, #tpu.memory_space<vmem>>, %arg50: memref<16x8xf32, #tpu.memory_space<vmem>>, %arg51: memref<2x16x40xf32, #tpu.memory_space<vmem>>, %arg52: memref<16x40xf32, #tpu.memory_space<vmem>>) attributes {dimension_semantics = [#tpu.dimension_semantics<arbitrary>, #tpu.dimension_semantics<arbitrary>], iteration_bounds = array<i64: 3, 1>, scalar_prefetch = 0 : i64, scratch_operands = 5 : i64, tpu.core_type = #tpu.core_type<tc>, window_params = [{transform_indices = @transform_0, window_bounds = array<i64: 128, 1>}, {transform_indices = @transform_1, window_bounds = array<i64: 128, 1>}, {transform_indices = @transform_2, window_bounds = array<i64: 128, 1>}, {transform_indices = @transform_3, window_bounds = array<i64: 128, 32>}, {transform_indices = @transform_4, window_bounds = array<i64: 128, 2>}, {pipeline_mode = #tpu.pipeline_mode<synchronous>, transform_indices = @transform_5, window_bounds = array<i64: 2, 32>}, {pipeline_mode = #tpu.pipeline_mode<synchronous>, transform_indices = @transform_6, window_bounds = array<i64: 16, 2>}, {pipeline_mode = #tpu.pipeline_mode<synchronous>, transform_indices = @transform_7, window_bounds = array<i64: 16, 8>}, {pipeline_mode = #tpu.pipeline_mode<synchronous>, transform_indices = @transform_8, window_bounds = array<i64: 16, 8>}, {pipeline_mode = #tpu.pipeline_mode<synchronous>, transform_indices = @transform_9, window_bounds = array<i64: 16, 1>}, {pipeline_mode = #tpu.pipeline_mode<synchronous>, transform_indices = @transform_10, window_bounds = array<i64: 32, 128>}, {pipeline_mode = #tpu.pipeline_mode<synchronous>, transform_indices = @transform_11, window_bounds = array<i64: 1, 128>}, {pipeline_mode = #tpu.pipeline_mode<synchronous>, transform_indices = @transform_12, window_bounds = array<i64: 128, 128>}, {pipeline_mode = #tpu.pipeline_mode<synchronous>, transform_indices = @transform_13, window_bounds = array<i64: 1, 128>}, {pipeline_mode = #tpu.pipeline_mode<synchronous>, transform_indices = @transform_14, window_bounds = array<i64: 128, 32>}, {pipeline_mode = #tpu.pipeline_mode<synchronous>, transform_indices = @transform_15, window_bounds = array<i64: 1, 32>}, {pipeline_mode = #tpu.pipeline_mode<synchronous>, transform_indices = @transform_16, window_bounds = array<i64: 1, 32>}, {pipeline_mode = #tpu.pipeline_mode<synchronous>, transform_indices = @transform_17, window_bounds = array<i64: 1, 32>}, {pipeline_mode = #tpu.pipeline_mode<synchronous>, transform_indices = @transform_18, window_bounds = array<i64: 32, 32>}, {pipeline_mode = #tpu.pipeline_mode<synchronous>, transform_indices = @transform_19, window_bounds = array<i64: 1, 32>}, {pipeline_mode = #tpu.pipeline_mode<synchronous>, transform_indices = @transform_20, window_bounds = array<i64: 40, 32>}, {pipeline_mode = #tpu.pipeline_mode<synchronous>, transform_indices = @transform_21, window_bounds = array<i64: 1, 32>}, {pipeline_mode = #tpu.pipeline_mode<synchronous>, transform_indices = @transform_22, window_bounds = array<i64: 2, 32, 64>}, {pipeline_mode = #tpu.pipeline_mode<synchronous>, transform_indices = @transform_23, window_bounds = array<i64: 2, 1, 32>}, {pipeline_mode = #tpu.pipeline_mode<synchronous>, transform_indices = @transform_24, window_bounds = array<i64: 2, 32, 32>}, {pipeline_mode = #tpu.pipeline_mode<synchronous>, transform_indices = @transform_25, window_bounds = array<i64: 2, 1, 32>}, {pipeline_mode = #tpu.pipeline_mode<synchronous>, transform_indices = @transform_26, window_bounds = array<i64: 2, 32, 32>}, {pipeline_mode = #tpu.pipeline_mode<synchronous>, transform_indices = @transform_27, window_bounds = array<i64: 2, 1, 32>}, {pipeline_mode = #tpu.pipeline_mode<synchronous>, transform_indices = @transform_28, window_bounds = array<i64: 2, 32, 1>}, {pipeline_mode = #tpu.pipeline_mode<synchronous>, transform_indices = @transform_29, window_bounds = array<i64: 2, 1, 1>}, {pipeline_mode = #tpu.pipeline_mode<synchronous>, transform_indices = @transform_30, window_bounds = array<i64: 2, 32, 32>}, {pipeline_mode = #tpu.pipeline_mode<synchronous>, transform_indices = @transform_31, window_bounds = array<i64: 2, 1, 32>}, {pipeline_mode = #tpu.pipeline_mode<synchronous>, transform_indices = @transform_32, window_bounds = array<i64: 2, 32, 1>}, {pipeline_mode = #tpu.pipeline_mode<synchronous>, transform_indices = @transform_33, window_bounds = array<i64: 2, 1, 1>}, {pipeline_mode = #tpu.pipeline_mode<synchronous>, transform_indices = @transform_34, window_bounds = array<i64: 2, 1, 1>}, {pipeline_mode = #tpu.pipeline_mode<synchronous>, transform_indices = @transform_35, window_bounds = array<i64: 2, 64, 64>}, {pipeline_mode = #tpu.pipeline_mode<synchronous>, transform_indices = @transform_36, window_bounds = array<i64: 2, 1, 64>}, {pipeline_mode = #tpu.pipeline_mode<synchronous>, transform_indices = @transform_37, window_bounds = array<i64: 2, 64, 32>}, {pipeline_mode = #tpu.pipeline_mode<synchronous>, transform_indices = @transform_38, window_bounds = array<i64: 2, 1, 32>}, {pipeline_mode = #tpu.pipeline_mode<synchronous>, transform_indices = @transform_39, window_bounds = array<i64: 64, 32>}, {pipeline_mode = #tpu.pipeline_mode<synchronous>, transform_indices = @transform_40, window_bounds = array<i64: 1, 32>}, {pipeline_mode = #tpu.pipeline_mode<synchronous>, transform_indices = @transform_41, window_bounds = array<i64: 32, 16>}, {pipeline_mode = #tpu.pipeline_mode<synchronous>, transform_indices = @transform_42, window_bounds = array<i64: 1, 16>}, {pipeline_mode = #tpu.pipeline_mode<synchronous>, transform_indices = @transform_43, window_bounds = array<i64: 1, 16>}, {pipeline_mode = #tpu.pipeline_mode<synchronous>, transform_indices = @transform_44, window_bounds = array<i64: 1, 1>}, {transform_indices = @transform_45, window_bounds = array<i64: 1, 128>}]} {
    %c0_i32 = arith.constant 0 : i32
    %0 = arith.cmpi eq, %arg0, %c0_i32 : i32
    %c0_i32_0 = arith.constant 0 : i32
    %1 = arith.cmpi eq, %arg1, %c0_i32_0 : i32
    %2 = arith.andi %0, %1 : i1
    %3 = arith.extui %2 : i1 to i32
    %c0_i32_1 = arith.constant 0 : i32
    %4 = arith.cmpi ne, %3, %c0_i32_1 : i32
    scf.if %4 {
      %c0 = arith.constant 0 : index
      %c0_11 = arith.constant 0 : index
      %21 = vector.load %arg7[%c0, %c0_11] : memref<2x32xf32, #tpu.memory_space<vmem>>, vector<2x32xf32>
      %c0_12 = arith.constant 0 : index
      %c0_13 = arith.constant 0 : index
      %22 = vector.load %arg12[%c0_12, %c0_13] : memref<32x128xf32, #tpu.memory_space<vmem>>, vector<32x128xf32>
      %cst = arith.constant dense<0.000000e+00> : vector<2x128xf32>
      %23 = tpu.matmul %21, %22, %cst {dimension_numbers = #tpu.dot_dimension_numbers<[1], [0], [0], [1], [0, 0, 1, 1], [], []>} : vector<2x32xf32>, vector<32x128xf32>, vector<2x128xf32> -> vector<2x128xf32>
      %c0_14 = arith.constant 0 : index
      %c0_15 = arith.constant 0 : index
      %24 = vector.load %arg13[%c0_14, %c0_15] : memref<1x128xf32, #tpu.memory_space<vmem>>, vector<1x128xf32>
      %25 = vector.broadcast %24 : vector<1x128xf32> to vector<2x128xf32>
      %26 = arith.addf %23, %25 : vector<2x128xf32>
      %cst_16 = arith.constant 0.000000e+00 : f32
      %27 = vector.broadcast %cst_16 : f32 to vector<2x128xf32>
      %28 = arith.maximumf %26, %27 : vector<2x128xf32>
      %c0_17 = arith.constant 0 : index
      %c0_18 = arith.constant 0 : index
      %29 = vector.load %arg14[%c0_17, %c0_18] : memref<128x128xf32, #tpu.memory_space<vmem>>, vector<128x128xf32>
      %cst_19 = arith.constant dense<0.000000e+00> : vector<2x128xf32>
      %30 = tpu.matmul %28, %29, %cst_19 {dimension_numbers = #tpu.dot_dimension_numbers<[1], [0], [0], [1], [0, 0, 1, 1], [], []>} : vector<2x128xf32>, vector<128x128xf32>, vector<2x128xf32> -> vector<2x128xf32>
      %c0_20 = arith.constant 0 : index
      %c0_21 = arith.constant 0 : index
      %31 = vector.load %arg15[%c0_20, %c0_21] : memref<1x128xf32, #tpu.memory_space<vmem>>, vector<1x128xf32>
      %32 = vector.broadcast %31 : vector<1x128xf32> to vector<2x128xf32>
      %33 = arith.addf %30, %32 : vector<2x128xf32>
      %cst_22 = arith.constant 0.000000e+00 : f32
      %34 = vector.broadcast %cst_22 : f32 to vector<2x128xf32>
      %35 = arith.maximumf %33, %34 : vector<2x128xf32>
      %c0_23 = arith.constant 0 : index
      %c0_24 = arith.constant 0 : index
      %36 = vector.load %arg16[%c0_23, %c0_24] : memref<128x32xf32, #tpu.memory_space<vmem>>, vector<128x32xf32>
      %cst_25 = arith.constant dense<0.000000e+00> : vector<2x32xf32>
      %37 = tpu.matmul %35, %36, %cst_25 {dimension_numbers = #tpu.dot_dimension_numbers<[1], [0], [0], [1], [0, 0, 1, 1], [], []>} : vector<2x128xf32>, vector<128x32xf32>, vector<2x32xf32> -> vector<2x32xf32>
      %c0_26 = arith.constant 0 : index
      %c0_27 = arith.constant 0 : index
      %38 = vector.load %arg17[%c0_26, %c0_27] : memref<1x32xf32, #tpu.memory_space<vmem>>, vector<1x32xf32>
      %39 = vector.broadcast %38 : vector<1x32xf32> to vector<2x32xf32>
      %40 = arith.addf %37, %39 : vector<2x32xf32>
      %c0_28 = arith.constant 0 : index
      %c0_29 = arith.constant 0 : index
      %41 = vector.load %arg48[%c0_28, %c0_29] : memref<2x32xf32, #tpu.memory_space<vmem>>, vector<2x32xf32>
      tpu.vector_store %arg48[%c0_28, %c0_29], %40 {strides = array<i32>} : memref<2x32xf32, #tpu.memory_space<vmem>>, vector<2x32xf32>,
      %c0_30 = arith.constant 0 : index
      %c0_31 = arith.constant 0 : index
      %42 = vector.load %arg8[%c0_30, %c0_31] : memref<16x2xf32, #tpu.memory_space<vmem>>, vector<16x2xf32>
      %cst_32 = arith.constant dense<0.000000e+00> : vector<16x32xf32>
      %43 = tpu.matmul %42, %40, %cst_32 {dimension_numbers = #tpu.dot_dimension_numbers<[1], [0], [0], [1], [0, 0, 1, 1], [], []>} : vector<16x2xf32>, vector<2x32xf32>, vector<16x32xf32> -> vector<16x32xf32>
      %c0_33 = arith.constant 0 : index
      %c0_34 = arith.constant 0 : index
      %44 = vector.load %arg9[%c0_33, %c0_34] : memref<16x8xf32, #tpu.memory_space<vmem>>, vector<16x8xf32>
      %45 = tpu.concatenate %44, %43 in 1 : vector<16x8xf32>, vector<16x32xf32> -> vector<16x40xf32>
      %c0_35 = arith.constant 0 : index
      %c0_36 = arith.constant 0 : index
      %46 = vector.load %arg22[%c0_35, %c0_36] : memref<40x32xf32, #tpu.memory_space<vmem>>, vector<40x32xf32>
      %cst_37 = arith.constant dense<0.000000e+00> : vector<16x32xf32>
      %47 = tpu.matmul %45, %46, %cst_37 {dimension_numbers = #tpu.dot_dimension_numbers<[1], [0], [0], [1], [0, 0, 1, 1], [], []>} : vector<16x40xf32>, vector<40x32xf32>, vector<16x32xf32> -> vector<16x32xf32>
      %c0_38 = arith.constant 0 : index
      %c0_39 = arith.constant 0 : index
      %48 = vector.load %arg23[%c0_38, %c0_39] : memref<1x32xf32, #tpu.memory_space<vmem>>, vector<1x32xf32>
      %49 = vector.broadcast %48 : vector<1x32xf32> to vector<16x32xf32>
      %50 = arith.addf %47, %49 : vector<16x32xf32>
      %c0_40 = arith.constant 0 : index
      %c0_41 = arith.constant 0 : index
      %51 = vector.load %arg49[%c0_40, %c0_41] : memref<16x32xf32, #tpu.memory_space<vmem>>, vector<16x32xf32>
      tpu.vector_store %arg49[%c0_40, %c0_41], %50 {strides = array<i32>} : memref<16x32xf32, #tpu.memory_space<vmem>>, vector<16x32xf32>,
      %c0_42 = arith.constant 0 : index
      %c0_43 = arith.constant 0 : index
      %52 = vector.load %arg10[%c0_42, %c0_43] : memref<16x8xf32, #tpu.memory_space<vmem>>, vector<16x8xf32>
      %c0_44 = arith.constant 0 : index
      %c0_45 = arith.constant 0 : index
      %53 = vector.load %arg50[%c0_44, %c0_45] : memref<16x8xf32, #tpu.memory_space<vmem>>, vector<16x8xf32>
      tpu.vector_store %arg50[%c0_44, %c0_45], %52 {strides = array<i32>} : memref<16x8xf32, #tpu.memory_space<vmem>>, vector<16x8xf32>,
    } else {
    }
    %c2_i32 = arith.constant 2 : i32
    %5 = arith.cmpi slt, %arg0, %c2_i32 : i32
    %c0_i32_2 = arith.constant 0 : i32
    %6 = arith.cmpi eq, %arg1, %c0_i32_2 : i32
    %7 = arith.andi %5, %6 : i1
    %8 = arith.extui %7 : i1 to i32
    %c0_i32_3 = arith.constant 0 : i32
    %9 = arith.cmpi ne, %8, %c0_i32_3 : i32
    scf.if %9 {
      %c0 = arith.constant 0 : index
      %c0_11 = arith.constant 0 : index
      %21 = vector.load %arg49[%c0, %c0_11] : memref<16x32xf32, #tpu.memory_space<vmem>>, vector<16x32xf32>
      %22 = arith.index_cast %arg0 : i32 to index
      %c0_12 = arith.constant 0 : index
      %c0_13 = arith.constant 0 : index
      %23 = vector.load %arg24[%22, %c0_12, %c0_13] : memref<2x32x64xf32, #tpu.memory_space<vmem>>, vector<1x32x64xf32>
      %24 = vector.shape_cast %23 : vector<1x32x64xf32> to vector<32x64xf32>
      %cst = arith.constant dense<0.000000e+00> : vector<16x64xf32>
      %25 = tpu.matmul %21, %24, %cst {dimension_numbers = #tpu.dot_dimension_numbers<[1], [0], [0], [1], [0, 0, 1, 1], [], []>} : vector<16x32xf32>, vector<32x64xf32>, vector<16x64xf32> -> vector<16x64xf32>
      %c0_14 = arith.constant 0 : index
      %c0_15 = arith.constant 0 : index
      %26 = vector.load %arg50[%c0_14, %c0_15] : memref<16x8xf32, #tpu.memory_space<vmem>>, vector<16x8xf32>
      %27 = vector.extract_strided_slice %25 {offsets = [0, 0], sizes = [16, 32], strides = [1, 1]} : vector<16x64xf32> to vector<16x32xf32>
      %28 = tpu.concatenate %27, %26 in 1 : vector<16x32xf32>, vector<16x8xf32> -> vector<16x40xf32>
      %c0_16 = arith.constant 0 : index
      %c0_17 = arith.constant 0 : index
      %c0_18 = arith.constant 0 : index
      %29 = vector.load %arg51[%c0_16, %c0_17, %c0_18] : memref<2x16x40xf32, #tpu.memory_space<vmem>>, vector<1x16x40xf32>
      %30 = vector.shape_cast %29 : vector<1x16x40xf32> to vector<16x40xf32>
      %31 = vector.shape_cast %28 : vector<16x40xf32> to vector<1x16x40xf32>
      tpu.vector_store %arg51[%c0_16, %c0_17, %c0_18], %31 {strides = array<i32>} : memref<2x16x40xf32, #tpu.memory_space<vmem>>, vector<1x16x40xf32>,
      %32 = vector.extract_strided_slice %25 {offsets = [0, 32], sizes = [16, 32], strides = [1, 1]} : vector<16x64xf32> to vector<16x32xf32>
      %33 = tpu.concatenate %32, %26 in 1 : vector<16x32xf32>, vector<16x8xf32> -> vector<16x40xf32>
      %c1 = arith.constant 1 : index
      %c0_19 = arith.constant 0 : index
      %c0_20 = arith.constant 0 : index
      %34 = vector.load %arg51[%c1, %c0_19, %c0_20] : memref<2x16x40xf32, #tpu.memory_space<vmem>>, vector<1x16x40xf32>
      %35 = vector.shape_cast %34 : vector<1x16x40xf32> to vector<16x40xf32>
      %36 = vector.shape_cast %33 : vector<16x40xf32> to vector<1x16x40xf32>
      tpu.vector_store %arg51[%c1, %c0_19, %c0_20], %36 {strides = array<i32>} : memref<2x16x40xf32, #tpu.memory_space<vmem>>, vector<1x16x40xf32>,
      %cst_21 = arith.constant 0.000000e+00 : f32
      %37 = vector.broadcast %cst_21 : f32 to vector<16x40xf32>
      %c0_22 = arith.constant 0 : index
      %c0_23 = arith.constant 0 : index
      %38 = vector.load %arg52[%c0_22, %c0_23] : memref<16x40xf32, #tpu.memory_space<vmem>>, vector<16x40xf32>
      tpu.vector_store %arg52[%c0_22, %c0_23], %37 {strides = array<i32>} : memref<16x40xf32, #tpu.memory_space<vmem>>, vector<16x40xf32>,
    } else {
    }
    %c2_i32_4 = arith.constant 2 : i32
    %10 = arith.cmpi slt, %arg0, %c2_i32_4 : i32
    %11 = arith.extui %10 : i1 to i32
    %c0_i32_5 = arith.constant 0 : i32
    %12 = arith.cmpi ne, %11, %c0_i32_5 : i32
    scf.if %12 {
      %c0 = arith.constant 0 : index
      %c0_11 = arith.constant 0 : index
      %21 = vector.load %arg2[%c0, %c0_11] : memref<128x1xi32, #tpu.memory_space<vmem>>, vector<128x1xi32>
      %22 = tpu.iota {dimensions = array<i32: 1>} : vector<128x16xi32>
      %23 = vector.broadcast %21 : vector<128x1xi32> to vector<128x16xi32>
      %24 = arith.cmpi eq, %23, %22 : vector<128x16xi32>
      %25 = arith.extui %24 : vector<128x16xi1> to vector<128x16xi32>
      %26 = arith.sitofp %25 : vector<128x16xi32> to vector<128x16xf32>
      %27 = arith.truncf %26 : vector<128x16xf32> to vector<128x16xbf16>
      %c0_12 = arith.constant 0 : index
      %c0_13 = arith.constant 0 : index
      %28 = vector.load %arg3[%c0_12, %c0_13] : memref<128x1xi32, #tpu.memory_space<vmem>>, vector<128x1xi32>
      %29 = tpu.iota {dimensions = array<i32: 1>} : vector<128x16xi32>
      %30 = vector.broadcast %28 : vector<128x1xi32> to vector<128x16xi32>
      %31 = arith.cmpi eq, %30, %29 : vector<128x16xi32>
      %32 = arith.extui %31 : vector<128x16xi1> to vector<128x16xi32>
      %33 = arith.sitofp %32 : vector<128x16xi32> to vector<128x16xf32>
      %34 = arith.truncf %33 : vector<128x16xf32> to vector<128x16xbf16>
      %c0_14 = arith.constant 0 : index
      %c0_15 = arith.constant 0 : index
      %c0_16 = arith.constant 0 : index
      %35 = vector.load %arg51[%c0_14, %c0_15, %c0_16] : memref<2x16x40xf32, #tpu.memory_space<vmem>>, vector<1x16x40xf32>
      %36 = vector.shape_cast %35 : vector<1x16x40xf32> to vector<16x40xf32>
      %37 = arith.truncf %36 : vector<16x40xf32> to vector<16x40xbf16>
      %cst = arith.constant dense<0.000000e+00> : vector<128x40xf32>
      %38 = tpu.matmul %27, %37, %cst {dimension_numbers = #tpu.dot_dimension_numbers<[1], [0], [0], [1], [0, 0, 1, 1], [], []>} : vector<128x16xbf16>, vector<16x40xbf16>, vector<128x40xf32> -> vector<128x40xf32>
      %c1 = arith.constant 1 : index
      %c0_17 = arith.constant 0 : index
      %c0_18 = arith.constant 0 : index
      %39 = vector.load %arg51[%c1, %c0_17, %c0_18] : memref<2x16x40xf32, #tpu.memory_space<vmem>>, vector<1x16x40xf32>
      %40 = vector.shape_cast %39 : vector<1x16x40xf32> to vector<16x40xf32>
      %41 = arith.truncf %40 : vector<16x40xf32> to vector<16x40xbf16>
      %cst_19 = arith.constant dense<0.000000e+00> : vector<128x40xf32>
      %42 = tpu.matmul %34, %41, %cst_19 {dimension_numbers = #tpu.dot_dimension_numbers<[1], [0], [0], [1], [0, 0, 1, 1], [], []>} : vector<128x16xbf16>, vector<16x40xbf16>, vector<128x40xf32> -> vector<128x40xf32>
      %43 = vector.extract_strided_slice %38 {offsets = [0, 32], sizes = [128, 8], strides = [1, 1]} : vector<128x40xf32> to vector<128x8xf32>
      %44 = vector.extract_strided_slice %42 {offsets = [0, 32], sizes = [128, 8], strides = [1, 1]} : vector<128x40xf32> to vector<128x8xf32>
      %45 = arith.subf %43, %44 : vector<128x8xf32>
      %46 = arith.mulf %45, %45 : vector<128x8xf32>
      %cst_20 = arith.constant dense<0.000000e+00> : vector<128xf32>
      %47 = vector.multi_reduction <add>, %46, %cst_20 [1] : vector<128x8xf32> to vector<128xf32>
      %48 = vector.shape_cast %47 : vector<128xf32> to vector<128x1xf32>
      %c0_21 = arith.constant 0 : index
      %c0_22 = arith.constant 0 : index
      %49 = vector.load %arg4[%c0_21, %c0_22] : memref<128x1xf32, #tpu.memory_space<vmem>>, vector<128x1xf32>
      %c0_23 = arith.constant 0 : index
      %c0_24 = arith.constant 0 : index
      %50 = vector.load %arg18[%c0_23, %c0_24] : memref<1x32xf32, #tpu.memory_space<vmem>>, vector<1x32xf32>
      %51 = vector.broadcast %49 : vector<128x1xf32> to vector<128x32xf32>
      %52 = vector.broadcast %50 : vector<1x32xf32> to vector<128x32xf32>
      %53 = arith.mulf %51, %52 : vector<128x32xf32>
      %c0_25 = arith.constant 0 : index
      %c0_26 = arith.constant 0 : index
      %54 = vector.load %arg19[%c0_25, %c0_26] : memref<1x32xf32, #tpu.memory_space<vmem>>, vector<1x32xf32>
      %55 = vector.broadcast %54 : vector<1x32xf32> to vector<128x32xf32>
      %56 = arith.addf %53, %55 : vector<128x32xf32>
      %cst_27 = arith.constant 0.000000e+00 : f32
      %57 = vector.broadcast %cst_27 : f32 to vector<128x32xf32>
      %58 = arith.maximumf %56, %57 : vector<128x32xf32>
      %c0_28 = arith.constant 0 : index
      %c0_29 = arith.constant 0 : index
      %59 = vector.load %arg20[%c0_28, %c0_29] : memref<32x32xf32, #tpu.memory_space<vmem>>, vector<32x32xf32>
      %60 = arith.truncf %58 : vector<128x32xf32> to vector<128x32xbf16>
      %61 = arith.truncf %59 : vector<32x32xf32> to vector<32x32xbf16>
      %cst_30 = arith.constant dense<0.000000e+00> : vector<128x32xf32>
      %62 = tpu.matmul %60, %61, %cst_30 {dimension_numbers = #tpu.dot_dimension_numbers<[1], [0], [0], [1], [0, 0, 1, 1], [], []>} : vector<128x32xbf16>, vector<32x32xbf16>, vector<128x32xf32> -> vector<128x32xf32>
      %c0_31 = arith.constant 0 : index
      %c0_32 = arith.constant 0 : index
      %63 = vector.load %arg21[%c0_31, %c0_32] : memref<1x32xf32, #tpu.memory_space<vmem>>, vector<1x32xf32>
      %64 = vector.broadcast %63 : vector<1x32xf32> to vector<128x32xf32>
      %65 = arith.addf %62, %64 : vector<128x32xf32>
      %c0_33 = arith.constant 0 : index
      %c0_34 = arith.constant 0 : index
      %66 = vector.load %arg6[%c0_33, %c0_34] : memref<128x2xf32, #tpu.memory_space<vmem>>, vector<128x2xf32>
      %c0_35 = arith.constant 0 : index
      %c0_36 = arith.constant 0 : index
      %67 = vector.load %arg48[%c0_35, %c0_36] : memref<2x32xf32, #tpu.memory_space<vmem>>, vector<2x32xf32>
      %cst_37 = arith.constant dense<0.000000e+00> : vector<128x32xf32>
      %68 = tpu.matmul %66, %67, %cst_37 {dimension_numbers = #tpu.dot_dimension_numbers<[1], [0], [0], [1], [0, 0, 1, 1], [], []>} : vector<128x2xf32>, vector<2x32xf32>, vector<128x32xf32> -> vector<128x32xf32>
      %c0_38 = arith.constant 0 : index
      %c0_39 = arith.constant 0 : index
      %69 = vector.load %arg5[%c0_38, %c0_39] : memref<128x32xbf16, #tpu.memory_space<vmem>>, vector<128x32xbf16>
      %70 = arith.extf %69 : vector<128x32xbf16> to vector<128x32xf32>
      %71 = arith.mulf %65, %70 : vector<128x32xf32>
      %72 = arith.addf %71, %68 : vector<128x32xf32>
      %73 = vector.extract_strided_slice %38 {offsets = [0, 0], sizes = [128, 32], strides = [1, 1]} : vector<128x40xf32> to vector<128x32xf32>
      %74 = vector.extract_strided_slice %42 {offsets = [0, 0], sizes = [128, 32], strides = [1, 1]} : vector<128x40xf32> to vector<128x32xf32>
      %75 = arith.addf %73, %74 : vector<128x32xf32>
      %76 = arith.index_cast %arg0 : i32 to index
      %c0_40 = arith.constant 0 : index
      %c0_41 = arith.constant 0 : index
      %77 = vector.load %arg25[%76, %c0_40, %c0_41] : memref<2x1x32xf32, #tpu.memory_space<vmem>>, vector<1x1x32xf32>
      %78 = vector.shape_cast %77 : vector<1x1x32xf32> to vector<1x32xf32>
      %79 = vector.broadcast %48 : vector<128x1xf32> to vector<128x32xf32>
      %80 = vector.broadcast %78 : vector<1x32xf32> to vector<128x32xf32>
      %81 = arith.mulf %79, %80 : vector<128x32xf32>
      %82 = arith.addf %75, %81 : vector<128x32xf32>
      %83 = arith.index_cast %arg0 : i32 to index
      %c0_42 = arith.constant 0 : index
      %c0_43 = arith.constant 0 : index
      %84 = vector.load %arg26[%83, %c0_42, %c0_43] : memref<2x32x32xf32, #tpu.memory_space<vmem>>, vector<1x32x32xf32>
      %85 = vector.shape_cast %84 : vector<1x32x32xf32> to vector<32x32xf32>
      %86 = arith.truncf %72 : vector<128x32xf32> to vector<128x32xbf16>
      %87 = arith.truncf %85 : vector<32x32xf32> to vector<32x32xbf16>
      %cst_44 = arith.constant dense<0.000000e+00> : vector<128x32xf32>
      %88 = tpu.matmul %86, %87, %cst_44 {dimension_numbers = #tpu.dot_dimension_numbers<[1], [0], [0], [1], [0, 0, 1, 1], [], []>} : vector<128x32xbf16>, vector<32x32xbf16>, vector<128x32xf32> -> vector<128x32xf32>
      %89 = arith.addf %82, %88 : vector<128x32xf32>
      %90 = arith.index_cast %arg0 : i32 to index
      %c0_45 = arith.constant 0 : index
      %c0_46 = arith.constant 0 : index
      %91 = vector.load %arg27[%90, %c0_45, %c0_46] : memref<2x1x32xf32, #tpu.memory_space<vmem>>, vector<1x1x32xf32>
      %92 = vector.shape_cast %91 : vector<1x1x32xf32> to vector<1x32xf32>
      %93 = vector.broadcast %92 : vector<1x32xf32> to vector<128x32xf32>
      %94 = arith.addf %89, %93 : vector<128x32xf32>
      %95 = arith.negf %94 : vector<128x32xf32>
      %96 = math.exp %95 : vector<128x32xf32>
      %cst_47 = arith.constant 1.000000e+00 : f32
      %97 = vector.broadcast %cst_47 : f32 to vector<128x32xf32>
      %98 = arith.addf %97, %96 : vector<128x32xf32>
      %99 = arith.divf %97, %98 : vector<128x32xf32>
      %100 = arith.mulf %94, %99 : vector<128x32xf32>
      %101 = arith.index_cast %arg0 : i32 to index
      %c0_48 = arith.constant 0 : index
      %c0_49 = arith.constant 0 : index
      %102 = vector.load %arg28[%101, %c0_48, %c0_49] : memref<2x32x32xf32, #tpu.memory_space<vmem>>, vector<1x32x32xf32>
      %103 = vector.shape_cast %102 : vector<1x32x32xf32> to vector<32x32xf32>
      %104 = arith.truncf %100 : vector<128x32xf32> to vector<128x32xbf16>
      %105 = arith.truncf %103 : vector<32x32xf32> to vector<32x32xbf16>
      %cst_50 = arith.constant dense<0.000000e+00> : vector<128x32xf32>
      %106 = tpu.matmul %104, %105, %cst_50 {dimension_numbers = #tpu.dot_dimension_numbers<[1], [0], [0], [1], [0, 0, 1, 1], [], []>} : vector<128x32xbf16>, vector<32x32xbf16>, vector<128x32xf32> -> vector<128x32xf32>
      %107 = arith.index_cast %arg0 : i32 to index
      %c0_51 = arith.constant 0 : index
      %c0_52 = arith.constant 0 : index
      %108 = vector.load %arg29[%107, %c0_51, %c0_52] : memref<2x1x32xf32, #tpu.memory_space<vmem>>, vector<1x1x32xf32>
      %109 = vector.shape_cast %108 : vector<1x1x32xf32> to vector<1x32xf32>
      %110 = vector.broadcast %109 : vector<1x32xf32> to vector<128x32xf32>
      %111 = arith.addf %106, %110 : vector<128x32xf32>
      %112 = arith.negf %111 : vector<128x32xf32>
      %113 = math.exp %112 : vector<128x32xf32>
      %cst_53 = arith.constant 1.000000e+00 : f32
      %114 = vector.broadcast %cst_53 : f32 to vector<128x32xf32>
      %115 = arith.addf %114, %113 : vector<128x32xf32>
      %116 = arith.divf %114, %115 : vector<128x32xf32>
      %117 = arith.mulf %111, %116 : vector<128x32xf32>
      %118 = arith.index_cast %arg0 : i32 to index
      %c0_54 = arith.constant 0 : index
      %c0_55 = arith.constant 0 : index
      %119 = vector.load %arg30[%118, %c0_54, %c0_55] : memref<2x32x1xf32, #tpu.memory_space<vmem>>, vector<1x32x1xf32>
      %120 = vector.shape_cast %119 : vector<1x32x1xf32> to vector<32x1xf32>
      %121 = arith.truncf %117 : vector<128x32xf32> to vector<128x32xbf16>
      %122 = arith.truncf %120 : vector<32x1xf32> to vector<32x1xbf16>
      %cst_56 = arith.constant dense<0.000000e+00> : vector<128x1xf32>
      %123 = tpu.matmul %121, %122, %cst_56 {dimension_numbers = #tpu.dot_dimension_numbers<[1], [0], [0], [1], [0, 0, 1, 1], [], []>} : vector<128x32xbf16>, vector<32x1xbf16>, vector<128x1xf32> -> vector<128x1xf32>
      %124 = arith.index_cast %arg0 : i32 to index
      %c0_57 = arith.constant 0 : index
      %c0_58 = arith.constant 0 : index
      %125 = vector.load %arg31[%124, %c0_57, %c0_58] : memref<2x1x1xf32, #tpu.memory_space<vmem>>, vector<1x1x1xf32>
      %126 = vector.shape_cast %125 : vector<1x1x1xf32> to vector<1x1xf32>
      %127 = vector.broadcast %126 : vector<1x1xf32> to vector<128x1xf32>
      %128 = arith.addf %123, %127 : vector<128x1xf32>
      %129 = arith.negf %128 : vector<128x1xf32>
      %130 = math.exp %129 : vector<128x1xf32>
      %cst_59 = arith.constant 1.000000e+00 : f32
      %131 = vector.broadcast %cst_59 : f32 to vector<128x1xf32>
      %132 = arith.addf %131, %130 : vector<128x1xf32>
      %133 = arith.divf %131, %132 : vector<128x1xf32>
      %134 = vector.broadcast %133 : vector<128x1xf32> to vector<128x32xf32>
      %135 = arith.mulf %117, %134 : vector<128x32xf32>
      %136 = arith.index_cast %arg0 : i32 to index
      %c0_60 = arith.constant 0 : index
      %c0_61 = arith.constant 0 : index
      %137 = vector.load %arg32[%136, %c0_60, %c0_61] : memref<2x32x32xf32, #tpu.memory_space<vmem>>, vector<1x32x32xf32>
      %138 = vector.shape_cast %137 : vector<1x32x32xf32> to vector<32x32xf32>
      %139 = arith.truncf %135 : vector<128x32xf32> to vector<128x32xbf16>
      %140 = arith.truncf %138 : vector<32x32xf32> to vector<32x32xbf16>
      %cst_62 = arith.constant dense<0.000000e+00> : vector<128x32xf32>
      %141 = tpu.matmul %139, %140, %cst_62 {dimension_numbers = #tpu.dot_dimension_numbers<[1], [0], [0], [1], [0, 0, 1, 1], [], []>} : vector<128x32xbf16>, vector<32x32xbf16>, vector<128x32xf32> -> vector<128x32xf32>
      %142 = arith.index_cast %arg0 : i32 to index
      %c0_63 = arith.constant 0 : index
      %c0_64 = arith.constant 0 : index
      %143 = vector.load %arg33[%142, %c0_63, %c0_64] : memref<2x1x32xf32, #tpu.memory_space<vmem>>, vector<1x1x32xf32>
      %144 = vector.shape_cast %143 : vector<1x1x32xf32> to vector<1x32xf32>
      %145 = vector.broadcast %144 : vector<1x32xf32> to vector<128x32xf32>
      %146 = arith.addf %141, %145 : vector<128x32xf32>
      %147 = arith.negf %146 : vector<128x32xf32>
      %148 = math.exp %147 : vector<128x32xf32>
      %cst_65 = arith.constant 1.000000e+00 : f32
      %149 = vector.broadcast %cst_65 : f32 to vector<128x32xf32>
      %150 = arith.addf %149, %148 : vector<128x32xf32>
      %151 = arith.divf %149, %150 : vector<128x32xf32>
      %152 = arith.mulf %146, %151 : vector<128x32xf32>
      %153 = arith.index_cast %arg0 : i32 to index
      %c0_66 = arith.constant 0 : index
      %c0_67 = arith.constant 0 : index
      %154 = vector.load %arg34[%153, %c0_66, %c0_67] : memref<2x32x1xf32, #tpu.memory_space<vmem>>, vector<1x32x1xf32>
      %155 = vector.shape_cast %154 : vector<1x32x1xf32> to vector<32x1xf32>
      %156 = arith.truncf %152 : vector<128x32xf32> to vector<128x32xbf16>
      %157 = arith.truncf %155 : vector<32x1xf32> to vector<32x1xbf16>
      %cst_68 = arith.constant dense<0.000000e+00> : vector<128x1xf32>
      %158 = tpu.matmul %156, %157, %cst_68 {dimension_numbers = #tpu.dot_dimension_numbers<[1], [0], [0], [1], [0, 0, 1, 1], [], []>} : vector<128x32xbf16>, vector<32x1xbf16>, vector<128x1xf32> -> vector<128x1xf32>
      %159 = arith.index_cast %arg0 : i32 to index
      %c0_69 = arith.constant 0 : index
      %c0_70 = arith.constant 0 : index
      %160 = vector.load %arg35[%159, %c0_69, %c0_70] : memref<2x1x1xf32, #tpu.memory_space<vmem>>, vector<1x1x1xf32>
      %161 = vector.shape_cast %160 : vector<1x1x1xf32> to vector<1x1xf32>
      %162 = vector.broadcast %161 : vector<1x1xf32> to vector<128x1xf32>
      %163 = arith.addf %158, %162 : vector<128x1xf32>
      %cst_71 = arith.constant 1.000000e-16 : f32
      %164 = vector.broadcast %cst_71 : f32 to vector<128x1xf32>
      %165 = arith.maximumf %48, %164 : vector<128x1xf32>
      %166 = math.rsqrt %165 : vector<128x1xf32>
      %167 = vector.broadcast %166 : vector<128x1xf32> to vector<128x8xf32>
      %168 = arith.mulf %45, %167 : vector<128x8xf32>
      %169 = arith.index_cast %arg0 : i32 to index
      %c0_72 = arith.constant 0 : index
      %c0_73 = arith.constant 0 : index
      %170 = vector.load %arg36[%169, %c0_72, %c0_73] : memref<2x1x1xf32, #tpu.memory_space<vmem>>, vector<1x1x1xf32>
      %171 = vector.shape_cast %170 : vector<1x1x1xf32> to vector<1x1xf32>
      %172 = vector.broadcast %171 : vector<1x1xf32> to vector<128x8xf32>
      %173 = arith.mulf %168, %172 : vector<128x8xf32>
      %174 = vector.broadcast %163 : vector<128x1xf32> to vector<128x8xf32>
      %175 = arith.mulf %173, %174 : vector<128x8xf32>
      %176 = tpu.concatenate %135, %175 in 1 : vector<128x32xf32>, vector<128x8xf32> -> vector<128x40xf32>
      %177 = arith.truncf %176 : vector<128x40xf32> to vector<128x40xbf16>
      %cst_74 = arith.constant dense<0.000000e+00> : vector<16x40xf32>
      %178 = tpu.matmul %27, %177, %cst_74 {dimension_numbers = #tpu.dot_dimension_numbers<[0], [0], [1], [1], [0, 1, 1, 1], [], []>} : vector<128x16xbf16>, vector<128x40xbf16>, vector<16x40xf32> -> vector<16x40xf32>
      %c0_75 = arith.constant 0 : index
      %c0_76 = arith.constant 0 : index
      %179 = vector.load %arg52[%c0_75, %c0_76] : memref<16x40xf32, #tpu.memory_space<vmem>>, vector<16x40xf32>
      %180 = arith.addf %179, %178 : vector<16x40xf32>
      %c0_77 = arith.constant 0 : index
      %c0_78 = arith.constant 0 : index
      %181 = vector.load %arg52[%c0_77, %c0_78] : memref<16x40xf32, #tpu.memory_space<vmem>>, vector<16x40xf32>
      tpu.vector_store %arg52[%c0_77, %c0_78], %180 {strides = array<i32>} : memref<16x40xf32, #tpu.memory_space<vmem>>, vector<16x40xf32>,
    } else {
    }
    %c2_i32_6 = arith.constant 2 : i32
    %13 = arith.cmpi slt, %arg0, %c2_i32_6 : i32
    %c0_i32_7 = arith.constant 0 : i32
    %14 = arith.cmpi eq, %arg1, %c0_i32_7 : i32
    %15 = arith.andi %13, %14 : i1
    %16 = arith.extui %15 : i1 to i32
    %c0_i32_8 = arith.constant 0 : i32
    %17 = arith.cmpi ne, %16, %c0_i32_8 : i32
    scf.if %17 {
      %c0 = arith.constant 0 : index
      %c0_11 = arith.constant 0 : index
      %21 = vector.load %arg52[%c0, %c0_11] : memref<16x40xf32, #tpu.memory_space<vmem>>, vector<16x40xf32>
      %c0_12 = arith.constant 0 : index
      %c0_13 = arith.constant 0 : index
      %22 = vector.load %arg49[%c0_12, %c0_13] : memref<16x32xf32, #tpu.memory_space<vmem>>, vector<16x32xf32>
      %23 = vector.extract_strided_slice %21 {offsets = [0, 0], sizes = [16, 32], strides = [1, 1]} : vector<16x40xf32> to vector<16x32xf32>
      %24 = tpu.concatenate %22, %23 in 1 : vector<16x32xf32>, vector<16x32xf32> -> vector<16x64xf32>
      %25 = arith.index_cast %arg0 : i32 to index
      %c0_14 = arith.constant 0 : index
      %c0_15 = arith.constant 0 : index
      %26 = vector.load %arg37[%25, %c0_14, %c0_15] : memref<2x64x64xf32, #tpu.memory_space<vmem>>, vector<1x64x64xf32>
      %27 = vector.shape_cast %26 : vector<1x64x64xf32> to vector<64x64xf32>
      %cst = arith.constant dense<0.000000e+00> : vector<16x64xf32>
      %28 = tpu.matmul %24, %27, %cst {dimension_numbers = #tpu.dot_dimension_numbers<[1], [0], [0], [1], [0, 0, 1, 1], [], []>} : vector<16x64xf32>, vector<64x64xf32>, vector<16x64xf32> -> vector<16x64xf32>
      %29 = arith.index_cast %arg0 : i32 to index
      %c0_16 = arith.constant 0 : index
      %c0_17 = arith.constant 0 : index
      %30 = vector.load %arg38[%29, %c0_16, %c0_17] : memref<2x1x64xf32, #tpu.memory_space<vmem>>, vector<1x1x64xf32>
      %31 = vector.shape_cast %30 : vector<1x1x64xf32> to vector<1x64xf32>
      %32 = vector.broadcast %31 : vector<1x64xf32> to vector<16x64xf32>
      %33 = arith.addf %28, %32 : vector<16x64xf32>
      %34 = arith.negf %33 : vector<16x64xf32>
      %35 = math.exp %34 : vector<16x64xf32>
      %cst_18 = arith.constant 1.000000e+00 : f32
      %36 = vector.broadcast %cst_18 : f32 to vector<16x64xf32>
      %37 = arith.addf %36, %35 : vector<16x64xf32>
      %38 = arith.divf %36, %37 : vector<16x64xf32>
      %39 = arith.mulf %33, %38 : vector<16x64xf32>
      %40 = arith.index_cast %arg0 : i32 to index
      %c0_19 = arith.constant 0 : index
      %c0_20 = arith.constant 0 : index
      %41 = vector.load %arg39[%40, %c0_19, %c0_20] : memref<2x64x32xf32, #tpu.memory_space<vmem>>, vector<1x64x32xf32>
      %42 = vector.shape_cast %41 : vector<1x64x32xf32> to vector<64x32xf32>
      %cst_21 = arith.constant dense<0.000000e+00> : vector<16x32xf32>
      %43 = tpu.matmul %39, %42, %cst_21 {dimension_numbers = #tpu.dot_dimension_numbers<[1], [0], [0], [1], [0, 0, 1, 1], [], []>} : vector<16x64xf32>, vector<64x32xf32>, vector<16x32xf32> -> vector<16x32xf32>
      %44 = arith.addf %22, %43 : vector<16x32xf32>
      %45 = arith.index_cast %arg0 : i32 to index
      %c0_22 = arith.constant 0 : index
      %c0_23 = arith.constant 0 : index
      %46 = vector.load %arg40[%45, %c0_22, %c0_23] : memref<2x1x32xf32, #tpu.memory_space<vmem>>, vector<1x1x32xf32>
      %47 = vector.shape_cast %46 : vector<1x1x32xf32> to vector<1x32xf32>
      %48 = vector.broadcast %47 : vector<1x32xf32> to vector<16x32xf32>
      %49 = arith.addf %44, %48 : vector<16x32xf32>
      %c0_24 = arith.constant 0 : index
      %c0_25 = arith.constant 0 : index
      %50 = vector.load %arg49[%c0_24, %c0_25] : memref<16x32xf32, #tpu.memory_space<vmem>>, vector<16x32xf32>
      tpu.vector_store %arg49[%c0_24, %c0_25], %49 {strides = array<i32>} : memref<16x32xf32, #tpu.memory_space<vmem>>, vector<16x32xf32>,
      %c0_26 = arith.constant 0 : index
      %c0_27 = arith.constant 0 : index
      %51 = vector.load %arg50[%c0_26, %c0_27] : memref<16x8xf32, #tpu.memory_space<vmem>>, vector<16x8xf32>
      %52 = vector.extract_strided_slice %21 {offsets = [0, 32], sizes = [16, 8], strides = [1, 1]} : vector<16x40xf32> to vector<16x8xf32>
      %c0_28 = arith.constant 0 : index
      %c0_29 = arith.constant 0 : index
      %53 = vector.load %arg11[%c0_28, %c0_29] : memref<16x1xf32, #tpu.memory_space<vmem>>, vector<16x1xf32>
      %54 = vector.broadcast %53 : vector<16x1xf32> to vector<16x8xf32>
      %55 = arith.mulf %52, %54 : vector<16x8xf32>
      %56 = arith.addf %51, %55 : vector<16x8xf32>
      %c0_30 = arith.constant 0 : index
      %c0_31 = arith.constant 0 : index
      %57 = vector.load %arg50[%c0_30, %c0_31] : memref<16x8xf32, #tpu.memory_space<vmem>>, vector<16x8xf32>
      tpu.vector_store %arg50[%c0_30, %c0_31], %56 {strides = array<i32>} : memref<16x8xf32, #tpu.memory_space<vmem>>, vector<16x8xf32>,
    } else {
    }
    %c2_i32_9 = arith.constant 2 : i32
    %18 = arith.cmpi eq, %arg0, %c2_i32_9 : i32
    %19 = arith.extui %18 : i1 to i32
    %c0_i32_10 = arith.constant 0 : i32
    %20 = arith.cmpi ne, %19, %c0_i32_10 : i32
    scf.if %20 {
      %c0 = arith.constant 0 : index
      %c0_11 = arith.constant 0 : index
      %21 = vector.load %arg2[%c0, %c0_11] : memref<128x1xi32, #tpu.memory_space<vmem>>, vector<128x1xi32>
      %22 = tpu.iota {dimensions = array<i32: 1>} : vector<128x16xi32>
      %23 = vector.broadcast %21 : vector<128x1xi32> to vector<128x16xi32>
      %24 = arith.cmpi eq, %23, %22 : vector<128x16xi32>
      %25 = arith.extui %24 : vector<128x16xi1> to vector<128x16xi32>
      %26 = arith.sitofp %25 : vector<128x16xi32> to vector<128x16xf32>
      %27 = arith.truncf %26 : vector<128x16xf32> to vector<128x16xbf16>
      %c0_12 = arith.constant 0 : index
      %c0_13 = arith.constant 0 : index
      %28 = vector.load %arg3[%c0_12, %c0_13] : memref<128x1xi32, #tpu.memory_space<vmem>>, vector<128x1xi32>
      %29 = tpu.iota {dimensions = array<i32: 1>} : vector<128x16xi32>
      %30 = vector.broadcast %28 : vector<128x1xi32> to vector<128x16xi32>
      %31 = arith.cmpi eq, %30, %29 : vector<128x16xi32>
      %32 = arith.extui %31 : vector<128x16xi1> to vector<128x16xi32>
      %33 = arith.sitofp %32 : vector<128x16xi32> to vector<128x16xf32>
      %34 = arith.truncf %33 : vector<128x16xf32> to vector<128x16xbf16>
      %c0_14 = arith.constant 0 : index
      %c0_15 = arith.constant 0 : index
      %35 = vector.load %arg49[%c0_14, %c0_15] : memref<16x32xf32, #tpu.memory_space<vmem>>, vector<16x32xf32>
      %36 = arith.truncf %35 : vector<16x32xf32> to vector<16x32xbf16>
      %cst = arith.constant dense<0.000000e+00> : vector<128x32xf32>
      %37 = tpu.matmul %27, %36, %cst {dimension_numbers = #tpu.dot_dimension_numbers<[1], [0], [0], [1], [0, 0, 1, 1], [], []>} : vector<128x16xbf16>, vector<16x32xbf16>, vector<128x32xf32> -> vector<128x32xf32>
      %cst_16 = arith.constant dense<0.000000e+00> : vector<128x32xf32>
      %38 = tpu.matmul %34, %36, %cst_16 {dimension_numbers = #tpu.dot_dimension_numbers<[1], [0], [0], [1], [0, 0, 1, 1], [], []>} : vector<128x16xbf16>, vector<16x32xbf16>, vector<128x32xf32> -> vector<128x32xf32>
      %c0_17 = arith.constant 0 : index
      %c0_18 = arith.constant 0 : index
      %39 = vector.load %arg4[%c0_17, %c0_18] : memref<128x1xf32, #tpu.memory_space<vmem>>, vector<128x1xf32>
      %c0_19 = arith.constant 0 : index
      %c0_20 = arith.constant 0 : index
      %40 = vector.load %arg18[%c0_19, %c0_20] : memref<1x32xf32, #tpu.memory_space<vmem>>, vector<1x32xf32>
      %41 = vector.broadcast %39 : vector<128x1xf32> to vector<128x32xf32>
      %42 = vector.broadcast %40 : vector<1x32xf32> to vector<128x32xf32>
      %43 = arith.mulf %41, %42 : vector<128x32xf32>
      %c0_21 = arith.constant 0 : index
      %c0_22 = arith.constant 0 : index
      %44 = vector.load %arg19[%c0_21, %c0_22] : memref<1x32xf32, #tpu.memory_space<vmem>>, vector<1x32xf32>
      %45 = vector.broadcast %44 : vector<1x32xf32> to vector<128x32xf32>
      %46 = arith.addf %43, %45 : vector<128x32xf32>
      %cst_23 = arith.constant 0.000000e+00 : f32
      %47 = vector.broadcast %cst_23 : f32 to vector<128x32xf32>
      %48 = arith.maximumf %46, %47 : vector<128x32xf32>
      %c0_24 = arith.constant 0 : index
      %c0_25 = arith.constant 0 : index
      %49 = vector.load %arg20[%c0_24, %c0_25] : memref<32x32xf32, #tpu.memory_space<vmem>>, vector<32x32xf32>
      %50 = arith.truncf %48 : vector<128x32xf32> to vector<128x32xbf16>
      %51 = arith.truncf %49 : vector<32x32xf32> to vector<32x32xbf16>
      %cst_26 = arith.constant dense<0.000000e+00> : vector<128x32xf32>
      %52 = tpu.matmul %50, %51, %cst_26 {dimension_numbers = #tpu.dot_dimension_numbers<[1], [0], [0], [1], [0, 0, 1, 1], [], []>} : vector<128x32xbf16>, vector<32x32xbf16>, vector<128x32xf32> -> vector<128x32xf32>
      %c0_27 = arith.constant 0 : index
      %c0_28 = arith.constant 0 : index
      %53 = vector.load %arg21[%c0_27, %c0_28] : memref<1x32xf32, #tpu.memory_space<vmem>>, vector<1x32xf32>
      %54 = vector.broadcast %53 : vector<1x32xf32> to vector<128x32xf32>
      %55 = arith.addf %52, %54 : vector<128x32xf32>
      %c0_29 = arith.constant 0 : index
      %c0_30 = arith.constant 0 : index
      %56 = vector.load %arg6[%c0_29, %c0_30] : memref<128x2xf32, #tpu.memory_space<vmem>>, vector<128x2xf32>
      %c0_31 = arith.constant 0 : index
      %c0_32 = arith.constant 0 : index
      %57 = vector.load %arg48[%c0_31, %c0_32] : memref<2x32xf32, #tpu.memory_space<vmem>>, vector<2x32xf32>
      %cst_33 = arith.constant dense<0.000000e+00> : vector<128x32xf32>
      %58 = tpu.matmul %56, %57, %cst_33 {dimension_numbers = #tpu.dot_dimension_numbers<[1], [0], [0], [1], [0, 0, 1, 1], [], []>} : vector<128x2xf32>, vector<2x32xf32>, vector<128x32xf32> -> vector<128x32xf32>
      %c0_34 = arith.constant 0 : index
      %c0_35 = arith.constant 0 : index
      %59 = vector.load %arg5[%c0_34, %c0_35] : memref<128x32xbf16, #tpu.memory_space<vmem>>, vector<128x32xbf16>
      %60 = arith.extf %59 : vector<128x32xbf16> to vector<128x32xf32>
      %61 = arith.mulf %55, %60 : vector<128x32xf32>
      %62 = arith.addf %61, %58 : vector<128x32xf32>
      %63 = arith.mulf %37, %38 : vector<128x32xf32>
      %64 = tpu.concatenate %63, %62 in 1 : vector<128x32xf32>, vector<128x32xf32> -> vector<128x64xf32>
      %c0_36 = arith.constant 0 : index
      %c0_37 = arith.constant 0 : index
      %65 = vector.load %arg41[%c0_36, %c0_37] : memref<64x32xf32, #tpu.memory_space<vmem>>, vector<64x32xf32>
      %66 = arith.truncf %64 : vector<128x64xf32> to vector<128x64xbf16>
      %67 = arith.truncf %65 : vector<64x32xf32> to vector<64x32xbf16>
      %cst_38 = arith.constant dense<0.000000e+00> : vector<128x32xf32>
      %68 = tpu.matmul %66, %67, %cst_38 {dimension_numbers = #tpu.dot_dimension_numbers<[1], [0], [0], [1], [0, 0, 1, 1], [], []>} : vector<128x64xbf16>, vector<64x32xbf16>, vector<128x32xf32> -> vector<128x32xf32>
      %c0_39 = arith.constant 0 : index
      %c0_40 = arith.constant 0 : index
      %69 = vector.load %arg42[%c0_39, %c0_40] : memref<1x32xf32, #tpu.memory_space<vmem>>, vector<1x32xf32>
      %70 = vector.broadcast %69 : vector<1x32xf32> to vector<128x32xf32>
      %71 = arith.addf %68, %70 : vector<128x32xf32>
      %cst_41 = arith.constant 0.000000e+00 : f32
      %72 = vector.broadcast %cst_41 : f32 to vector<128x32xf32>
      %73 = arith.maximumf %71, %72 : vector<128x32xf32>
      %c0_42 = arith.constant 0 : index
      %c0_43 = arith.constant 0 : index
      %74 = vector.load %arg43[%c0_42, %c0_43] : memref<32x16xf32, #tpu.memory_space<vmem>>, vector<32x16xf32>
      %75 = arith.truncf %73 : vector<128x32xf32> to vector<128x32xbf16>
      %76 = arith.truncf %74 : vector<32x16xf32> to vector<32x16xbf16>
      %cst_44 = arith.constant dense<0.000000e+00> : vector<128x16xf32>
      %77 = tpu.matmul %75, %76, %cst_44 {dimension_numbers = #tpu.dot_dimension_numbers<[1], [0], [0], [1], [0, 0, 1, 1], [], []>} : vector<128x32xbf16>, vector<32x16xbf16>, vector<128x16xf32> -> vector<128x16xf32>
      %c0_45 = arith.constant 0 : index
      %c0_46 = arith.constant 0 : index
      %78 = vector.load %arg44[%c0_45, %c0_46] : memref<1x16xf32, #tpu.memory_space<vmem>>, vector<1x16xf32>
      %79 = vector.broadcast %78 : vector<1x16xf32> to vector<128x16xf32>
      %80 = arith.addf %77, %79 : vector<128x16xf32>
      %cst_47 = arith.constant 0.000000e+00 : f32
      %81 = vector.broadcast %cst_47 : f32 to vector<128x16xf32>
      %82 = arith.maximumf %80, %81 : vector<128x16xf32>
      %c0_48 = arith.constant 0 : index
      %c0_49 = arith.constant 0 : index
      %83 = vector.load %arg45[%c0_48, %c0_49] : memref<1x16xf32, #tpu.memory_space<vmem>>, vector<1x16xf32>
      %84 = arith.truncf %83 : vector<1x16xf32> to vector<1x16xbf16>
      %85 = arith.truncf %82 : vector<128x16xf32> to vector<128x16xbf16>
      %cst_50 = arith.constant dense<0.000000e+00> : vector<1x128xf32>
      %86 = tpu.matmul %84, %85, %cst_50 {dimension_numbers = #tpu.dot_dimension_numbers<[1], [1], [0], [0], [0, 0, 1, 0], [], []>} : vector<1x16xbf16>, vector<128x16xbf16>, vector<1x128xf32> -> vector<1x128xf32>
      %c0_51 = arith.constant 0 : index
      %c0_52 = arith.constant 0 : index
      %87 = vector.load %arg46[%c0_51, %c0_52] : memref<1x1xf32, #tpu.memory_space<vmem>>, vector<1x1xf32>
      %88 = vector.broadcast %87 : vector<1x1xf32> to vector<1x128xf32>
      %89 = arith.addf %86, %88 : vector<1x128xf32>
      %c0_53 = arith.constant 0 : index
      %c0_54 = arith.constant 0 : index
      %90 = vector.load %arg47[%c0_53, %c0_54] : memref<1x128xf32, #tpu.memory_space<vmem>>, vector<1x128xf32>
      tpu.vector_store %arg47[%c0_53, %c0_54], %89 {strides = array<i32>} : memref<1x128xf32, #tpu.memory_space<vmem>>, vector<1x128xf32>,
    } else {
    }
    return
  }
  func.func @transform_0(%arg0: i32, %arg1: i32) -> (i32, i32) {
    %c0_i32 = arith.constant 0 : i32
    %c0_i32_0 = arith.constant 0 : i32
    return %arg1, %c0_i32 : i32, i32
  }
  func.func @transform_1(%arg0: i32, %arg1: i32) -> (i32, i32) {
    %c0_i32 = arith.constant 0 : i32
    %c0_i32_0 = arith.constant 0 : i32
    return %arg1, %c0_i32 : i32, i32
  }
  func.func @transform_2(%arg0: i32, %arg1: i32) -> (i32, i32) {
    %c0_i32 = arith.constant 0 : i32
    %c0_i32_0 = arith.constant 0 : i32
    return %arg1, %c0_i32 : i32, i32
  }
  func.func @transform_3(%arg0: i32, %arg1: i32) -> (i32, i32) {
    %c0_i32 = arith.constant 0 : i32
    %c0_i32_0 = arith.constant 0 : i32
    return %arg1, %c0_i32 : i32, i32
  }
  func.func @transform_4(%arg0: i32, %arg1: i32) -> (i32, i32) {
    %c0_i32 = arith.constant 0 : i32
    %c0_i32_0 = arith.constant 0 : i32
    return %arg1, %c0_i32 : i32, i32
  }
  func.func @transform_5(%arg0: i32, %arg1: i32) -> (i32, i32) {
    %c0_i32 = arith.constant 0 : i32
    %c0_i32_0 = arith.constant 0 : i32
    %c0_i32_1 = arith.constant 0 : i32
    return %c0_i32, %c0_i32_0 : i32, i32
  }
  func.func @transform_6(%arg0: i32, %arg1: i32) -> (i32, i32) {
    %c0_i32 = arith.constant 0 : i32
    %c0_i32_0 = arith.constant 0 : i32
    %c0_i32_1 = arith.constant 0 : i32
    return %c0_i32, %c0_i32_0 : i32, i32
  }
  func.func @transform_7(%arg0: i32, %arg1: i32) -> (i32, i32) {
    %c0_i32 = arith.constant 0 : i32
    %c0_i32_0 = arith.constant 0 : i32
    %c0_i32_1 = arith.constant 0 : i32
    return %c0_i32, %c0_i32_0 : i32, i32
  }
  func.func @transform_8(%arg0: i32, %arg1: i32) -> (i32, i32) {
    %c0_i32 = arith.constant 0 : i32
    %c0_i32_0 = arith.constant 0 : i32
    %c0_i32_1 = arith.constant 0 : i32
    return %c0_i32, %c0_i32_0 : i32, i32
  }
  func.func @transform_9(%arg0: i32, %arg1: i32) -> (i32, i32) {
    %c0_i32 = arith.constant 0 : i32
    %c0_i32_0 = arith.constant 0 : i32
    %c0_i32_1 = arith.constant 0 : i32
    return %c0_i32, %c0_i32_0 : i32, i32
  }
  func.func @transform_10(%arg0: i32, %arg1: i32) -> (i32, i32) {
    %c0_i32 = arith.constant 0 : i32
    %c0_i32_0 = arith.constant 0 : i32
    %c0_i32_1 = arith.constant 0 : i32
    return %c0_i32, %c0_i32_0 : i32, i32
  }
  func.func @transform_11(%arg0: i32, %arg1: i32) -> (i32, i32) {
    %c0_i32 = arith.constant 0 : i32
    %c0_i32_0 = arith.constant 0 : i32
    %c0_i32_1 = arith.constant 0 : i32
    return %c0_i32, %c0_i32_0 : i32, i32
  }
  func.func @transform_12(%arg0: i32, %arg1: i32) -> (i32, i32) {
    %c0_i32 = arith.constant 0 : i32
    %c0_i32_0 = arith.constant 0 : i32
    %c0_i32_1 = arith.constant 0 : i32
    return %c0_i32, %c0_i32_0 : i32, i32
  }
  func.func @transform_13(%arg0: i32, %arg1: i32) -> (i32, i32) {
    %c0_i32 = arith.constant 0 : i32
    %c0_i32_0 = arith.constant 0 : i32
    %c0_i32_1 = arith.constant 0 : i32
    return %c0_i32, %c0_i32_0 : i32, i32
  }
  func.func @transform_14(%arg0: i32, %arg1: i32) -> (i32, i32) {
    %c0_i32 = arith.constant 0 : i32
    %c0_i32_0 = arith.constant 0 : i32
    %c0_i32_1 = arith.constant 0 : i32
    return %c0_i32, %c0_i32_0 : i32, i32
  }
  func.func @transform_15(%arg0: i32, %arg1: i32) -> (i32, i32) {
    %c0_i32 = arith.constant 0 : i32
    %c0_i32_0 = arith.constant 0 : i32
    %c0_i32_1 = arith.constant 0 : i32
    return %c0_i32, %c0_i32_0 : i32, i32
  }
  func.func @transform_16(%arg0: i32, %arg1: i32) -> (i32, i32) {
    %c0_i32 = arith.constant 0 : i32
    %c0_i32_0 = arith.constant 0 : i32
    %c0_i32_1 = arith.constant 0 : i32
    return %c0_i32, %c0_i32_0 : i32, i32
  }
  func.func @transform_17(%arg0: i32, %arg1: i32) -> (i32, i32) {
    %c0_i32 = arith.constant 0 : i32
    %c0_i32_0 = arith.constant 0 : i32
    %c0_i32_1 = arith.constant 0 : i32
    return %c0_i32, %c0_i32_0 : i32, i32
  }
  func.func @transform_18(%arg0: i32, %arg1: i32) -> (i32, i32) {
    %c0_i32 = arith.constant 0 : i32
    %c0_i32_0 = arith.constant 0 : i32
    %c0_i32_1 = arith.constant 0 : i32
    return %c0_i32, %c0_i32_0 : i32, i32
  }
  func.func @transform_19(%arg0: i32, %arg1: i32) -> (i32, i32) {
    %c0_i32 = arith.constant 0 : i32
    %c0_i32_0 = arith.constant 0 : i32
    %c0_i32_1 = arith.constant 0 : i32
    return %c0_i32, %c0_i32_0 : i32, i32
  }
  func.func @transform_20(%arg0: i32, %arg1: i32) -> (i32, i32) {
    %c0_i32 = arith.constant 0 : i32
    %c0_i32_0 = arith.constant 0 : i32
    %c0_i32_1 = arith.constant 0 : i32
    return %c0_i32, %c0_i32_0 : i32, i32
  }
  func.func @transform_21(%arg0: i32, %arg1: i32) -> (i32, i32) {
    %c0_i32 = arith.constant 0 : i32
    %c0_i32_0 = arith.constant 0 : i32
    %c0_i32_1 = arith.constant 0 : i32
    return %c0_i32, %c0_i32_0 : i32, i32
  }
  func.func @transform_22(%arg0: i32, %arg1: i32) -> (i32, i32, i32) {
    %c0_i32 = arith.constant 0 : i32
    %c0_i32_0 = arith.constant 0 : i32
    %c0_i32_1 = arith.constant 0 : i32
    %c0_i32_2 = arith.constant 0 : i32
    return %c0_i32, %c0_i32_0, %c0_i32_1 : i32, i32, i32
  }
  func.func @transform_23(%arg0: i32, %arg1: i32) -> (i32, i32, i32) {
    %c0_i32 = arith.constant 0 : i32
    %c0_i32_0 = arith.constant 0 : i32
    %c0_i32_1 = arith.constant 0 : i32
    %c0_i32_2 = arith.constant 0 : i32
    return %c0_i32, %c0_i32_0, %c0_i32_1 : i32, i32, i32
  }
  func.func @transform_24(%arg0: i32, %arg1: i32) -> (i32, i32, i32) {
    %c0_i32 = arith.constant 0 : i32
    %c0_i32_0 = arith.constant 0 : i32
    %c0_i32_1 = arith.constant 0 : i32
    %c0_i32_2 = arith.constant 0 : i32
    return %c0_i32, %c0_i32_0, %c0_i32_1 : i32, i32, i32
  }
  func.func @transform_25(%arg0: i32, %arg1: i32) -> (i32, i32, i32) {
    %c0_i32 = arith.constant 0 : i32
    %c0_i32_0 = arith.constant 0 : i32
    %c0_i32_1 = arith.constant 0 : i32
    %c0_i32_2 = arith.constant 0 : i32
    return %c0_i32, %c0_i32_0, %c0_i32_1 : i32, i32, i32
  }
  func.func @transform_26(%arg0: i32, %arg1: i32) -> (i32, i32, i32) {
    %c0_i32 = arith.constant 0 : i32
    %c0_i32_0 = arith.constant 0 : i32
    %c0_i32_1 = arith.constant 0 : i32
    %c0_i32_2 = arith.constant 0 : i32
    return %c0_i32, %c0_i32_0, %c0_i32_1 : i32, i32, i32
  }
  func.func @transform_27(%arg0: i32, %arg1: i32) -> (i32, i32, i32) {
    %c0_i32 = arith.constant 0 : i32
    %c0_i32_0 = arith.constant 0 : i32
    %c0_i32_1 = arith.constant 0 : i32
    %c0_i32_2 = arith.constant 0 : i32
    return %c0_i32, %c0_i32_0, %c0_i32_1 : i32, i32, i32
  }
  func.func @transform_28(%arg0: i32, %arg1: i32) -> (i32, i32, i32) {
    %c0_i32 = arith.constant 0 : i32
    %c0_i32_0 = arith.constant 0 : i32
    %c0_i32_1 = arith.constant 0 : i32
    %c0_i32_2 = arith.constant 0 : i32
    return %c0_i32, %c0_i32_0, %c0_i32_1 : i32, i32, i32
  }
  func.func @transform_29(%arg0: i32, %arg1: i32) -> (i32, i32, i32) {
    %c0_i32 = arith.constant 0 : i32
    %c0_i32_0 = arith.constant 0 : i32
    %c0_i32_1 = arith.constant 0 : i32
    %c0_i32_2 = arith.constant 0 : i32
    return %c0_i32, %c0_i32_0, %c0_i32_1 : i32, i32, i32
  }
  func.func @transform_30(%arg0: i32, %arg1: i32) -> (i32, i32, i32) {
    %c0_i32 = arith.constant 0 : i32
    %c0_i32_0 = arith.constant 0 : i32
    %c0_i32_1 = arith.constant 0 : i32
    %c0_i32_2 = arith.constant 0 : i32
    return %c0_i32, %c0_i32_0, %c0_i32_1 : i32, i32, i32
  }
  func.func @transform_31(%arg0: i32, %arg1: i32) -> (i32, i32, i32) {
    %c0_i32 = arith.constant 0 : i32
    %c0_i32_0 = arith.constant 0 : i32
    %c0_i32_1 = arith.constant 0 : i32
    %c0_i32_2 = arith.constant 0 : i32
    return %c0_i32, %c0_i32_0, %c0_i32_1 : i32, i32, i32
  }
  func.func @transform_32(%arg0: i32, %arg1: i32) -> (i32, i32, i32) {
    %c0_i32 = arith.constant 0 : i32
    %c0_i32_0 = arith.constant 0 : i32
    %c0_i32_1 = arith.constant 0 : i32
    %c0_i32_2 = arith.constant 0 : i32
    return %c0_i32, %c0_i32_0, %c0_i32_1 : i32, i32, i32
  }
  func.func @transform_33(%arg0: i32, %arg1: i32) -> (i32, i32, i32) {
    %c0_i32 = arith.constant 0 : i32
    %c0_i32_0 = arith.constant 0 : i32
    %c0_i32_1 = arith.constant 0 : i32
    %c0_i32_2 = arith.constant 0 : i32
    return %c0_i32, %c0_i32_0, %c0_i32_1 : i32, i32, i32
  }
  func.func @transform_34(%arg0: i32, %arg1: i32) -> (i32, i32, i32) {
    %c0_i32 = arith.constant 0 : i32
    %c0_i32_0 = arith.constant 0 : i32
    %c0_i32_1 = arith.constant 0 : i32
    %c0_i32_2 = arith.constant 0 : i32
    return %c0_i32, %c0_i32_0, %c0_i32_1 : i32, i32, i32
  }
  func.func @transform_35(%arg0: i32, %arg1: i32) -> (i32, i32, i32) {
    %c0_i32 = arith.constant 0 : i32
    %c0_i32_0 = arith.constant 0 : i32
    %c0_i32_1 = arith.constant 0 : i32
    %c0_i32_2 = arith.constant 0 : i32
    return %c0_i32, %c0_i32_0, %c0_i32_1 : i32, i32, i32
  }
  func.func @transform_36(%arg0: i32, %arg1: i32) -> (i32, i32, i32) {
    %c0_i32 = arith.constant 0 : i32
    %c0_i32_0 = arith.constant 0 : i32
    %c0_i32_1 = arith.constant 0 : i32
    %c0_i32_2 = arith.constant 0 : i32
    return %c0_i32, %c0_i32_0, %c0_i32_1 : i32, i32, i32
  }
  func.func @transform_37(%arg0: i32, %arg1: i32) -> (i32, i32, i32) {
    %c0_i32 = arith.constant 0 : i32
    %c0_i32_0 = arith.constant 0 : i32
    %c0_i32_1 = arith.constant 0 : i32
    %c0_i32_2 = arith.constant 0 : i32
    return %c0_i32, %c0_i32_0, %c0_i32_1 : i32, i32, i32
  }
  func.func @transform_38(%arg0: i32, %arg1: i32) -> (i32, i32, i32) {
    %c0_i32 = arith.constant 0 : i32
    %c0_i32_0 = arith.constant 0 : i32
    %c0_i32_1 = arith.constant 0 : i32
    %c0_i32_2 = arith.constant 0 : i32
    return %c0_i32, %c0_i32_0, %c0_i32_1 : i32, i32, i32
  }
  func.func @transform_39(%arg0: i32, %arg1: i32) -> (i32, i32) {
    %c0_i32 = arith.constant 0 : i32
    %c0_i32_0 = arith.constant 0 : i32
    %c0_i32_1 = arith.constant 0 : i32
    return %c0_i32, %c0_i32_0 : i32, i32
  }
  func.func @transform_40(%arg0: i32, %arg1: i32) -> (i32, i32) {
    %c0_i32 = arith.constant 0 : i32
    %c0_i32_0 = arith.constant 0 : i32
    %c0_i32_1 = arith.constant 0 : i32
    return %c0_i32, %c0_i32_0 : i32, i32
  }
  func.func @transform_41(%arg0: i32, %arg1: i32) -> (i32, i32) {
    %c0_i32 = arith.constant 0 : i32
    %c0_i32_0 = arith.constant 0 : i32
    %c0_i32_1 = arith.constant 0 : i32
    return %c0_i32, %c0_i32_0 : i32, i32
  }
  func.func @transform_42(%arg0: i32, %arg1: i32) -> (i32, i32) {
    %c0_i32 = arith.constant 0 : i32
    %c0_i32_0 = arith.constant 0 : i32
    %c0_i32_1 = arith.constant 0 : i32
    return %c0_i32, %c0_i32_0 : i32, i32
  }
  func.func @transform_43(%arg0: i32, %arg1: i32) -> (i32, i32) {
    %c0_i32 = arith.constant 0 : i32
    %c0_i32_0 = arith.constant 0 : i32
    %c0_i32_1 = arith.constant 0 : i32
    return %c0_i32, %c0_i32_0 : i32, i32
  }
  func.func @transform_44(%arg0: i32, %arg1: i32) -> (i32, i32) {
    %c0_i32 = arith.constant 0 : i32
    %c0_i32_0 = arith.constant 0 : i32
    %c0_i32_1 = arith.constant 0 : i32
    return %c0_i32, %c0_i32_0 : i32, i32
  }
  func.func @transform_45(%arg0: i32, %arg1: i32) -> (i32, i32) {
    %c0_i32 = arith.constant 0 : i32
    %c0_i32_0 = arith.constant 0 : i32
    return %c0_i32, %arg1 : i32, i32
  }
}

</mosaic_0001>

<bundles_post_ra>
// kernel: dual_edge_egnn_forward.1
= control target key start
LH: loop header
LB: loop body
LE: loop exit
PB: predicated region body
PF: predicated region fallthrough
CT: control target
= control target key end

     0   :  { %s7501_s6 = smov 1   ;;  %s7502_s10 = smov 2   ;;  %s9921_s0 = inlined_call_operand.smem [shape: u32[46], index: -1, kind: input, shape index: {}] }
   0x1   :  { %s7569_s5 = sld [smem:[%s9921_s0]]   ;;  %s7503_s14 = smov 3  }
   0x2   :  { %s7574_s9 = sld [smem:[%s9921_s0 + %s7501_s6]]   ;;  %s7504_s18 = smov 4  }
   0x3   :  { %s7579_s13 = sld [smem:[%s9921_s0 + %s7502_s10]]   ;;  %s7505_s22 = smov 5  }
   0x4   :  { %s7584_s17 = sld [smem:[%s9921_s0 + %s7503_s14]]   ;;  %s7506_s26 = smov 6  }
   0x5   :  { %s7589_s21 = sld [smem:[%s9921_s0 + %s7504_s18]]   ;;  %s7507_s30 = smov 7  }
   0x6   :  { %s7594_s25 = sld [smem:[%s9921_s0 + %s7505_s22]]   ;;  %s7508_s4 = smov 8  }
   0x7   :  { %9969 = sst [smem:[#allocation8_spill]] %s7569_s5  ;;  %s7509_s10 = smov 9  }
   0x8   :  { %9970 = sst [smem:[#allocation9_spill]] %s7574_s9  ;;  %s7510_s15 = smov 10  }
   0x9   :  { %s7599_s29 = sld [smem:[%s9921_s0 + %s7506_s26]]   ;;  %s7511_s20 = smov 11  }
   0xa   :  { %9971 = sst [smem:[#allocation10_spill]] %s7584_s17  ;;  %s7512_s26 = smov 12  }
   0xb   :  { %9972 = sst [smem:[#allocation11_spill]] %s7589_s21  ;;  %s7513_s1 = smov 13  }
   0xc   :  { %s7604_s3 = sld [smem:[%s9921_s0 + %s7507_s30]]   ;;  %s7514_s7 = smov 14  }
   0xd   :  { %s7609_s8 = sld [smem:[%s9921_s0 + %s7508_s4]]   ;;  %s7516_s22 = smov 16  }
   0xe   :  { %s7614_s14 = sld [smem:[%s9921_s0 + %s7509_s10]]   ;;  %s7517_s28 = smov 17  }
   0xf   :  { %s7619_s19 = sld [smem:[%s9921_s0 + %s7510_s15]]   ;;  %s7515_s15 = smov 15  }
  0x10   :  { %s7624_s24 = sld [smem:[%s9921_s0 + %s7511_s20]]   ;;  %s7796_s10 = smov 0  }
  0x11   :  { %s7629_s30 = sld [smem:[%s9921_s0 + %s7512_s26]]   ;;  %s7798_s11 = smov 0  }
  0x12   :  { %s7634_s6 = sld [smem:[%s9921_s0 + %s7513_s1]]   ;;  %s7545_s1 = smov 45  }
  0x13   :  { %s7639_s12 = sld [smem:[%s9921_s0 + %s7514_s7]]   ;;  %s7518_s7 = smov 18  }
  0x14   :  { %9973 = sst [smem:[#allocation12_spill]] %s7614_s14 }
  0x15   :  { %s7644_s20 = sld [smem:[%s9921_s0 + %s7515_s15]]   ;;  %s7519_s15 = smov 19  }
  0x16   :  { %s7649_s27 = sld [smem:[%s9921_s0 + %s7516_s22]]   ;;  %s7520_s22 = smov 20  }
  0x17   :  { %s7654_s4 = sld [smem:[%s9921_s0 + %s7517_s28]]   ;;  %s7521_s28 = smov 21  }
  0x18   :  { %s7659_s14 = sld [smem:[%s9921_s0 + %s7518_s7]]   ;;  %s7522_s7 = smov 22  }
  0x19   :  { %s7664_s17 = sld [smem:[%s9921_s0 + %s7519_s15]]   ;;  %s7523_s15 = smov 23  }
  0x1a   :  { %s7679_s21 = sld [smem:[%s9921_s0 + %s7522_s7]]   ;;  %s7526_s7 = smov 26  }
  0x1b   :  { %s7699_s9 = sld [smem:[%s9921_s0 + %s7526_s7]]   ;;  %s7530_s7 = smov 30  }
  0x1c   :  { %9974 = sst [smem:[#allocation13_spill]] %s7649_s27 }
  0x1d   :  { %9975 = sst [smem:[#allocation14_spill]] %s7654_s4 }
  0x1e   :  { %9976 = sst [smem:[#allocation15_spill]] %s7659_s14 }
  0x1f   :  { %9977 = sst [smem:[#allocation16_spill]] %s7664_s17 }
  0x20   :  { %s7669_s27 = sld [smem:[%s9921_s0 + %s7520_s22]]   ;;  %s7524_s22 = smov 24  }
  0x21   :  { %s7674_s4 = sld [smem:[%s9921_s0 + %s7521_s28]]   ;;  %s7525_s28 = smov 25  }
  0x22   :  { %s7684_s17 = sld [smem:[%s9921_s0 + %s7523_s15]]   ;;  %s7527_s15 = smov 27  }
  0x23   :  { %s7689_s14 = sld [smem:[%s9921_s0 + %s7524_s22]]   ;;  %s7528_s22 = smov 28  }
  0x24   :  { %s7694_s5 = sld [smem:[%s9921_s0 + %s7525_s28]]   ;;  %s7529_s28 = smov 29  }
  0x25   :  { %9981 = sst [smem:[#allocation20_spill]] %s7699_s9 }
  0x26   :  { %s7719_s9 = sld [smem:[%s9921_s0 + %s7530_s7]]   ;;  %s7534_s7 = smov 34  }
  0x28   :  { %9978 = sst [smem:[#allocation17_spill]] %s7684_s17 }
  0x29   :  { %9979 = sst [smem:[#allocation18_spill]] %s7689_s14 }
  0x2a   :  { %9980 = sst [smem:[#allocation19_spill]] %s7694_s5 }
  0x2b   :  { %s7704_s17 = sld [smem:[%s9921_s0 + %s7527_s15]]   ;;  %s7531_s15 = smov 31  }
  0x2c   :  { %s7709_s14 = sld [smem:[%s9921_s0 + %s7528_s22]]   ;;  %s7532_s22 = smov 32  }
  0x2d   :  { %s7714_s5 = sld [smem:[%s9921_s0 + %s7529_s28]]   ;;  %s7533_s28 = smov 33  }
  0x2e   :  { %9985 = sst [smem:[#allocation24_spill]] %s7719_s9 }
  0x2f   :  { %s7739_s9 = sld [smem:[%s9921_s0 + %s7534_s7]]   ;;  %s7538_s7 = smov 38  }
  0x31   :  { %9982 = sst [smem:[#allocation21_spill]] %s7704_s17 }
  0x32   :  { %9983 = sst [smem:[#allocation22_spill]] %s7709_s14 }
  0x33   :  { %9984 = sst [smem:[#allocation23_spill]] %s7714_s5 }
  0x34   :  { %s7724_s17 = sld [smem:[%s9921_s0 + %s7531_s15]]   ;;  %s7535_s15 = smov 35  }
  0x35   :  { %s7729_s14 = sld [smem:[%s9921_s0 + %s7532_s22]]   ;;  %s7536_s22 = smov 36  }
  0x36   :  { %s7734_s5 = sld [smem:[%s9921_s0 + %s7533_s28]]   ;;  %s7537_s28 = smov 37  }
  0x37   :  { %9989 = sst [smem:[#allocation28_spill]] %s7739_s9 }
  0x38   :  { %s7759_s9 = sld [smem:[%s9921_s0 + %s7538_s7]]   ;;  %s7542_s7 = smov 42  }
  0x3a   :  { %9986 = sst [smem:[#allocation25_spill]] %s7724_s17 }
  0x3b   :  { %9987 = sst [smem:[#allocation26_spill]] %s7729_s14 }
  0x3c   :  { %9988 = sst [smem:[#allocation27_spill]] %s7734_s5 }
  0x3d   :  { %s7744_s17 = sld [smem:[%s9921_s0 + %s7535_s15]]   ;;  %s7539_s15 = smov 39  }
  0x3e   :  { %s7749_s14 = sld [smem:[%s9921_s0 + %s7536_s22]]   ;;  %s7540_s22 = smov 40  }
  0x3f   :  { %s7754_s5 = sld [smem:[%s9921_s0 + %s7537_s28]]   ;;  %s7541_s28 = smov 41  }
  0x40   :  { %9993 = sst [smem:[#allocation32_spill]] %s7759_s9 }
  0x41   :  { %s7779_s9 = sld [smem:[%s9921_s0 + %s7542_s7]]   ;;  %s7794_s7 = smov 0  }
  0x43   :  { %9990 = sst [smem:[#allocation29_spill]] %s7744_s17 }
  0x44   :  { %9991 = sst [smem:[#allocation30_spill]] %s7749_s14 }
  0x45   :  { %9992 = sst [smem:[#allocation31_spill]] %s7754_s5 }
  0x46   :  { %s7764_s17 = sld [smem:[%s9921_s0 + %s7539_s15]]   ;;  %s7543_s15 = smov 43  }
  0x47   :  { %s7769_s14 = sld [smem:[%s9921_s0 + %s7540_s22]]   ;;  %s7544_s22 = smov 44  }
  0x48   :  { %s7774_s5 = sld [smem:[%s9921_s0 + %s7541_s28]]  }
  0x4c   :  { %9994 = sst [smem:[#allocation33_spill]] %s7764_s17 }
  0x4d   :  { %9995 = sst [smem:[#allocation34_spill]] %s7769_s14 }
  0x4e   :  { %9996 = sst [smem:[#allocation35_spill]] %s7774_s5 }
  0x4f   :  { %s7784_s17 = sld [smem:[%s9921_s0 + %s7543_s15]]  }
  0x50   :  { %s6591_s14 = sld [smem:[%s9921_s0 + %s7544_s22]]  }
  0x51   :  { %s7792_s5 = sld [smem:[%s9921_s0 + %s7545_s1]]  }
  0x56   :  { %v96_v0 = vstv %s6591_s14 }
  0x57   :  { %97 = vst [vmem:[#allocation7] sm:$0x1] %v96_v0 }
  0x58 LB: > { %s115_s0 = sadd.s32 1, %s7495_s10  ;;  %p6600_p0 = scmp.ge.s32.totalorder %s7499_s11, 1  ;;  %s7499_s11 = sphi %s7798_s11, %s103_s11   ;;  %s7495_s10 = sphi %s7796_s10, %s10130_s10   ;;  %s7491_s7 = sphi %s7794_s7, %s10129_s7  }
  0x59   : > { %p117_p1 = scmp.ge.s32.totalorder %s115_s0, 3  ;;  %p1292_p2 = scmp.lt.s32.totalorder %s7499_s11, 4 }
  0x5b   : > { %s10132_s0 = smov (%p117_p1, %s115_s0), 0  ;;  %p1293_p3 = pnand %p6600_p0, %p1292_p2 }
  0x5c   : > { %p1452_p4 = scmp.eq.s32.totalorder (!%p1293_p3), %s7491_s7, 0 }
  0x5d   : > { %1296 = sbr.rel (%p1293_p3) target bundleno = 4499 (0x1193), region = 200 }
  0x62   : > { %1457 = sbr.rel (!%p1452_p4) target bundleno = 886 (0x376), region = 204  ;;  %v1462_v1 = vld [vmem:[%s7619_s19 + $0x18] sm:$0xff] (%p1452_p4)  ;;  %v1461_v2 = vld [vmem:[%s7619_s19 + $0x10] sm:$0xff] (%p1452_p4)  ;;  %v1460_v4 = vld [vmem:[%s7619_s19 + $0x8] sm:$0xff] (%p1452_p4)  ;;  %vm1467_vm0 = vcmask (%p1452_p4), 261120   ;;  %vm1573_vm1 = vcmask (%p1452_p4), 254976  }
  0x63   : > { %1483 = vmatpush.msra.mxu0 (%p1452_p4), %v1462_v1  ;;  %v1507_v3 = vld [vmem:[%s7629_s30 + $0x78] sm:$0xff] (%p1452_p4)  ;;  %v1506_v5 = vld [vmem:[%s7629_s30 + $0x70] sm:$0xff] (%p1452_p4)  ;;  %v1505_v6 = vld [vmem:[%s7629_s30 + $0x68] sm:$0xff] (%p1452_p4)  ;;  %vm1584_vm2 = vcmask (%p1452_p4), 1041408   ;;  %vm1577_vm3 = vcmask (%p1452_p4), 15360   ;;  %vm1621_vm4 = vcmask (%p1452_p4), 64512  }
  0x64   : > { %1512 = vmatpush.msra.mxu1 (%p1452_p4), %v1507_v3  ;;  %v1459_v7 = vld [vmem:[%s7619_s19] sm:$0xff] (%p1452_p4)  ;;  %v1503_v10 = vld [vmem:[%s7629_s30 + $0x58] sm:$0xff] (%p1452_p4)  ;;  %v1502_v11 = vld [vmem:[%s7629_s30 + $0x50] sm:$0xff] (%p1452_p4)  ;;  %s7546_s14 = smov (%p1452_p4), 8   ;;  %vm1633_vm5 = vcmask (%p1452_p4), 326656  }
  0x65   : > { %1484 = vmatpush.msra.mxu0 (%p1452_p4), %v1461_v2  ;;  %v1458_v8 = vld [vmem:[%s7594_s25] sm:$0x3] (%p1452_p4)  ;;  %v1501_v12 = vld [vmem:[%s7629_s30 + $0x48] sm:$0xff] (%p1452_p4)  ;;  %v1499_v14 = vld [vmem:[%s7629_s30 + $0x38] sm:$0xff] (%p1452_p4) }
  0x66   : > { %1513 = vmatpush.msra.mxu1 (%p1452_p4), %v1506_v5  ;;  %v1504_v9 = vld [vmem:[%s7629_s30 + $0x60] sm:$0xff] (%p1452_p4)  ;;  %v1498_v15 = vld [vmem:[%s7629_s30 + $0x30] sm:$0xff] (%p1452_p4)  ;;  %v1497_v16 = vld [vmem:[%s7629_s30 + $0x28] sm:$0xff] (%p1452_p4) }
  0x67   : > { %1485 = vmatpush.msra.mxu0 %v1460_v4  ;;  %v1500_v13 = vld [vmem:[%s7629_s30 + $0x40] sm:$0xff]  ;;  %v1495_v18 = vld [vmem:[%s7629_s30 + $0x18] sm:$0xff]  ;;  %v1494_v19 = vld [vmem:[%s7629_s30 + $0x10] sm:$0xff] }
  0x68   : > { %1514 = vmatpush.msra.mxu1 %v1505_v6  ;;  %v1496_v17 = vld [vmem:[%s7629_s30 + $0x20] sm:$0xff]  ;;  %v1493_v20 = vld [vmem:[%s7629_s30 + $0x8] sm:$0xff]  ;;  %v1548_v22 = vld [vmem:[%s7639_s12 + $0x78] sm:$0xff] }
  0x69   : > { %1486 = vmatpush.msra.mxu0 %v1459_v7  ;;  %v1492_v21 = vld [vmem:[%s7629_s30] sm:$0xff]  ;;  %v1547_v23 = vld [vmem:[%s7639_s12 + $0x70] sm:$0xff]  ;;  %1553 = vmatpush.msra.mxu2 %v1548_v22  ;;  %v1546_v24 = vld [vmem:[%s7639_s12 + $0x68] sm:$0xff] }
  0x6a   : > { %6602 = vmatmul.msk.f32.vlgmr.msra.gmra.mxu0 %vm1467_vm0, %v1458_v8  ;;  %1515 = vmatpush.msra.mxu1 %v1504_v9  ;;  %v1545_v25 = vld [vmem:[%s7639_s12 + $0x60] sm:$0xff]  ;;  %v1544_v26 = vld [vmem:[%s7639_s12 + $0x58] sm:$0xff]  ;;  %v1543_v27 = vld [vmem:[%s7639_s12 + $0x50] sm:$0xff] }
  0x6b   : > { %1554 = vmatpush.msra.mxu2 %v1547_v23  ;;  %v1542_v28 = vld [vmem:[%s7639_s12 + $0x48] sm:$0xff]  ;;  %v1541_v29 = vld [vmem:[%s7639_s12 + $0x40] sm:$0xff]  ;;  %v1540_v30 = vld [vmem:[%s7639_s12 + $0x38] sm:$0xff] }
  0x6c   : > { %1516 = vmatpush.msra.mxu1 %v1503_v10  ;;  %v1539_v31 = vld [vmem:[%s7639_s12 + $0x30] sm:$0xff]  ;;  %v1538_v32 = vld [vmem:[%s7639_s12 + $0x28] sm:$0xff]  ;;  %v1537_v33 = vld [vmem:[%s7639_s12 + $0x20] sm:$0xff] }
  0x6d   : > { %1555 = vmatpush.msra.mxu2 %v1546_v24  ;;  %v1536_v34 = vld [vmem:[%s7639_s12 + $0x18] sm:$0xff]  ;;  %v7109_v35 = vld [vmem:[%s7624_s24] ss:$0 sm:$0xff]  ;;  %v1535_v39 = vld [vmem:[%s7639_s12 + $0x10] sm:$0xff] }
  0x6e   : > { %1517 = vmatpush.msra.mxu1 %v1502_v11  ;;  %v1534_v40 = vld [vmem:[%s7639_s12 + $0x8] sm:$0xff]  ;;  %v1533_v41 = vld [vmem:[%s7639_s12] sm:$0xff]  ;;  %v1627_v52 = vld [vmem:[%s7669_s27 + $0x18] sm:$0xff] }
  0x6f   : > { %1556 = vmatpush.msra.mxu2 %v1545_v25  ;;  %v7110_v42 = vld [vmem:[%s7634_s6] ss:$0 sm:$0xff]  ;;  %v1576_v50 = vld [vmem:[%s7599_s29 + $0x8] sm:$0xff]  ;;  %v1626_v54 = vld [vmem:[%s7669_s27 + $0x10] sm:$0xff] }
  0x70   : > { %1518 = vmatpush.msra.mxu1 %v1501_v12  ;;  %v7111_v46 = vld [vmem:[%s7644_s20] ss:$0 sm:$0xff]  ;;  %v1666_v55 = vld [vmem:[%s7609_s8 + $0x8] sm:$0xff] }
  0x71   : > { %1557 = vmatpush.msra.mxu2 %v1544_v26  ;;  %v1575_v49 = vld [vmem:[%s7599_s29] sm:$0xff]  ;;  %1668 = vst.msk [vmem:[#allocation4 + $0x8] sm:$0xff] %vm1621_vm4, %v1666_v55  ;;  %v1625_v56 = vld [vmem:[%s7669_s27 + $0x8] sm:$0xff] }
  0x72   : > { %1519 = vmatpush.msra.mxu1 %v1500_v13  ;;  %v1628_v51 = vld [vmem:[%s7669_s27 + $0x20] sm:$0xff]  ;;  %v1612_v63 = vld [vmem:[%s7604_s3 + $0x8] sm:$0xff] }
  0x73   : > { %1558 = vmatpush.msra.mxu2 %v1543_v27  ;;  %1651 = vmatpush.msrb.mxu0 %v1628_v51  ;;  %v1665_v53 = vld [vmem:[%s7609_s8] sm:$0xff] }
  0x74   : > { %1520 = vmatpush.msra.mxu1 %v1499_v14  ;;  %1667 = vst.msk [vmem:[#allocation4] sm:$0xff] %vm1621_vm4, %v1665_v53  ;;  %v1624_v59 = vld [vmem:[%s7669_s27] sm:$0xff] }
  0x75   : > { %1559 = vmatpush.msra.mxu2 %v1542_v28  ;;  %1652 = vmatpush.msrb.mxu0 %v1627_v52  ;;  %v1611_v60 = vld [vmem:[%s7604_s3] sm:$0xff] }
  0x76   : > { %1521 = vmatpush.msra.mxu1 %v1498_v15  ;;  %v7112_v2 = vld [vmem:[%s7674_s4] ss:$0 sm:$0xff] }
  0x77   : > { %1560 = vmatpush.msra.mxu2 %v1541_v29  ;;  %1653 = vmatpush.msrb.mxu0 %v1626_v54 }
  0x78   : > { %1522 = vmatpush.msra.mxu1 %v1497_v16 }
  0x79   : > { %1561 = vmatpush.msra.mxu2 %v1540_v30  ;;  %1654 = vmatpush.msrb.mxu0 %v1625_v56 }
  0x7a   : > { %1523 = vmatpush.msra.mxu1 %v1496_v17 }
  0x7b   : > { %1562 = vmatpush.msra.mxu2 %v1539_v31  ;;  %1655 = vmatpush.msrb.mxu0 %v1624_v59 }
  0x7c   : > { %1524 = vmatpush.msra.mxu1 %v1495_v18 }
  0x7d   : > { %1563 = vmatpush.msra.mxu2 %v1538_v32 }
  0x7e   : > { %1525 = vmatpush.msra.mxu1 %v1494_v19 }
  0x7f   : > { %1564 = vmatpush.msra.mxu2 %v1537_v33 }
  0x80   : > { %1526 = vmatpush.msra.mxu1 %v1493_v20 }
  0x81   : > { %1565 = vmatpush.msra.mxu2 %v1536_v34 }
  0x82   : > { %1527 = vmatpush.msra.mxu1 %v1492_v21 }
  0x83   : > { %1566 = vmatpush.msra.mxu2 %v1535_v39 }
  0x85   : > { %1567 = vmatpush.msra.mxu2 %v1534_v40 }
  0x87   : > { %1568 = vmatpush.msra.mxu2 %v1533_v41 }
  0xe7   : > { %v1488_v36 = vpop.f32.mrf.mxu0 }
  0xe8   : > { %v1489_v37 = vadd.f32 %v7109_v35, %v1488_v36 }
  0xea   : > { %v1491_v38 = vmax.f32 %v1489_v37, 0.0 }
  0xec   : > { %1528 = vmatmul.f32.vlgmr.msra.gmra.mxu1 %v1491_v38 }
 0x169   : > { %v1529_v43 = vpop.f32.mrf.mxu1 }
 0x16a   : > { %v1530_v44 = vadd.f32 %v7110_v42, %v1529_v43 }
 0x16c   : > { %v1532_v45 = vmax.f32 %v1530_v44, 0.0 }
 0x16e   : > { %1569 = vmatmul.f32.vlgmr.msra.gmra.mxu2 %v1532_v45 }
 0x1f1   : > { %v1570_v47 = vpop.f32.mrf.mxu2 }
 0x1f2   : > { %v1571_v48 = vadd.f32 %v7111_v46, %v1570_v47 }
 0x1f4   : > { %1574 = vst.msk [vmem:[#allocation2] sm:$0x3] %vm1573_vm1, %v1571_v48  ;;  %6603 = vmatpush.msk.msra.mxu3 %vm1584_vm2, %v1571_v48 }
 0x1f5   : > { %6604 = vmatmul.msk.f32.vlgmr.msra.gmra.mxu3 %vm1577_vm3, %v1575_v49 }
 0x1fd   : > { %6605 = vmatmul.msk.f32.gmra.mxu3 %vm1577_vm3, %v1576_v50 }
 0x278   : > { %v1605_v57 = vpop.f32.mrf.mxu3 }
 0x279   : > { %1615 = vrot.lane.b32.xlu0 %v1605_v57, %s7546_s14 }
 0x280   : > { %v1608_v58 = vpop.f32.mrf.mxu3 }
 0x281   : > { %1617 = vrot.lane.b32.xlu0 %v1608_v58, %s7546_s14 }
 0x2eb   : > { %v1616_v61 = vpop.permute.xlu0 %1615 }
 0x2ec   : > { %v1622_v62 = vsel %vm1621_vm4, %v1611_v60, %v1616_v61 }
 0x2ed   : > { %6606 = vmatmul.msk.f32.vlgmr.msrb.gmra.mxu0 %vm1633_vm5, %v1622_v62 }
 0x2f3   : > { %v1618_v0 = vpop.permute.xlu0 %1617 }
 0x2f4   : > { %v1623_v1 = vsel %vm1621_vm4, %v1612_v63, %v1618_v0 }
 0x2f5   : > { %6607 = vmatmul.msk.f32.gmra.mxu0 %vm1633_vm5, %v1623_v1 }
 0x36a   : > { %v1657_v3 = vpop.f32.mrf.mxu0 }
 0x36b   : > { %v1658_v4 = vadd.f32 %v7112_v2, %v1657_v3 }
 0x36d   : > { %1663 = vst.msk [vmem:[#allocation3] sm:$0xff] %vm1467_vm0, %v1658_v4 }
 0x372   : > { %v1660_v5 = vpop.f32.mrf.mxu0 }
 0x373   : > { %v1661_v6 = vadd.f32 %v7112_v2, %v1660_v5 }
 0x375   : > { %1664 = vst.msk [vmem:[#allocation3 + $0x8] sm:$0xff] %vm1467_vm0, %v1661_v6 }
 0x376 PF: > { %p1669_p5 = scmp.lt.s32.totalorder %s7491_s7, 2 }
 0x377   : > { %s6609_s15 = sshll.u32 (%p1669_p5), %s7491_s7, 5  ;;  %v1712_v7 = vld [vmem:[#allocation4] sm:$0xff] (%p1669_p5)  ;;  %s7547_s18 = smov (%p1669_p5), 32   ;;  %v1674_v12 = vld [vmem:[#allocation3] sm:$0xff] (%p1669_p5)  ;;  %vm1682_vm6 = vcmask (%p1669_p5), 261120   ;;  %v1713_v14 = vld [vmem:[#allocation4 + $0x8] sm:$0xff] (%p1669_p5) }
 0x378   : > { %1673 = sbr.rel (!%p1669_p5) target bundleno = 1148 (0x47c), region = 208  ;;  %s1677_s16 = scalar_lea.vmem (%p1669_p5), %s7679_s21, %s6609_s15  ;;  %1716 = vrot.lane.b32.xlu0 (%p1669_p5), %v1712_v7, %s7547_s18  ;;  %vm1724_vm7 = vcmask (%p1669_p5), 326656   ;;  %v7548_v15 = vmov (%p1669_p5), 0.0  }
 0x379   : > { %v1681_v8 = vld [vmem:[%s1677_s16 + $0x18] sm:$0xff] (%p1669_p5)  ;;  %v1680_v9 = vld [vmem:[%s1677_s16 + $0x10] sm:$0xff] (%p1669_p5)  ;;  %v1679_v10 = vld [vmem:[%s1677_s16 + $0x8] sm:$0xff] (%p1669_p5)  ;;  %1740 = vst.msk [vmem:[#allocation6] sm:$0xff] (%p1669_p5), %vm1724_vm7, %v7548_v15  ;;  %s7549_s22 = smov (%p1669_p5), 96  }
 0x37a   : > { %1701 = vmatpush.msra.mxu0 (%p1669_p5), %v1681_v8  ;;  %6972 = vmatpush.msra.mxu1 (%p1669_p5), %v1681_v8  ;;  %v1678_v11 = vld [vmem:[%s1677_s16] sm:$0xff] (%p1669_p5)  ;;  %1741 = vst.msk [vmem:[#allocation6 + $0x8] sm:$0xff] (%p1669_p5), %vm1724_vm7, %v7548_v15 }
 0x37c   : > { %1702 = vmatpush.msra.mxu0 (%p1669_p5), %v1680_v9  ;;  %6973 = vmatpush.msra.mxu1 (%p1669_p5), %v1680_v9  ;;  %v1675_v13 = vld [vmem:[#allocation3 + $0x8] sm:$0xff] (%p1669_p5) }
 0x37e   : > { %1703 = vmatpush.msra.mxu0 %v1679_v10  ;;  %6974 = vmatpush.msra.mxu1 %v1679_v10 }
 0x380   : > { %1704 = vmatpush.msra.mxu0 %v1678_v11  ;;  %6975 = vmatpush.msra.mxu1 %v1678_v11 }
 0x381   : > { %6610 = vmatmul.msk.f32.vlgmr.msra.gmra.mxu0 %vm1682_vm6, %v1674_v12  ;;  %6611 = vmatmul.msk.f32.vlgmr.msra.gmra.mxu1 %vm1682_vm6, %v1675_v13 }
 0x382   : > { %1718 = vrot.lane.b32.xlu0 %v1713_v14, %s7547_s18 }
 0x3ea   : > { %v1717_v16 = vpop.permute.xlu0 %1716 }
 0x3f4   : > { %v1719_v17 = vpop.permute.xlu0 %1718 }
 0x3fe   : > { %v1706_v18 = vpop.f32.mrf.mxu0  ;;  %v1709_v19 = vpop.f32.mrf.mxu1 }
 0x3ff   : > { %v1722_v20 = vsel %vm1682_vm6, %v1706_v18, %v1717_v16  ;;  %1729 = vrot.lane.b32.xlu1 %v1706_v18, %s7549_s22  ;;  %v1723_v21 = vsel %vm1682_vm6, %v1709_v19, %v1719_v17 }
 0x400   : > { %1725 = vst.msk [vmem:[#allocation5] sm:$0xff] %vm1724_vm7, %v1722_v20 }
 0x401   : > { %1726 = vst.msk [vmem:[#allocation5 + $0x8] sm:$0xff] %vm1724_vm7, %v1723_v21 }
 0x407   : > { %1731 = vrot.lane.b32.xlu1 %v1709_v19, %s7549_s22 }
 0x471   : > { %v1730_v22 = vpop.permute.xlu1 %1729 }
 0x472   : > { %v1735_v23 = vsel %vm1682_vm6, %v1730_v22, %v1717_v16 }
 0x473   : > { %1738 = vst.msk [vmem:[#allocation5 + $0x10] sm:$0xff] %vm1724_vm7, %v1735_v23 }
 0x479   : > { %v1732_v24 = vpop.permute.xlu1 %1731 }
 0x47a   : > { %v1736_v25 = vsel %vm1682_vm6, %v1732_v24, %v1719_v17 }
 0x47b   : > { %1739 = vst.msk [vmem:[#allocation5 + $0x18] sm:$0xff] %vm1724_vm7, %v1736_v25 }
 0x47c PF: > { %p6612_p6 = scmp.ge.s32.totalorder %s7491_s7, 2 }
 0x47e   : > { %1744 = sbr.rel (%p6612_p6) target bundleno = 3026 (0xbd2), region = 212 }
 0x483   : > { %s9997_s23 = sld [smem:[#allocation9_spill]]  ;;  %v2286_v26 = vld [vmem:[%s7579_s13] sm:$0xff]  ;;  %v7550_v29 = vmov 0   ;;  %v2287_v30 = vld [vmem:[%s7579_s13 + $0x8] sm:$0xff]  ;;  %v2289_v34 = vld [vmem:[%s7579_s13 + $0x18] sm:$0xff]  ;;  %v1761_v17 = vlaneseq  ;;  %vm1990_vm10 = vcmask 130048  }
 0x484   : > { %7115 = vset.pattern.permute.xlu2 %v7550_v29  ;;  %7114 = vset.pattern.permute.xlu1 %v7550_v29  ;;  %v2290_v33 = vld [vmem:[%s7579_s13 + $0x20] sm:$0xff]  ;;  %v2288_v35 = vld [vmem:[%s7579_s13 + $0x10] sm:$0xff]  ;;  %s9998_s26 = sld [smem:[#allocation8_spill]]  ;;  %v2293_v36 = vld [vmem:[%s7579_s13 + $0x38] sm:$0xff]  ;;  %vm2596_vm11 = vcmask 1041408   ;;  %vm2547_vm12 = vcmask 15360  }
 0x485   : > { %7113 = vset.pattern.permute.xlu0 %v7550_v29  ;;  %2305 = vperm.xlu2 %7115, %v2286_v26   ;;  %v2292_v37 = vld [vmem:[%s7579_s13 + $0x30] sm:$0xff]  ;;  %v2291_v38 = vld [vmem:[%s7579_s13 + $0x28] sm:$0xff]  ;;  %v2294_v39 = vld [vmem:[%s7579_s13 + $0x40] sm:$0xff]  ;;  %s9999_s1 = sld [smem:[#allocation15_spill]]  ;;  %v7950_v24 = vand.u32 127, %v1761_v17  ;;  %vm2456_vm4 = vcmask 261120  }
 0x486   : > { %v2295_v43 = vld [vmem:[%s7579_s13 + $0x48] sm:$0xff]  ;;  %v2296_v45 = vld [vmem:[%s7579_s13 + $0x50] sm:$0xff]  ;;  %v2297_v49 = vld [vmem:[%s7579_s13 + $0x58] sm:$0xff]  ;;  %s10000_s28 = sld [smem:[#allocation11_spill]]  ;;  %s8208_s16 = sshll.u32 %s7491_s7, 5 }
 0x487   : > { %v2298_v51 = vld [vmem:[%s7579_s13 + $0x60] sm:$0xff]  ;;  %v2299_v55 = vld [vmem:[%s7579_s13 + $0x68] sm:$0xff]  ;;  %v2300_v57 = vld [vmem:[%s7579_s13 + $0x70] sm:$0xff]  ;;  %s10001_s2 = sld [smem:[#allocation13_spill]] }
 0x488   : > { %v2301_v61 = vld [vmem:[%s7579_s13 + $0x78] sm:$0xff]  ;;  %v1987_v25 = vld [vmem:[#allocation5] sm:$0xff]  ;;  %v1988_v26 = vld [vmem:[#allocation5 + $0x8] sm:$0xff]  ;;  %s10002_s14 = sld [smem:[#allocation14_spill]] }
 0x489   : > { %v1881_v27 = vld [vmem:[%s9997_s23 + $0x70] sm:$0xff]  ;;  %v1879_v28 = vld [vmem:[%s9997_s23 + $0x60] sm:$0xff]  ;;  %v1882_v31 = vld [vmem:[%s9997_s23 + $0x78] sm:$0xff]  ;;  %s10010_s15 = sld [smem:[#allocation18_spill]] }
 0x48a   : > { %1926 = vperm.xlu1 %7114, %v1881_v27   ;;  %1920 = vperm.xlu0 %7113, %v1879_v28   ;;  %v1880_v32 = vld [vmem:[%s9997_s23 + $0x68] sm:$0xff]  ;;  %v1867_v41 = vld [vmem:[%s9997_s23] sm:$0xff]  ;;  %v1869_v46 = vld [vmem:[%s9997_s23 + $0x10] sm:$0xff]  ;;  %s10012_s22 = sld [smem:[#allocation16_spill]] }
 0x48b   : > { %v1868_v40 = vld [vmem:[%s9997_s23 + $0x8] sm:$0xff]  ;;  %v1745_v44 = vld [vmem:[%s9998_s26] sm:$0xff]  ;;  %v1870_v47 = vld [vmem:[%s9997_s23 + $0x18] sm:$0xff] }
 0x48c   : > { %v1746_v42 = vld [vmem:[%s9998_s26 + $0x8] sm:$0xff]  ;;  %v1748_v48 = vld [vmem:[%s9998_s26 + $0x18] sm:$0xff]  ;;  %v1747_v50 = vld [vmem:[%s9998_s26 + $0x10] sm:$0xff] }
 0x48d   : > { %2310 = vperm.xlu2 %7115, %v2287_v30   ;;  %v1871_v52 = vld [vmem:[%s9997_s23 + $0x20] sm:$0xff]  ;;  %v1872_v53 = vld [vmem:[%s9997_s23 + $0x28] sm:$0xff]  ;;  %v1873_v58 = vld [vmem:[%s9997_s23 + $0x30] sm:$0xff]  ;;  %v1989_v30 = vpack.c.bf16 %v1988_v26, %v1987_v25 }
 0x48e   : > { %v1750_v54 = vld [vmem:[%s9998_s26 + $0x28] sm:$0xff]  ;;  %v1749_v56 = vld [vmem:[%s9998_s26 + $0x20] sm:$0xff]  ;;  %v1874_v59 = vld [vmem:[%s9997_s23 + $0x38] sm:$0xff] }
 0x48f   : > { %v1752_v60 = vld [vmem:[%s9998_s26 + $0x38] sm:$0xff]  ;;  %v1751_v62 = vld [vmem:[%s9998_s26 + $0x30] sm:$0xff]  ;;  %v1753_v3 = vld [vmem:[%s9998_s26 + $0x40] sm:$0xff]  ;;  %2022 = vmatpush.bf16.msra.mxu0 %v1989_v30  ;;  %s2783_s18 = scalar_lea.vmem %s10010_s15, %s8208_s16  ;;  %s10027_s15 = sld [smem:[#allocation20_spill]] }
 0x490   : > { %v2065_v0 = vld [vmem:[#allocation5 + $0x10] sm:$0xff]  ;;  %v2066_v1 = vld [vmem:[#allocation5 + $0x18] sm:$0xff]  ;;  %v1876_v5 = vld [vmem:[%s9997_s23 + $0x48] sm:$0xff] }
 0x491   : > { %v2067_v2 = vpack.c.bf16 %v2066_v1, %v2065_v0  ;;  %v1875_v4 = vld [vmem:[%s9997_s23 + $0x40] sm:$0xff]  ;;  %v1878_v7 = vld [vmem:[%s9997_s23 + $0x58] sm:$0xff]  ;;  %v1754_v8 = vld [vmem:[%s9998_s26 + $0x48] sm:$0xff] }
 0x492   : > { %1929 = vperm.xlu1 %7114, %v1882_v31   ;;  %1923 = vperm.xlu0 %7113, %v1880_v32   ;;  %v1877_v9 = vld [vmem:[%s9997_s23 + $0x50] sm:$0xff]  ;;  %v1757_v11 = vld [vmem:[%s9998_s26 + $0x60] sm:$0xff]  ;;  %v1756_v13 = vld [vmem:[%s9998_s26 + $0x58] sm:$0xff]  ;;  %s10013_s23 = sld [smem:[#allocation10_spill]] }
 0x493   : > { %6976 = vmatpush.bf16.msra.mxu2 %v2067_v2  ;;  %2099 = vmatpush.bf16.msra.mxu1 %v2067_v2  ;;  %v1755_v12 = vld [vmem:[%s9998_s26 + $0x50] sm:$0xff]  ;;  %v1758_v18 = vld [vmem:[%s9998_s26 + $0x68] sm:$0xff]  ;;  %v1760_v19 = vld [vmem:[%s9998_s26 + $0x78] sm:$0xff] }
 0x494   : > { %v1759_v20 = vld [vmem:[%s9998_s26 + $0x70] sm:$0xff]  ;;  %v2441_v22 = vld [vmem:[%s9999_s1 + $0x18] sm:$0xff]  ;;  %v2438_v27 = vld [vmem:[%s9999_s1] sm:$0xff]  ;;  %s7553_s26 = smov 96  }
 0x495   : > { %2325 = vperm.xlu2 %7115, %v2290_v33   ;;  %v2440_v21 = vld [vmem:[%s9999_s1 + $0x10] sm:$0xff]  ;;  %v2439_v31 = vld [vmem:[%s9999_s1 + $0x8] sm:$0xff]  ;;  %s10022_s1 = sld [smem:[#allocation17_spill]] }
 0x496   : > { %v2451_v23 = vpack.c.bf16 %v2441_v22, %v2440_v21  ;;  %v2450_v33 = vpack.c.bf16 %v2439_v31, %v2438_v27  ;;  %v2535_v27 = vld [vmem:[%s10000_s28 + $0x28] sm:$0xff] }
 0x498   : > { %2487 = vmatpush.bf16.msrb.mxu2 %v2451_v23 }
 0x49a   : > { %2320 = vperm.xlu1 %7114, %v2289_v34   ;;  %2315 = vperm.xlu0 %7113, %v2288_v35   ;;  %v7551_v34 = vmov 0.0  }
 0x49c   : > { %2488 = vmatpush.bf16.msrb.mxu2 %v2450_v33 }
 0x49d   : > { %2340 = vperm.xlu2 %7115, %v2293_v36  }
 0x4a2   : > { %2335 = vperm.xlu1 %7114, %v2292_v37   ;;  %2330 = vperm.xlu0 %7113, %v2291_v38   ;;  %v2546_v38 = vld [vmem:[#allocation2] sm:$0x3] }
 0x4a3   : > { %6669 = vmatpush.msk.msra.mxu3 %vm2596_vm11, %v2546_v38 }
 0x4a5   : > { %2345 = vperm.xlu2 %7115, %v2294_v39  }
 0x4aa   : > { %1887 = vperm.xlu1 %7114, %v1868_v40   ;;  %1884 = vperm.xlu0 %7113, %v1867_v41   ;;  %v2530_v41 = vld [vmem:[%s10000_s28] sm:$0xff] }
 0x4ab   : > { %6670 = vmatmul.msk.f32.vlgmr.msra.gmra.mxu3 %vm2547_vm12, %v2530_v41 }
 0x4ad   : > { %1767 = vperm.xlu2 %7115, %v1746_v42  }
 0x4b2   : > { %2350 = vperm.xlu0 %7113, %v2295_v43   ;;  %1764 = vperm.xlu1 %7114, %v1745_v44  }
 0x4b5   : > { %2355 = vperm.xlu2 %7115, %v2296_v45  }
 0x4ba   : > { %1890 = vperm.xlu0 %7113, %v1869_v46   ;;  %1893 = vperm.xlu1 %7114, %v1870_v47   ;;  %v2531_v46 = vld [vmem:[%s10000_s28 + $0x8] sm:$0xff] }
 0x4bb   : > { %6671 = vmatmul.msk.f32.gmra.mxu3 %vm2547_vm12, %v2531_v46 }
 0x4bd   : > { %1773 = vperm.xlu2 %7115, %v1748_v48   ;;  %v7974_v48 = vld [vmem:[%s10001_s2] ss:$0 sm:$0xff]  ;;  %s8361_s2 = scalar_lea.vmem %s10022_s1, %s7491_s7 }
 0x4c2   : > { %2360 = vperm.xlu0 %7113, %v2297_v49   ;;  %1770 = vperm.xlu1 %7114, %v1747_v50  }
 0x4c5   : > { %2365 = vperm.xlu2 %7115, %v2298_v51   ;;  %v7980_v51 = vld [vmem:[%s10002_s14] ss:$0 sm:$0xff] }
 0x4ca   : > { %1896 = vperm.xlu0 %7113, %v1871_v52   ;;  %1899 = vperm.xlu1 %7114, %v1872_v53  }
 0x4cd   : > { %1779 = vperm.xlu2 %7115, %v1750_v54  }
 0x4d2   : > { %2370 = vperm.xlu0 %7113, %v2299_v55   ;;  %1776 = vperm.xlu1 %7114, %v1749_v56   ;;  %v2532_v56 = vld [vmem:[%s10000_s28 + $0x10] sm:$0xff] }
 0x4d3   : > { %6672 = vmatmul.msk.f32.gmra.mxu3 %vm2547_vm12, %v2532_v56 }
 0x4d5   : > { %2375 = vperm.xlu2 %7115, %v2300_v57  }
 0x4da   : > { %1902 = vperm.xlu0 %7113, %v1873_v58   ;;  %1905 = vperm.xlu1 %7114, %v1874_v59  }
 0x4dd   : > { %1785 = vperm.xlu2 %7115, %v1752_v60  }
 0x4df   : > { %v7928_v63 = vpop.permute.xlu2 %2305 }
 0x4e0   : > { %v2386_v52 = vmul.f32 %v7974_v48, %v7928_v63 }
 0x4e2   : > { %2380 = vperm.xlu0 %7113, %v2301_v61   ;;  %1782 = vperm.xlu1 %7114, %v1751_v62   ;;  %v2406_v59 = vadd.f32 %v7980_v51, %v2386_v52 }
 0x4e4   : > { %v2422_v62 = vmax.f32 %v2406_v59, 0.0 }
 0x4e5   : > { %1788 = vperm.xlu2 %7115, %v1753_v3   ;;  %v2533_v3 = vld [vmem:[%s10000_s28 + $0x18] sm:$0xff] }
 0x4e6   : > { %6673 = vmatmul.msk.f32.gmra.mxu3 %vm2547_vm12, %v2533_v3 }
 0x4e7   : > { %v7933_v6 = vpop.permute.xlu2 %2310 }
 0x4e8   : > { %v2387_v53 = vmul.f32 %v7974_v48, %v7933_v6 }
 0x4ea   : > { %1908 = vperm.xlu0 %7113, %v1875_v4   ;;  %1911 = vperm.xlu1 %7114, %v1876_v5   ;;  %v2407_v60 = vadd.f32 %v7980_v51, %v2387_v53  ;;  %v2537_v53 = vld [vmem:[%s10000_s28 + $0x38] sm:$0xff] }
 0x4ec   : > { %v2423_v63 = vmax.f32 %v2407_v60, 0.0 }
 0x4ed   : > { %1917 = vperm.xlu2 %7115, %v1878_v7  }
 0x4ee   : > { %v2442_v7 = vpack.c.bf16 %v2423_v63, %v2422_v62 }
 0x4ef   : > { %v7938_v10 = vpop.permute.xlu2 %2325 }
 0x4f2   : > { %1791 = vperm.xlu0 %7113, %v1754_v8   ;;  %1914 = vperm.xlu1 %7114, %v1877_v9  }
 0x4f5   : > { %1800 = vperm.xlu2 %7115, %v1757_v11  }
 0x4f7   : > { %v7943_v14 = vpop.permute.xlu2 %2340 }
 0x4fa   : > { %1794 = vperm.xlu0 %7113, %v1755_v12   ;;  %1797 = vperm.xlu1 %7114, %v1756_v13  }
 0x4fc   : > { %v1927_v15 = vpop.permute.xlu1 %1926  ;;  %v1921_v16 = vpop.permute.xlu0 %1920 }
 0x4fd   : > { %1809 = vperm.xlu2 %7115, %v1760_v19   ;;  %vm1943_vm8 = vcmp.eq.s32.totalorder %v1921_v16, %v7950_v24  ;;  %vm1945_vm14 = vcmp.eq.s32.totalorder %v1927_v15, %v7950_v24  ;;  %v2534_v15 = vld [vmem:[%s10000_s28 + $0x20] sm:$0xff] }
 0x4fe   : > { %v6641_v35 = vsel %vm1943_vm8, 1.0, %v7551_v34  ;;  %v6643_v47 = vsel %vm1945_vm14, 1.0, %v7551_v34  ;;  %6674 = vmatmul.msk.f32.gmra.mxu3 %vm2547_vm12, %v2534_v15 }
 0x4ff   : > { %v7955_v32 = vpop.permute.xlu2 %2345 }
 0x502   : > { %1803 = vperm.xlu0 %7113, %v1758_v18   ;;  %1806 = vperm.xlu1 %7114, %v1759_v20  }
 0x504   : > { %v1930_v28 = vpop.permute.xlu1 %1929  ;;  %v1924_v29 = vpop.permute.xlu0 %1923 }
 0x505   : > { %vm1944_vm9 = vcmp.eq.s32.totalorder %v1924_v29, %v7950_v24  ;;  %vm1946_vm13 = vcmp.eq.s32.totalorder %v1930_v28, %v7950_v24 }
 0x506   : > { %v6642_v36 = vsel %vm1944_vm9, 1.0, %v7551_v34  ;;  %v6644_v43 = vsel %vm1946_vm13, 1.0, %v7551_v34  ;;  %6675 = vmatmul.msk.f32.gmra.mxu3 %vm2547_vm12, %v2535_v27 }
 0x507   : > { %v1985_v37 = vpack.c.bf16 %v6642_v36, %v6641_v35  ;;  %v1768_v42 = vpop.permute.xlu2 %1767  ;;  %v1986_v49 = vpack.c.bf16 %v6644_v43, %v6643_v47 }
 0x508   : > { %vm1812_vm1 = vcmp.eq.s32.totalorder %v1768_v42, %v7950_v24 }
 0x509   : > { %6659 = vmatmul.msk.bf16.vlgmr.msra.gmra.mxu2 %vm1990_vm10, %v1985_v37  ;;  %v6614_v4 = vsel %vm1812_vm1, 1.0, %v7551_v34 }
 0x50c   : > { %v2321_v39 = vpop.permute.xlu1 %2320  ;;  %v2316_v40 = vpop.permute.xlu0 %2315 }
 0x50d   : > { %v2389_v9 = vmul.f32 %v7974_v48, %v2321_v39  ;;  %v2388_v11 = vmul.f32 %v7974_v48, %v2316_v40  ;;  %v2536_v39 = vld [vmem:[%s10000_s28 + $0x30] sm:$0xff]  ;;  %v2390_v40 = vmul.f32 %v7974_v48, %v7938_v10 }
 0x50e   : > { %6676 = vmatmul.msk.f32.gmra.mxu3 %vm2547_vm12, %v2536_v39 }
 0x50f   : > { %v7976_v50 = vpop.permute.xlu2 %2355  ;;  %v2409_v19 = vadd.f32 %v7980_v51, %v2389_v9  ;;  %v2408_v20 = vadd.f32 %v7980_v51, %v2388_v11  ;;  %v2410_v46 = vadd.f32 %v7980_v51, %v2390_v40  ;;  %v2539_v11 = vld [vmem:[%s10000_s28 + $0x48] sm:$0xff] }
 0x511   : > { %v2425_v22 = vmax.f32 %v2409_v19, 0.0  ;;  %v2424_v23 = vmax.f32 %v2408_v20, 0.0 }
 0x513   : > { %v2443_v35 = vpack.c.bf16 %v2425_v22, %v2424_v23  ;;  %v2540_v23 = vld [vmem:[%s10000_s28 + $0x50] sm:$0xff] }
 0x514   : > { %v7966_v44 = vpop.permute.xlu1 %2335  ;;  %v7968_v45 = vpop.permute.xlu0 %2330 }
 0x515   : > { %v2391_v36 = vmul.f32 %v7974_v48, %v7968_v45  ;;  %v2392_v60 = vmul.f32 %v7974_v48, %v7966_v44 }
 0x516   : > { %6677 = vmatmul.msk.f32.gmra.mxu3 %vm2547_vm12, %v2537_v53  ;;  %v2542_v53 = vld [vmem:[%s10000_s28 + $0x60] sm:$0xff] }
 0x517   : > { %v1774_v0 = vpop.permute.xlu2 %1773  ;;  %v2411_v43 = vadd.f32 %v7980_v51, %v2391_v36  ;;  %v2412_v44 = vadd.f32 %v7980_v51, %v2392_v60 }
 0x518   : > { %vm1814_vm7 = vcmp.eq.s32.totalorder %v1774_v0, %v7950_v24  ;;  %v2538_v0 = vld [vmem:[%s10000_s28 + $0x40] sm:$0xff] }
 0x519   : > { %6660 = vmatmul.msk.bf16.gmra.mxu2 %vm1990_vm10, %v1986_v49  ;;  %v6616_v28 = vsel %vm1814_vm7, 1.0, %v7551_v34  ;;  %v2427_v10 = vmax.f32 %v2411_v43, 0.0 }
 0x51c   : > { %v1888_v54 = vpop.permute.xlu1 %1887  ;;  %v1885_v55 = vpop.permute.xlu0 %1884 }
 0x51d   : > { %vm1932_vm15 = vcmp.eq.s32.totalorder %v1888_v54, %v7950_v24  ;;  %vm1931_vm0 = vcmp.eq.s32.totalorder %v1885_v55, %v7950_v24  ;;  %v2426_v54 = vmax.f32 %v2410_v46, 0.0 }
 0x51e   : > { %v6630_v57 = vsel %vm1932_vm15, 1.0, %v7551_v34  ;;  %v6629_v58 = vsel %vm1931_vm0, 1.0, %v7551_v34  ;;  %6678 = vmatmul.msk.f32.gmra.mxu3 %vm2547_vm12, %v2538_v0  ;;  %v2543_v0 = vld [vmem:[%s10000_s28 + $0x68] sm:$0xff] }
 0x51f   : > { %v1979_v61 = vpack.c.bf16 %v6630_v57, %v6629_v58  ;;  %v8012_v16 = vpop.permute.xlu2 %2365  ;;  %v2444_v59 = vpack.c.bf16 %v2427_v10, %v2426_v54  ;;  %v2396_v54 = vmul.f32 %v7974_v48, %v7976_v50 }
 0x521   : > { %6653 = vmatmul.msk.bf16.vlgmr.msra.gmra.mxu1 %vm1990_vm10, %v1979_v61 }
 0x524   : > { %v7996_v1 = vpop.permute.xlu0 %2350  ;;  %v1765_v2 = vpop.permute.xlu1 %1764 }
 0x525   : > { %vm1811_vm2 = vcmp.eq.s32.totalorder %v1765_v2, %v7950_v24  ;;  %v2393_v2 = vmul.f32 %v7974_v48, %v7943_v14  ;;  %v2395_v20 = vmul.f32 %v7974_v48, %v7996_v1 }
 0x526   : > { %v6613_v5 = vsel %vm1811_vm2, 1.0, %v7551_v34  ;;  %vm8003_vm3 = vmpackc.low %vm1812_vm1, %vm1811_vm2  ;;  %6679 = vmatmul.msk.f32.gmra.mxu3 %vm2547_vm12, %v2539_v11  ;;  %v2398_v11 = vmul.f32 %v7974_v48, %v8012_v16 }
 0x527   : > { %v1859_v8 = vpack.c.bf16 %v6614_v4, %v6613_v5  ;;  %v1780_v31 = vpop.permute.xlu2 %1779 }
 0x528   : > { %vm1816_vm14 = vcmp.eq.s32.totalorder %v1780_v31, %v7950_v24 }
 0x529   : > { %6645 = vmatmul.msk.bf16.vlgmr.msra.gmra.mxu0 %vm1990_vm10, %v1859_v8  ;;  %6661 = vmatmul.msk.bf16.vlgmr.msrb.gmra.mxu2 %vm2456_vm4, %v2442_v7  ;;  %v6618_v55 = vsel %vm1816_vm14, 1.0, %v7551_v34  ;;  %v2413_v7 = vadd.f32 %v7980_v51, %v2393_v2  ;;  %v2428_v8 = vmax.f32 %v2412_v44, 0.0 }
 0x52c   : > { %v1891_v12 = vpop.permute.xlu0 %1890  ;;  %v1894_v13 = vpop.permute.xlu1 %1893 }
 0x52d   : > { %vm1933_vm5 = vcmp.eq.s32.totalorder %v1891_v12, %v7950_v24  ;;  %vm1934_vm6 = vcmp.eq.s32.totalorder %v1894_v13, %v7950_v24  ;;  %v2429_v12 = vmax.f32 %v2413_v7, 0.0 }
 0x52e   : > { %v6631_v17 = vsel %vm1933_vm5, 1.0, %v7551_v34  ;;  %v6632_v18 = vsel %vm1934_vm6, 1.0, %v7551_v34  ;;  %6680 = vmatmul.msk.f32.gmra.mxu3 %vm2547_vm12, %v2540_v23  ;;  %v2617_v23 = vpop.f32.mrf.mxu3 }
 0x52f   : > { %v1980_v21 = vpack.c.bf16 %v6632_v18, %v6631_v17  ;;  %v8048_v47 = vpop.permute.xlu2 %2375  ;;  %v2445_v19 = vpack.c.bf16 %v2429_v12, %v2428_v8  ;;  %v2544_v8 = vld [vmem:[%s10000_s28 + $0x70] sm:$0xff] }
 0x531   : > { %6654 = vmatmul.msk.bf16.gmra.mxu1 %vm1990_vm10, %v1980_v21 }
 0x534   : > { %v8023_v25 = vpop.permute.xlu0 %2360  ;;  %v1771_v26 = vpop.permute.xlu1 %1770 }
 0x535   : > { %vm1813_vm8 = vcmp.eq.s32.totalorder %v1771_v26, %v7950_v24  ;;  %v2394_v26 = vmul.f32 %v7974_v48, %v7955_v32 }
 0x536   : > { %v6615_v29 = vsel %vm1813_vm8, 1.0, %v7551_v34  ;;  %vm8030_vm9 = vmpackc.low %vm1814_vm7, %vm1813_vm8 }
 0x537   : > { %v1860_v33 = vpack.c.bf16 %v6616_v28, %v6615_v29  ;;  %v8067_v61 = vpop.permute.xlu2 %1785  ;;  %v2415_v29 = vadd.f32 %v7980_v51, %v2395_v20 }
 0x538   : > { %vm9940_vm5 = vcmp.eq.s32.totalorder %v8067_v61, %v7950_v24 }
 0x539   : > { %6646 = vmatmul.msk.bf16.gmra.mxu0 %vm1990_vm10, %v1860_v33  ;;  %6662 = vmatmul.msk.bf16.gmra.mxu2 %vm2456_vm4, %v2443_v35  ;;  %v6620_v15 = vsel %vm9940_vm5, 1.0, %v7551_v34  ;;  %v2414_v33 = vadd.f32 %v7980_v51, %v2394_v26  ;;  %v2431_v35 = vmax.f32 %v2415_v29, 0.0 }
 0x53c   : > { %v1897_v37 = vpop.permute.xlu0 %1896  ;;  %v1900_v38 = vpop.permute.xlu1 %1899 }
 0x53d   : > { %vm1935_vm11 = vcmp.eq.s32.totalorder %v1897_v37, %v7950_v24  ;;  %vm1936_vm13 = vcmp.eq.s32.totalorder %v1900_v38, %v7950_v24  ;;  %v2541_v37 = vld [vmem:[%s10000_s28 + $0x58] sm:$0xff]  ;;  %v2430_v38 = vmax.f32 %v2414_v33, 0.0  ;;  %v2785_v33 = vld [vmem:[%s2783_s18 + $0x8] sm:$0xff] }
 0x53e   : > { %v6633_v41 = vsel %vm1935_vm11, 1.0, %v7551_v34  ;;  %v6634_v42 = vsel %vm1936_vm13, 1.0, %v7551_v34  ;;  %6681 = vmatmul.msk.f32.gmra.mxu3 %vm2547_vm12, %v2541_v37  ;;  %v2620_v6 = vpop.f32.mrf.mxu3 }
 0x53f   : > { %v1981_v45 = vpack.c.bf16 %v6634_v42, %v6633_v41  ;;  %v8087_v13 = vpop.permute.xlu2 %1788  ;;  %v2446_v42 = vpack.c.bf16 %v2431_v35, %v2430_v38 }
 0x540   : > { %vm1819_vm11 = vcmp.eq.s32.totalorder %v8087_v13, %v7950_v24 }
 0x541   : > { %6655 = vmatmul.msk.bf16.gmra.mxu1 %vm1990_vm10, %v1981_v45  ;;  %v6621_v39 = vsel %vm1819_vm11, 1.0, %v7551_v34  ;;  %v2397_v45 = vmul.f32 %v7974_v48, %v8023_v25  ;;  %v2416_v25 = vadd.f32 %v7980_v51, %v2396_v54 }
 0x543   : > { %v2432_v2 = vmax.f32 %v2416_v25, 0.0 }
 0x544   : > { %v8052_v49 = vpop.permute.xlu0 %2370  ;;  %v1777_v52 = vpop.permute.xlu1 %1776 }
 0x545   : > { %vm1815_vm15 = vcmp.eq.s32.totalorder %v1777_v52, %v7950_v24  ;;  %v2399_v7 = vmul.f32 %v7974_v48, %v8052_v49  ;;  %v2418_v49 = vadd.f32 %v7980_v51, %v2398_v11 }
 0x546   : > { %v6617_v56 = vsel %vm1815_vm15, 1.0, %v7551_v34  ;;  %vm8059_vm0 = vmpackc.low %vm1816_vm14, %vm1815_vm15  ;;  %6682 = vmatmul.msk.f32.gmra.mxu3 %vm2547_vm12, %v2542_v53 }
 0x547   : > { %v1861_v58 = vpack.c.bf16 %v6618_v55, %v6617_v56  ;;  %v1918_v1 = vpop.permute.xlu2 %1917  ;;  %v2417_v56 = vadd.f32 %v7980_v51, %v2397_v45  ;;  %v2419_v12 = vadd.f32 %v7980_v51, %v2399_v7 }
 0x548   : > { %vm1942_vm15 = vcmp.eq.s32.totalorder %v1918_v1, %v7950_v24 }
 0x549   : > { %6647 = vmatmul.msk.bf16.gmra.mxu0 %vm1990_vm10, %v1861_v58  ;;  %6663 = vmatmul.msk.bf16.gmra.mxu2 %vm2456_vm4, %v2444_v59  ;;  %v6640_v55 = vsel %vm1942_vm15, 1.0, %v7551_v34  ;;  %v2433_v59 = vmax.f32 %v2417_v56, 0.0 }
 0x54b   : > { %v2447_v44 = vpack.c.bf16 %v2433_v59, %v2432_v2 }
 0x54c   : > { %v1903_v62 = vpop.permute.xlu0 %1902  ;;  %v1906_v63 = vpop.permute.xlu1 %1905 }
 0x54d   : > { %vm1937_vm1 = vcmp.eq.s32.totalorder %v1903_v62, %v7950_v24  ;;  %vm1938_vm2 = vcmp.eq.s32.totalorder %v1906_v63, %v7950_v24 }
 0x54e   : > { %v6635_v3 = vsel %vm1937_vm1, 1.0, %v7551_v34  ;;  %v6636_v4 = vsel %vm1938_vm2, 1.0, %v7551_v34  ;;  %6683 = vmatmul.msk.f32.gmra.mxu3 %vm2547_vm12, %v2543_v0 }
 0x54f   : > { %v1982_v5 = vpack.c.bf16 %v6636_v4, %v6635_v3  ;;  %v1801_v43 = vpop.permute.xlu2 %1800 }
 0x550   : > { %vm1823_vm5 = vcmp.eq.s32.totalorder %v1801_v43, %v7950_v24  ;;  %v8242_v43 = vld [vmem:[%s10012_s22] ss:$0 sm:$0xff]  ;;  %s10029_s22 = sld [smem:[#allocation21_spill]] }
 0x551   : > { %6656 = vmatmul.msk.bf16.gmra.mxu1 %vm1990_vm10, %v1982_v5  ;;  %v7552_v5 = vmov 1.0|1.0  }
 0x554   : > { %v8082_v14 = vpop.permute.xlu0 %2380  ;;  %v8084_v9 = vpop.permute.xlu1 %1782 }
 0x555   : > { %vm1817_vm6 = vcmp.eq.s32.totalorder %v8084_v9, %v7950_v24 }
 0x556   : > { %v6619_v17 = vsel %vm1817_vm6, 1.0, %v7551_v34  ;;  %6684 = vmatmul.msk.f32.gmra.mxu3 %vm2547_vm12, %v2544_v8 }
 0x557   : > { %v1862_v18 = vpack.c.bf16 %v6620_v15, %v6619_v17  ;;  %v1810_v60 = vpop.permute.xlu2 %1809  ;;  %v2435_v15 = vmax.f32 %v2419_v12, 0.0  ;;  %v2545_v17 = vld [vmem:[%s10000_s28 + $0x78] sm:$0xff]  ;;  %s10023_s28 = sld [smem:[#allocation19_spill]] }
 0x559   : > { %6648 = vmatmul.msk.bf16.gmra.mxu0 %vm1990_vm10, %v1862_v18  ;;  %6664 = vmatmul.msk.bf16.gmra.mxu2 %vm2456_vm4, %v2445_v19  ;;  %v2434_v18 = vmax.f32 %v2418_v49, 0.0  ;;  %v6625_v19 = vsel %vm1823_vm5, 1.0, %v7551_v34  ;;  %v6958_v49 = vld [vmem:[%s10013_s23 + $0x8] sm:$0xff]  }
 0x55b   : > { %v2448_v20 = vpack.c.bf16 %v2435_v15, %v2434_v18 }
 0x55c   : > { %v1909_v21 = vpop.permute.xlu0 %1908  ;;  %v1912_v22 = vpop.permute.xlu1 %1911 }
 0x55d   : > { %vm1939_vm7 = vcmp.eq.s32.totalorder %v1909_v21, %v7950_v24  ;;  %vm1940_vm8 = vcmp.eq.s32.totalorder %v1912_v22, %v7950_v24  ;;  %v2401_v21 = vmul.f32 %v7974_v48, %v8082_v14  ;;  %s8365_s14 = scalar_lea.vmem %s10023_s28, %s7491_s7  ;;  %s10035_s28 = sld [smem:[#allocation23_spill]] }
 0x55e   : > { %v6637_v27 = vsel %vm1939_vm7, 1.0, %v7551_v34  ;;  %v6638_v28 = vsel %vm1940_vm8, 1.0, %v7551_v34  ;;  %vm9941_vm8 = vcmp.eq.s32.totalorder %v1810_v60, %v7950_v24  ;;  %6685 = vmatmul.msk.f32.gmra.mxu3 %vm2547_vm12, %v2545_v17  ;;  %vm10011_vm12 = vcmp.eq.s32.totalorder %v1810_v60, %v7950_v24 }
 0x55f   : > { %v1983_v31 = vpack.c.bf16 %v6638_v28, %v6637_v27  ;;  %v2421_v9 = vadd.f32 %v7980_v51, %v2401_v21  ;;  %v2787_v27 = vld [vmem:[%s2783_s18 + $0x18] sm:$0xff]  ;;  %v6628_v30 = vsel %vm10011_vm12, 1.0, %v7551_v34  ;;  %v6900_v17 = vunpack.c.l.bf16 %v6958_v49 }
 0x561   : > { %6657 = vmatmul.msk.bf16.gmra.mxu1 %vm1990_vm10, %v1983_v31  ;;  %v2437_v14 = vmax.f32 %v2421_v9, 0.0  ;;  %v2784_v31 = vld [vmem:[%s2783_s18] sm:$0xff] }
 0x562   : > { %v2796_v35 = vpack.c.bf16 %v2785_v33, %v2784_v31  ;;  %v6959_v33 = vld [vmem:[%s10013_s23 + $0x10] sm:$0xff]  }
 0x564   : > { %v1792_v32 = vpop.permute.xlu0 %1791  ;;  %v1915_v36 = vpop.permute.xlu1 %1914 }
 0x565   : > { %vm1820_vm13 = vcmp.eq.s32.totalorder %v1792_v32, %v7950_v24  ;;  %vm1941_vm14 = vcmp.eq.s32.totalorder %v1915_v36, %v7950_v24 }
 0x566   : > { %v6622_v40 = vsel %vm1820_vm13, 1.0, %v7551_v34  ;;  %v6639_v46 = vsel %vm1941_vm14, 1.0, %v7551_v34 }
 0x567   : > { %v1863_v41 = vpack.c.bf16 %v6622_v40, %v6621_v39  ;;  %v1984_v58 = vpack.c.bf16 %v6640_v55, %v6639_v46 }
 0x569   : > { %6649 = vmatmul.msk.bf16.gmra.mxu0 %vm1990_vm10, %v1863_v41  ;;  %6665 = vmatmul.msk.bf16.gmra.mxu2 %vm2456_vm4, %v2446_v42 }
 0x56c   : > { %v1795_v10 = vpop.permute.xlu0 %1794  ;;  %v1798_v52 = vpop.permute.xlu1 %1797 }
 0x56d   : > { %vm1821_vm1 = vcmp.eq.s32.totalorder %v1795_v10, %v7950_v24  ;;  %vm1822_vm2 = vcmp.eq.s32.totalorder %v1798_v52, %v7950_v24  ;;  %v6895_v52 = vld [vmem:[%s10013_s23] sm:$0xff]  }
 0x56e   : > { %v6623_v50 = vsel %vm1821_vm1, 1.0, %v7551_v34  ;;  %v6624_v62 = vsel %vm1822_vm2, 1.0, %v7551_v34  ;;  %v6896_v55 = vunpack.c.l.bf16 %v6895_v52 }
 0x56f   : > { %v1864_v4 = vpack.c.bf16 %v6624_v62, %v6623_v50 }
 0x571   : > { %6658 = vmatmul.msk.bf16.gmra.mxu1 %vm1990_vm10, %v1984_v58  ;;  %v6897_v58 = vunpack.c.h.bf16 %v6895_v52 }
 0x574   : > { %v1807_v63 = vpop.permute.xlu1 %1806  ;;  %v1804_v3 = vpop.permute.xlu0 %1803 }
 0x575   : > { %vm1825_vm7 = vcmp.eq.s32.totalorder %v1807_v63, %v7950_v24  ;;  %vm1824_vm15 = vcmp.eq.s32.totalorder %v1804_v3, %v7950_v24 }
 0x576   : > { %vm7010_vm14 = vmpackc.low %vm9941_vm8, %vm1825_vm7  ;;  %v6626_v16 = vsel %vm1824_vm15, 1.0, %v7551_v34  ;;  %v6627_v57 = vsel %vm1825_vm7, 1.0, %v7551_v34  ;;  %v2623_v34 = vpop.f32.mrf.mxu3 }
 0x577   : > { %7011 = vmatpush.lsf.msk.bf16.msk.msrb.mxu0 %vm7010_vm14, %v7552_v5  ;;  %vm7012_vm8 = vmpackc.low %vm1824_vm15, %vm1823_vm5  ;;  %v1865_v13 = vpack.c.bf16 %v6626_v16, %v6625_v19 }
 0x578   : > { %vm7014_vm14 = vmpackc.low %vm1822_vm2, %vm1821_vm1 }
 0x579   : > { %6650 = vmatmul.msk.bf16.gmra.mxu0 %vm1990_vm10, %v1864_v4  ;;  %6666 = vmatmul.msk.bf16.gmra.mxu2 %vm2456_vm4, %v2447_v44 }
 0x57b   : > { %7013 = vmatpush.lsf.msk.bf16.msk.msrb.mxu0 %vm7012_vm8, %v7552_v5  ;;  %vm7016_vm8 = vmpackc.low %vm1820_vm13, %vm1819_vm11  ;;  %vm10009_vm11 = vcmp.eq.s32.totalorder %v8067_v61, %v7950_v24  ;;  %v2400_v61 = vmul.f32 %v7974_v48, %v8048_v47  ;;  %v2786_v47 = vld [vmem:[%s2783_s18 + $0x10] sm:$0xff]  ;;  %s3228_s18 = scalar_lea.vmem %s10027_s15, %s8208_s16  ;;  %s3656_s15 = scalar_lea.vmem %s10035_s28, %s7491_s7 }
 0x57c   : > { %vm7018_vm13 = vmpackc.low %vm10009_vm11, %vm1817_vm6  ;;  %v2797_v29 = vpack.c.bf16 %v2787_v27, %v2786_v47 }
 0x57d   : > { %v2420_v26 = vadd.f32 %v7980_v51, %v2400_v61  ;;  %v1866_v51 = vpack.c.bf16 %v6628_v30, %v6627_v57 }
 0x57e   : > { %2828 = vmatpush.bf16.msrb.mxu1 %v2797_v29  ;;  %6977 = vmatpush.bf16.msrb.mxu3 %v2797_v29  ;;  %v2626_v45 = vpop.f32.mrf.mxu3 }
 0x57f   : > { %7015 = vmatpush.lsf.msk.bf16.msk.msrb.mxu0 %vm7014_vm14, %v7552_v5  ;;  %v2436_v28 = vmax.f32 %v2420_v26, 0.0 }
 0x581   : > { %v2449_v1 = vpack.c.bf16 %v2437_v14, %v2436_v28 }
 0x582   : > { %2829 = vmatpush.bf16.msrb.mxu1 %v2796_v35  ;;  %6978 = vmatpush.bf16.msrb.mxu3 %v2796_v35 }
 0x583   : > { %7017 = vmatpush.lsf.msk.bf16.msk.msrb.mxu0 %vm7016_vm8, %v7552_v5 }
 0x586   : > { %v2629_v3 = vpop.f32.mrf.mxu3 }
 0x587   : > { %7019 = vmatpush.lsf.msk.bf16.msk.msrb.mxu0 %vm7018_vm13, %v7552_v5 }
 0x589   : > { %6651 = vmatmul.msk.bf16.gmra.mxu0 %vm1990_vm10, %v1865_v13  ;;  %6667 = vmatmul.msk.bf16.gmra.mxu2 %vm2456_vm4, %v2448_v20  ;;  %v6901_v13 = vunpack.c.h.bf16 %v6958_v49 }
 0x58b   : > { %7021 = vmatpush.lsf.msk.bf16.msk.msrb.mxu0 %vm8059_vm0, %v7552_v5 }
 0x58c   : > { %v8203_v22 = vpop.f32.mrf.mxu2 }
 0x58e   : > { %v2632_v19 = vpop.f32.mrf.mxu3 }
 0x58f   : > { %7023 = vmatpush.lsf.msk.bf16.msk.msrb.mxu0 %vm8030_vm9, %v7552_v5 }
 0x593   : > { %7025 = vmatpush.lsf.msk.bf16.msk.msrb.mxu0 %vm8003_vm3, %v7552_v5 }
 0x594   : > { %v8221_v48 = vpop.f32.mrf.mxu2 }
 0x598   : > { %7007 = vllmr.2.mxu0 }
 0x599   : > { %6652 = vmatmul.msk.bf16.gmra.mxu0 %vm1990_vm10, %v1866_v51  ;;  %6668 = vmatmul.msk.bf16.gmra.mxu2 %vm2456_vm4, %v2449_v1  ;;  %v2635_v51 = vpop.f32.mrf.mxu3  ;;  %vm2237_vm10 = vcmask 64512  }
 0x59c   : > { %v8228_v32 = vpop.f32.mrf.mxu2 }
 0x59e   : > { %v2101_v24 = vpop.f32.mrf.mxu1 }
 0x5a1   : > { %v2638_v52 = vpop.f32.mrf.mxu3 }
 0x5a4   : > { %v8230_v36 = vpop.f32.mrf.mxu2 }
 0x5a6   : > { %v2024_v37 = vpop.f32.mrf.mxu0  ;;  %v8232_v38 = vpop.f32.mrf.mxu1 }
 0x5a7   : > { %v8234_v39 = vsub.f32 %v2024_v37, %v2101_v24  ;;  %v8236_v40 = vadd.f32 %v2101_v24, %v2024_v37  ;;  %v6904_v24 = vunpack.c.l.bf16 %v6959_v33  ;;  %v6905_v37 = vunpack.c.h.bf16 %v6959_v33 }
 0x5a9   : > { %10014 = vst [vmem:[#allocation36_spill] sm:$0xff] %v8234_v39  ;;  %v2157_v41 = vmul.f32 %v8234_v39, %v8234_v39 }
 0x5ab   : > { %2189 = vrot.lane.b32.xlu0 %v2157_v41, %s7553_s26 }
 0x5ac   : > { %v2490_v42 = vpop.f32.mrf.mxu2 }
 0x5ad   : > { %v2491_v54 = vadd.f32 %v8242_v43, %v2490_v42 }
 0x5ae   : > { %v8244_v46 = vpop.f32.mrf.mxu0  ;;  %v2106_v10 = vpop.f32.mrf.mxu1 }
 0x5af   : > { %v8249_v53 = vsub.f32 %v8244_v46, %v8232_v38  ;;  %v2697_v59 = vmul.f32 %v6896_v55, %v2491_v54 }
 0x5b1   : > { %10015 = vst [vmem:[#allocation37_spill] sm:$0xff] %v8249_v53  ;;  %v2158_v56 = vmul.f32 %v8249_v53, %v8249_v53  ;;  %v2713_v4 = vadd.f32 %v2697_v59, %v2617_v23 }
 0x5b3   : > { %2191 = vrot.lane.b32.xlu1 %v2158_v56, %s7553_s26 }
 0x5b4   : > { %v2492_v25 = vpop.f32.mrf.mxu2 }
 0x5b5   : > { %v2493_v60 = vadd.f32 %v8242_v43, %v2492_v25 }
 0x5b6   : > { %v2029_v50 = vpop.f32.mrf.mxu0  ;;  %v8256_v62 = vpop.f32.mrf.mxu1 }
 0x5b7   : > { %v8258_v63 = vsub.f32 %v2029_v50, %v2106_v10  ;;  %v8260_v0 = vadd.f32 %v2106_v10, %v2029_v50  ;;  %v2698_v2 = vmul.f32 %v6897_v58, %v2493_v60 }
 0x5b9   : > { %10016 = vst [vmem:[#allocation38_spill] sm:$0xff] %v8258_v63  ;;  %v2159_v44 = vmul.f32 %v8258_v63, %v8258_v63  ;;  %v2714_v5 = vadd.f32 %v2698_v2, %v2620_v6 }
 0x5bb   : > { %v2788_v7 = vpack.c.bf16 %v2714_v5, %v2713_v4  ;;  %2193 = vrot.lane.b32.xlu2 %v2159_v44, %s7553_s26  ;;  %v6960_v44 = vld [vmem:[%s10013_s23 + $0x18] sm:$0xff]  }
 0x5bc   : > { %v2495_v8 = vpop.f32.mrf.mxu2 }
 0x5bd   : > { %6687 = vmatmul.msk.bf16.vlgmr.msrb.gmra.mxu1 %vm2456_vm4, %v2788_v7  ;;  %v2496_v16 = vadd.f32 %v8242_v43, %v2495_v8  ;;  %v2641_v7 = vpop.f32.mrf.mxu3  ;;  %v6908_v8 = vunpack.c.l.bf16 %v6960_v44 }
 0x5be   : > { %v8266_v11 = vpop.f32.mrf.mxu0  ;;  %v2111_v12 = vpop.f32.mrf.mxu1 }
 0x5bf   : > { %v8271_v15 = vsub.f32 %v8266_v11, %v8256_v62  ;;  %v2699_v21 = vmul.f32 %v6900_v17, %v2496_v16  ;;  %v6909_v16 = vunpack.c.h.bf16 %v6960_v44  ;;  %v6962_v44 = vld [vmem:[%s10013_s23 + $0x28] sm:$0xff]  }
 0x5c1   : > { %10017 = vst [vmem:[#allocation39_spill] sm:$0xff] %v8271_v15  ;;  %v2160_v18 = vmul.f32 %v8271_v15, %v8271_v15  ;;  %v2715_v47 = vadd.f32 %v2699_v21, %v2623_v34 }
 0x5c3   : > { %2195 = vrot.lane.b32.xlu0 %v2160_v18, %s7553_s26 }
 0x5c4   : > { %v2497_v20 = vpop.f32.mrf.mxu2 }
 0x5c5   : > { %v2498_v61 = vadd.f32 %v8242_v43, %v2497_v20 }
 0x5c6   : > { %v2034_v9 = vpop.f32.mrf.mxu0  ;;  %v8278_v23 = vpop.f32.mrf.mxu1 }
 0x5c7   : > { %v8280_v26 = vsub.f32 %v2034_v9, %v2111_v12  ;;  %v8282_v14 = vadd.f32 %v2111_v12, %v2034_v9  ;;  %v2700_v57 = vmul.f32 %v6901_v13, %v2498_v61 }
 0x5c9   : > { %v2161_v27 = vmul.f32 %v8280_v26, %v8280_v26  ;;  %v2716_v28 = vadd.f32 %v2700_v57, %v2626_v45 }
 0x5cb   : > { %v2789_v29 = vpack.c.bf16 %v2716_v28, %v2715_v47  ;;  %2197 = vrot.lane.b32.xlu1 %v2161_v27, %s7553_s26  ;;  %v2644_v47 = vpop.f32.mrf.mxu3 }
 0x5cc   : > { %v2500_v30 = vpop.f32.mrf.mxu2 }
 0x5cd   : > { %6688 = vmatmul.msk.bf16.gmra.mxu1 %vm2456_vm4, %v2789_v29  ;;  %v2501_v35 = vadd.f32 %v8242_v43, %v2500_v30 }
 0x5ce   : > { %v8288_v1 = vpop.f32.mrf.mxu0  ;;  %v2116_v31 = vpop.f32.mrf.mxu1 }
 0x5cf   : > { %v8293_v6 = vsub.f32 %v8288_v1, %v8278_v23  ;;  %v2701_v42 = vmul.f32 %v6904_v24, %v2501_v35 }
 0x5d1   : > { %v2162_v34 = vmul.f32 %v8293_v6, %v8293_v6  ;;  %v2717_v25 = vadd.f32 %v2701_v42, %v2629_v3 }
 0x5d3   : > { %2199 = vrot.lane.b32.xlu2 %v2162_v34, %s7553_s26 }
 0x5d4   : > { %v2502_v41 = vpop.f32.mrf.mxu2 }
 0x5d5   : > { %v2503_v45 = vadd.f32 %v8242_v43, %v2502_v41  ;;  %v2647_v41 = vpop.f32.mrf.mxu3 }
 0x5d6   : > { %v2039_v10 = vpop.f32.mrf.mxu0  ;;  %v8304_v58 = vpop.f32.mrf.mxu1 }
 0x5d7   : > { %v8300_v54 = vsub.f32 %v2039_v10, %v2116_v31  ;;  %v8302_v55 = vadd.f32 %v2116_v31, %v2039_v10  ;;  %v2702_v56 = vmul.f32 %v6905_v37, %v2503_v45  ;;  %v6961_v31 = vld [vmem:[%s10013_s23 + $0x20] sm:$0xff]  }
 0x5d8   : > { %v6912_v35 = vunpack.c.l.bf16 %v6961_v31  ;;  %v6913_v34 = vunpack.c.h.bf16 %v6961_v31 }
 0x5d9   : > { %10018 = vst [vmem:[#allocation40_spill] sm:$0xff] %v8300_v54  ;;  %v2163_v59 = vmul.f32 %v8300_v54, %v8300_v54  ;;  %v2718_v60 = vadd.f32 %v2702_v56, %v2632_v19 }
 0x5db   : > { %v2790_v50 = vpack.c.bf16 %v2718_v60, %v2717_v25  ;;  %2201 = vrot.lane.b32.xlu2 %v2163_v59, %s7553_s26 }
 0x5dc   : > { %v2505_v2 = vpop.f32.mrf.mxu2 }
 0x5dd   : > { %6689 = vmatmul.msk.bf16.gmra.mxu1 %vm2456_vm4, %v2790_v50  ;;  %v2506_v3 = vadd.f32 %v8242_v43, %v2505_v2 }
 0x5de   : > { %v8310_v4 = vpop.f32.mrf.mxu0  ;;  %v8320_v49 = vpop.f32.mrf.mxu1 }
 0x5df   : > { %v8315_v5 = vsub.f32 %v8310_v4, %v8304_v58  ;;  %v2703_v18 = vmul.f32 %v6908_v8, %v2506_v3  ;;  %v2650_v3 = vpop.f32.mrf.mxu3 }
 0x5e1   : > { %10019 = vst [vmem:[#allocation41_spill] sm:$0xff] %v8315_v5  ;;  %v2164_v12 = vmul.f32 %v8315_v5, %v8315_v5  ;;  %v2719_v61 = vadd.f32 %v2703_v18, %v2635_v51 }
 0x5e3   : > { %2203 = vrot.lane.b32.xlu2 %v2164_v12, %s7553_s26  ;;  %v6916_v12 = vunpack.c.l.bf16 %v6962_v44 }
 0x5e4   : > { %v2507_v17 = vpop.f32.mrf.mxu2 }
 0x5e5   : > { %v2508_v19 = vadd.f32 %v8242_v43, %v2507_v17 }
 0x5e6   : > { %v8324_v13 = vpop.f32.mrf.mxu0  ;;  %v8333_v28 = vpop.f32.mrf.mxu1 }
 0x5e7   : > { %v8328_v20 = vsub.f32 %v8324_v13, %v8320_v49  ;;  %v2704_v21 = vmul.f32 %v6909_v16, %v2508_v19  ;;  %v6917_v16 = vunpack.c.h.bf16 %v6962_v44 }
 0x5e9   : > { %10020 = vst [vmem:[#allocation42_spill] sm:$0xff] %v8328_v20  ;;  %v2720_v9 = vadd.f32 %v2704_v21, %v2638_v52  ;;  %v2165_v57 = vmul.f32 %v8328_v20, %v8328_v20  ;;  %v2653_v21 = vpop.f32.mrf.mxu3 }
 0x5eb   : > { %v2791_v27 = vpack.c.bf16 %v2720_v9, %v2719_v61  ;;  %2205 = vrot.lane.b32.xlu1 %v2165_v57, %s7553_s26 }
 0x5ec   : > { %v2510_v29 = vpop.f32.mrf.mxu2 }
 0x5ed   : > { %6690 = vmatmul.msk.bf16.gmra.mxu1 %vm2456_vm4, %v2791_v27  ;;  %v2511_v51 = vadd.f32 %v8242_v43, %v2510_v29  ;;  %v6963_v27 = vld [vmem:[%s10013_s23 + $0x30] sm:$0xff]  }
 0x5ee   : > { %v8336_v30 = vpop.f32.mrf.mxu0  ;;  %v8348_v10 = vpop.f32.mrf.mxu1  ;;  %v6920_v31 = vunpack.c.l.bf16 %v6963_v27 }
 0x5ef   : > { %v8341_v33 = vsub.f32 %v8336_v30, %v8333_v28  ;;  %v2705_v42 = vmul.f32 %v6912_v35, %v2511_v51  ;;  %v6921_v35 = vunpack.c.h.bf16 %v6963_v27 }
 0x5f1   : > { %10021 = vst [vmem:[#allocation43_spill] sm:$0xff] %v8341_v33  ;;  %v2166_v24 = vmul.f32 %v8341_v33, %v8341_v33  ;;  %v2721_v59 = vadd.f32 %v2705_v42, %v2641_v7  ;;  %v2656_v51 = vpop.f32.mrf.mxu3 }
 0x5f3   : > { %2207 = vrot.lane.b32.xlu0 %v2166_v24, %s7553_s26 }
 0x5f4   : > { %v2512_v37 = vpop.f32.mrf.mxu2 }
 0x5f5   : > { %v2513_v45 = vadd.f32 %v8242_v43, %v2512_v37 }
 0x5f6   : > { %v8350_v52 = vpop.f32.mrf.mxu0 }
 0x5f7   : > { %v2706_v56 = vmul.f32 %v6913_v34, %v2513_v45  ;;  %v8354_v25 = vadd.f32 %v8348_v10, %v8350_v52 }
 0x5f9   : > { %v2722_v60 = vadd.f32 %v2706_v56, %v2644_v47 }
 0x5fb   : > { %v2792_v50 = vpack.c.bf16 %v2722_v60, %v2721_v59 }
 0x5fc   : > { %v2515_v2 = vpop.f32.mrf.mxu2 }
 0x5fd   : > { %6691 = vmatmul.msk.bf16.gmra.mxu1 %vm2456_vm4, %v2792_v50  ;;  %v2516_v8 = vadd.f32 %v8242_v43, %v2515_v2  ;;  %v2659_v2 = vpop.f32.mrf.mxu3 }
 0x5ff   : > { %v2707_v18 = vmul.f32 %v6916_v12, %v2516_v8  ;;  %v6964_v8 = vld [vmem:[%s10013_s23 + $0x38] sm:$0xff]   ;;  %s8486_s23 = scalar_lea.vmem %s10029_s22, %s7491_s7 }
 0x601   : > { %v2723_v61 = vadd.f32 %v2707_v18, %v2647_v41 }
 0x604   : > { %v2517_v17 = vpop.f32.mrf.mxu2 }
 0x605   : > { %v2518_v7 = vadd.f32 %v8242_v43, %v2517_v17  ;;  %v6925_v17 = vunpack.c.h.bf16 %v6964_v8 }
 0x607   : > { %v2708_v19 = vmul.f32 %v6917_v16, %v2518_v7  ;;  %v6924_v16 = vunpack.c.l.bf16 %v6964_v8 }
 0x609   : > { %v2724_v9 = vadd.f32 %v2708_v19, %v2650_v3 }
 0x60b   : > { %v2793_v57 = vpack.c.bf16 %v2724_v9, %v2723_v61  ;;  %v2662_v9 = vpop.f32.mrf.mxu3 }
 0x60c   : > { %v2520_v47 = vpop.f32.mrf.mxu2 }
 0x60d   : > { %6692 = vmatmul.msk.bf16.vlgmr.msrb.gmra.mxu3 %vm2456_vm4, %v2793_v57  ;;  %v2521_v29 = vadd.f32 %v8242_v43, %v2520_v47 }
 0x60f   : > { %v2709_v34 = vmul.f32 %v6920_v31, %v2521_v29  ;;  %v8379_v29 = vpop.f32.mrf.mxu0 }
 0x611   : > { %v2725_v56 = vadd.f32 %v2709_v34, %v2653_v21 }
 0x614   : > { %v2522_v24 = vpop.f32.mrf.mxu2 }
 0x615   : > { %v2523_v37 = vadd.f32 %v8242_v43, %v2522_v24  ;;  %v2194_v42 = vpop.permute.xlu2 %2193  ;;  %v8393_v24 = vsub.f32 %v8350_v52, %v8348_v10 }
 0x616   : > { %v2244_v41 = vsel %vm2237_vm10, %v2194_v42, 0.0 }
 0x617   : > { %v2710_v45 = vmul.f32 %v6921_v35, %v2523_v37  ;;  %2245 = vadd.xlane.f32.xlu2 %v2244_v41  ;;  %10025 = vst [vmem:[#allocation45_spill] sm:$0xff] %v8393_v24  ;;  %v2167_v37 = vmul.f32 %v8393_v24, %v8393_v24 }
 0x619   : > { %v2726_v59 = vadd.f32 %v2710_v45, %v2656_v51  ;;  %v8381_v51 = vpop.f32.mrf.mxu1 }
 0x61a   : > { %v8385_v35 = vsub.f32 %v8379_v29, %v8381_v51 }
 0x61b   : > { %v2794_v60 = vpack.c.bf16 %v2726_v59, %v2725_v56 }
 0x61c   : > { %v2525_v50 = vpop.f32.mrf.mxu2  ;;  %10024 = vst [vmem:[#allocation44_spill] sm:$0xff] %v8385_v35 }
 0x61d   : > { %6693 = vmatmul.msk.bf16.gmra.mxu3 %vm2456_vm4, %v2794_v60  ;;  %v2190_v44 = vpop.permute.xlu0 %2189  ;;  %v2526_v12 = vadd.f32 %v8242_v43, %v2525_v50  ;;  %v8401_v60 = vpop.f32.mrf.mxu0 }
 0x61e   : > { %v2238_v3 = vsel %vm2237_vm10, %v2190_v44, 0.0 }
 0x61f   : > { %2239 = vadd.xlane.f32.xlu0 %v2238_v3  ;;  %v2711_v7 = vmul.f32 %v6924_v16, %v2526_v12  ;;  %v8416_v12 = vsub.f32 %v8401_v60, %v8203_v22 }
 0x621   : > { %v2727_v47 = vadd.f32 %v2711_v7, %v2659_v2  ;;  %10026 = vst [vmem:[#allocation46_spill] sm:$0xff] %v8416_v12  ;;  %v2169_v16 = vmul.f32 %v8416_v12, %v8416_v12 }
 0x624   : > { %v2527_v18 = vpop.f32.mrf.mxu2 }
 0x625   : > { %v2528_v19 = vadd.f32 %v8242_v43, %v2527_v18  ;;  %v2192_v21 = vpop.permute.xlu1 %2191  ;;  %v2168_v43 = vmul.f32 %v8385_v35, %v8385_v35  ;;  %v8404_v50 = vpop.f32.mrf.mxu0 }
 0x626   : > { %v2241_v61 = vsel %vm2237_vm10, %v2192_v21, 0.0  ;;  %v8408_v2 = vsub.f32 %v8404_v50, %v8221_v48 }
 0x627   : > { %2242 = vadd.xlane.f32.xlu1 %v2241_v61  ;;  %v2712_v57 = vmul.f32 %v6925_v17, %v2528_v19  ;;  %v8432_v61 = vld [vmem:[%s8361_s2] ss:$0 sm:$0xff] }
 0x628   : > { %v2170_v44 = vmul.f32 %v8408_v2, %v8408_v2 }
 0x629   : > { %v2728_v27 = vadd.f32 %v2712_v57, %v2662_v9 }
 0x62b   : > { %v2795_v31 = vpack.c.bf16 %v2728_v27, %v2727_v47 }
 0x62d   : > { %6694 = vmatmul.msk.bf16.gmra.mxu3 %vm2456_vm4, %v2795_v31  ;;  %v2200_v41 = vpop.permute.xlu2 %2199  ;;  %v8421_v17 = vpop.f32.mrf.mxu0 }
 0x62e   : > { %v2253_v45 = vsel %vm2237_vm10, %v2200_v41, 0.0  ;;  %v8425_v18 = vsub.f32 %v8421_v17, %v8228_v32 }
 0x630   : > { %10028 = vst [vmem:[#allocation47_spill] sm:$0xff] %v8425_v18  ;;  %v2171_v7 = vmul.f32 %v8425_v18, %v8425_v18 }
 0x633   : > { %2211 = vrot.lane.b32.xlu0 %v2168_v43, %s7553_s26  ;;  %v8440_v43 = vld [vmem:[%s8365_s14] ss:$0 sm:$0xff] }
 0x635   : > { %v2202_v56 = vpop.permute.xlu2 %2201  ;;  %v2196_v10 = vpop.permute.xlu0 %2195 }
 0x636   : > { %v2256_v59 = vsel %vm2237_vm10, %v2202_v56, 0.0  ;;  %v2247_v52 = vsel %vm2237_vm10, %v2196_v10, 0.0  ;;  %v3232_v10 = vld [vmem:[%s3228_s18 + $0x18] sm:$0xff] }
 0x63a   : > { %v2831_v27 = vpop.f32.mrf.mxu1 }
 0x63d   : > { %v2198_v34 = vpop.permute.xlu1 %2197  ;;  %v2204_v3 = vpop.permute.xlu2 %2203 }
 0x63e   : > { %v2250_v42 = vsel %vm2237_vm10, %v2198_v34, 0.0  ;;  %v2259_v8 = vsel %vm2237_vm10, %v2204_v3, 0.0 }
 0x63f   : > { %2251 = vadd.xlane.f32.xlu2 %v2250_v42 }
 0x640   : > { %2209 = vrot.lane.b32.xlu1 %v2167_v37, %s7553_s26 }
 0x647   : > { %2254 = vadd.xlane.f32.xlu2 %v2253_v45  ;;  %v2730_v45 = vadd.f32 %v8232_v38, %v8244_v46 }
 0x64f   : > { %2257 = vadd.xlane.f32.xlu2 %v2256_v59 }
 0x65d   : > { %2248 = vadd.xlane.f32.xlu0 %v2247_v52  ;;  %v2206_v9 = vpop.permute.xlu1 %2205 }
 0x65e   : > { %v2262_v41 = vsel %vm2237_vm10, %v2206_v9, 0.0 }
 0x665   : > { %v2208_v19 = vpop.permute.xlu0 %2207 }
 0x666   : > { %v2265_v21 = vsel %vm2237_vm10, %v2208_v19, 0.0 }
 0x667   : > { %2215 = vrot.lane.b32.xlu2 %v2170_v44, %s7553_s26  ;;  %v2833_v44 = vpop.f32.mrf.mxu1 }
 0x66a   : > { %2260 = vadd.xlane.f32.xlu1 %v2259_v8 }
 0x671   : > { %2213 = vrot.lane.b32.xlu0 %v2169_v16, %s7553_s26  ;;  %v3229_v16 = vld [vmem:[%s3228_s18] sm:$0xff] }
 0x683   : > { %2217 = vrot.lane.b32.xlu1 %v2171_v7, %s7553_s26  ;;  %v3230_v7 = vld [vmem:[%s3228_s18 + $0x8] sm:$0xff] }
 0x690   : > { %2266 = vadd.xlane.f32.xlu2 %v2265_v21  ;;  %v3241_v21 = vpack.c.bf16 %v3230_v7, %v3229_v16 }
 0x692   : > { %v8434_v57 = vpop.xlane.xlu0 %2239 }
 0x693   : > { %v2750_v47 = vmul.f32 %v8432_v61, %v8434_v57 }
 0x695   : > { %v2766_v31 = vadd.f32 %v2750_v47, %v8236_v40  ;;  %v3231_v40 = vld [vmem:[%s3228_s18 + $0x10] sm:$0xff]  ;;  %s10045_s18 = sld [smem:[#allocation24_spill]] }
 0x696   : > { %v3242_v3 = vpack.c.bf16 %v3232_v10, %v3231_v40 }
 0x697   : > { %v2871_v34 = vadd.f32 %v2831_v27, %v2766_v31  ;;  %v8456_v27 = vpop.f32.mrf.mxu0 }
 0x698   : > { %3278 = vmatpush.bf16.msra.mxu0 %v3242_v3 }
 0x699   : > { %v8443_v37 = vadd.f32 %v8440_v43, %v2871_v34  ;;  %v8461_v34 = vsub.f32 %v8456_v27, %v8230_v36 }
 0x69a   : > { %v8447_v42 = vpop.xlane.xlu1 %2242 }
 0x69b   : > { %v6695_v56 = vmul.f32 -1.442695, %v8443_v37  ;;  %v2751_v59 = vmul.f32 %v8432_v61, %v8447_v42  ;;  %2263 = vadd.xlane.f32.xlu0 %v2262_v41  ;;  %v8463_v41 = vpop.xlane.xlu2 %2245  ;;  %v2172_v10 = vmul.f32 %v8461_v34, %v8461_v34  ;;  %s4134_s22 = scalar_lea.vmem %s10045_s18, %s8208_s16 }
 0x69c   : > { %3279 = vmatpush.bf16.msra.mxu0 %v3241_v21 }
 0x69d   : > { %7126 = vpow2.f32 %v6695_v56  ;;  %v2767_v52 = vadd.f32 %v2751_v59, %v2730_v45  ;;  %v2836_v56 = vpop.f32.mrf.mxu1 }
 0x69f   : > { %v2872_v8 = vadd.f32 %v2833_v44, %v2767_v52 }
 0x6a1   : > { %v2893_v19 = vadd.f32 %v8440_v43, %v2872_v8 }
 0x6a3   : > { %v7127_v38 = vpop.eup %7126  ;;  %v6696_v46 = vmul.f32 -1.442695, %v2893_v19 }
 0x6a4   : > { %v2956_v9 = vadd.f32 1.0, %v7127_v38  ;;  %v2752_v38 = vmul.f32 %v8432_v61, %v8463_v41 }
 0x6a5   : > { %7128 = vpow2.f32 %v6696_v46  ;;  %v2212_v47 = vpop.permute.xlu0 %2211  ;;  %v2838_v46 = vpop.f32.mrf.mxu1 }
 0x6a6   : > { %7130 = vrcp.f32 %v2956_v9  ;;  %v2271_v31 = vsel %vm2237_vm10, %v2212_v47, 0.0  ;;  %vm2977_vm9 = vweird.f32 %v2956_v9 }
 0x6a7   : > { %2272 = vadd.xlane.f32.xlu2 %v2271_v31 }
 0x6ab   : > { %v7129_v45 = vpop.eup %7128 }
 0x6ac   : > { %v7131_v59 = vpop.eup %7130  ;;  %v2957_v40 = vadd.f32 1.0, %v7129_v45  ;;  %v2983_v45 = vand.u32 2147483648, %v2956_v9 }
 0x6ad   : > { %v2973_v52 = vmul.f32 %v7131_v59, %v2956_v9  ;;  %vm2978_vm3 = vweird.f32 %v7131_v59 }
 0x6ae   : > { %7132 = vrcp.f32 %v2957_v40  ;;  %vm2979_vm0 = vmor %vm2977_vm9, %vm2978_vm3  ;;  %v2984_v15 = vor.u32 1.1754944e-38, %v2983_v45  ;;  %vm2992_vm1 = vweird.f32 %v2957_v40 }
 0x6af   : > { %v2974_v44 = vsub.f32 1.0, %v2973_v52  ;;  %2219 = vrot.lane.b32.xlu0 %v2172_v10, %s7553_s26  ;;  %v2981_v52 = vand.u32 2147483647, %v2956_v9  ;;  %v2768_v10 = vadd.f32 %v2752_v38, %v8260_v0  ;;  %v2841_v38 = vpop.f32.mrf.mxu1  ;;  %s10032_s26 = sld [smem:[#allocation22_spill]] }
 0x6b1   : > { %v2975_v3 = vmul.f32 %v7131_v59, %v2974_v44  ;;  %v2998_v44 = vand.u32 2147483648, %v2957_v40  ;;  %vm2982_vm6 = vcmp.eq.f32.partialorder %v2981_v52, 8.507059e+37 }
 0x6b2   : > { %v8468_v8 = vpop.xlane.xlu2 %2251  ;;  %v2210_v16 = vpop.permute.xlu1 %2209 }
 0x6b3   : > { %v2268_v7 = vsel %vm2237_vm10, %v2210_v16, 0.0  ;;  %v2976_v47 = vadd.f32 %v7131_v59, %v2975_v3  ;;  %v2996_v16 = vand.u32 2147483647, %v2957_v40  ;;  %v2873_v3 = vadd.f32 %v2836_v56, %v2768_v10 }
 0x6b4   : > { %v7133_v21 = vpop.eup %7132  ;;  %2269 = vadd.xlane.f32.xlu1 %v2268_v7  ;;  %v2999_v9 = vor.u32 1.1754944e-38, %v2998_v44 }
 0x6b5   : > { %v2988_v31 = vmul.f32 %v7133_v21, %v2957_v40  ;;  %v2980_v39 = vsel %vm2979_vm0, %v7131_v59, %v2976_v47  ;;  %vm2993_vm5 = vweird.f32 %v7133_v21  ;;  %vm2997_vm7 = vcmp.eq.f32.partialorder %v2996_v16, 8.507059e+37  ;;  %s8656_s1 = scalar_lea.vmem %s10032_s26, %s8208_s16 }
 0x6b6   : > { %v2985_v54 = vsel %vm2982_vm6, %v2984_v15, %v2980_v39  ;;  %vm2994_vm2 = vmor %vm2992_vm1, %vm2993_vm5  ;;  %v8478_v47 = vadd.f32 %v8440_v43, %v2873_v3  ;;  %v2734_v39 = vadd.f32 %v8278_v23, %v8288_v1  ;;  %v2732_v1 = vadd.f32 %v8256_v62, %v8266_v11 }
 0x6b7   : > { %v2989_v53 = vsub.f32 1.0, %v2988_v31 }
 0x6b8   : > { %v6697_v15 = vmul.f32 -1.442695, %v8478_v47 }
 0x6b9   : > { %v2990_v63 = vmul.f32 %v7133_v21, %v2989_v53  ;;  %v3212_v53 = vmul.f32 %v2985_v54, %v8443_v37  ;;  %v2754_v54 = vmul.f32 %v8432_v61, %v8468_v8 }
 0x6ba   : > { %v8474_v5 = vpop.xlane.xlu2 %2254  ;;  %7134 = vpow2.f32 %v6697_v15 }
 0x6bb   : > { %v2991_v7 = vadd.f32 %v7133_v21, %v2990_v63  ;;  %v2755_v63 = vmul.f32 %v8432_v61, %v8474_v5  ;;  %v2770_v56 = vadd.f32 %v2754_v54, %v8282_v14 }
 0x6bd   : > { %v2995_v31 = vsel %vm2994_vm2, %v7133_v21, %v2991_v7  ;;  %v2771_v37 = vadd.f32 %v2755_v63, %v2734_v39  ;;  %v2875_v44 = vadd.f32 %v2841_v38, %v2770_v56 }
 0x6be   : > { %v3000_v0 = vsel %vm2997_vm7, %v2999_v9, %v2995_v31 }
 0x6bf   : > { %v3213_v59 = vmul.f32 %v3000_v0, %v2893_v19  ;;  %v2843_v19 = vpop.f32.mrf.mxu1  ;;  %v8506_v9 = vadd.f32 %v8440_v43, %v2875_v44 }
 0x6c0   : > { %v2876_v40 = vadd.f32 %v2843_v19, %v2771_v37  ;;  %v7135_v16 = vpop.eup %7134  ;;  %v2736_v19 = vadd.f32 %v8304_v58, %v8310_v4 }
 0x6c1   : > { %v3233_v45 = vpack.c.bf16 %v3213_v59, %v3212_v53  ;;  %v8503_v3 = vadd.f32 1.0, %v7135_v16  ;;  %v6699_v38 = vmul.f32 -1.442695, %v8506_v9 }
 0x6c2   : > { %v8482_v52 = vpop.xlane.xlu2 %2257  ;;  %v8497_v7 = vadd.f32 %v8440_v43, %v2876_v40 }
 0x6c3   : > { %6711 = vmatmul.msk.bf16.vlgmr.msra.gmra.mxu0 %vm2456_vm4, %v3233_v45  ;;  %7136 = vrcp.f32 %v8503_v3  ;;  %v2756_v53 = vmul.f32 %v8432_v61, %v8482_v52  ;;  %vm3007_vm14 = vweird.f32 %v8503_v3 }
 0x6c4   : > { %v6700_v31 = vmul.f32 -1.442695, %v8497_v7 }
 0x6c5   : > { %v2772_v45 = vadd.f32 %v2756_v53, %v8302_v55 }
 0x6c6   : > { %7138 = vpow2.f32 %v6700_v31 }
 0x6c7   : > { %v2846_v62 = vpop.f32.mrf.mxu1  ;;  %7140 = vpow2.f32 %v6699_v38 }
 0x6c8   : > { %v2877_v54 = vadd.f32 %v2846_v62, %v2772_v45 }
 0x6c9   : > { %v7137_v39 = vpop.eup %7136 }
 0x6ca   : > { %v2216_v21 = vpop.permute.xlu2 %2215  ;;  %v3003_v56 = vmul.f32 %v7137_v39, %v8503_v3  ;;  %v8530_v16 = vadd.f32 %v8440_v43, %v2877_v54  ;;  %vm3008_vm15 = vweird.f32 %v7137_v39 }
 0x6cb   : > { %v2277_v10 = vsel %vm2237_vm10, %v2216_v21, 0.0  ;;  %vm8548_vm8 = vmor %vm3007_vm14, %vm3008_vm15 }
 0x6cc   : > { %2278 = vadd.xlane.f32.xlu2 %v2277_v10  ;;  %v7139_v15 = vpop.eup %7138  ;;  %v6701_v53 = vmul.f32 -1.442695, %v8530_v16 }
 0x6cd   : > { %v7141_v40 = vpop.eup %7140  ;;  %v8527_v21 = vadd.f32 1.0, %v7139_v15 }
 0x6cf   : > { %v2848_v44 = vpop.f32.mrf.mxu1  ;;  %vm3052_vm6 = vweird.f32 %v8527_v21 }
 0x6d0   : > { %v8499_v23 = vpop.xlane.xlu0 %2248 }
 0x6d1   : > { %v2753_v14 = vmul.f32 %v8432_v61, %v8499_v23 }
 0x6d3   : > { %v2769_v0 = vadd.f32 %v2753_v14, %v2732_v1  ;;  %v8532_v1 = vadd.f32 1.0, %v7141_v40  ;;  %v3011_v40 = vand.u32 2147483647, %v8503_v3 }
 0x6d5   : > { %v2874_v59 = vadd.f32 %v2838_v46, %v2769_v0  ;;  %v3004_v0 = vsub.f32 1.0, %v3003_v56  ;;  %vm3012_vm13 = vcmp.eq.f32.partialorder %v3011_v40, 8.507059e+37  ;;  %vm3037_vm2 = vweird.f32 %v8532_v1 }
 0x6d7   : > { %v8516_v11 = vadd.f32 %v8440_v43, %v2874_v59  ;;  %v3005_v62 = vmul.f32 %v7137_v39, %v3004_v0 }
 0x6d9   : > { %v6698_v63 = vmul.f32 -1.442695, %v8516_v11  ;;  %v3006_v15 = vadd.f32 %v7137_v39, %v3005_v62 }
 0x6db   : > { %7142 = vpow2.f32 %v6698_v63 }
 0x6dc   : > { %7144 = vrcp.f32 %v8527_v21 }
 0x6dd   : > { %v8520_v37 = vpop.xlane.xlu1 %2260 }
 0x6de   : > { %v2757_v46 = vmul.f32 %v8432_v61, %v8520_v37 }
 0x6e0   : > { %v2773_v55 = vadd.f32 %v2757_v46, %v2736_v19  ;;  %v3013_v46 = vand.u32 2147483648, %v8503_v3 }
 0x6e1   : > { %v7143_v10 = vpop.eup %7142 }
 0x6e2   : > { %v2959_v14 = vadd.f32 1.0, %v7143_v10  ;;  %v2878_v31 = vadd.f32 %v2848_v44, %v2773_v55  ;;  %v8542_v45 = vpop.eup %7144  ;;  %v3014_v20 = vor.u32 1.1754944e-38, %v3013_v46 }
 0x6e3   : > { %v2214_v58 = vpop.permute.xlu0 %2213  ;;  %v3048_v10 = vmul.f32 %v8542_v45, %v8527_v21  ;;  %vm3053_vm0 = vweird.f32 %v8542_v45 }
 0x6e4   : > { %7146 = vrcp.f32 %v2959_v14  ;;  %v8536_v4 = vadd.f32 %v8440_v43, %v2878_v31  ;;  %v2274_v38 = vsel %vm2237_vm10, %v2214_v58, 0.0  ;;  %v3010_v31 = vsel %vm8548_vm8, %v7137_v39, %v3006_v15  ;;  %vm3054_vm1 = vmor %vm3052_vm6, %vm3053_vm0 }
 0x6e5   : > { %2275 = vadd.xlane.f32.xlu0 %v2274_v38  ;;  %7148 = vrcp.f32 %v8532_v1  ;;  %v3028_v0 = vand.u32 2147483648, %v2959_v14  ;;  %vm3022_vm12 = vweird.f32 %v2959_v14  ;;  %v3015_v24 = vsel %vm3012_vm13, %v3014_v20, %v3010_v31 }
 0x6e6   : > { %v6702_v59 = vmul.f32 -1.442695, %v8536_v4 }
 0x6e7   : > { %v3029_v39 = vor.u32 1.1754944e-38, %v3028_v0  ;;  %v3043_v0 = vand.u32 2147483648, %v8532_v1 }
 0x6e8   : > { %7150 = vpow2.f32 %v6702_v59 }
 0x6e9   : > { %7152 = vpow2.f32 %v6701_v53  ;;  %v3026_v53 = vand.u32 2147483647, %v2959_v14 }
 0x6ea   : > { %v7147_v63 = vpop.eup %7146 }
 0x6eb   : > { %v3018_v54 = vmul.f32 %v7147_v63, %v2959_v14  ;;  %v8544_v19 = vpop.eup %7148  ;;  %vm3023_vm11 = vweird.f32 %v7147_v63  ;;  %vm3027_vm9 = vcmp.eq.f32.partialorder %v3026_v53, 8.507059e+37 }
 0x6ec   : > { %v3033_v59 = vmul.f32 %v8544_v19, %v8532_v1  ;;  %vm3024_vm3 = vmor %vm3022_vm12, %vm3023_vm11  ;;  %vm3038_vm5 = vweird.f32 %v8544_v19 }
 0x6ed   : > { %v3019_v55 = vsub.f32 1.0, %v3018_v54  ;;  %v3049_v54 = vsub.f32 1.0, %v3048_v10  ;;  %vm3039_vm7 = vmor %vm3037_vm2, %vm3038_vm5 }
 0x6ee   : > { %v7151_v44 = vpop.eup %7150  ;;  %v3034_v56 = vsub.f32 1.0, %v3033_v59 }
 0x6ef   : > { %v7153_v58 = vpop.eup %7152  ;;  %v3020_v38 = vmul.f32 %v7147_v63, %v3019_v55  ;;  %v8559_v62 = vadd.f32 1.0, %v7151_v44  ;;  %v3214_v44 = vmul.f32 %v3015_v24, %v8478_v47  ;;  %v3050_v40 = vmul.f32 %v8542_v45, %v3049_v54 }
 0x6f0   : > { %v8561_v33 = vadd.f32 1.0, %v7153_v58  ;;  %v3058_v24 = vand.u32 2147483648, %v8527_v21  ;;  %v2851_v58 = vpop.f32.mrf.mxu1 }
 0x6f1   : > { %v3021_v3 = vadd.f32 %v7147_v63, %v3020_v38  ;;  %7154 = vrcp.f32 %v8559_v62  ;;  %v3051_v10 = vadd.f32 %v8542_v45, %v3050_v40  ;;  %v3041_v38 = vand.u32 2147483647, %v8532_v1 }
 0x6f2   : > { %7156 = vrcp.f32 %v8561_v33  ;;  %vm3082_vm13 = vweird.f32 %v8559_v62 }
 0x6f3   : > { %v3025_v15 = vsel %vm3024_vm3, %v7147_v63, %v3021_v3  ;;  %v3035_v63 = vmul.f32 %v8544_v19, %v3034_v56  ;;  %v3055_v53 = vsel %vm3054_vm1, %v8542_v45, %v3051_v10  ;;  %v3059_v3 = vor.u32 1.1754944e-38, %v3058_v24 }
 0x6f4   : > { %v3030_v55 = vsel %vm3027_vm9, %v3029_v39, %v3025_v15  ;;  %v3044_v39 = vor.u32 1.1754944e-38, %v3043_v0  ;;  %vm3042_vm14 = vcmp.eq.f32.partialorder %v3041_v38, 8.507059e+37  ;;  %v2738_v45 = vadd.f32 %v8333_v28, %v8336_v30 }
 0x6f5   : > { %v2218_v35 = vpop.permute.xlu1 %2217  ;;  %v3215_v46 = vmul.f32 %v3030_v55, %v8516_v11  ;;  %v3036_v47 = vadd.f32 %v8544_v19, %v3035_v63  ;;  %v3088_v28 = vand.u32 2147483648, %v8559_v62  ;;  %v3073_v38 = vand.u32 2147483648, %v8561_v33 }
 0x6f6   : > { %v2280_v14 = vsel %vm2237_vm10, %v2218_v35, 0.0  ;;  %v3056_v35 = vand.u32 2147483647, %v8527_v21  ;;  %vm3067_vm3 = vweird.f32 %v8561_v33 }
 0x6f7   : > { %2281 = vadd.xlane.f32.xlu2 %v2280_v14  ;;  %v3234_v20 = vpack.c.bf16 %v3215_v46, %v3214_v44  ;;  %v7155_v31 = vpop.eup %7154  ;;  %v3040_v54 = vsel %vm3039_vm7, %v8544_v19, %v3036_v47 }
 0x6f8   : > { %v7157_v11 = vpop.eup %7156  ;;  %v3078_v59 = vmul.f32 %v7155_v31, %v8559_v62  ;;  %vm3057_vm15 = vcmp.eq.f32.partialorder %v3056_v35, 8.507059e+37  ;;  %v3045_v55 = vsel %vm3042_vm14, %v3044_v39, %v3040_v54  ;;  %v2853_v63 = vpop.f32.mrf.mxu1  ;;  %vm3083_vm8 = vweird.f32 %v7155_v31 }
 0x6f9   : > { %6712 = vmatmul.msk.bf16.gmra.mxu0 %vm2456_vm4, %v3234_v20  ;;  %v3063_v21 = vmul.f32 %v7157_v11, %v8561_v33  ;;  %v3060_v15 = vsel %vm3057_vm15, %v3059_v3, %v3055_v53  ;;  %v3216_v19 = vmul.f32 %v3045_v55, %v8506_v9  ;;  %vm3068_vm11 = vweird.f32 %v7157_v11  ;;  %vm3084_vm12 = vmor %vm3082_vm13, %vm3083_vm8 }
 0x6fa   : > { %v3079_v56 = vsub.f32 1.0, %v3078_v59  ;;  %v3217_v1 = vmul.f32 %v3060_v15, %v8497_v7  ;;  %v3086_v9 = vand.u32 2147483647, %v8559_v62  ;;  %v3071_v53 = vand.u32 2147483647, %v8561_v33  ;;  %vm3069_vm9 = vmor %vm3067_vm3, %vm3068_vm11 }
 0x6fb   : > { %v3064_v46 = vsub.f32 1.0, %v3063_v21  ;;  %v3089_v54 = vor.u32 1.1754944e-38, %v3088_v28  ;;  %v2737_v21 = vadd.f32 %v8320_v49, %v8324_v13  ;;  %v3074_v15 = vor.u32 1.1754944e-38, %v3073_v38 }
 0x6fc   : > { %v3080_v14 = vmul.f32 %v7155_v31, %v3079_v56  ;;  %v3235_v10 = vpack.c.bf16 %v3217_v1, %v3216_v19  ;;  %vm3087_vm0 = vcmp.eq.f32.partialorder %v3086_v9, 8.507059e+37  ;;  %vm3072_vm5 = vcmp.eq.f32.partialorder %v3071_v53, 8.507059e+37 }
 0x6fd   : > { %v3065_v24 = vmul.f32 %v7157_v11, %v3064_v46 }
 0x6fe   : > { %v3081_v35 = vadd.f32 %v7155_v31, %v3080_v14 }
 0x6ff   : > { %v3066_v30 = vadd.f32 %v7157_v11, %v3065_v24 }
 0x700   : > { %v3085_v59 = vsel %vm3084_vm12, %v7155_v31, %v3081_v35 }
 0x701   : > { %v3070_v39 = vsel %vm3069_vm9, %v7157_v11, %v3066_v30  ;;  %v3090_v56 = vsel %vm3087_vm0, %v3089_v54, %v3085_v59 }
 0x702   : > { %v3075_v1 = vsel %vm3072_vm5, %v3074_v15, %v3070_v39  ;;  %v3219_v31 = vmul.f32 %v3090_v56, %v8536_v4 }
 0x703   : > { %v8585_v44 = vpop.xlane.xlu2 %2266  ;;  %v3218_v49 = vmul.f32 %v3075_v1, %v8530_v16 }
 0x704   : > { %v2759_v40 = vmul.f32 %v8432_v61, %v8585_v44 }
 0x705   : > { %v3236_v14 = vpack.c.bf16 %v3219_v31, %v3218_v49 }
 0x706   : > { %v2775_v20 = vadd.f32 %v2759_v40, %v2738_v45  ;;  %v2856_v45 = vpop.f32.mrf.mxu3 }
 0x708   : > { %v2880_v47 = vadd.f32 %v2853_v63, %v2775_v20 }
 0x709   : > { %6713 = vmatmul.msk.bf16.gmra.mxu0 %vm2456_vm4, %v3235_v10 }
 0x70a   : > { %v8595_v7 = vadd.f32 %v8440_v43, %v2880_v47 }
 0x70c   : > { %v6704_v0 = vmul.f32 -1.442695, %v8595_v7 }
 0x70e   : > { %7158 = vpow2.f32 %v6704_v0  ;;  %v8604_v3 = vpop.xlane.xlu0 %2263  ;;  %v2858_v24 = vpop.f32.mrf.mxu3 }
 0x70f   : > { %v2758_v62 = vmul.f32 %v8432_v61, %v8604_v3 }
 0x711   : > { %v2774_v55 = vadd.f32 %v2758_v62, %v2737_v21 }
 0x713   : > { %v2879_v33 = vadd.f32 %v2851_v58, %v2774_v55  ;;  %v2740_v58 = vadd.f32 %v8381_v51, %v8379_v29 }
 0x714   : > { %v7159_v46 = vpop.eup %7158 }
 0x715   : > { %v2965_v40 = vadd.f32 1.0, %v7159_v46  ;;  %v2900_v19 = vadd.f32 %v8440_v43, %v2879_v33 }
 0x717   : > { %7160 = vrcp.f32 %v2965_v40  ;;  %v6703_v13 = vmul.f32 -1.442695, %v2900_v19  ;;  %v3118_v39 = vand.u32 2147483648, %v2965_v40  ;;  %vm3112_vm1 = vweird.f32 %v2965_v40 }
 0x718   : > { %v3116_v56 = vand.u32 2147483647, %v2965_v40 }
 0x719   : > { %7162 = vpow2.f32 %v6703_v13  ;;  %6714 = vmatmul.msk.bf16.gmra.mxu0 %vm2456_vm4, %v3236_v14 }
 0x71a   : > { %v8614_v11 = vpop.xlane.xlu2 %2272  ;;  %vm3117_vm15 = vcmp.eq.f32.partialorder %v3116_v56, 8.507059e+37 }
 0x71b   : > { %v2761_v4 = vmul.f32 %v8432_v61, %v8614_v11 }
 0x71d   : > { %v7161_v20 = vpop.eup %7160  ;;  %v2777_v63 = vadd.f32 %v2761_v4, %v2740_v58  ;;  %v3119_v58 = vor.u32 1.1754944e-38, %v3118_v39 }
 0x71e   : > { %v3108_v47 = vmul.f32 %v7161_v20, %v2965_v40  ;;  %vm3113_vm6 = vweird.f32 %v7161_v20 }
 0x71f   : > { %v7163_v10 = vpop.eup %7162  ;;  %v2882_v35 = vadd.f32 %v2858_v24, %v2777_v63 }
 0x720   : > { %v2964_v16 = vadd.f32 1.0, %v7163_v10  ;;  %v3109_v30 = vsub.f32 1.0, %v3108_v47 }
 0x721   : > { %v2220_v28 = vpop.permute.xlu0 %2219  ;;  %v8621_v9 = vadd.f32 %v8440_v43, %v2882_v35 }
 0x722   : > { %7164 = vrcp.f32 %v2964_v16  ;;  %v2283_v0 = vsel %vm2237_vm10, %v2220_v28, 0.0  ;;  %v3110_v51 = vmul.f32 %v7161_v20, %v3109_v30  ;;  %v3101_v33 = vand.u32 2147483647, %v2964_v16  ;;  %vm3114_vm10 = vmor %vm3112_vm1, %vm3113_vm6  ;;  %v8640_v30 = vpop.f32.mrf.mxu3 }
 0x723   : > { %2284 = vadd.xlane.f32.xlu2 %v2283_v0  ;;  %v6706_v29 = vmul.f32 -1.442695, %v8621_v9  ;;  %v3103_v31 = vand.u32 2147483648, %v2964_v16  ;;  %vm3097_vm7 = vweird.f32 %v2964_v16 }
 0x724   : > { %v3111_v21 = vadd.f32 %v7161_v20, %v3110_v51  ;;  %vm3102_vm8 = vcmp.eq.f32.partialorder %v3101_v33, 8.507059e+37  ;;  %v8643_v51 = vld [vmem:[%s8486_s23] ss:$0 sm:$0xff] }
 0x725   : > { %7166 = vpow2.f32 %v6706_v29 }
 0x726   : > { %v3115_v13 = vsel %vm3114_vm10, %v7161_v20, %v3111_v21 }
 0x727   : > { %v8625_v38 = vpop.xlane.xlu1 %2269  ;;  %v3120_v4 = vsel %vm3117_vm15, %v3119_v58, %v3115_v13  ;;  %v3644_v13 = vld [vmem:[%s8656_s1 + $0x10] sm:$0xff]  ;;  %v3645_v58 = vld [vmem:[%s8656_s1 + $0x18] sm:$0xff] }
 0x728   : > { %v7165_v53 = vpop.eup %7164  ;;  %v2760_v59 = vmul.f32 %v8432_v61, %v8625_v38  ;;  %v3221_v24 = vmul.f32 %v3120_v4, %v8595_v7  ;;  %v2742_v7 = vadd.f32 %v8221_v48, %v8404_v50  ;;  %v3655_v4 = vpack.c.bf16 %v3645_v58, %v3644_v13 }
 0x729   : > { %v3093_v54 = vmul.f32 %v7165_v53, %v2964_v16  ;;  %vm3098_vm2 = vweird.f32 %v7165_v53 }
 0x72a   : > { %v2776_v62 = vadd.f32 %v2760_v59, %v8354_v25  ;;  %vm3099_vm14 = vmor %vm3097_vm7, %vm3098_vm2  ;;  %v2863_v56 = vpop.f32.mrf.mxu3  ;;  %3691 = vmatpush.bf16.msra.mxu1 %v3655_v4 }
 0x72b   : > { %v3094_v15 = vsub.f32 1.0, %v3093_v54  ;;  %v7167_v55 = vpop.eup %7166 }
 0x72c   : > { %v2881_v1 = vadd.f32 %v2856_v45, %v2776_v62  ;;  %v8630_v46 = vadd.f32 1.0, %v7167_v55  ;;  %v3104_v45 = vor.u32 1.1754944e-38, %v3103_v31 }
 0x72d   : > { %v3095_v49 = vmul.f32 %v7165_v53, %v3094_v15 }
 0x72e   : > { %v8633_v14 = vadd.f32 %v8440_v43, %v2881_v1  ;;  %7168 = vrcp.f32 %v8630_v46  ;;  %v3148_v33 = vand.u32 2147483648, %v8630_v46  ;;  %vm3142_vm13 = vweird.f32 %v8630_v46 }
 0x72f   : > { %v3096_v25 = vadd.f32 %v7165_v53, %v3095_v49  ;;  %v3146_v49 = vand.u32 2147483647, %v8630_v46 }
 0x730   : > { %v6705_v40 = vmul.f32 -1.442695, %v8633_v14 }
 0x731   : > { %v3100_v63 = vsel %vm3099_vm14, %v7165_v53, %v3096_v25  ;;  %vm3147_vm5 = vcmp.eq.f32.partialorder %v3146_v49, 8.507059e+37 }
 0x732   : > { %7170 = vpow2.f32 %v6705_v40  ;;  %v3105_v10 = vsel %vm3102_vm8, %v3104_v45, %v3100_v63 }
 0x733   : > { %v3220_v20 = vmul.f32 %v3105_v10, %v2900_v19 }
 0x734   : > { %v7169_v47 = vpop.eup %7168 }
 0x735   : > { %v3237_v35 = vpack.c.bf16 %v3221_v24, %v3220_v20  ;;  %v3138_v16 = vmul.f32 %v7169_v47, %v8630_v46  ;;  %vm3143_vm11 = vweird.f32 %v7169_v47  ;;  %v3149_v24 = vor.u32 1.1754944e-38, %v3148_v33 }
 0x736   : > { %vm8664_vm3 = vmor %vm3142_vm13, %vm3143_vm11 }
 0x737   : > { %6715 = vmatmul.msk.bf16.gmra.mxu0 %vm2456_vm4, %v3237_v35  ;;  %v3139_v29 = vsub.f32 1.0, %v3138_v16 }
 0x738   : > { %v7171_v28 = vpop.eup %7170 }
 0x739   : > { %v2966_v0 = vadd.f32 1.0, %v7171_v28  ;;  %v3140_v19 = vmul.f32 %v7169_v47, %v3139_v29  ;;  %v3642_v28 = vld [vmem:[%s8656_s1] sm:$0xff]  ;;  %v3643_v29 = vld [vmem:[%s8656_s1 + $0x8] sm:$0xff]  ;;  %s10055_s1 = sld [smem:[#allocation26_spill]] }
 0x73b   : > { %7172 = vrcp.f32 %v2966_v0  ;;  %v3141_v1 = vadd.f32 %v7169_v47, %v3140_v19  ;;  %v3133_v31 = vand.u32 2147483648, %v2966_v0  ;;  %v3131_v40 = vand.u32 2147483647, %v2966_v0 }
 0x73c   : > { %vm3127_vm9 = vweird.f32 %v2966_v0 }
 0x73d   : > { %v3145_v10 = vsel %vm8664_vm3, %v7169_v47, %v3141_v1  ;;  %v3134_v16 = vor.u32 1.1754944e-38, %v3133_v31  ;;  %vm3132_vm6 = vcmp.eq.f32.partialorder %v3131_v40, 8.507059e+37 }
 0x73f   : > { %v8645_v53 = vpop.xlane.xlu2 %2278 }
 0x740   : > { %v2763_v59 = vmul.f32 %v8432_v61, %v8645_v53  ;;  %v3281_v54 = vpop.f32.mrf.mxu0 }
 0x741   : > { %v7173_v21 = vpop.eup %7172  ;;  %v8652_v62 = vadd.f32 %v8643_v51, %v3281_v54 }
 0x742   : > { %v2779_v39 = vadd.f32 %v2763_v59, %v2742_v7  ;;  %v3123_v15 = vmul.f32 %v7173_v21, %v2966_v0  ;;  %vm3128_vm12 = vweird.f32 %v7173_v21  ;;  %v3150_v7 = vsel %vm3147_vm5, %v3149_v24, %v3145_v10 }
 0x743   : > { %v6719_v55 = vmul.f32 -1.442695, %v8652_v62  ;;  %vm3129_vm0 = vmor %vm3127_vm9, %vm3128_vm12  ;;  %v3654_v59 = vpack.c.bf16 %v3643_v29, %v3642_v28 }
 0x744   : > { %v2884_v48 = vadd.f32 %v2863_v56, %v2779_v39  ;;  %v3124_v50 = vsub.f32 1.0, %v3123_v15 }
 0x745   : > { %7174 = vpow2.f32 %v6719_v55  ;;  %3692 = vmatpush.bf16.msra.mxu1 %v3654_v59  ;;  %v3223_v55 = vmul.f32 %v3150_v7, %v8621_v9 }
 0x746   : > { %v3125_v25 = vmul.f32 %v7173_v21, %v3124_v50  ;;  %v8669_v63 = vadd.f32 %v8440_v43, %v2884_v48 }
 0x748   : > { %v3283_v20 = vpop.f32.mrf.mxu0  ;;  %v3126_v46 = vadd.f32 %v7173_v21, %v3125_v25  ;;  %v6708_v47 = vmul.f32 -1.442695, %v8669_v63 }
 0x749   : > { %v8674_v35 = vadd.f32 %v8643_v51, %v3283_v20 }
 0x74a   : > { %v3130_v19 = vsel %vm3129_vm0, %v7173_v21, %v3126_v46 }
 0x74b   : > { %v7175_v54 = vpop.eup %7174  ;;  %v6720_v39 = vmul.f32 -1.442695, %v8674_v35  ;;  %v3135_v0 = vsel %vm3132_vm6, %v3134_v16, %v3130_v19 }
 0x74c   : > { %v3369_v15 = vadd.f32 1.0, %v7175_v54  ;;  %v3222_v56 = vmul.f32 %v3135_v0, %v8633_v14  ;;  %v2741_v14 = vadd.f32 %v8203_v22, %v8401_v60 }
 0x74d   : > { %7176 = vpow2.f32 %v6720_v39 }
 0x74e   : > { %7178 = vrcp.f32 %v3369_v15  ;;  %v3238_v1 = vpack.c.bf16 %v3223_v55, %v3222_v56  ;;  %v3396_v46 = vand.u32 2147483648, %v3369_v15  ;;  %vm3390_vm10 = vweird.f32 %v3369_v15 }
 0x74f   : > { %7180 = vpow2.f32 %v6708_v47  ;;  %v3394_v24 = vand.u32 2147483647, %v3369_v15 }
 0x750   : > { %6716 = vmatmul.msk.bf16.gmra.mxu0 %vm2456_vm4, %v3238_v1  ;;  %v3397_v54 = vor.u32 1.1754944e-38, %v3396_v46 }
 0x751   : > { %vm3395_vm15 = vcmp.eq.f32.partialorder %v3394_v24, 8.507059e+37 }
 0x753   : > { %v7177_v21 = vpop.eup %7176 }
 0x754   : > { %v7179_v48 = vpop.eup %7178  ;;  %v3370_v50 = vadd.f32 1.0, %v7177_v21 }
 0x755   : > { %v7181_v33 = vpop.eup %7180  ;;  %v3386_v31 = vmul.f32 %v7179_v48, %v3369_v15  ;;  %vm3391_vm1 = vweird.f32 %v7179_v48 }
 0x756   : > { %7182 = vrcp.f32 %v3370_v50  ;;  %v8683_v13 = vadd.f32 1.0, %v7181_v33  ;;  %vm3392_vm2 = vmor %vm3390_vm10, %vm3391_vm1  ;;  %v3409_v22 = vand.u32 2147483647, %v3370_v50  ;;  %v3411_v60 = vand.u32 2147483648, %v3370_v50 }
 0x757   : > { %v3387_v49 = vsub.f32 1.0, %v3386_v31  ;;  %vm3405_vm14 = vweird.f32 %v3370_v50 }
 0x758   : > { %v8685_v58 = vpop.xlane.xlu0 %2275  ;;  %7184 = vrcp.f32 %v8683_v13  ;;  %v3412_v39 = vor.u32 1.1754944e-38, %v3411_v60  ;;  %vm3410_vm11 = vcmp.eq.f32.partialorder %v3409_v22, 8.507059e+37  ;;  %vm3172_vm12 = vweird.f32 %v8683_v13 }
 0x759   : > { %v3388_v9 = vmul.f32 %v7179_v48, %v3387_v49  ;;  %v2762_v25 = vmul.f32 %v8432_v61, %v8685_v58  ;;  %v2743_v60 = vadd.f32 %v8228_v32, %v8421_v17 }
 0x75b   : > { %v2778_v40 = vadd.f32 %v2762_v25, %v2741_v14  ;;  %v3389_v4 = vadd.f32 %v7179_v48, %v3388_v9 }
 0x75c   : > { %v7183_v45 = vpop.eup %7182 }
 0x75d   : > { %v3401_v10 = vmul.f32 %v7183_v45, %v3370_v50  ;;  %v2883_v20 = vadd.f32 %v8640_v30, %v2778_v40  ;;  %v3393_v29 = vsel %vm3392_vm2, %v7179_v48, %v3389_v4  ;;  %vm3406_vm7 = vweird.f32 %v7183_v45 }
 0x75e   : > { %v7185_v59 = vpop.eup %7184  ;;  %v3398_v30 = vsel %vm3395_vm15, %v3397_v54, %v3393_v29  ;;  %vm3407_vm8 = vmor %vm3405_vm14, %vm3406_vm7 }
 0x75f   : > { %v3402_v16 = vsub.f32 1.0, %v3401_v10  ;;  %v8694_v28 = vadd.f32 %v8440_v43, %v2883_v20  ;;  %v3168_v56 = vmul.f32 %v7185_v59, %v8683_v13  ;;  %v8699_v55 = vmul.f32 %v3398_v30, %v8652_v62  ;;  %v2866_v30 = vpop.f32.mrf.mxu3 }
 0x760   : > { %vm3173_vm13 = vweird.f32 %v7185_v59 }
 0x761   : > { %v3403_v19 = vmul.f32 %v7183_v45, %v3402_v16  ;;  %v6707_v7 = vmul.f32 -1.442695, %v8694_v28  ;;  %v3169_v33 = vsub.f32 1.0, %v3168_v56  ;;  %vm8713_vm3 = vmor %vm3172_vm12, %vm3173_vm13 }
 0x763   : > { %v3404_v47 = vadd.f32 %v7183_v45, %v3403_v19  ;;  %7186 = vpow2.f32 %v6707_v7  ;;  %v3170_v31 = vmul.f32 %v7185_v59, %v3169_v33 }
 0x765   : > { %v3408_v0 = vsel %vm3407_vm8, %v7183_v45, %v3404_v47  ;;  %v3171_v14 = vadd.f32 %v7185_v59, %v3170_v31  ;;  %v3176_v45 = vand.u32 2147483647, %v8683_v13 }
 0x766   : > { %v3413_v15 = vsel %vm3410_vm11, %v3412_v39, %v3408_v0 }
 0x767   : > { %v8702_v1 = vmul.f32 %v3413_v15, %v8674_v35  ;;  %v3178_v35 = vand.u32 2147483648, %v8683_v13  ;;  %v3175_v46 = vsel %vm8713_vm3, %v7185_v59, %v3171_v14  ;;  %vm3177_vm5 = vcmp.eq.f32.partialorder %v3176_v45, 8.507059e+37 }
 0x769   : > { %v7187_v21 = vpop.eup %7186  ;;  %v3646_v48 = vpack.c.bf16 %v8702_v1, %v8699_v55  ;;  %v3179_v29 = vor.u32 1.1754944e-38, %v3178_v35 }
 0x76a   : > { %v2968_v50 = vadd.f32 1.0, %v7187_v21  ;;  %v8709_v9 = vpop.xlane.xlu2 %2281 }
 0x76b   : > { %6735 = vmatmul.msk.bf16.vlgmr.msra.gmra.mxu1 %vm2456_vm4, %v3646_v48  ;;  %v2764_v4 = vmul.f32 %v8432_v61, %v8709_v9  ;;  %v3180_v54 = vsel %vm3177_vm5, %v3179_v29, %v3175_v46 }
 0x76c   : > { %7188 = vrcp.f32 %v2968_v50  ;;  %v3163_v20 = vand.u32 2147483648, %v2968_v50  ;;  %v3161_v22 = vand.u32 2147483647, %v2968_v50  ;;  %vm3157_vm0 = vweird.f32 %v2968_v50 }
 0x76d   : > { %v2780_v61 = vadd.f32 %v2764_v4, %v2743_v60  ;;  %v3225_v0 = vmul.f32 %v3180_v54, %v8669_v63 }
 0x76e   : > { %v3164_v7 = vor.u32 1.1754944e-38, %v3163_v20  ;;  %vm3162_vm1 = vcmp.eq.f32.partialorder %v3161_v22, 8.507059e+37 }
 0x76f   : > { %v2885_v32 = vadd.f32 %v2866_v30, %v2780_v61 }
 0x772   : > { %v7189_v49 = vpop.eup %7188 }
 0x773   : > { %v3153_v62 = vmul.f32 %v7189_v49, %v2968_v50  ;;  %vm3158_vm9 = vweird.f32 %v7189_v49  ;;  %v8736_v50 = vadd.f32 %v8440_v43, %v2885_v32 }
 0x774   : > { %vm3159_vm6 = vmor %vm3157_vm0, %vm3158_vm9 }
 0x775   : > { %v3154_v25 = vsub.f32 1.0, %v3153_v62 }
 0x776   : > { %v3286_v10 = vpop.f32.mrf.mxu0 }
 0x777   : > { %v8723_v24 = vadd.f32 %v8643_v51, %v3286_v10  ;;  %v3155_v16 = vmul.f32 %v7189_v49, %v3154_v25 }
 0x779   : > { %v6721_v13 = vmul.f32 -1.442695, %v8723_v24  ;;  %v3156_v19 = vadd.f32 %v7189_v49, %v3155_v16 }
 0x77b   : > { %7190 = vpow2.f32 %v6721_v13  ;;  %v3160_v59 = vsel %vm3159_vm6, %v7189_v49, %v3156_v19 }
 0x77c   : > { %v3165_v47 = vsel %vm3162_vm1, %v3164_v7, %v3160_v59  ;;  %v2744_v59 = vadd.f32 %v8230_v36, %v8456_v27  ;;  %v7415_v7 = vld [vmem:[%s8365_s14] ss:$0 sm:$0xff] }
 0x77d   : > { %v3224_v39 = vmul.f32 %v3165_v47, %v8694_v28  ;;  %v6709_v28 = vmul.f32 -1.442695, %v8736_v50 }
 0x77e   : > { %v3288_v17 = vpop.f32.mrf.mxu0 }
 0x77f   : > { %v8731_v15 = vadd.f32 %v8643_v51, %v3288_v17  ;;  %v3239_v56 = vpack.c.bf16 %v3225_v0, %v3224_v39 }
 0x781   : > { %v7191_v21 = vpop.eup %7190  ;;  %v6722_v48 = vmul.f32 -1.442695, %v8731_v15  ;;  %6717 = vmatmul.msk.bf16.gmra.mxu0 %vm2456_vm4, %v3239_v56 }
 0x782   : > { %v3371_v33 = vadd.f32 1.0, %v7191_v21  ;;  %v7414_v21 = vld [vmem:[%s8361_s2] ss:$0 sm:$0xff]  ;;  %s10042_s2 = sld [smem:[#allocation28_spill]] }
 0x783   : > { %7192 = vpow2.f32 %v6722_v48 }
 0x784   : > { %7194 = vrcp.f32 %v3371_v33  ;;  %vm3420_vm2 = vweird.f32 %v3371_v33  ;;  %v3424_v19 = vand.u32 2147483647, %v3371_v33  ;;  %v3426_v61 = vand.u32 2147483648, %v3371_v33 }
 0x785   : > { %7196 = vpow2.f32 %v6709_v28 }
 0x786   : > { %v3291_v63 = vpop.f32.mrf.mxu0  ;;  %vm3425_vm14 = vcmp.eq.f32.partialorder %v3424_v19, 8.507059e+37  ;;  %v3427_v36 = vor.u32 1.1754944e-38, %v3426_v61 }
 0x787   : > { %v8740_v31 = vadd.f32 %v8643_v51, %v3291_v63 }
 0x788   : > { %s4832_s14 = scalar_lea.vmem %s10042_s2, %s7491_s7 }
 0x789   : > { %v7193_v49 = vpop.eup %7192  ;;  %v6723_v14 = vmul.f32 -1.442695, %v8740_v31 }
 0x78a   : > { %v7195_v62 = vpop.eup %7194  ;;  %v3372_v35 = vadd.f32 1.0, %v7193_v49 }
 0x78b   : > { %v3416_v25 = vmul.f32 %v7195_v62, %v3371_v33  ;;  %7198 = vpow2.f32 %v6723_v14  ;;  %v7197_v10 = vpop.eup %7196  ;;  %vm3421_vm10 = vweird.f32 %v7195_v62 }
 0x78c   : > { %7200 = vrcp.f32 %v3372_v35  ;;  %v8749_v29 = vadd.f32 1.0, %v7197_v10  ;;  %vm8752_vm7 = vmor %vm3420_vm2, %vm3421_vm10  ;;  %v3439_v30 = vand.u32 2147483647, %v3372_v35  ;;  %v3441_v39 = vand.u32 2147483648, %v3372_v35 }
 0x78d   : > { %v3417_v43 = vsub.f32 1.0, %v3416_v25  ;;  %vm3435_vm8 = vweird.f32 %v3372_v35 }
 0x78e   : > { %v3293_v40 = vpop.f32.mrf.mxu0  ;;  %vm3440_vm13 = vcmp.eq.f32.partialorder %v3439_v30, 8.507059e+37 }
 0x78f   : > { %v3418_v45 = vmul.f32 %v7195_v62, %v3417_v43  ;;  %v8744_v4 = vadd.f32 %v8643_v51, %v3293_v40 }
 0x791   : > { %v7199_v20 = vpop.eup %7198  ;;  %v6724_v46 = vmul.f32 -1.442695, %v8744_v4  ;;  %v3419_v22 = vadd.f32 %v7195_v62, %v3418_v45  ;;  %v2868_v45 = vpop.f32.mrf.mxu3 }
 0x792   : > { %v7201_v16 = vpop.eup %7200  ;;  %v8747_v60 = vadd.f32 1.0, %v7199_v20 }
 0x793   : > { %v3431_v13 = vmul.f32 %v7201_v16, %v3372_v35  ;;  %7202 = vpow2.f32 %v6724_v46  ;;  %v3423_v47 = vsel %vm8752_vm7, %v7195_v62, %v3419_v22  ;;  %vm3436_vm15 = vweird.f32 %v7201_v16 }
 0x794   : > { %7204 = vrcp.f32 %v8747_v60  ;;  %v3428_v14 = vsel %vm3425_vm14, %v3427_v36, %v3423_v47  ;;  %vm3437_vm11 = vmor %vm3435_vm8, %vm3436_vm15  ;;  %v3442_v62 = vor.u32 1.1754944e-38, %v3441_v39  ;;  %vm3450_vm3 = vweird.f32 %v8747_v60 }
 0x795   : > { %v3432_v54 = vsub.f32 1.0, %v3431_v13  ;;  %7206 = vrcp.f32 %v8749_v29  ;;  %v8771_v20 = vmul.f32 %v3428_v14, %v8723_v24  ;;  %v3454_v36 = vand.u32 2147483647, %v8747_v60 }
 0x796   : > { %v3296_v0 = vpop.f32.mrf.mxu0  ;;  %v8760_v32 = vpop.xlane.xlu2 %2284  ;;  %vm3187_vm7 = vweird.f32 %v8749_v29 }
 0x797   : > { %v3433_v17 = vmul.f32 %v7201_v16, %v3432_v54  ;;  %v8763_v56 = vadd.f32 %v8643_v51, %v3296_v0  ;;  %v2765_v48 = vmul.f32 %v7414_v21, %v8760_v32  ;;  %vm3455_vm5 = vcmp.eq.f32.partialorder %v3454_v36, 8.507059e+37 }
 0x799   : > { %v7203_v27 = vpop.eup %7202  ;;  %v3434_v33 = vadd.f32 %v7201_v16, %v3433_v17  ;;  %v6725_v28 = vmul.f32 -1.442695, %v8763_v56  ;;  %v2781_v63 = vadd.f32 %v2765_v48, %v2744_v59  ;;  %v3456_v48 = vand.u32 2147483648, %v8747_v60 }
 0x79a   : > { %v7205_v49 = vpop.eup %7204  ;;  %v3374_v25 = vadd.f32 1.0, %v7203_v27 }
 0x79b   : > { %v3438_v43 = vsel %vm3437_vm11, %v7201_v16, %v3434_v33  ;;  %v3446_v40 = vmul.f32 %v7205_v49, %v8747_v60  ;;  %7208 = vpow2.f32 %v6725_v28  ;;  %v2886_v22 = vadd.f32 %v2868_v45, %v2781_v63  ;;  %v8776_v13 = vpop.eup %7206 }
 0x79c   : > { %v3443_v10 = vsel %vm3440_vm13, %v3442_v62, %v3438_v43  ;;  %7210 = vrcp.f32 %v3374_v25  ;;  %v3183_v0 = vmul.f32 %v8776_v13, %v8749_v29  ;;  %vm3451_vm12 = vweird.f32 %v7205_v49 }
 0x79d   : > { %v8774_v35 = vmul.f32 %v3443_v10, %v8731_v15  ;;  %v3447_v46 = vsub.f32 1.0, %v3446_v40  ;;  %v8781_v54 = vadd.f32 %v7415_v7, %v2886_v22  ;;  %vm3452_vm9 = vmor %vm3450_vm3, %vm3451_vm12  ;;  %v3471_v33 = vand.u32 2147483648, %v3374_v25 }
 0x79e   : > { %v3298_v19 = vpop.f32.mrf.mxu0  ;;  %v3184_v28 = vsub.f32 1.0, %v3183_v0  ;;  %v3469_v62 = vand.u32 2147483647, %v3374_v25  ;;  %v3457_v43 = vor.u32 1.1754944e-38, %v3456_v48  ;;  %vm3465_vm6 = vweird.f32 %v3374_v25 }
 0x79f   : > { %v3647_v16 = vpack.c.bf16 %v8774_v35, %v8771_v20  ;;  %v3448_v61 = vmul.f32 %v7205_v49, %v3447_v46  ;;  %v8784_v59 = vadd.f32 %v8643_v51, %v3298_v19  ;;  %v6710_v47 = vmul.f32 -1.442695, %v8781_v54 }
 0x7a0   : > { %v3472_v22 = vor.u32 1.1754944e-38, %v3471_v33  ;;  %v3185_v19 = vmul.f32 %v8776_v13, %v3184_v28  ;;  %vm3470_vm10 = vcmp.eq.f32.partialorder %v3469_v62, 8.507059e+37  ;;  %vm3188_vm2 = vweird.f32 %v8776_v13 }
 0x7a1   : > { %v7209_v24 = vpop.eup %7208  ;;  %6736 = vmatmul.msk.bf16.gmra.mxu1 %vm2456_vm4, %v3647_v16  ;;  %v6726_v39 = vmul.f32 -1.442695, %v8784_v59  ;;  %v3449_v17 = vadd.f32 %v7205_v49, %v3448_v61  ;;  %7212 = vpow2.f32 %v6710_v47  ;;  %vm3189_vm15 = vmor %vm3187_vm7, %vm3188_vm2 }
 0x7a2   : > { %v7211_v15 = vpop.eup %7210  ;;  %v8788_v30 = vadd.f32 1.0, %v7209_v24  ;;  %v3186_v0 = vadd.f32 %v8776_v13, %v3185_v19 }
 0x7a3   : > { %v3461_v21 = vmul.f32 %v7211_v15, %v3374_v25  ;;  %v3453_v63 = vsel %vm3452_vm9, %v7205_v49, %v3449_v17  ;;  %vm3466_vm0 = vweird.f32 %v7211_v15  ;;  %v3193_v17 = vand.u32 2147483648, %v8749_v29 }
 0x7a4   : > { %7214 = vrcp.f32 %v8788_v30  ;;  %v3458_v46 = vsel %vm3455_vm5, %v3457_v43, %v3453_v63  ;;  %vm3467_vm1 = vmor %vm3465_vm6, %vm3466_vm0  ;;  %v3190_v48 = vsel %vm3189_vm15, %v8776_v13, %v3186_v0  ;;  %v3486_v63 = vand.u32 2147483648, %v8788_v30 }
 0x7a5   : > { %v3462_v27 = vsub.f32 1.0, %v3461_v21  ;;  %7216 = vpow2.f32 %v6726_v39  ;;  %v8803_v24 = vmul.f32 %v3458_v46, %v8740_v31  ;;  %v3191_v31 = vand.u32 2147483647, %v8749_v29 }
 0x7a6   : > { %v3194_v36 = vor.u32 1.1754944e-38, %v3193_v17  ;;  %vm3480_vm13 = vweird.f32 %v8788_v30  ;;  %v3484_v19 = vand.u32 2147483647, %v8788_v30 }
 0x7a7   : > { %v3463_v14 = vmul.f32 %v7211_v15, %v3462_v27  ;;  %v7213_v40 = vpop.eup %7212  ;;  %vm3192_vm14 = vcmp.eq.f32.partialorder %v3191_v31, 8.507059e+37  ;;  %v3487_v31 = vor.u32 1.1754944e-38, %v3486_v63 }
 0x7a8   : > { %v2971_v60 = vadd.f32 1.0, %v7213_v40  ;;  %v3195_v62 = vsel %vm3192_vm14, %v3194_v36, %v3190_v48  ;;  %vm3485_vm6 = vcmp.eq.f32.partialorder %v3484_v19, 8.507059e+37 }
 0x7a9   : > { %v3464_v45 = vadd.f32 %v7211_v15, %v3463_v14 }
 0x7aa   : > { %v8797_v10 = vpop.eup %7214  ;;  %7218 = vrcp.f32 %v2971_v60  ;;  %vm3202_vm12 = vweird.f32 %v2971_v60 }
 0x7ab   : > { %v3468_v16 = vsel %vm3467_vm1, %v7211_v15, %v3464_v45  ;;  %v3476_v49 = vmul.f32 %v8797_v10, %v8788_v30  ;;  %v7217_v61 = vpop.eup %7216  ;;  %vm3481_vm8 = vweird.f32 %v8797_v10  ;;  %v3208_v45 = vand.u32 2147483648, %v2971_v60 }
 0x7ac   : > { %v3473_v7 = vsel %vm3470_vm10, %v3472_v22, %v3468_v16  ;;  %v3376_v47 = vadd.f32 1.0, %v7217_v61  ;;  %v3206_v22 = vand.u32 2147483647, %v2971_v60  ;;  %vm8827_vm3 = vmor %vm3480_vm13, %vm3481_vm8 }
 0x7ad   : > { %v8806_v25 = vmul.f32 %v3473_v7, %v8744_v4  ;;  %v3477_v39 = vsub.f32 1.0, %v3476_v49  ;;  %v3209_v17 = vor.u32 1.1754944e-38, %v3208_v45 }
 0x7ae   : > { %7220 = vrcp.f32 %v3376_v47  ;;  %v3499_v61 = vand.u32 2147483647, %v3376_v47  ;;  %v3501_v7 = vand.u32 2147483648, %v3376_v47  ;;  %vm3207_vm5 = vcmp.eq.f32.partialorder %v3206_v22, 8.507059e+37 }
 0x7af   : > { %v3648_v15 = vpack.c.bf16 %v8806_v25, %v8803_v24  ;;  %v3478_v21 = vmul.f32 %v8797_v10, %v3477_v39  ;;  %vm3495_vm1 = vweird.f32 %v3376_v47 }
 0x7b0   : > { %v7219_v4 = vpop.eup %7218  ;;  %vm3500_vm2 = vcmp.eq.f32.partialorder %v3499_v61, 8.507059e+37 }
 0x7b1   : > { %6737 = vmatmul.msk.bf16.gmra.mxu1 %vm2456_vm4, %v3648_v15  ;;  %v3198_v27 = vmul.f32 %v7219_v4, %v2971_v60  ;;  %v3479_v43 = vadd.f32 %v8797_v10, %v3478_v21  ;;  %vm3203_vm11 = vweird.f32 %v7219_v4  ;;  %v3226_v60 = vmul.f32 %v3195_v62, %v8736_v50 }
 0x7b2   : > { %vm3204_vm0 = vmor %vm3202_vm12, %vm3203_vm11 }
 0x7b3   : > { %v3199_v29 = vsub.f32 1.0, %v3198_v27  ;;  %v3483_v0 = vsel %vm8827_vm3, %v8797_v10, %v3479_v43 }
 0x7b4   : > { %v3301_v33 = vpop.f32.mrf.mxu0  ;;  %v7221_v28 = vpop.eup %7220  ;;  %v3488_v27 = vsel %vm3485_vm6, %v3487_v31, %v3483_v0 }
 0x7b5   : > { %v8820_v14 = vadd.f32 %v8643_v51, %v3301_v33  ;;  %v3491_v40 = vmul.f32 %v7221_v28, %v3376_v47  ;;  %v3200_v46 = vmul.f32 %v7219_v4, %v3199_v29  ;;  %vm3496_vm9 = vweird.f32 %v7221_v28 }
 0x7b6   : > { %vm3497_vm10 = vmor %vm3495_vm1, %vm3496_vm9  ;;  %v3502_v33 = vor.u32 1.1754944e-38, %v3501_v7  ;;  %v8838_v50 = vmul.f32 %v3488_v27, %v8763_v56 }
 0x7b7   : > { %v6727_v13 = vmul.f32 -1.442695, %v8820_v14  ;;  %v3492_v16 = vsub.f32 1.0, %v3491_v40  ;;  %v3201_v39 = vadd.f32 %v7219_v4, %v3200_v46 }
 0x7b9   : > { %7222 = vpow2.f32 %v6727_v13  ;;  %v3493_v15 = vmul.f32 %v7221_v28, %v3492_v16  ;;  %v3205_v30 = vsel %vm3204_vm0, %v7219_v4, %v3201_v39 }
 0x7ba   : > { %v3210_v36 = vsel %vm3207_vm5, %v3209_v17, %v3205_v30 }
 0x7bb   : > { %v3494_v21 = vadd.f32 %v7221_v28, %v3493_v15  ;;  %v3227_v10 = vmul.f32 %v3210_v36, %v8781_v54 }
 0x7bc   : > { %v3303_v48 = vpop.f32.mrf.mxu0 }
 0x7bd   : > { %v3304_v29 = vadd.f32 %v8643_v51, %v3303_v48  ;;  %v3498_v43 = vsel %vm3497_vm10, %v7221_v28, %v3494_v21  ;;  %v3240_v45 = vpack.c.bf16 %v3227_v10, %v3226_v60 }
 0x7be   : > { %v3503_v63 = vsel %vm3500_vm2, %v3502_v33, %v3498_v43 }
 0x7bf   : > { %v7223_v40 = vpop.eup %7222  ;;  %v6728_v4 = vmul.f32 -1.442695, %v3304_v29  ;;  %v8841_v47 = vmul.f32 %v3503_v63, %v8784_v59  ;;  %6718 = vmatmul.msk.bf16.gmra.mxu0 %vm2456_vm4, %v3240_v45 }
 0x7c0   : > { %v3377_v62 = vadd.f32 1.0, %v7223_v40 }
 0x7c1   : > { %7224 = vpow2.f32 %v6728_v4  ;;  %v3649_v13 = vpack.c.bf16 %v8841_v47, %v8838_v50 }
 0x7c2   : > { %7226 = vrcp.f32 %v3377_v62  ;;  %v3516_v0 = vand.u32 2147483648, %v3377_v62  ;;  %vm3510_vm15 = vweird.f32 %v3377_v62  ;;  %v3514_v15 = vand.u32 2147483647, %v3377_v62 }
 0x7c3   : > { %6738 = vmatmul.msk.bf16.gmra.mxu1 %vm2456_vm4, %v3649_v13 }
 0x7c4   : > { %v3517_v48 = vor.u32 1.1754944e-38, %v3516_v0  ;;  %vm3515_vm11 = vcmp.eq.f32.partialorder %v3514_v15, 8.507059e+37 }
 0x7c7   : > { %v7225_v54 = vpop.eup %7224 }
 0x7c8   : > { %v7227_v28 = vpop.eup %7226  ;;  %v3378_v46 = vadd.f32 1.0, %v7225_v54 }
 0x7c9   : > { %v3506_v22 = vmul.f32 %v7227_v28, %v3377_v62  ;;  %vm3511_vm7 = vweird.f32 %v7227_v28 }
 0x7ca   : > { %7228 = vrcp.f32 %v3378_v46  ;;  %vm3512_vm14 = vmor %vm3510_vm15, %vm3511_vm7  ;;  %v3531_v31 = vand.u32 2147483648, %v3378_v46  ;;  %v3529_v21 = vand.u32 2147483647, %v3378_v46  ;;  %vm3525_vm13 = vweird.f32 %v3378_v46 }
 0x7cb   : > { %v3507_v56 = vsub.f32 1.0, %v3506_v22 }
 0x7cc   : > { %v3532_v43 = vor.u32 1.1754944e-38, %v3531_v31  ;;  %vm3530_vm3 = vcmp.eq.f32.partialorder %v3529_v21, 8.507059e+37 }
 0x7cd   : > { %v3508_v19 = vmul.f32 %v7227_v28, %v3507_v56  ;;  %v3306_v16 = vpop.f32.mrf.mxu0 }
 0x7ce   : > { %v8848_v59 = vadd.f32 %v8643_v51, %v3306_v16 }
 0x7cf   : > { %v3509_v61 = vadd.f32 %v7227_v28, %v3508_v19 }
 0x7d0   : > { %v7229_v49 = vpop.eup %7228  ;;  %v6729_v39 = vmul.f32 -1.442695, %v8848_v59 }
 0x7d1   : > { %v3521_v7 = vmul.f32 %v7229_v49, %v3378_v46  ;;  %v3513_v30 = vsel %vm3512_vm14, %v7227_v28, %v3509_v61  ;;  %vm3526_vm8 = vweird.f32 %v7229_v49 }
 0x7d2   : > { %7230 = vpow2.f32 %v6729_v39  ;;  %v3518_v10 = vsel %vm3515_vm11, %v3517_v48, %v3513_v30  ;;  %vm3527_vm12 = vmor %vm3525_vm13, %vm3526_vm8 }
 0x7d3   : > { %v3522_v17 = vsub.f32 1.0, %v3521_v7  ;;  %v8853_v13 = vmul.f32 %v3518_v10, %v8820_v14 }
 0x7d5   : > { %v3523_v60 = vmul.f32 %v7229_v49, %v3522_v17  ;;  %v3308_v36 = vpop.f32.mrf.mxu0 }
 0x7d6   : > { %v3309_v33 = vadd.f32 %v8643_v51, %v3308_v36 }
 0x7d7   : > { %v3524_v27 = vadd.f32 %v7229_v49, %v3523_v60 }
 0x7d8   : > { %v7231_v40 = vpop.eup %7230  ;;  %v6730_v4 = vmul.f32 -1.442695, %v3309_v33 }
 0x7d9   : > { %v3528_v63 = vsel %vm3527_vm12, %v7229_v49, %v3524_v27  ;;  %v3379_v62 = vadd.f32 1.0, %v7231_v40  ;;  %v8863_v49 = vld [vmem:[%s3656_s15] ss:$0 sm:$0xff]  ;;  %s4547_s15 = scalar_lea.vmem %s10055_s1, %s8208_s16  ;;  %s10058_s16 = sld [smem:[#allocation27_spill]] }
 0x7da   : > { %v3533_v45 = vsel %vm3530_vm3, %v3532_v43, %v3528_v63  ;;  %7232 = vpow2.f32 %v6730_v4 }
 0x7db   : > { %v8855_v54 = vmul.f32 %v3533_v45, %v3304_v29  ;;  %7234 = vrcp.f32 %v3379_v62  ;;  %v3546_v17 = vand.u32 2147483648, %v3379_v62  ;;  %vm3540_vm0 = vweird.f32 %v3379_v62 }
 0x7dc   : > { %v3544_v31 = vand.u32 2147483647, %v3379_v62 }
 0x7dd   : > { %v3650_v28 = vpack.c.bf16 %v8855_v54, %v8853_v13  ;;  %v3547_v27 = vor.u32 1.1754944e-38, %v3546_v17 }
 0x7de   : > { %vm3545_vm1 = vcmp.eq.f32.partialorder %v3544_v31, 8.507059e+37 }
 0x7df   : > { %6739 = vmatmul.msk.bf16.gmra.mxu1 %vm2456_vm4, %v3650_v28 }
 0x7e0   : > { %v7233_v46 = vpop.eup %7232 }
 0x7e1   : > { %v7235_v22 = vpop.eup %7234  ;;  %v3380_v56 = vadd.f32 1.0, %v7233_v46 }
 0x7e2   : > { %v3536_v19 = vmul.f32 %v7235_v22, %v3379_v62  ;;  %vm3541_vm9 = vweird.f32 %v7235_v22 }
 0x7e3   : > { %7236 = vrcp.f32 %v3380_v56  ;;  %vm3542_vm5 = vmor %vm3540_vm0, %vm3541_vm9  ;;  %v3561_v60 = vand.u32 2147483648, %v3380_v56  ;;  %v3559_v36 = vand.u32 2147483647, %v3380_v56  ;;  %vm3555_vm10 = vweird.f32 %v3380_v56 }
 0x7e4   : > { %v3537_v16 = vsub.f32 1.0, %v3536_v19 }
 0x7e5   : > { %v3562_v4 = vor.u32 1.1754944e-38, %v3561_v60  ;;  %vm3560_vm7 = vcmp.eq.f32.partialorder %v3559_v36, 8.507059e+37 }
 0x7e6   : > { %v3538_v14 = vmul.f32 %v7235_v22, %v3537_v16 }
 0x7e8   : > { %v3694_v61 = vpop.f32.mrf.mxu1  ;;  %v3539_v39 = vadd.f32 %v7235_v22, %v3538_v14 }
 0x7e9   : > { %v3695_v29 = vadd.f32 %v8863_v49, %v3694_v61  ;;  %v7237_v7 = vpop.eup %7236 }
 0x7ea   : > { %v3551_v0 = vmul.f32 %v7237_v7, %v3380_v56  ;;  %v3543_v21 = vsel %vm3542_vm5, %v7235_v22, %v3539_v39  ;;  %vm3556_vm6 = vweird.f32 %v7237_v7 }
 0x7eb   : > { %v6743_v15 = vmul.f32 -1.442695, %v3695_v29  ;;  %v3548_v63 = vsel %vm3545_vm1, %v3547_v27, %v3543_v21  ;;  %vm3557_vm2 = vmor %vm3555_vm10, %vm3556_vm6 }
 0x7ec   : > { %v3552_v30 = vsub.f32 1.0, %v3551_v0  ;;  %v8868_v22 = vmul.f32 %v3548_v63, %v8848_v59 }
 0x7ed   : > { %7238 = vpow2.f32 %v6743_v15 }
 0x7ee   : > { %v3553_v48 = vmul.f32 %v7237_v7, %v3552_v30 }
 0x7f0   : > { %v3696_v10 = vpop.f32.mrf.mxu1  ;;  %v3554_v43 = vadd.f32 %v7237_v7, %v3553_v48 }
 0x7f1   : > { %v3697_v40 = vadd.f32 %v8863_v49, %v3696_v10 }
 0x7f2   : > { %v3558_v62 = vsel %vm3557_vm2, %v7237_v7, %v3554_v43 }
 0x7f3   : > { %v7239_v45 = vpop.eup %7238  ;;  %v6744_v28 = vmul.f32 -1.442695, %v3697_v40  ;;  %v3563_v46 = vsel %vm3560_vm7, %v3562_v4, %v3558_v62 }
 0x7f4   : > { %v3782_v19 = vadd.f32 1.0, %v7239_v45  ;;  %v8870_v16 = vmul.f32 %v3563_v46, %v3309_v33 }
 0x7f5   : > { %7240 = vpow2.f32 %v6744_v28 }
 0x7f6   : > { %7242 = vrcp.f32 %v3782_v19  ;;  %v3651_v56 = vpack.c.bf16 %v8870_v16, %v8868_v22  ;;  %v3809_v15 = vand.u32 2147483648, %v3782_v19  ;;  %v3807_v31 = vand.u32 2147483647, %v3782_v19 }
 0x7f7   : > { %vm3803_vm14 = vweird.f32 %v3782_v19 }
 0x7f8   : > { %6740 = vmatmul.msk.bf16.gmra.mxu1 %vm2456_vm4, %v3651_v56  ;;  %v3810_v21 = vor.u32 1.1754944e-38, %v3809_v15  ;;  %vm3808_vm11 = vcmp.eq.f32.partialorder %v3807_v31, 8.507059e+37 }
 0x7fb   : > { %v7241_v14 = vpop.eup %7240 }
 0x7fc   : > { %v7243_v61 = vpop.eup %7242  ;;  %v3783_v29 = vadd.f32 1.0, %v7241_v14 }
 0x7fd   : > { %v3799_v7 = vmul.f32 %v7243_v61, %v3782_v19  ;;  %vm3804_vm15 = vweird.f32 %v7243_v61 }
 0x7fe   : > { %7244 = vrcp.f32 %v3783_v29  ;;  %v3311_v39 = vpop.f32.mrf.mxu0  ;;  %vm3805_vm8 = vmor %vm3803_vm14, %vm3804_vm15  ;;  %v3824_v63 = vand.u32 2147483648, %v3783_v29  ;;  %v3822_v28 = vand.u32 2147483647, %v3783_v29  ;;  %vm3818_vm12 = vweird.f32 %v3783_v29 }
 0x7ff   : > { %v8876_v0 = vadd.f32 %v8643_v51, %v3311_v39  ;;  %v3800_v59 = vsub.f32 1.0, %v3799_v7 }
 0x800   : > { %v3825_v56 = vor.u32 1.1754944e-38, %v3824_v63  ;;  %vm3823_vm9 = vcmp.eq.f32.partialorder %v3822_v28, 8.507059e+37 }
 0x801   : > { %v6731_v33 = vmul.f32 -1.442695, %v8876_v0  ;;  %v3801_v17 = vmul.f32 %v7243_v61, %v3800_v59 }
 0x803   : > { %7246 = vpow2.f32 %v6731_v33  ;;  %v3802_v30 = vadd.f32 %v7243_v61, %v3801_v17 }
 0x804   : > { %v7245_v60 = vpop.eup %7244 }
 0x805   : > { %v3806_v48 = vsel %vm3805_vm8, %v7243_v61, %v3802_v30  ;;  %v3814_v36 = vmul.f32 %v7245_v60, %v3783_v29  ;;  %vm3819_vm13 = vweird.f32 %v7245_v60 }
 0x806   : > { %v3313_v27 = vpop.f32.mrf.mxu0  ;;  %v3811_v10 = vsel %vm3808_vm11, %v3810_v21, %v3806_v48  ;;  %vm3820_vm3 = vmor %vm3818_vm12, %vm3819_vm13 }
 0x807   : > { %v3314_v43 = vadd.f32 %v8643_v51, %v3313_v27  ;;  %4040 = vperm.xlu2 %7115, %v3811_v10   ;;  %v3815_v40 = vsub.f32 1.0, %v3814_v36 }
 0x809   : > { %v7247_v4 = vpop.eup %7246  ;;  %v6732_v45 = vmul.f32 -1.442695, %v3314_v43  ;;  %v3816_v62 = vmul.f32 %v7245_v60, %v3815_v40 }
 0x80a   : > { %v3381_v46 = vadd.f32 1.0, %v7247_v4 }
 0x80b   : > { %7248 = vpow2.f32 %v6732_v45  ;;  %v3817_v19 = vadd.f32 %v7245_v60, %v3816_v62 }
 0x80c   : > { %7250 = vrcp.f32 %v3381_v46  ;;  %v3576_v21 = vand.u32 2147483648, %v3381_v46  ;;  %vm3570_vm5 = vweird.f32 %v3381_v46  ;;  %v3574_v29 = vand.u32 2147483647, %v3381_v46 }
 0x80d   : > { %v3821_v14 = vsel %vm3820_vm3, %v7245_v60, %v3817_v19 }
 0x80e   : > { %v3826_v61 = vsel %vm3823_vm9, %v3825_v56, %v3821_v14  ;;  %v3577_v4 = vor.u32 1.1754944e-38, %v3576_v21  ;;  %vm3575_vm10 = vcmp.eq.f32.partialorder %v3574_v29, 8.507059e+37 }
 0x80f   : > { %4045 = vperm.xlu1 %7114, %v3826_v61  }
 0x811   : > { %v7249_v51 = vpop.eup %7248 }
 0x812   : > { %v7251_v7 = vpop.eup %7250  ;;  %v3382_v39 = vadd.f32 1.0, %v7249_v51 }
 0x813   : > { %v3566_v59 = vmul.f32 %v7251_v7, %v3381_v46  ;;  %vm3571_vm0 = vweird.f32 %v7251_v7 }
 0x814   : > { %7252 = vrcp.f32 %v3382_v39  ;;  %vm3572_vm6 = vmor %vm3570_vm5, %vm3571_vm0  ;;  %v3589_v60 = vand.u32 2147483647, %v3382_v39  ;;  %v3591_v36 = vand.u32 2147483648, %v3382_v39  ;;  %vm3585_vm2 = vweird.f32 %v3382_v39 }
 0x815   : > { %v3567_v15 = vsub.f32 1.0, %v3566_v59 }
 0x816   : > { %v3592_v19 = vor.u32 1.1754944e-38, %v3591_v36  ;;  %vm3590_vm15 = vcmp.eq.f32.partialorder %v3589_v60, 8.507059e+37 }
 0x817   : > { %v3568_v33 = vmul.f32 %v7251_v7, %v3567_v15 }
 0x819   : > { %v3569_v31 = vadd.f32 %v7251_v7, %v3568_v33 }
 0x81a   : > { %v7253_v17 = vpop.eup %7252 }
 0x81b   : > { %v3581_v30 = vmul.f32 %v7253_v17, %v3382_v39  ;;  %v3573_v10 = vsel %vm3572_vm6, %v7251_v7, %v3569_v31  ;;  %vm3586_vm1 = vweird.f32 %v7253_v17 }
 0x81c   : > { %v3578_v28 = vsel %vm3575_vm10, %v3577_v4, %v3573_v10  ;;  %vm3587_vm7 = vmor %vm3585_vm2, %vm3586_vm1 }
 0x81d   : > { %v3582_v48 = vsub.f32 1.0, %v3581_v30  ;;  %v8882_v14 = vmul.f32 %v3578_v28, %v8876_v0 }
 0x81e   : > { %v3699_v27 = vpop.f32.mrf.mxu1 }
 0x81f   : > { %v3583_v40 = vmul.f32 %v7253_v17, %v3582_v48  ;;  %v3700_v63 = vadd.f32 %v8863_v49, %v3699_v27 }
 0x821   : > { %v3584_v45 = vadd.f32 %v7253_v17, %v3583_v40  ;;  %v6745_v62 = vmul.f32 -1.442695, %v3700_v63 }
 0x823   : > { %v3588_v56 = vsel %vm3587_vm7, %v7253_v17, %v3584_v45  ;;  %7254 = vpow2.f32 %v6745_v62 }
 0x824   : > { %v3593_v46 = vsel %vm3590_vm15, %v3592_v19, %v3588_v56 }
 0x825   : > { %v8884_v61 = vmul.f32 %v3593_v46, %v3314_v43 }
 0x826   : > { %v3701_v51 = vpop.f32.mrf.mxu1 }
 0x827   : > { %v3652_v7 = vpack.c.bf16 %v8884_v61, %v8882_v14  ;;  %v3702_v59 = vadd.f32 %v8863_v49, %v3701_v51 }
 0x829   : > { %v7255_v39 = vpop.eup %7254  ;;  %v6746_v15 = vmul.f32 -1.442695, %v3702_v59  ;;  %6741 = vmatmul.msk.bf16.gmra.mxu1 %vm2456_vm4, %v3652_v7 }
 0x82a   : > { %v3784_v33 = vadd.f32 1.0, %v7255_v39 }
 0x82b   : > { %7256 = vpow2.f32 %v6746_v15  ;;  %v7416_v15 = vld [vmem:[%s8486_s23] ss:$0 sm:$0xff]  ;;  %s10046_s23 = sld [smem:[#allocation25_spill]] }
 0x82c   : > { %7258 = vrcp.f32 %v3784_v33  ;;  %v3839_v36 = vand.u32 2147483648, %v3784_v33  ;;  %v3837_v40 = vand.u32 2147483647, %v3784_v33  ;;  %vm3833_vm8 = vweird.f32 %v3784_v33 }
 0x82e   : > { %v3704_v17 = vpop.f32.mrf.mxu1  ;;  %v3840_v19 = vor.u32 1.1754944e-38, %v3839_v36  ;;  %vm3838_vm13 = vcmp.eq.f32.partialorder %v3837_v40, 8.507059e+37 }
 0x82f   : > { %v3705_v31 = vadd.f32 %v8863_v49, %v3704_v17 }
 0x831   : > { %v7257_v0 = vpop.eup %7256  ;;  %v6747_v30 = vmul.f32 -1.442695, %v3705_v31  ;;  %s4149_s26 = scalar_lea.vmem %s10046_s23, %s7491_s7 }
 0x832   : > { %v7259_v43 = vpop.eup %7258  ;;  %v3785_v21 = vadd.f32 1.0, %v7257_v0 }
 0x833   : > { %7260 = vpow2.f32 %v6747_v30  ;;  %v3829_v29 = vmul.f32 %v7259_v43, %v3784_v33  ;;  %vm3834_vm14 = vweird.f32 %v7259_v43 }
 0x834   : > { %7262 = vrcp.f32 %v3785_v21  ;;  %vm3835_vm11 = vmor %vm3833_vm8, %vm3834_vm14  ;;  %v3854_v39 = vand.u32 2147483648, %v3785_v21  ;;  %v3852_v33 = vand.u32 2147483647, %v3785_v21  ;;  %vm3848_vm3 = vweird.f32 %v3785_v21 }
 0x835   : > { %v3830_v48 = vsub.f32 1.0, %v3829_v29 }
 0x836   : > { %v3706_v60 = vpop.f32.mrf.mxu1  ;;  %vm3853_vm0 = vcmp.eq.f32.partialorder %v3852_v33, 8.507059e+37 }
 0x837   : > { %v3707_v27 = vadd.f32 %v8863_v49, %v3706_v60  ;;  %v3831_v10 = vmul.f32 %v7259_v43, %v3830_v48 }
 0x839   : > { %v7261_v63 = vpop.eup %7260  ;;  %v6748_v4 = vmul.f32 -1.442695, %v3707_v27  ;;  %v3832_v45 = vadd.f32 %v7259_v43, %v3831_v10  ;;  %v3855_v27 = vor.u32 1.1754944e-38, %v3854_v39 }
 0x83a   : > { %v7263_v62 = vpop.eup %7262  ;;  %v3786_v28 = vadd.f32 1.0, %v7261_v63 }
 0x83b   : > { %7264 = vpow2.f32 %v6748_v4  ;;  %v3836_v56 = vsel %vm3835_vm11, %v7259_v43, %v3832_v45  ;;  %v3844_v46 = vmul.f32 %v7263_v62, %v3785_v21  ;;  %vm3849_vm12 = vweird.f32 %v7263_v62 }
 0x83c   : > { %7266 = vrcp.f32 %v3786_v28  ;;  %v3841_v51 = vsel %vm3838_vm13, %v3840_v19, %v3836_v56  ;;  %v3316_v59 = vpop.f32.mrf.mxu0  ;;  %vm3850_vm9 = vmor %vm3848_vm3, %vm3849_vm12  ;;  %vm3863_vm6 = vweird.f32 %v3786_v28 }
 0x83d   : > { %4050 = vperm.xlu0 %7113, %v3841_v51   ;;  %v3845_v7 = vsub.f32 1.0, %v3844_v46  ;;  %v8893_v17 = vadd.f32 %v7416_v15, %v3316_v59  ;;  %v3869_v46 = vand.u32 2147483648, %v3786_v28  ;;  %v3867_v51 = vand.u32 2147483647, %v3786_v28 }
 0x83f   : > { %v3846_v31 = vmul.f32 %v7263_v62, %v3845_v7  ;;  %v6733_v30 = vmul.f32 -1.442695, %v8893_v17  ;;  %vm3868_vm10 = vcmp.eq.f32.partialorder %v3867_v51, 8.507059e+37 }
 0x840   : > { %v3709_v29 = vpop.f32.mrf.mxu1 }
 0x841   : > { %v7265_v0 = vpop.eup %7264  ;;  %v3847_v48 = vadd.f32 %v7263_v62, %v3846_v31  ;;  %v3710_v36 = vadd.f32 %v8863_v49, %v3709_v29  ;;  %7268 = vpow2.f32 %v6733_v30  ;;  %v3870_v30 = vor.u32 1.1754944e-38, %v3869_v46 }
 0x842   : > { %v7267_v43 = vpop.eup %7266  ;;  %v3787_v60 = vadd.f32 1.0, %v7265_v0 }
 0x843   : > { %v3851_v10 = vsel %vm3850_vm9, %v7263_v62, %v3847_v48  ;;  %v3859_v40 = vmul.f32 %v7267_v43, %v3786_v28  ;;  %v6749_v63 = vmul.f32 -1.442695, %v3710_v36  ;;  %vm3864_vm5 = vweird.f32 %v7267_v43 }
 0x844   : > { %7270 = vrcp.f32 %v3787_v60  ;;  %v3856_v4 = vsel %vm3853_vm0, %v3855_v27, %v3851_v10  ;;  %v3318_v19 = vpop.f32.mrf.mxu0  ;;  %vm3865_vm1 = vmor %vm3863_vm6, %vm3864_vm5  ;;  %vm3878_vm7 = vweird.f32 %v3787_v60 }
 0x845   : > { %4055 = vperm.xlu2 %7115, %v3856_v4   ;;  %v3860_v45 = vsub.f32 1.0, %v3859_v40  ;;  %7272 = vpow2.f32 %v6749_v63  ;;  %v8897_v56 = vadd.f32 %v7416_v15, %v3318_v19  ;;  %v3884_v63 = vand.u32 2147483648, %v3787_v60 }
 0x846   : > { %v3882_v4 = vand.u32 2147483647, %v3787_v60 }
 0x847   : > { %v3861_v21 = vmul.f32 %v7267_v43, %v3860_v45  ;;  %v7269_v7 = vpop.eup %7268  ;;  %v6734_v59 = vmul.f32 -1.442695, %v8897_v56 }
 0x848   : > { %v3711_v39 = vpop.f32.mrf.mxu1  ;;  %v8900_v33 = vadd.f32 1.0, %v7269_v7  ;;  %v3885_v7 = vor.u32 1.1754944e-38, %v3884_v63  ;;  %vm3883_vm14 = vcmp.eq.f32.partialorder %v3882_v4, 8.507059e+37 }
 0x849   : > { %v3862_v62 = vadd.f32 %v7267_v43, %v3861_v21  ;;  %v3712_v0 = vadd.f32 %v8863_v49, %v3711_v39  ;;  %7274 = vpow2.f32 %v6734_v59 }
 0x84a   : > { %v7271_v31 = vpop.eup %7270  ;;  %7276 = vrcp.f32 %v8900_v33  ;;  %vm3600_vm13 = vweird.f32 %v8900_v33  ;;  %v3604_v4 = vand.u32 2147483647, %v8900_v33 }
 0x84b   : > { %v3866_v15 = vsel %vm3865_vm1, %v7267_v43, %v3862_v62  ;;  %v3874_v29 = vmul.f32 %v7271_v31, %v3787_v60  ;;  %v7273_v48 = vpop.eup %7272  ;;  %v6750_v27 = vmul.f32 -1.442695, %v3712_v0  ;;  %vm3879_vm2 = vweird.f32 %v7271_v31 }
 0x84c   : > { %v3788_v36 = vadd.f32 1.0, %v7273_v48  ;;  %v3871_v10 = vsel %vm3868_vm10, %v3870_v30, %v3866_v15  ;;  %vm3880_vm15 = vmor %vm3878_vm7, %vm3879_vm2  ;;  %vm3605_vm6 = vcmp.eq.f32.partialorder %v3604_v4, 8.507059e+37 }
 0x84d   : > { %v3875_v28 = vsub.f32 1.0, %v3874_v29  ;;  %4060 = vperm.xlu1 %7114, %v3871_v10  }
 0x84e   : > { %7278 = vrcp.f32 %v3788_v36  ;;  %v3897_v60 = vand.u32 2147483647, %v3788_v36  ;;  %vm3893_vm3 = vweird.f32 %v3788_v36 }
 0x84f   : > { %v3876_v40 = vmul.f32 %v7271_v31, %v3875_v28  ;;  %7280 = vpow2.f32 %v6750_v27  ;;  %v7275_v45 = vpop.eup %7274  ;;  %v3899_v27 = vand.u32 2147483648, %v3788_v36 }
 0x850   : > { %v7277_v19 = vpop.eup %7276  ;;  %v3384_v21 = vadd.f32 1.0, %v7275_v45  ;;  %v3606_v45 = vand.u32 2147483648, %v8900_v33  ;;  %vm3898_vm0 = vcmp.eq.f32.partialorder %v3897_v60, 8.507059e+37 }
 0x851   : > { %v3877_v43 = vadd.f32 %v7271_v31, %v3876_v40  ;;  %v3596_v46 = vmul.f32 %v7277_v19, %v8900_v33  ;;  %vm3601_vm8 = vweird.f32 %v7277_v19 }
 0x852   : > { %7282 = vrcp.f32 %v3384_v21  ;;  %vm8911_vm12 = vmor %vm3600_vm13, %vm3601_vm8  ;;  %v3607_v18 = vor.u32 1.1754944e-38, %v3606_v45  ;;  %vm3615_vm1 = vweird.f32 %v3384_v21 }
 0x853   : > { %v3881_v51 = vsel %vm3880_vm15, %v7271_v31, %v3877_v43  ;;  %v3597_v39 = vsub.f32 1.0, %v3596_v46 }
 0x854   : > { %v7279_v59 = vpop.eup %7278  ;;  %v3886_v62 = vsel %vm3883_vm14, %v3885_v7, %v3881_v51 }
 0x855   : > { %v7281_v0 = vpop.eup %7280  ;;  %4065 = vperm.xlu0 %7113, %v3886_v62   ;;  %v3889_v15 = vmul.f32 %v7279_v59, %v3788_v36  ;;  %v3598_v30 = vmul.f32 %v7277_v19, %v3597_v39  ;;  %vm3894_vm11 = vweird.f32 %v7279_v59  ;;  %v3900_v39 = vor.u32 1.1754944e-38, %v3899_v27 }
 0x856   : > { %v8907_v29 = vadd.f32 1.0, %v7281_v0  ;;  %vm3895_vm9 = vmor %vm3893_vm3, %vm3894_vm11  ;;  %v3619_v0 = vand.u32 2147483647, %v3384_v21 }
 0x857   : > { %v3890_v48 = vsub.f32 1.0, %v3889_v15  ;;  %v3599_v31 = vadd.f32 %v7277_v19, %v3598_v30  ;;  %v3621_v15 = vand.u32 2147483648, %v3384_v21 }
 0x858   : > { %7284 = vrcp.f32 %v8907_v29  ;;  %v7283_v10 = vpop.eup %7282  ;;  %vm3620_vm2 = vcmp.eq.f32.partialorder %v3619_v0, 8.507059e+37  ;;  %v3912_v4 = vand.u32 2147483647, %v8907_v29  ;;  %vm3908_vm15 = vweird.f32 %v8907_v29 }
 0x859   : > { %v3891_v28 = vmul.f32 %v7279_v59, %v3890_v48  ;;  %v3611_v40 = vmul.f32 %v7283_v10, %v3384_v21  ;;  %v3603_v62 = vsel %vm8911_vm12, %v7277_v19, %v3599_v31  ;;  %vm3616_vm5 = vweird.f32 %v7283_v10  ;;  %v4137_v31 = vld [vmem:[%s4134_s22 + $0x10] sm:$0xff] }
 0x85a   : > { %v3608_v60 = vsel %vm3605_vm6, %v3607_v18, %v3603_v62  ;;  %vm3617_vm10 = vmor %vm3615_vm1, %vm3616_vm5  ;;  %v3622_v19 = vor.u32 1.1754944e-38, %v3621_v15  ;;  %v4136_v62 = vld [vmem:[%s4134_s22 + $0x8] sm:$0xff]  ;;  %vm3913_vm8 = vcmp.eq.f32.partialorder %v3912_v4, 8.507059e+37 }
 0x85b   : > { %v3892_v46 = vadd.f32 %v7279_v59, %v3891_v28  ;;  %v3612_v51 = vsub.f32 1.0, %v3611_v40 }
 0x85c   : > { %v3714_v43 = vpop.f32.mrf.mxu1 }
 0x85d   : > { %v3715_v7 = vadd.f32 %v8863_v49, %v3714_v43  ;;  %v3896_v30 = vsel %vm3895_vm9, %v7279_v59, %v3892_v46  ;;  %v3613_v12 = vmul.f32 %v7283_v10, %v3612_v51  ;;  %v4138_v59 = vld [vmem:[%s4134_s22 + $0x18] sm:$0xff]  ;;  %v3914_v43 = vand.u32 2147483648, %v8907_v29 }
 0x85e   : > { %v7285_v48 = vpop.eup %7284  ;;  %v3901_v28 = vsel %vm3898_vm0, %v3900_v39, %v3896_v30  ;;  %v4148_v46 = vpack.c.bf16 %v4138_v59, %v4137_v31  ;;  %v4135_v39 = vld [vmem:[%s4134_s22] sm:$0xff] }
 0x85f   : > { %v6751_v33 = vmul.f32 -1.442695, %v3715_v7  ;;  %4070 = vperm.xlu2 %7115, %v3901_v28   ;;  %v3904_v36 = vmul.f32 %v7285_v48, %v8907_v29  ;;  %v3614_v40 = vadd.f32 %v7283_v10, %v3613_v12  ;;  %vm3909_vm7 = vweird.f32 %v7285_v48 }
 0x860   : > { %v8926_v12 = vmul.f32 %v3608_v60, %v8893_v17  ;;  %4184 = vmatpush.bf16.msra.mxu2 %v4148_v46  ;;  %vm3910_vm14 = vmor %vm3908_vm15, %vm3909_vm7  ;;  %v4147_v17 = vpack.c.bf16 %v4136_v62, %v4135_v39 }
 0x861   : > { %7286 = vpow2.f32 %v6751_v33  ;;  %v3905_v27 = vsub.f32 1.0, %v3904_v36  ;;  %v3618_v63 = vsel %vm3617_vm10, %v7283_v10, %v3614_v40  ;;  %v3915_v33 = vor.u32 1.1754944e-38, %v3914_v43 }
 0x862   : > { %v3623_v51 = vsel %vm3620_vm2, %v3622_v19, %v3618_v63 }
 0x863   : > { %v3906_v7 = vmul.f32 %v7285_v48, %v3905_v27  ;;  %v8929_v18 = vmul.f32 %v3623_v51, %v8897_v56 }
 0x864   : > { %v3716_v45 = vpop.f32.mrf.mxu1  ;;  %4185 = vmatpush.bf16.msra.mxu2 %v4147_v17 }
 0x865   : > { %v3717_v21 = vadd.f32 %v8863_v49, %v3716_v45  ;;  %v3907_v10 = vadd.f32 %v7285_v48, %v3906_v7  ;;  %v3653_v15 = vpack.c.bf16 %v8929_v18, %v8926_v12 }
 0x867   : > { %v7287_v0 = vpop.eup %7286  ;;  %v6752_v30 = vmul.f32 -1.442695, %v3717_v21  ;;  %v3911_v36 = vsel %vm3910_vm14, %v7285_v48, %v3907_v10  ;;  %6742 = vmatmul.msk.bf16.gmra.mxu1 %vm2456_vm4, %v3653_v15 }
 0x868   : > { %v3790_v28 = vadd.f32 1.0, %v7287_v0  ;;  %v3916_v56 = vsel %vm3913_vm8, %v3915_v33, %v3911_v36  ;;  %v4041_v33 = vpop.permute.xlu2 %4040 }
 0x869   : > { %7288 = vpow2.f32 %v6752_v30  ;;  %4075 = vperm.xlu1 %7114, %v3916_v56  }
 0x86a   : > { %7290 = vrcp.f32 %v3790_v28  ;;  %v3929_v31 = vand.u32 2147483648, %v3790_v28  ;;  %v3927_v63 = vand.u32 2147483647, %v3790_v28  ;;  %vm3923_vm13 = vweird.f32 %v3790_v28 }
 0x86c   : > { %v3930_v45 = vor.u32 1.1754944e-38, %v3929_v31  ;;  %vm3928_vm3 = vcmp.eq.f32.partialorder %v3927_v63, 8.507059e+37 }
 0x86f   : > { %v7289_v29 = vpop.eup %7288 }
 0x870   : > { %v7291_v40 = vpop.eup %7290  ;;  %v3791_v60 = vadd.f32 1.0, %v7289_v29 }
 0x871   : > { %v3919_v19 = vmul.f32 %v7291_v40, %v3790_v28  ;;  %vm3924_vm11 = vweird.f32 %v7291_v40 }
 0x872   : > { %7292 = vrcp.f32 %v3791_v60  ;;  %vm3925_vm12 = vmor %vm3923_vm13, %vm3924_vm11  ;;  %v3944_v62 = vand.u32 2147483648, %v3791_v60  ;;  %v3942_v15 = vand.u32 2147483647, %v3791_v60  ;;  %vm3938_vm0 = vweird.f32 %v3791_v60 }
 0x873   : > { %v3920_v27 = vsub.f32 1.0, %v3919_v19 }
 0x874   : > { %v3945_v36 = vor.u32 1.1754944e-38, %v3944_v62  ;;  %vm3943_vm6 = vcmp.eq.f32.partialorder %v3942_v15, 8.507059e+37 }
 0x875   : > { %v3921_v59 = vmul.f32 %v7291_v40, %v3920_v27  ;;  %v3719_v43 = vpop.f32.mrf.mxu1  ;;  %v8939_v27 = vmul.f32 %v4041_v33, %v8699_v55 }
 0x876   : > { %v3720_v48 = vadd.f32 %v8863_v49, %v3719_v43 }
 0x877   : > { %v3922_v46 = vadd.f32 %v7291_v40, %v3921_v59  ;;  %10047 = vst [vmem:[#allocation48_spill] sm:$0xff] %v8939_v27 }
 0x878   : > { %v7293_v51 = vpop.eup %7292  ;;  %v6753_v7 = vmul.f32 -1.442695, %v3720_v48 }
 0x879   : > { %v3926_v4 = vsel %vm3925_vm12, %v7291_v40, %v3922_v46  ;;  %v3934_v21 = vmul.f32 %v7293_v51, %v3791_v60  ;;  %vm3939_vm9 = vweird.f32 %v7293_v51 }
 0x87a   : > { %v3931_v10 = vsel %vm3928_vm3, %v3930_v45, %v3926_v4  ;;  %7294 = vpow2.f32 %v6753_v7  ;;  %vm3940_vm5 = vmor %vm3938_vm0, %vm3939_vm9 }
 0x87b   : > { %4080 = vperm.xlu0 %7113, %v3931_v10   ;;  %v3935_v39 = vsub.f32 1.0, %v3934_v21 }
 0x87d   : > { %v3936_v0 = vmul.f32 %v7293_v51, %v3935_v39  ;;  %v3721_v30 = vpop.f32.mrf.mxu1 }
 0x87e   : > { %v3722_v17 = vadd.f32 %v8863_v49, %v3721_v30 }
 0x87f   : > { %v3937_v28 = vadd.f32 %v7293_v51, %v3936_v0 }
 0x880   : > { %v7295_v56 = vpop.eup %7294  ;;  %v6754_v29 = vmul.f32 -1.442695, %v3722_v17 }
 0x881   : > { %v4046_v40 = vpop.permute.xlu1 %4045  ;;  %v3941_v19 = vsel %vm3940_vm5, %v7293_v51, %v3937_v28  ;;  %v3792_v31 = vadd.f32 1.0, %v7295_v56 }
 0x882   : > { %v8942_v59 = vmul.f32 %v4046_v40, %v8702_v1  ;;  %v3946_v63 = vsel %vm3943_vm6, %v3945_v36, %v3941_v19  ;;  %7296 = vpow2.f32 %v6754_v29 }
 0x883   : > { %4085 = vperm.xlu2 %7115, %v3946_v63   ;;  %7298 = vrcp.f32 %v3792_v31  ;;  %v3959_v45 = vand.u32 2147483648, %v3792_v31  ;;  %v3957_v1 = vand.u32 2147483647, %v3792_v31  ;;  %vm3953_vm10 = vweird.f32 %v3792_v31 }
 0x884   : > { %10048 = vst [vmem:[#allocation49_spill] sm:$0xff] %v8942_v59  ;;  %v4139_v60 = vpack.c.bf16 %v8942_v59, %v8939_v27 }
 0x885   : > { %v3960_v10 = vor.u32 1.1754944e-38, %v3959_v45  ;;  %vm3958_vm7 = vcmp.eq.f32.partialorder %v3957_v1, 8.507059e+37 }
 0x886   : > { %6759 = vmatmul.msk.bf16.vlgmr.msra.gmra.mxu2 %vm2456_vm4, %v4139_v60 }
 0x888   : > { %v7297_v43 = vpop.eup %7296 }
 0x889   : > { %v7299_v48 = vpop.eup %7298  ;;  %v3793_v46 = vadd.f32 1.0, %v7297_v43 }
 0x88a   : > { %v3949_v51 = vmul.f32 %v7299_v48, %v3792_v31  ;;  %vm3954_vm1 = vweird.f32 %v7299_v48 }
 0x88b   : > { %7300 = vrcp.f32 %v3793_v46  ;;  %vm3955_vm2 = vmor %vm3953_vm10, %vm3954_vm1  ;;  %v3974_v30 = vand.u32 2147483648, %v3793_v46  ;;  %v3972_v17 = vand.u32 2147483647, %v3793_v46  ;;  %vm3968_vm14 = vweird.f32 %v3793_v46 }
 0x88c   : > { %v3950_v55 = vsub.f32 1.0, %v3949_v51 }
 0x88d   : > { %v3975_v36 = vor.u32 1.1754944e-38, %v3974_v30  ;;  %vm3973_vm11 = vcmp.eq.f32.partialorder %v3972_v17, 8.507059e+37 }
 0x88e   : > { %v3951_v7 = vmul.f32 %v7299_v48, %v3950_v55 }
 0x890   : > { %v3952_v4 = vadd.f32 %v7299_v48, %v3951_v7 }
 0x891   : > { %v7301_v21 = vpop.eup %7300 }
 0x892   : > { %v3956_v39 = vsel %vm3955_vm2, %v7299_v48, %v3952_v4  ;;  %v3964_v62 = vmul.f32 %v7301_v21, %v3793_v46  ;;  %vm3969_vm15 = vweird.f32 %v7301_v21 }
 0x893   : > { %v3961_v0 = vsel %vm3958_vm7, %v3960_v10, %v3956_v39  ;;  %vm3970_vm8 = vmor %vm3968_vm14, %vm3969_vm15 }
 0x894   : > { %4090 = vperm.xlu1 %7114, %v3961_v0   ;;  %v3965_v15 = vsub.f32 1.0, %v3964_v62 }
 0x896   : > { %v3966_v33 = vmul.f32 %v7301_v21, %v3965_v15 }
 0x898   : > { %v3967_v28 = vadd.f32 %v7301_v21, %v3966_v33 }
 0x89a   : > { %v3971_v56 = vsel %vm3970_vm8, %v7301_v21, %v3967_v28 }
 0x89b   : > { %v3976_v29 = vsel %vm3973_vm11, %v3975_v36, %v3971_v56 }
 0x89c   : > { %4095 = vperm.xlu0 %7113, %v3976_v29  }
 0x89f   : > { %v4056_v63 = vpop.permute.xlu2 %4055 }
 0x8a0   : > { %v8952_v51 = vmul.f32 %v4056_v63, %v8774_v35 }
 0x8a2   : > { %10049 = vst [vmem:[#allocation50_spill] sm:$0xff] %v8952_v51 }
 0x8a6   : > { %v3724_v40 = vpop.f32.mrf.mxu1 }
 0x8a7   : > { %v3725_v19 = vadd.f32 %v8863_v49, %v3724_v40 }
 0x8a9   : > { %v6755_v31 = vmul.f32 -1.442695, %v3725_v19 }
 0x8ab   : > { %7302 = vpow2.f32 %v6755_v31 }
 0x8ae   : > { %v3726_v60 = vpop.f32.mrf.mxu1 }
 0x8af   : > { %v3727_v43 = vadd.f32 %v8863_v49, %v3726_v60  ;;  %v4051_v48 = vpop.permute.xlu0 %4050 }
 0x8b0   : > { %v8955_v46 = vmul.f32 %v4051_v48, %v8771_v20 }
 0x8b1   : > { %v7303_v55 = vpop.eup %7302  ;;  %v6756_v45 = vmul.f32 -1.442695, %v3727_v43 }
 0x8b2   : > { %10050 = vst [vmem:[#allocation51_spill] sm:$0xff] %v8955_v46  ;;  %v3794_v7 = vadd.f32 1.0, %v7303_v55  ;;  %v4140_v1 = vpack.c.bf16 %v8952_v51, %v8955_v46 }
 0x8b3   : > { %7304 = vpow2.f32 %v6756_v45 }
 0x8b4   : > { %7306 = vrcp.f32 %v3794_v7  ;;  %6760 = vmatmul.msk.bf16.gmra.mxu2 %vm2456_vm4, %v4140_v1  ;;  %v3989_v62 = vand.u32 2147483648, %v3794_v7  ;;  %v3987_v20 = vand.u32 2147483647, %v3794_v7  ;;  %vm3983_vm12 = vweird.f32 %v3794_v7 }
 0x8b6   : > { %v3990_v33 = vor.u32 1.1754944e-38, %v3989_v62  ;;  %vm3988_vm9 = vcmp.eq.f32.partialorder %v3987_v20, 8.507059e+37 }
 0x8b9   : > { %v7305_v4 = vpop.eup %7304 }
 0x8ba   : > { %v7307_v21 = vpop.eup %7306  ;;  %v3795_v10 = vadd.f32 1.0, %v7305_v4  ;;  %v7123_v4 = vld [vmem:[%s4832_s14] ss:$0 sm:$0xff]  ;;  %s4562_s14 = scalar_lea.vmem %s10058_s16, %s7491_s7 }
 0x8bb   : > { %v3979_v39 = vmul.f32 %v7307_v21, %v3794_v7  ;;  %vm3984_vm13 = vweird.f32 %v7307_v21 }
 0x8bc   : > { %7308 = vrcp.f32 %v3795_v10  ;;  %vm3985_vm3 = vmor %vm3983_vm12, %vm3984_vm13  ;;  %v4004_v40 = vand.u32 2147483648, %v3795_v10  ;;  %v4002_v31 = vand.u32 2147483647, %v3795_v10  ;;  %vm3998_vm5 = vweird.f32 %v3795_v10 }
 0x8bd   : > { %v3980_v35 = vsub.f32 1.0, %v3979_v39 }
 0x8be   : > { %v4005_v55 = vor.u32 1.1754944e-38, %v4004_v40  ;;  %vm4003_vm1 = vcmp.eq.f32.partialorder %v4002_v31, 8.507059e+37 }
 0x8bf   : > { %v3981_v0 = vmul.f32 %v7307_v21, %v3980_v35  ;;  %v4061_v29 = vpop.permute.xlu1 %4060 }
 0x8c0   : > { %v8961_v60 = vmul.f32 %v4061_v29, %v8803_v24  ;;  %v4071_v24 = vpop.permute.xlu2 %4070 }
 0x8c1   : > { %v3982_v15 = vadd.f32 %v7307_v21, %v3981_v0 }
 0x8c2   : > { %v7309_v30 = vpop.eup %7308 }
 0x8c3   : > { %v3986_v17 = vsel %vm3985_vm3, %v7307_v21, %v3982_v15  ;;  %v3994_v28 = vmul.f32 %v7309_v30, %v3795_v10  ;;  %vm3999_vm0 = vweird.f32 %v7309_v30 }
 0x8c4   : > { %v3991_v36 = vsel %vm3988_vm9, %v3990_v33, %v3986_v17  ;;  %vm4000_vm6 = vmor %vm3998_vm5, %vm3999_vm0 }
 0x8c5   : > { %4100 = vperm.xlu2 %7115, %v3991_v36   ;;  %v3995_v56 = vsub.f32 1.0, %v3994_v28 }
 0x8c7   : > { %v3996_v19 = vmul.f32 %v7309_v30, %v3995_v56  ;;  %v4066_v63 = vpop.permute.xlu0 %4065 }
 0x8c8   : > { %v8964_v43 = vmul.f32 %v4066_v63, %v8806_v25  ;;  %v8973_v25 = vmul.f32 %v4071_v24, %v8838_v50 }
 0x8c9   : > { %v3997_v48 = vadd.f32 %v7309_v30, %v3996_v19 }
 0x8ca   : > { %v4141_v45 = vpack.c.bf16 %v8964_v43, %v8961_v60  ;;  %10051 = vst [vmem:[#allocation52_spill] sm:$0xff] %v8973_v25 }
 0x8cb   : > { %v4001_v7 = vsel %vm4000_vm6, %v7309_v30, %v3997_v48 }
 0x8cc   : > { %v4006_v1 = vsel %vm4003_vm1, %v4005_v55, %v4001_v7  ;;  %6761 = vmatmul.msk.bf16.gmra.mxu2 %vm2456_vm4, %v4141_v45 }
 0x8cd   : > { %4105 = vperm.xlu1 %7114, %v4006_v1  }
 0x8d5   : > { %4837 = vperm.xlu1 %7114, %v7123_v4  }
 0x8db   : > { %v4076_v21 = vpop.permute.xlu1 %4075 }
 0x8dc   : > { %v8976_v10 = vmul.f32 %v4076_v21, %v8841_v47  ;;  %v8995_v21 = vld [vmem:[%s4149_s26] ss:$0 sm:$0xff] }
 0x8dd   : > { %v4086_v20 = vpop.permute.xlu2 %4085 }
 0x8de   : > { %10052 = vst [vmem:[#allocation53_spill] sm:$0xff] %v8976_v10  ;;  %v4142_v39 = vpack.c.bf16 %v8976_v10, %v8973_v25  ;;  %v8983_v30 = vmul.f32 %v4086_v20, %v8855_v54 }
 0x8e0   : > { %6762 = vmatmul.msk.bf16.gmra.mxu2 %vm2456_vm4, %v4142_v39  ;;  %10053 = vst [vmem:[#allocation54_spill] sm:$0xff] %v8983_v30 }
 0x8e4   : > { %v3729_v35 = vpop.f32.mrf.mxu1 }
 0x8e5   : > { %v3730_v62 = vadd.f32 %v8863_v49, %v3729_v35 }
 0x8e7   : > { %v6757_v0 = vmul.f32 -1.442695, %v3730_v62 }
 0x8e9   : > { %7310 = vpow2.f32 %v6757_v0 }
 0x8ec   : > { %v3731_v50 = vpop.f32.mrf.mxu1 }
 0x8ed   : > { %v4081_v15 = vpop.permute.xlu0 %4080  ;;  %v3732_v47 = vadd.f32 %v8863_v49, %v3731_v50 }
 0x8ee   : > { %v8986_v33 = vmul.f32 %v4081_v15, %v8853_v13 }
 0x8ef   : > { %v7311_v28 = vpop.eup %7310  ;;  %v6758_v36 = vmul.f32 -1.442695, %v3732_v47 }
 0x8f0   : > { %10054 = vst [vmem:[#allocation55_spill] sm:$0xff] %v8986_v33  ;;  %v4143_v17 = vpack.c.bf16 %v8983_v30, %v8986_v33  ;;  %v3796_v56 = vadd.f32 1.0, %v7311_v28 }
 0x8f1   : > { %7312 = vpow2.f32 %v6758_v36 }
 0x8f2   : > { %6763 = vmatmul.msk.bf16.gmra.mxu2 %vm2456_vm4, %v4143_v17  ;;  %7314 = vrcp.f32 %v3796_v56  ;;  %v4019_v13 = vand.u32 2147483648, %v3796_v56  ;;  %v4017_v63 = vand.u32 2147483647, %v3796_v56  ;;  %vm4013_vm2 = vweird.f32 %v3796_v56 }
 0x8f4   : > { %v4020_v45 = vor.u32 1.1754944e-38, %v4019_v13  ;;  %vm4018_vm15 = vcmp.eq.f32.partialorder %v4017_v63, 8.507059e+37 }
 0x8f7   : > { %v7313_v29 = vpop.eup %7312 }
 0x8f8   : > { %v7315_v40 = vpop.eup %7314  ;;  %v3797_v54 = vadd.f32 1.0, %v7313_v29 }
 0x8f9   : > { %v4009_v19 = vmul.f32 %v7315_v40, %v3796_v56  ;;  %vm4014_vm10 = vweird.f32 %v7315_v40 }
 0x8fa   : > { %7316 = vrcp.f32 %v3797_v54  ;;  %vm4015_vm7 = vmor %vm4013_vm2, %vm4014_vm10  ;;  %v4034_v39 = vand.u32 2147483648, %v3797_v54  ;;  %v4032_v62 = vand.u32 2147483647, %v3797_v54  ;;  %vm4028_vm8 = vweird.f32 %v3797_v54 }
 0x8fb   : > { %v4010_v31 = vsub.f32 1.0, %v4009_v19  ;;  %v4551_v19 = vld [vmem:[%s4547_s15 + $0x18] sm:$0xff] }
 0x8fc   : > { %v4035_v50 = vor.u32 1.1754944e-38, %v4034_v39  ;;  %vm4033_vm13 = vcmp.eq.f32.partialorder %v4032_v62, 8.507059e+37 }
 0x8fd   : > { %v4011_v49 = vmul.f32 %v7315_v40, %v4010_v31 }
 0x8ff   : > { %v4012_v48 = vadd.f32 %v7315_v40, %v4011_v49 }
 0x900   : > { %v7317_v55 = vpop.eup %7316 }
 0x901   : > { %v4016_v7 = vsel %vm4015_vm7, %v7315_v40, %v4012_v48  ;;  %v4024_v1 = vmul.f32 %v7317_v55, %v3797_v54  ;;  %vm4029_vm14 = vweird.f32 %v7317_v55  ;;  %v4550_v54 = vld [vmem:[%s4547_s15 + $0x10] sm:$0xff]  ;;  %v4548_v48 = vld [vmem:[%s4547_s15] sm:$0xff] }
 0x902   : > { %v4021_v4 = vsel %vm4018_vm15, %v4020_v45, %v4016_v7  ;;  %vm4030_vm11 = vmor %vm4028_vm8, %vm4029_vm14  ;;  %v4561_v13 = vpack.c.bf16 %v4551_v19, %v4550_v54 }
 0x903   : > { %4110 = vperm.xlu0 %7113, %v4021_v4   ;;  %v4025_v24 = vsub.f32 1.0, %v4024_v1 }
 0x904   : > { %4597 = vmatpush.bf16.msra.mxu3 %v4561_v13 }
 0x905   : > { %v4026_v35 = vmul.f32 %v7317_v55, %v4025_v24 }
 0x906   : > { %v4091_v36 = vpop.permute.xlu1 %4090 }
 0x907   : > { %v4027_v20 = vadd.f32 %v7317_v55, %v4026_v35  ;;  %v9004_v29 = vmul.f32 %v4091_v36, %v8868_v22 }
 0x909   : > { %v4187_v0 = vpop.f32.mrf.mxu2  ;;  %v4031_v47 = vsel %vm4030_vm11, %v7317_v55, %v4027_v20  ;;  %10056 = vst [vmem:[#allocation56_spill] sm:$0xff] %v9004_v29  ;;  %v4549_v55 = vld [vmem:[%s4547_s15 + $0x8] sm:$0xff] }
 0x90a   : > { %v8998_v15 = vadd.f32 %v8995_v21, %v4187_v0  ;;  %v4036_v28 = vsel %vm4033_vm13, %v4035_v50, %v4031_v47  ;;  %v4560_v45 = vpack.c.bf16 %v4549_v55, %v4548_v48 }
 0x90b   : > { %4115 = vperm.xlu2 %7115, %v4036_v28  }
 0x90c   : > { %v6767_v17 = vmul.f32 -1.442695, %v8998_v15  ;;  %4598 = vmatpush.bf16.msra.mxu3 %v4560_v45 }
 0x90e   : > { %7318 = vpow2.f32 %v6767_v17  ;;  %v4096_v56 = vpop.permute.xlu0 %4095 }
 0x90f   : > { %v9007_v40 = vmul.f32 %v4096_v56, %v8870_v16 }
 0x911   : > { %10057 = vst [vmem:[#allocation57_spill] sm:$0xff] %v9007_v40  ;;  %v4189_v31 = vpop.f32.mrf.mxu2  ;;  %v4144_v49 = vpack.c.bf16 %v9007_v40, %v9004_v29 }
 0x912   : > { %v4190_v63 = vadd.f32 %v8995_v21, %v4189_v31 }
 0x913   : > { %6764 = vmatmul.msk.bf16.gmra.mxu2 %vm2456_vm4, %v4144_v49 }
 0x914   : > { %v7319_v7 = vpop.eup %7318  ;;  %v6768_v1 = vmul.f32 -1.442695, %v4190_v63 }
 0x915   : > { %v4275_v22 = vadd.f32 1.0, %v7319_v7 }
 0x916   : > { %7320 = vpow2.f32 %v6768_v1 }
 0x917   : > { %7322 = vrcp.f32 %v4275_v22  ;;  %v4302_v47 = vand.u32 2147483648, %v4275_v22  ;;  %vm4296_vm3 = vweird.f32 %v4275_v22  ;;  %v4300_v17 = vand.u32 2147483647, %v4275_v22 }
 0x919   : > { %v4303_v31 = vor.u32 1.1754944e-38, %v4302_v47  ;;  %vm4301_vm5 = vcmp.eq.f32.partialorder %v4300_v17, 8.507059e+37 }
 0x91c   : > { %v7321_v16 = vpop.eup %7320 }
 0x91d   : > { %v7323_v4 = vpop.eup %7322  ;;  %v4276_v24 = vadd.f32 1.0, %v7321_v16 }
 0x91e   : > { %v4292_v39 = vmul.f32 %v7323_v4, %v4275_v22  ;;  %vm4297_vm12 = vweird.f32 %v7323_v4 }
 0x91f   : > { %7324 = vrcp.f32 %v4276_v24  ;;  %vm4298_vm9 = vmor %vm4296_vm3, %vm4297_vm12  ;;  %v4317_v36 = vand.u32 2147483648, %v4276_v24  ;;  %v4315_v19 = vand.u32 2147483647, %v4276_v24  ;;  %vm4311_vm6 = vweird.f32 %v4276_v24 }
 0x920   : > { %v4293_v35 = vsub.f32 1.0, %v4292_v39 }
 0x921   : > { %v4318_v48 = vor.u32 1.1754944e-38, %v4317_v36  ;;  %vm4316_vm10 = vcmp.eq.f32.partialorder %v4315_v19, 8.507059e+37 }
 0x922   : > { %v4294_v62 = vmul.f32 %v7323_v4, %v4293_v35  ;;  %v4101_v35 = vpop.permute.xlu2 %4100 }
 0x924   : > { %v4295_v20 = vadd.f32 %v7323_v4, %v4294_v62 }
 0x925   : > { %v7325_v0 = vpop.eup %7324 }
 0x926   : > { %v4307_v50 = vmul.f32 %v7325_v0, %v4276_v24  ;;  %v4299_v56 = vsel %vm4298_vm9, %v7323_v4, %v4295_v20  ;;  %vm4312_vm0 = vweird.f32 %v7325_v0  ;;  %v9019_v20 = vmul.f32 %v4101_v35, %v8882_v14 }
 0x927   : > { %v4304_v49 = vsel %vm4301_vm5, %v4303_v31, %v4299_v56  ;;  %vm4313_vm1 = vmor %vm4311_vm6, %vm4312_vm0 }
 0x928   : > { %v4308_v28 = vsub.f32 1.0, %v4307_v50  ;;  %v4531_v7 = vmul.f32 %v4304_v49, %v8998_v15 }
 0x92a   : > { %v4309_v54 = vmul.f32 %v7325_v0, %v4308_v28 }
 0x92c   : > { %v4310_v13 = vadd.f32 %v7325_v0, %v4309_v54 }
 0x92e   : > { %v4314_v55 = vsel %vm4313_vm1, %v7325_v0, %v4310_v13 }
 0x92f   : > { %v4319_v45 = vsel %vm4316_vm10, %v4318_v48, %v4314_v55 }
 0x930   : > { %v4532_v1 = vmul.f32 %v4319_v45, %v4190_v63 }
 0x932   : > { %v4552_v22 = vpack.c.bf16 %v4532_v1, %v4531_v7 }
 0x934   : > { %6783 = vmatmul.msk.bf16.vlgmr.msra.gmra.mxu3 %vm2456_vm4, %v4552_v22 }
 0x937   : > { %v4192_v16 = vpop.f32.mrf.mxu2 }
 0x938   : > { %v4193_v4 = vadd.f32 %v8995_v21, %v4192_v16 }
 0x93a   : > { %v6769_v39 = vmul.f32 -1.442695, %v4193_v4 }
 0x93c   : > { %7326 = vpow2.f32 %v6769_v39 }
 0x93f   : > { %v4194_v24 = vpop.f32.mrf.mxu2  ;;  %v4106_v62 = vpop.permute.xlu1 %4105 }
 0x940   : > { %v4195_v0 = vadd.f32 %v8995_v21, %v4194_v24  ;;  %v9023_v15 = vmul.f32 %v4106_v62, %v8884_v61 }
 0x942   : > { %v7327_v63 = vpop.eup %7326  ;;  %v6770_v50 = vmul.f32 -1.442695, %v4195_v0  ;;  %v4145_v47 = vpack.c.bf16 %v9023_v15, %v9019_v20 }
 0x943   : > { %v4277_v17 = vadd.f32 1.0, %v7327_v63 }
 0x944   : > { %7328 = vpow2.f32 %v6770_v50  ;;  %6765 = vmatmul.msk.bf16.gmra.mxu2 %vm2456_vm4, %v4145_v47 }
 0x945   : > { %7330 = vrcp.f32 %v4277_v17  ;;  %v4332_v45 = vand.u32 2147483648, %v4277_v17  ;;  %vm4326_vm7 = vweird.f32 %v4277_v17  ;;  %v4330_v7 = vand.u32 2147483647, %v4277_v17 }
 0x947   : > { %v4333_v62 = vor.u32 1.1754944e-38, %v4332_v45  ;;  %vm4331_vm8 = vcmp.eq.f32.partialorder %v4330_v7, 8.507059e+37 }
 0x94a   : > { %v7329_v28 = vpop.eup %7328 }
 0x94b   : > { %v7331_v36 = vpop.eup %7330  ;;  %v4278_v56 = vadd.f32 1.0, %v7329_v28 }
 0x94c   : > { %v4322_v14 = vmul.f32 %v7331_v36, %v4277_v17  ;;  %vm4327_vm2 = vweird.f32 %v7331_v36 }
 0x94d   : > { %7332 = vrcp.f32 %v4278_v56  ;;  %vm4328_vm15 = vmor %vm4326_vm7, %vm4327_vm2  ;;  %v4347_v22 = vand.u32 2147483648, %v4278_v56  ;;  %v4345_v35 = vand.u32 2147483647, %v4278_v56  ;;  %vm4341_vm11 = vweird.f32 %v4278_v56 }
 0x94e   : > { %v4323_v54 = vsub.f32 1.0, %v4322_v14 }
 0x94f   : > { %v4197_v31 = vpop.f32.mrf.mxu2  ;;  %v4348_v14 = vor.u32 1.1754944e-38, %v4347_v22  ;;  %vm4346_vm12 = vcmp.eq.f32.partialorder %v4345_v35, 8.507059e+37 }
 0x950   : > { %v4324_v19 = vmul.f32 %v7331_v36, %v4323_v54  ;;  %v9029_v61 = vadd.f32 %v8995_v21, %v4197_v31 }
 0x952   : > { %v6771_v49 = vmul.f32 -1.442695, %v9029_v61  ;;  %v4325_v48 = vadd.f32 %v7331_v36, %v4324_v19 }
 0x953   : > { %v7333_v13 = vpop.eup %7332 }
 0x954   : > { %v4337_v55 = vmul.f32 %v7333_v13, %v4278_v56  ;;  %7334 = vpow2.f32 %v6771_v49  ;;  %v4329_v16 = vsel %vm4328_vm15, %v7331_v36, %v4325_v48  ;;  %vm4342_vm14 = vweird.f32 %v7333_v13 }
 0x955   : > { %v4334_v28 = vsel %vm4331_vm8, %v4333_v62, %v4329_v16  ;;  %vm4343_vm13 = vmor %vm4341_vm11, %vm4342_vm14 }
 0x956   : > { %v4338_v1 = vsub.f32 1.0, %v4337_v55  ;;  %v4533_v31 = vmul.f32 %v4334_v28, %v4193_v4 }
 0x957   : > { %v4199_v24 = vpop.f32.mrf.mxu2 }
 0x958   : > { %v4339_v39 = vmul.f32 %v7333_v13, %v4338_v1  ;;  %v9033_v63 = vadd.f32 %v8995_v21, %v4199_v24 }
 0x95a   : > { %v4340_v50 = vadd.f32 %v7333_v13, %v4339_v39  ;;  %v7335_v47 = vpop.eup %7334  ;;  %v6772_v17 = vmul.f32 -1.442695, %v9033_v63 }
 0x95b   : > { %v4279_v36 = vadd.f32 1.0, %v7335_v47 }
 0x95c   : > { %v4344_v54 = vsel %vm4343_vm13, %v7333_v13, %v4340_v50  ;;  %7336 = vpow2.f32 %v6772_v17 }
 0x95d   : > { %v4349_v19 = vsel %vm4346_vm12, %v4348_v14, %v4344_v54  ;;  %7338 = vrcp.f32 %v4279_v36  ;;  %v4362_v50 = vand.u32 2147483648, %v4279_v36  ;;  %vm4356_vm9 = vweird.f32 %v4279_v36 }
 0x95e   : > { %v4534_v49 = vmul.f32 %v4349_v19, %v4195_v0  ;;  %v4360_v28 = vand.u32 2147483647, %v4279_v36 }
 0x960   : > { %v4553_v48 = vpack.c.bf16 %v4534_v49, %v4533_v31  ;;  %vm4361_vm6 = vcmp.eq.f32.partialorder %v4360_v28, 8.507059e+37 }
 0x962   : > { %6784 = vmatmul.msk.bf16.gmra.mxu3 %vm2456_vm4, %v4553_v48  ;;  %v7337_v55 = vpop.eup %7336 }
 0x963   : > { %v7339_v45 = vpop.eup %7338  ;;  %v4280_v56 = vadd.f32 1.0, %v7337_v55  ;;  %v4202_v7 = vpop.f32.mrf.mxu2  ;;  %v4363_v55 = vor.u32 1.1754944e-38, %v4362_v50 }
 0x964   : > { %v4352_v1 = vmul.f32 %v7339_v45, %v4279_v36  ;;  %v9038_v22 = vadd.f32 %v8995_v21, %v4202_v7  ;;  %vm4357_vm3 = vweird.f32 %v7339_v45 }
 0x965   : > { %7340 = vrcp.f32 %v4280_v56  ;;  %vm4358_vm0 = vmor %vm4356_vm9, %vm4357_vm3  ;;  %v4375_v54 = vand.u32 2147483647, %v4280_v56  ;;  %v4377_v19 = vand.u32 2147483648, %v4280_v56  ;;  %vm4371_vm1 = vweird.f32 %v4280_v56 }
 0x966   : > { %v4353_v13 = vsub.f32 1.0, %v4352_v1  ;;  %v6773_v16 = vmul.f32 -1.442695, %v9038_v22 }
 0x967   : > { %vm4376_vm2 = vcmp.eq.f32.partialorder %v4375_v54, 8.507059e+37 }
 0x968   : > { %v4354_v39 = vmul.f32 %v7339_v45, %v4353_v13  ;;  %7342 = vpow2.f32 %v6773_v16  ;;  %v4378_v13 = vor.u32 1.1754944e-38, %v4377_v19 }
 0x96a   : > { %v4355_v35 = vadd.f32 %v7339_v45, %v4354_v39 }
 0x96b   : > { %v7341_v4 = vpop.eup %7340  ;;  %v4204_v0 = vpop.f32.mrf.mxu2 }
 0x96c   : > { %v4367_v24 = vmul.f32 %v7341_v4, %v4280_v56  ;;  %v9042_v62 = vadd.f32 %v8995_v21, %v4204_v0  ;;  %v4359_v49 = vsel %vm4358_vm0, %v7339_v45, %v4355_v35  ;;  %vm4372_vm5 = vweird.f32 %v7341_v4  ;;  %v4116_v0 = vpop.permute.xlu2 %4115 }
 0x96d   : > { %v4364_v1 = vsel %vm4361_vm6, %v4363_v55, %v4359_v49  ;;  %vm4373_vm10 = vmor %vm4371_vm1, %vm4372_vm5  ;;  %v9055_v19 = vmul.f32 %v4116_v0, %v8929_v18 }
 0x96e   : > { %v7343_v47 = vpop.eup %7342  ;;  %v4368_v14 = vsub.f32 1.0, %v4367_v24  ;;  %v6774_v17 = vmul.f32 -1.442695, %v9042_v62  ;;  %v4535_v35 = vmul.f32 %v4364_v1, %v9029_v61 }
 0x96f   : > { %v4281_v31 = vadd.f32 1.0, %v7343_v47 }
 0x970   : > { %v4369_v48 = vmul.f32 %v7341_v4, %v4368_v14  ;;  %7344 = vpow2.f32 %v6774_v17 }
 0x971   : > { %7346 = vrcp.f32 %v4281_v31  ;;  %vm4386_vm15 = vweird.f32 %v4281_v31 }
 0x972   : > { %v4370_v7 = vadd.f32 %v7341_v4, %v4369_v48 }
 0x974   : > { %v4374_v36 = vsel %vm4373_vm10, %v7341_v4, %v4370_v7 }
 0x975   : > { %v4207_v16 = vpop.f32.mrf.mxu2  ;;  %v4379_v39 = vsel %vm4376_vm2, %v4378_v13, %v4374_v36  ;;  %v4111_v47 = vpop.permute.xlu0 %4110  ;;  %v4392_v36 = vand.u32 2147483648, %v4281_v31 }
 0x976   : > { %v9046_v24 = vadd.f32 %v8995_v21, %v4207_v16  ;;  %v7345_v45 = vpop.eup %7344  ;;  %v4536_v50 = vmul.f32 %v4379_v39, %v9033_v63  ;;  %v9051_v56 = vmul.f32 %v4111_v47, %v8926_v12  ;;  %v4390_v39 = vand.u32 2147483647, %v4281_v31 }
 0x977   : > { %v7347_v28 = vpop.eup %7346  ;;  %v4282_v14 = vadd.f32 1.0, %v7345_v45 }
 0x978   : > { %v6775_v4 = vmul.f32 -1.442695, %v9046_v24  ;;  %v4554_v17 = vpack.c.bf16 %v4536_v50, %v4535_v35  ;;  %v4382_v54 = vmul.f32 %v7347_v28, %v4281_v31  ;;  %v4146_v61 = vpack.c.bf16 %v9055_v19, %v9051_v56 }
 0x979   : > { %7348 = vrcp.f32 %v4282_v14  ;;  %vm4387_vm7 = vweird.f32 %v7347_v28  ;;  %v4407_v45 = vand.u32 2147483648, %v4282_v14  ;;  %v4405_v47 = vand.u32 2147483647, %v4282_v14 }
 0x97a   : > { %v4383_v49 = vsub.f32 1.0, %v4382_v54  ;;  %7350 = vpow2.f32 %v6775_v4  ;;  %6785 = vmatmul.msk.bf16.gmra.mxu3 %vm2456_vm4, %v4554_v17  ;;  %6766 = vmatmul.msk.bf16.gmra.mxu2 %vm2456_vm4, %v4146_v61  ;;  %vm4388_vm14 = vmor %vm4386_vm15, %vm4387_vm7  ;;  %v4393_v4 = vor.u32 1.1754944e-38, %v4392_v36  ;;  %vm4391_vm11 = vcmp.eq.f32.partialorder %v4390_v39, 8.507059e+37 }
 0x97b   : > { %vm4401_vm13 = vweird.f32 %v4282_v14  ;;  %v4408_v61 = vor.u32 1.1754944e-38, %v4407_v45  ;;  %vm4406_vm3 = vcmp.eq.f32.partialorder %v4405_v47, 8.507059e+37 }
 0x97c   : > { %v4384_v63 = vmul.f32 %v7347_v28, %v4383_v49 }
 0x97d   : > { %v4209_v12 = vpop.f32.mrf.mxu2 }
 0x97e   : > { %v9062_v48 = vadd.f32 %v8995_v21, %v4209_v12  ;;  %v4385_v1 = vadd.f32 %v7347_v28, %v4384_v63 }
 0x97f   : > { %v7349_v55 = vpop.eup %7348 }
 0x980   : > { %v6776_v7 = vmul.f32 -1.442695, %v9062_v48  ;;  %v7351_v18 = vpop.eup %7350  ;;  %v4397_v13 = vmul.f32 %v7349_v55, %v4282_v14  ;;  %v4389_v35 = vsel %vm4388_vm14, %v7347_v28, %v4385_v1  ;;  %vm4402_vm8 = vweird.f32 %v7349_v55 }
 0x981   : > { %v4283_v16 = vadd.f32 1.0, %v7351_v18  ;;  %v4394_v49 = vsel %vm4391_vm11, %v4393_v4, %v4389_v35  ;;  %vm4403_vm12 = vmor %vm4401_vm13, %vm4402_vm8 }
 0x982   : > { %7352 = vpow2.f32 %v6776_v7  ;;  %v4398_v0 = vsub.f32 1.0, %v4397_v13  ;;  %v4537_v18 = vmul.f32 %v4394_v49, %v9038_v22 }
 0x983   : > { %7354 = vrcp.f32 %v4283_v16  ;;  %vm4416_vm0 = vweird.f32 %v4283_v16  ;;  %v4420_v35 = vand.u32 2147483647, %v4283_v16 }
 0x984   : > { %v4399_v50 = vmul.f32 %v7349_v55, %v4398_v0 }
 0x985   : > { %vm4421_vm1 = vcmp.eq.f32.partialorder %v4420_v35, 8.507059e+37 }
 0x986   : > { %v4400_v17 = vadd.f32 %v7349_v55, %v4399_v50 }
 0x988   : > { %v7353_v54 = vpop.eup %7352  ;;  %v4404_v63 = vsel %vm4403_vm12, %v7349_v55, %v4400_v17  ;;  %v4422_v55 = vand.u32 2147483648, %v4283_v16 }
 0x989   : > { %v4284_v12 = vadd.f32 1.0, %v7353_v54  ;;  %v7355_v31 = vpop.eup %7354  ;;  %v4409_v7 = vsel %vm4406_vm3, %v4408_v61, %v4404_v63 }
 0x98a   : > { %v4538_v28 = vmul.f32 %v4409_v7, %v9042_v62  ;;  %v4412_v1 = vmul.f32 %v7355_v31, %v4283_v16  ;;  %vm4417_vm9 = vweird.f32 %v7355_v31  ;;  %v4423_v17 = vor.u32 1.1754944e-38, %v4422_v55 }
 0x98b   : > { %7356 = vrcp.f32 %v4284_v12  ;;  %vm4418_vm5 = vmor %vm4416_vm0, %vm4417_vm9  ;;  %v4437_v47 = vand.u32 2147483648, %v4284_v12  ;;  %v4435_v62 = vand.u32 2147483647, %v4284_v12  ;;  %vm4431_vm10 = vweird.f32 %v4284_v12 }
 0x98c   : > { %v4555_v13 = vpack.c.bf16 %v4538_v28, %v4537_v18  ;;  %v4413_v36 = vsub.f32 1.0, %v4412_v1 }
 0x98d   : > { %v4438_v7 = vor.u32 1.1754944e-38, %v4437_v47  ;;  %vm4436_vm7 = vcmp.eq.f32.partialorder %v4435_v62, 8.507059e+37 }
 0x98e   : > { %v4414_v39 = vmul.f32 %v7355_v31, %v4413_v36  ;;  %6786 = vmatmul.msk.bf16.gmra.mxu3 %vm2456_vm4, %v4555_v13 }
 0x990   : > { %v4415_v0 = vadd.f32 %v7355_v31, %v4414_v39 }
 0x991   : > { %v7357_v14 = vpop.eup %7356 }
 0x992   : > { %v4427_v45 = vmul.f32 %v7357_v14, %v4284_v12  ;;  %v4419_v22 = vsel %vm4418_vm5, %v7355_v31, %v4415_v0  ;;  %vm4432_vm6 = vweird.f32 %v7357_v14 }
 0x993   : > { %v4424_v63 = vsel %vm4421_vm1, %v4423_v17, %v4419_v22  ;;  %vm4433_vm2 = vmor %vm4431_vm10, %vm4432_vm6 }
 0x994   : > { %v4428_v50 = vsub.f32 1.0, %v4427_v45  ;;  %v4539_v1 = vmul.f32 %v4424_v63, %v9046_v24 }
 0x996   : > { %v4429_v4 = vmul.f32 %v7357_v14, %v4428_v50  ;;  %v4212_v54 = vpop.f32.mrf.mxu2 }
 0x997   : > { %v4213_v61 = vadd.f32 %v8995_v21, %v4212_v54 }
 0x998   : > { %v4430_v49 = vadd.f32 %v7357_v14, %v4429_v4 }
 0x999   : > { %v6777_v16 = vmul.f32 -1.442695, %v4213_v61 }
 0x99a   : > { %v4434_v18 = vsel %vm4433_vm2, %v7357_v14, %v4430_v49 }
 0x99b   : > { %v4439_v28 = vsel %vm4436_vm7, %v4438_v7, %v4434_v18  ;;  %7358 = vpow2.f32 %v6777_v16 }
 0x99c   : > { %v4540_v31 = vmul.f32 %v4439_v28, %v9062_v48 }
 0x99e   : > { %v4556_v13 = vpack.c.bf16 %v4540_v31, %v4539_v1  ;;  %v4214_v36 = vpop.f32.mrf.mxu2 }
 0x99f   : > { %v4215_v39 = vadd.f32 %v8995_v21, %v4214_v36 }
 0x9a0   : > { %6787 = vmatmul.msk.bf16.gmra.mxu3 %vm2456_vm4, %v4556_v13 }
 0x9a1   : > { %v7359_v12 = vpop.eup %7358  ;;  %v6778_v0 = vmul.f32 -1.442695, %v4215_v39 }
 0x9a2   : > { %v4285_v45 = vadd.f32 1.0, %v7359_v12 }
 0x9a3   : > { %7360 = vpow2.f32 %v6778_v0 }
 0x9a4   : > { %7362 = vrcp.f32 %v4285_v45  ;;  %v4452_v62 = vand.u32 2147483648, %v4285_v45  ;;  %vm4446_vm14 = vweird.f32 %v4285_v45  ;;  %v4450_v17 = vand.u32 2147483647, %v4285_v45 }
 0x9a6   : > { %v4453_v16 = vor.u32 1.1754944e-38, %v4452_v62  ;;  %vm4451_vm13 = vcmp.eq.f32.partialorder %v4450_v17, 8.507059e+37 }
 0x9a9   : > { %v7361_v14 = vpop.eup %7360 }
 0x9aa   : > { %v7363_v55 = vpop.eup %7362  ;;  %v4286_v35 = vadd.f32 1.0, %v7361_v14 }
 0x9ab   : > { %v4442_v50 = vmul.f32 %v7363_v55, %v4285_v45  ;;  %vm4447_vm15 = vweird.f32 %v7363_v55 }
 0x9ac   : > { %7364 = vrcp.f32 %v4286_v35  ;;  %vm4448_vm8 = vmor %vm4446_vm14, %vm4447_vm15  ;;  %v4467_v49 = vand.u32 2147483648, %v4286_v35  ;;  %v4465_v18 = vand.u32 2147483647, %v4286_v35  ;;  %vm4461_vm12 = vweird.f32 %v4286_v35 }
 0x9ad   : > { %v4443_v24 = vsub.f32 1.0, %v4442_v50 }
 0x9ae   : > { %v4468_v31 = vor.u32 1.1754944e-38, %v4467_v49  ;;  %vm4466_vm9 = vcmp.eq.f32.partialorder %v4465_v18, 8.507059e+37 }
 0x9af   : > { %v4444_v47 = vmul.f32 %v7363_v55, %v4443_v24 }
 0x9b1   : > { %v4445_v22 = vadd.f32 %v7363_v55, %v4444_v47 }
 0x9b2   : > { %v7365_v48 = vpop.eup %7364 }
 0x9b3   : > { %v4457_v4 = vmul.f32 %v7365_v48, %v4286_v35  ;;  %v4449_v63 = vsel %vm4448_vm8, %v7363_v55, %v4445_v22  ;;  %vm4462_vm11 = vweird.f32 %v7365_v48 }
 0x9b4   : > { %v4454_v1 = vsel %vm4451_vm13, %v4453_v16, %v4449_v63  ;;  %vm4463_vm3 = vmor %vm4461_vm12, %vm4462_vm11 }
 0x9b5   : > { %v4458_v54 = vsub.f32 1.0, %v4457_v4  ;;  %v4541_v12 = vmul.f32 %v4454_v1, %v4213_v61 }
 0x9b7   : > { %v4459_v7 = vmul.f32 %v7365_v48, %v4458_v54 }
 0x9b9   : > { %v4460_v28 = vadd.f32 %v7365_v48, %v4459_v7 }
 0x9bb   : > { %v4464_v13 = vsel %vm4463_vm3, %v7365_v48, %v4460_v28 }
 0x9bc   : > { %v4469_v36 = vsel %vm4466_vm9, %v4468_v31, %v4464_v13 }
 0x9bd   : > { %v4542_v0 = vmul.f32 %v4469_v36, %v4215_v39 }
 0x9bf   : > { %v4557_v45 = vpack.c.bf16 %v4542_v0, %v4541_v12  ;;  %v9076_v12 = vpop.f32.mrf.mxu3 }
 0x9c1   : > { %6788 = vmatmul.msk.bf16.gmra.mxu3 %vm2456_vm4, %v4557_v45 }
 0x9c7   : > { %v4217_v14 = vpop.f32.mrf.mxu2 }
 0x9c8   : > { %v4218_v55 = vadd.f32 %v8995_v21, %v4217_v14 }
 0x9ca   : > { %v6779_v50 = vmul.f32 -1.442695, %v4218_v55 }
 0x9cc   : > { %7366 = vpow2.f32 %v6779_v50 }
 0x9cf   : > { %v4219_v24 = vpop.f32.mrf.mxu2 }
 0x9d0   : > { %v4220_v47 = vadd.f32 %v8995_v21, %v4219_v24 }
 0x9d2   : > { %v7367_v35 = vpop.eup %7366  ;;  %v6780_v22 = vmul.f32 -1.442695, %v4220_v47 }
 0x9d3   : > { %v4287_v4 = vadd.f32 1.0, %v7367_v35 }
 0x9d4   : > { %7368 = vpow2.f32 %v6780_v22 }
 0x9d5   : > { %7370 = vrcp.f32 %v4287_v4  ;;  %v4482_v18 = vand.u32 2147483648, %v4287_v4  ;;  %vm4476_vm5 = vweird.f32 %v4287_v4  ;;  %v4480_v16 = vand.u32 2147483647, %v4287_v4 }
 0x9d7   : > { %v4483_v0 = vor.u32 1.1754944e-38, %v4482_v18  ;;  %vm4481_vm10 = vcmp.eq.f32.partialorder %v4480_v16, 8.507059e+37 }
 0x9da   : > { %v7369_v48 = vpop.eup %7368 }
 0x9db   : > { %v7371_v62 = vpop.eup %7370  ;;  %v4288_v61 = vadd.f32 1.0, %v7369_v48 }
 0x9dc   : > { %v4472_v39 = vmul.f32 %v7371_v62, %v4287_v4  ;;  %vm4477_vm0 = vweird.f32 %v7371_v62 }
 0x9dd   : > { %7372 = vrcp.f32 %v4288_v61  ;;  %vm4478_vm6 = vmor %vm4476_vm5, %vm4477_vm0  ;;  %v4497_v1 = vand.u32 2147483648, %v4288_v61  ;;  %v4495_v36 = vand.u32 2147483647, %v4288_v61  ;;  %vm4491_vm2 = vweird.f32 %v4288_v61 }
 0x9de   : > { %v4473_v17 = vsub.f32 1.0, %v4472_v39 }
 0x9df   : > { %v4498_v50 = vor.u32 1.1754944e-38, %v4497_v1  ;;  %vm4496_vm15 = vcmp.eq.f32.partialorder %v4495_v36, 8.507059e+37 }
 0x9e0   : > { %v4474_v54 = vmul.f32 %v7371_v62, %v4473_v17 }
 0x9e2   : > { %v4475_v63 = vadd.f32 %v7371_v62, %v4474_v54 }
 0x9e3   : > { %v7373_v49 = vpop.eup %7372 }
 0x9e4   : > { %v4487_v7 = vmul.f32 %v7373_v49, %v4288_v61  ;;  %v4479_v31 = vsel %vm4478_vm6, %v7371_v62, %v4475_v63  ;;  %vm4492_vm1 = vweird.f32 %v7373_v49  ;;  %v9079_v62 = vpop.f32.mrf.mxu3 }
 0x9e5   : > { %v4484_v14 = vsel %vm4481_vm10, %v4483_v0, %v4479_v31  ;;  %vm4493_vm7 = vmor %vm4491_vm2, %vm4492_vm1 }
 0x9e6   : > { %v4488_v28 = vsub.f32 1.0, %v4487_v7  ;;  %v4543_v22 = vmul.f32 %v4484_v14, %v4218_v55 }
 0x9e8   : > { %v4489_v13 = vmul.f32 %v7373_v49, %v4488_v28 }
 0x9ea   : > { %v4490_v45 = vadd.f32 %v7373_v49, %v4489_v13 }
 0x9ec   : > { %v4494_v24 = vsel %vm4493_vm7, %v7373_v49, %v4490_v45  ;;  %v9081_v39 = vpop.f32.mrf.mxu3 }
 0x9ed   : > { %v4499_v35 = vsel %vm4496_vm15, %v4498_v50, %v4494_v24 }
 0x9ee   : > { %v4544_v4 = vmul.f32 %v4499_v35, %v4220_v47 }
 0x9f0   : > { %v4558_v48 = vpack.c.bf16 %v4544_v4, %v4543_v22 }
 0x9f2   : > { %6789 = vmatmul.msk.bf16.gmra.mxu3 %vm2456_vm4, %v4558_v48 }
 0x9f4   : > { %v9084_v61 = vpop.f32.mrf.mxu3 }
 0x9fd   : > { %v4222_v17 = vpop.f32.mrf.mxu2  ;;  %v9087_v16 = vpop.f32.mrf.mxu3 }
 0x9fe   : > { %v4223_v54 = vadd.f32 %v8995_v21, %v4222_v17 }
 0xa00   : > { %v6781_v63 = vmul.f32 -1.442695, %v4223_v54 }
 0xa02   : > { %7374 = vpow2.f32 %v6781_v63 }
 0xa05   : > { %v4224_v7 = vpop.f32.mrf.mxu2  ;;  %v4612_v0 = vpop.f32.mrf.mxu3 }
 0xa06   : > { %v4225_v49 = vadd.f32 %v8995_v21, %v4224_v7 }
 0xa08   : > { %v7375_v18 = vpop.eup %7374  ;;  %v6782_v55 = vmul.f32 -1.442695, %v4225_v49 }
 0xa09   : > { %v4289_v47 = vadd.f32 1.0, %v7375_v18 }
 0xa0a   : > { %7376 = vpow2.f32 %v6782_v55 }
 0xa0b   : > { %7378 = vrcp.f32 %v4289_v47  ;;  %v4512_v21 = vand.u32 2147483648, %v4289_v47  ;;  %vm4506_vm8 = vweird.f32 %v4289_v47  ;;  %v4510_v35 = vand.u32 2147483647, %v4289_v47 }
 0xa0d   : > { %v4513_v18 = vor.u32 1.1754944e-38, %v4512_v21  ;;  %vm4511_vm12 = vcmp.eq.f32.partialorder %v4510_v35, 8.507059e+37  ;;  %v7125_v21 = vld [vmem:[%s4562_s14] ss:$0 sm:$0xff] }
 0xa10   : > { %v7377_v28 = vpop.eup %7376 }
 0xa11   : > { %v7379_v1 = vpop.eup %7378  ;;  %v4290_v31 = vadd.f32 1.0, %v7377_v28  ;;  %v4615_v7 = vpop.f32.mrf.mxu3 }
 0xa12   : > { %v4502_v13 = vmul.f32 %v7379_v1, %v4289_v47  ;;  %vm4507_vm14 = vweird.f32 %v7379_v1 }
 0xa13   : > { %7380 = vrcp.f32 %v4290_v31  ;;  %vm4508_vm11 = vmor %vm4506_vm8, %vm4507_vm14  ;;  %v4527_v4 = vand.u32 2147483648, %v4290_v31  ;;  %v4525_v63 = vand.u32 2147483647, %v4290_v31  ;;  %vm4521_vm3 = vweird.f32 %v4290_v31 }
 0xa14   : > { %v4503_v36 = vsub.f32 1.0, %v4502_v13 }
 0xa15   : > { %v4528_v13 = vor.u32 1.1754944e-38, %v4527_v4  ;;  %vm4526_vm0 = vcmp.eq.f32.partialorder %v4525_v63, 8.507059e+37  ;;  %v4613_v63 = vadd.f32 %v7125_v21, %v4612_v0  ;;  %v4611_v0 = vadd.f32 %v7125_v21, %v9087_v16 }
 0xa16   : > { %v4504_v45 = vmul.f32 %v7379_v1, %v4503_v36  ;;  %v9110_v16 = vmax.f32 %v8434_v57, 1e-16  ;;  %v9130_v57 = vmax.f32 %v8709_v9, 1e-16  ;;  %v9149_v9 = vmax.f32 %v8625_v38, 1e-16 }
 0xa18   : > { %v4505_v50 = vadd.f32 %v7379_v1, %v4504_v45  ;;  %10060 = vst [vmem:[#allocation59_spill] sm:$0xff] %v9110_v16 }
 0xa19   : > { %v7381_v14 = vpop.eup %7380 }
 0xa1a   : > { %v4517_v24 = vmul.f32 %v7381_v14, %v4290_v31  ;;  %v4509_v48 = vsel %vm4508_vm11, %v7379_v1, %v4505_v50  ;;  %vm4522_vm13 = vweird.f32 %v7381_v14  ;;  %v4617_v1 = vpop.f32.mrf.mxu3 }
 0xa1b   : > { %v4514_v28 = vsel %vm4511_vm12, %v4513_v18, %v4509_v48  ;;  %vm4523_vm9 = vmor %vm4521_vm3, %vm4522_vm13 }
 0xa1c   : > { %v4518_v22 = vsub.f32 1.0, %v4517_v24  ;;  %v4545_v45 = vmul.f32 %v4514_v28, %v4223_v54  ;;  %v4616_v54 = vadd.f32 %v7125_v21, %v4615_v7  ;;  %v4606_v7 = vadd.f32 %v7125_v21, %v9081_v39 }
 0xa1d   : > { %v9107_v39 = vmax.f32 %v8463_v41, 1e-16 }
 0xa1e   : > { %v4519_v17 = vmul.f32 %v7381_v14, %v4518_v22 }
 0xa1f   : > { %10059 = vst [vmem:[#allocation58_spill] sm:$0xff] %v9107_v39 }
 0xa20   : > { %v4520_v55 = vadd.f32 %v7381_v14, %v4519_v17 }
 0xa22   : > { %v4524_v36 = vsel %vm4523_vm9, %v7381_v14, %v4520_v55 }
 0xa23   : > { %v4529_v47 = vsel %vm4526_vm0, %v4528_v13, %v4524_v36  ;;  %v4620_v50 = vpop.f32.mrf.mxu3  ;;  %v4618_v36 = vadd.f32 %v7125_v21, %v4617_v1  ;;  %v9102_v1 = vmax.f32 %v8474_v5, 1e-16  ;;  %v9122_v5 = vmax.f32 %v8645_v53, 1e-16 }
 0xa24   : > { %v4546_v24 = vmul.f32 %v4529_v47, %v4225_v49  ;;  %v4621_v28 = vadd.f32 %v7125_v21, %v4620_v50  ;;  %v9124_v50 = vpop.permute.xlu1 %4837  ;;  %v9139_v53 = vmax.f32 %v8585_v44, 1e-16  ;;  %v9155_v44 = vmax.f32 %v8520_v37, 1e-16 }
 0xa25   : > { %vm4712_vm2 = vweird.f32 %v9102_v1  ;;  %vm4792_vm12 = vweird.f32 %v9122_v5 }
 0xa26   : > { %v4559_v59 = vpack.c.bf16 %v4546_v24, %v4545_v45  ;;  %v4608_v45 = vadd.f32 %v7125_v21, %v9084_v61  ;;  %v9099_v24 = vmax.f32 %v8468_v8, 1e-16  ;;  %v9116_v61 = vmax.f32 %v8760_v32, 1e-16 }
 0xa27   : > { %vm4752_vm13 = vweird.f32 %v9139_v53 }
 0xa28   : > { %6790 = vmatmul.msk.bf16.gmra.mxu3 %vm2456_vm4, %v4559_v59  ;;  %v4601_v59 = vadd.f32 %v7125_v21, %v9076_v12  ;;  %v4603_v12 = vadd.f32 %v7125_v21, %v9079_v62  ;;  %7382 = vrsqrt.f32 %v9099_v24  ;;  %v9113_v62 = vmax.f32 %v8482_v52, 1e-16 }
 0xa29   : > { %7384 = vrsqrt.f32 %v9102_v1  ;;  %v9134_v52 = vmax.f32 %v8685_v58, 1e-16  ;;  %vm4702_vm1 = vweird.f32 %v9099_v24  ;;  %vm4812_vm11 = vweird.f32 %v9116_v61 }
 0xa2a   : > { %7386 = vrsqrt.f32 %v9107_v39 }
 0xa2b   : > { %v4622_v22 = vpop.f32.mrf.mxu3  ;;  %7388 = vrsqrt.f32 %v9110_v16 }
 0xa2c   : > { %v4623_v47 = vadd.f32 %v7125_v21, %v4622_v22  ;;  %7390 = vrsqrt.f32 %v9113_v62 }
 0xa2d   : > { %7392 = vrsqrt.f32 %v9116_v61 }
 0xa2e   : > { %v9118_v8 = vpop.eup %7382  ;;  %7394 = vrsqrt.f32 %v9122_v5 }
 0xa2f   : > { %v9126_v41 = vpop.eup %7384  ;;  %v4697_v32 = vmul.f32 %v9118_v8, %v9099_v24  ;;  %7396 = vrsqrt.f32 %v9130_v57  ;;  %vm4703_vm5 = vweird.f32 %v9118_v8 }
 0xa30   : > { %v4707_v22 = vmul.f32 %v9126_v41, %v9102_v1  ;;  %v9152_v58 = vpop.eup %7386  ;;  %7398 = vrsqrt.f32 %v9134_v52  ;;  %vm4713_vm6 = vweird.f32 %v9126_v41  ;;  %vm9242_vm10 = vmor %vm4702_vm1, %vm4703_vm5 }
 0xa31   : > { %10061 = vst [vmem:[#allocation60_spill] sm:$0xff] %v9152_v58  ;;  %7400 = vrsqrt.f32 %v9139_v53  ;;  %vm9252_vm7 = vmor %vm4712_vm2, %vm4713_vm6  ;;  %vm4802_vm6 = vweird.f32 %v9130_v57 }
 0xa44   : > { %v4625_v35 = vpop.f32.mrf.mxu3 }
 0xa45   : > { %v4626_v27 = vadd.f32 %v7125_v21, %v4625_v35  ;;  %v9158_v35 = vpop.eup %7388 }
 0xa46   : > { %v9165_v38 = vpop.eup %7390 }
 0xa47   : > { %4908 = vperm.xlu2 %7115, %v4626_v27   ;;  %v9171_v37 = vpop.eup %7392 }
 0xa48   : > { %vm4813_vm15 = vweird.f32 %v9171_v37 }
 0xa49   : > { %vm9297_vm9 = vmor %vm4812_vm11, %vm4813_vm15 }
 0xa4c   : > { %v4627_v31 = vpop.f32.mrf.mxu3 }
 0xa4d   : > { %v4628_v48 = vadd.f32 %v7125_v21, %v4627_v31  ;;  %v4698_v31 = vmul.f32 %v9118_v8, %v4697_v32 }
 0xa4f   : > { %4913 = vperm.xlu1 %7114, %v4628_v48   ;;  %v4708_v48 = vmul.f32 %v9126_v41, %v4707_v22 }
 0xa75   : > { %v4630_v4 = vpop.f32.mrf.mxu3 }
 0xa76   : > { %v4631_v14 = vadd.f32 %v7125_v21, %v4630_v4 }
 0xa78   : > { %4918 = vperm.xlu1 %7114, %v4631_v14   ;;  %v9174_v14 = vpop.eup %7394 }
 0xa79   : > { %vm4793_vm14 = vweird.f32 %v9174_v14 }
 0xa7a   : > { %vm9305_vm5 = vmor %vm4792_vm12, %vm4793_vm14  ;;  %vm4723_vm12 = vweird.f32 %v9165_v38 }
 0xa7d   : > { %v4632_v17 = vpop.f32.mrf.mxu3 }
 0xa7e   : > { %v4633_v49 = vadd.f32 %v7125_v21, %v4632_v17  ;;  %v9177_v17 = vpop.eup %7396 }
 0xa7f   : > { %vm4803_vm8 = vweird.f32 %v9177_v17 }
 0xa80   : > { %4923 = vperm.xlu0 %7113, %v4633_v49   ;;  %4888 = vperm.xlu1 %7114, %v4616_v54   ;;  %v4717_v54 = vmul.f32 %v9165_v38, %v9113_v62  ;;  %v9182_v49 = vpop.eup %7398  ;;  %vm9319_vm2 = vmor %vm4802_vm6, %vm4803_vm8  ;;  %vm4722_vm6 = vweird.f32 %v9113_v62 }
 0xa81   : > { %vm4783_vm3 = vweird.f32 %v9182_v49 }
 0xa88   : > { %4883 = vperm.xlu1 %7114, %v4613_v63   ;;  %v4677_v63 = vmul.f32 %v9152_v58, %v9107_v39 }
 0xa8a   : > { %v4678_v32 = vmul.f32 %v9152_v58, %v4677_v63 }
 0xa8c   : > { %v9248_v24 = vmul.f32 0.5, %v4678_v32 }
 0xa8e   : > { %10064 = vst [vmem:[#allocation61_spill] sm:$0xff] %v9248_v24 }
 0xa90   : > { %4858 = vperm.xlu1 %7114, %v4601_v59   ;;  %v4709_v59 = vmul.f32 0.5, %v4708_v48 }
 0xa92   : > { %v4710_v22 = vsub.f32 1.5, %v4709_v59 }
 0xa94   : > { %v4711_v30 = vmul.f32 %v9126_v41, %v4710_v22 }
 0xaab   : > { %v4635_v18 = vpop.f32.mrf.mxu3 }
 0xaac   : > { %v4636_v55 = vadd.f32 %v7125_v21, %v4635_v18  ;;  %v4807_v18 = vmul.f32 %v9171_v37, %v9116_v61  ;;  %v10098_v61 = vld [vmem:[#allocation54_spill] sm:$0xff] }
 0xaae   : > { %4928 = vperm.xlu0 %7113, %v4636_v55   ;;  %v9188_v55 = vpop.eup %7400 }
 0xaaf   : > { %vm4753_vm0 = vweird.f32 %v9188_v55 }
 0xab0   : > { %vm9343_vm14 = vmor %vm4752_vm13, %vm4753_vm0 }
 0xab3   : > { %v4637_v27 = vpop.f32.mrf.mxu3 }
 0xab4   : > { %v4638_v13 = vadd.f32 %v7125_v21, %v4637_v27  ;;  %v9145_v21 = vmax.f32 %v8614_v11, 1e-16  ;;  %v9163_v11 = vmax.f32 %v8604_v3, 1e-16  ;;  %v4699_v3 = vmul.f32 0.5, %v4698_v31 }
 0xab5   : > { %v4787_v27 = vmul.f32 %v9174_v14, %v9122_v5  ;;  %v4808_v31 = vmul.f32 %v9171_v37, %v4807_v18 }
 0xab6   : > { %4933 = vperm.xlu2 %7115, %v4638_v13   ;;  %4898 = vperm.xlu0 %7113, %v4621_v28   ;;  %7402 = vrsqrt.f32 %v9145_v21  ;;  %v9195_v13 = vmax.f32 %v8499_v23, 1e-16  ;;  %v9208_v23 = vpop.permute.xlu2 %4908  ;;  %vm4742_vm8 = vweird.f32 %v9163_v11  ;;  %vm4772_vm11 = vweird.f32 %v9145_v21 }
 0xab7   : > { %7404 = vrsqrt.f32 %v9149_v9  ;;  %v4788_v63 = vmul.f32 %v9174_v14, %v4787_v27  ;;  %v4809_v58 = vmul.f32 0.5, %v4808_v31 }
 0xab8   : > { %7406 = vrsqrt.f32 %v9155_v44 }
 0xab9   : > { %7408 = vrsqrt.f32 %v9163_v11  ;;  %v4810_v32 = vsub.f32 1.5, %v4809_v58 }
 0xaba   : > { %7410 = vrsqrt.f32 %v9195_v13 }
 0xabc   : > { %v9192_v28 = vpop.eup %7402 }
 0xabd   : > { %v4767_v46 = vmul.f32 %v9192_v28, %v9145_v21  ;;  %vm4773_vm1 = vweird.f32 %v9192_v28 }
 0xabe   : > { %4903 = vperm.xlu2 %7115, %v4623_v47   ;;  %4893 = vperm.xlu0 %7113, %v4618_v36   ;;  %v4797_v36 = vmul.f32 %v9177_v17, %v9130_v57  ;;  %v9199_v47 = vpop.eup %7404  ;;  %vm9357_vm13 = vmor %vm4772_vm11, %vm4773_vm1 }
 0xabf   : > { %v4757_v59 = vmul.f32 %v9199_v47, %v9149_v9  ;;  %v4768_v33 = vmul.f32 %v9192_v28, %v4767_v46 }
 0xac0   : > { %v4798_v18 = vmul.f32 %v9177_v17, %v4797_v36 }
 0xac1   : > { %v9169_v4 = vpop.permute.xlu1 %4913  ;;  %v4758_v22 = vmul.f32 %v9199_v47, %v4757_v59  ;;  %v4769_v40 = vmul.f32 0.5, %v4768_v33 }
 0xac2   : > { %v4799_v31 = vmul.f32 0.5, %v4798_v18  ;;  %v4715_v18 = vsel %vm9252_vm7, %v9126_v41, %v4711_v30  ;;  %vm4763_vm7 = vweird.f32 %v9199_v47 }
 0xac3   : > { %v4821_v33 = vmul.f32 %v4715_v18, %v8293_v6 }
 0xac6   : > { %4878 = vperm.xlu2 %7115, %v4611_v0   ;;  %4868 = vperm.xlu0 %7113, %v4606_v7   ;;  %v4700_v7 = vsub.f32 1.5, %v4699_v3  ;;  %v4718_v0 = vmul.f32 %v9165_v38, %v4717_v54  ;;  %v4657_v3 = vmul.f32 %v9158_v35, %v9110_v16  ;;  %v4747_v54 = vmul.f32 %v9188_v55, %v9139_v53 }
 0xac8   : > { %v4719_v16 = vmul.f32 0.5, %v4718_v0  ;;  %v4701_v25 = vmul.f32 %v9118_v8, %v4700_v7  ;;  %v4748_v36 = vmul.f32 %v9188_v55, %v4747_v54  ;;  %v4789_v0 = vmul.f32 0.5, %v4788_v63 }
 0xaca   : > { %v4705_v63 = vsel %vm9242_vm10, %v9118_v8, %v4701_v25  ;;  %v4790_v7 = vsub.f32 1.5, %v4789_v0  ;;  %v4759_v25 = vmul.f32 0.5, %v4758_v22  ;;  %v4800_v8 = vsub.f32 1.5, %v4799_v31 }
 0xacb   : > { %v9275_v58 = vmul.f32 %v4705_v63, %v8280_v26  ;;  %v4811_v0 = vmul.f32 %v9171_v37, %v4810_v32  ;;  %v4770_v26 = vsub.f32 1.5, %v4769_v40  ;;  %vm4782_vm10 = vweird.f32 %v9134_v52 }
 0xacc   : > { %v4791_v31 = vmul.f32 %v9174_v14, %v4790_v7  ;;  %v4760_v46 = vsub.f32 1.5, %v4759_v25  ;;  %v4801_v6 = vmul.f32 %v9177_v17, %v4800_v8  ;;  %vm9330_vm15 = vmor %vm4782_vm10, %vm4783_vm3 }
 0xacd   : > { %v4771_v18 = vmul.f32 %v9192_v28, %v4770_v26  ;;  %v10082_v26 = vld [vmem:[#allocation46_spill] sm:$0xff]  ;;  %vm9435_vm10 = vmor %vm4722_vm6, %vm4723_vm12 }
 0xace   : > { %4873 = vperm.xlu2 %7115, %v4608_v45   ;;  %4863 = vperm.xlu0 %7113, %v4603_v12   ;;  %v4777_v12 = vmul.f32 %v9182_v49, %v9134_v52  ;;  %v9204_v45 = vpop.eup %7406  ;;  %v4795_v57 = vsel %vm9305_vm5, %v9174_v14, %v4791_v31  ;;  %v4761_v52 = vmul.f32 %v9199_v47, %v4760_v46 }
 0xacf   : > { %v9212_v51 = vpop.eup %7408  ;;  %v4727_v39 = vmul.f32 %v9204_v45, %v9155_v44  ;;  %v4805_v7 = vsel %vm9319_vm2, %v9177_v17, %v4801_v6  ;;  %v4829_v21 = vmul.f32 %v4795_v57, %v8408_v2  ;;  %vm4733_vm1 = vweird.f32 %v9204_v45 }
 0xad0   : > { %v4778_v10 = vmul.f32 %v9182_v49, %v4777_v12  ;;  %v4737_v27 = vmul.f32 %v9212_v51, %v9163_v11  ;;  %v9238_v12 = vmax.f32 %v8447_v42, 1e-16  ;;  %v4720_v42 = vsub.f32 1.5, %v4719_v16  ;;  %v9259_v29 = vpop.eup %7410 }
 0xad1   : > { %v4728_v1 = vmul.f32 %v9204_v45, %v4727_v39  ;;  %v9269_v16 = vmul.f32 %v9158_v35, %v4657_v3  ;;  %v9279_v30 = vmul.f32 %v9259_v29, %v9195_v13  ;;  %vm4743_vm3 = vweird.f32 %v9212_v51 }
 0xad2   : > { %v4779_v54 = vmul.f32 0.5, %v4778_v10  ;;  %v4738_v59 = vmul.f32 %v9212_v51, %v4737_v27  ;;  %v4749_v10 = vmul.f32 0.5, %v4748_v36  ;;  %7412 = vrsqrt.f32 %v9238_v12  ;;  %vm9395_vm5 = vmor %vm4742_vm8, %vm4743_vm3 }
 0xad3   : > { %v9282_v3 = vmul.f32 %v9165_v38, %v4720_v42  ;;  %v9285_v27 = vmul.f32 0.5, %v4728_v1  ;;  %v4815_v1 = vsel %vm9297_vm9, %v9171_v37, %v4811_v0  ;;  %vm4762_vm9 = vweird.f32 %v9149_v9  ;;  %v10081_v9 = vld [vmem:[#allocation47_spill] sm:$0xff] }
 0xad4   : > { %v4780_v41 = vsub.f32 1.5, %v4779_v54  ;;  %v4739_v36 = vmul.f32 0.5, %v4738_v59  ;;  %v4750_v22 = vsub.f32 1.5, %v4749_v10  ;;  %v4831_v8 = vmul.f32 %v4815_v1, %v8461_v34  ;;  %vm9366_vm0 = vmor %vm4762_vm9, %vm4763_vm7 }
 0xad5   : > { %v4765_v2 = vsel %vm9366_vm0, %v9199_v47, %v4761_v52  ;;  %v4853_v46 = vmul.f32 %v9124_v50, %v4829_v21  ;;  %v4730_v47 = vsub.f32 1.5, %v9285_v27  ;;  %v10086_v27 = vld [vmem:[#allocation45_spill] sm:$0xff]  ;;  %vm4732_vm2 = vweird.f32 %v9155_v44 }
 0xad6   : > { %v4781_v40 = vmul.f32 %v9182_v49, %v4780_v41  ;;  %v4740_v63 = vsub.f32 1.5, %v4739_v36  ;;  %v4751_v10 = vmul.f32 %v9188_v55, %v4750_v22  ;;  %v4845_v36 = vmul.f32 %v9124_v50, %v4821_v33  ;;  %vm9449_vm7 = vmor %vm4732_vm2, %vm4733_vm1 }
 0xad7   : > { %v4855_v0 = vmul.f32 %v9124_v50, %v4831_v8  ;;  %v4830_v22 = vmul.f32 %v4805_v7, %v10081_v9  ;;  %v4844_v33 = vmul.f32 %v9124_v50, %v9275_v58  ;;  %v4826_v52 = vmul.f32 %v4765_v2, %v10086_v27  ;;  %v10087_v7 = vld [vmem:[#allocation43_spill] sm:$0xff] }
 0xad8   : > { %v9302_v54 = vpop.eup %7412  ;;  %v4785_v25 = vsel %vm9330_vm15, %v9182_v49, %v4781_v40  ;;  %v4741_v41 = vmul.f32 %v9212_v51, %v4740_v63  ;;  %v4775_v49 = vsel %vm9357_vm13, %v9192_v28, %v4771_v18  ;;  %v4755_v6 = vsel %vm9343_vm14, %v9188_v55, %v4751_v10  ;;  %v10085_v55 = vld [vmem:[#allocation44_spill] sm:$0xff] }
 0xad9   : > { %v4828_v31 = vmul.f32 %v4785_v25, %v10082_v26  ;;  %v4854_v40 = vmul.f32 %v9124_v50, %v4830_v22  ;;  %v4688_v63 = vmul.f32 %v9259_v29, %v9279_v30  ;;  %v4825_v14 = vmul.f32 %v4755_v6, %v10087_v7  ;;  %v10094_v6 = vld [vmem:[#allocation61_spill] sm:$0xff] }
 0xada   : > { %v4745_v30 = vsel %vm9395_vm5, %v9212_v51, %v4741_v41  ;;  %v4725_v22 = vsel %vm9435_vm10, %v9165_v38, %v9282_v3  ;;  %v10095_v3 = vld [vmem:[#allocation40_spill] sm:$0xff]  ;;  %vm4693_vm15 = vweird.f32 %v9259_v29  ;;  %vm4692_vm8 = vweird.f32 %v9195_v13 }
 0xadb   : > { %v4852_v1 = vmul.f32 %v9124_v50, %v4828_v31  ;;  %v4689_v53 = vmul.f32 0.5, %v4688_v63  ;;  %v10097_v63 = vld [vmem:[#allocation55_spill] sm:$0xff]  ;;  %vm4694_vm11 = vmor %vm4692_vm8, %vm4693_vm15  ;;  %vm4663_vm13 = vweird.f32 %v9158_v35  ;;  %vm4673_vm0 = vweird.f32 %v9302_v54 }
 0xadc   : > { %vm4672_vm6 = vweird.f32 %v9238_v12  ;;  %v10108_v31 = vld [vmem:[#allocation51_spill] sm:$0xff]  ;;  %vm5010_vm10 = vcmask 326656  }
 0xadd   : > { %v4690_v9 = vsub.f32 1.5, %v4689_v53  ;;  %vm4674_vm1 = vmor %vm4672_vm6, %vm4673_vm0 }
 0xaea   : > { %v9210_v48 = vpop.permute.xlu1 %4918 }
 0xaeb   : > { %v4948_v10 = vmul.f32 %v9210_v48, %v4852_v1 }
 0xaed   : > { %v4964_v62 = vsel %vm2456_vm4, %v9019_v20, %v4948_v10  ;;  %v4680_v20 = vsub.f32 1.5, %v10094_v6 }
 0xaf2   : > { %v9272_v39 = vpop.permute.xlu1 %4888  ;;  %v4924_v5 = vpop.permute.xlu0 %4923 }
 0xaf3   : > { %v4949_v18 = vmul.f32 %v4924_v5, %v4853_v46 }
 0xafa   : > { %v4884_v17 = vpop.permute.xlu1 %4883 }
 0xafb   : > { %v4941_v42 = vmul.f32 %v4884_v17, %v4845_v36  ;;  %v10088_v17 = vld [vmem:[#allocation42_spill] sm:$0xff] }
 0xafc   : > { %v4824_v48 = vmul.f32 %v4745_v30, %v10088_v17 }
 0xafd   : > { %v9418_v51 = vsel %vm2456_vm4, %v8964_v43, %v4941_v42  ;;  %v4667_v43 = vmul.f32 %v9302_v54, %v9238_v12  ;;  %v4659_v42 = vmul.f32 0.5, %v9269_v16  ;;  %v4691_v16 = vmul.f32 %v9259_v29, %v4690_v9 }
 0xaff   : > { %v4668_v44 = vmul.f32 %v9302_v54, %v4667_v43  ;;  %v4695_v10 = vsel %vm4694_vm11, %v9259_v29, %v4691_v16 }
 0xb02   : > { %v4859_v12 = vpop.permute.xlu1 %4858 }
 0xb10   : > { %v9266_v24 = vpop.permute.xlu2 %4933 }
 0xb11   : > { %v4951_v28 = vmul.f32 %v9266_v24, %v4855_v0  ;;  %v4827_v24 = vmul.f32 %v4775_v49, %v10085_v55  ;;  %v4731_v49 = vmul.f32 %v9204_v45, %v4730_v47  ;;  %v4848_v0 = vmul.f32 %v9124_v50, %v4824_v48 }
 0xb13   : > { %v4851_v11 = vmul.f32 %v9124_v50, %v4827_v24  ;;  %v4967_v5 = vsel %vm2456_vm4, %v9055_v19, %v4951_v28  ;;  %v4849_v19 = vmul.f32 %v9124_v50, %v4825_v14  ;;  %v4735_v38 = vsel %vm9449_vm7, %v9204_v45, %v4731_v49  ;;  %v10099_v45 = vld [vmem:[#allocation41_spill] sm:$0xff]  ;;  %v10106_v49 = vld [vmem:[#allocation59_spill] sm:$0xff] }
 0xb14   : > { %v4822_v28 = vmul.f32 %v4725_v22, %v10095_v3  ;;  %vm4662_vm9 = vweird.f32 %v10106_v49  ;;  %v10112_v3 = vld [vmem:[#allocation49_spill] sm:$0xff] }
 0xb15   : > { %v4947_v34 = vmul.f32 %v9169_v4, %v4851_v11  ;;  %v4660_v11 = vsub.f32 1.5, %v4659_v42  ;;  %vm4664_vm5 = vmor %vm4662_vm9, %vm4663_vm13 }
 0xb18   : > { %v9313_v59 = vpop.permute.xlu2 %4903 }
 0xb20   : > { %v4879_v58 = vpop.permute.xlu2 %4878  ;;  %v4929_v32 = vpop.permute.xlu0 %4928 }
 0xb21   : > { %v4940_v57 = vmul.f32 %v4879_v58, %v4844_v33  ;;  %v4950_v37 = vmul.f32 %v4929_v32, %v4854_v40  ;;  %v10096_v33 = vld [vmem:[#allocation56_spill] sm:$0xff]  ;;  %v4846_v58 = vmul.f32 %v9124_v50, %v4822_v28  ;;  %v4823_v32 = vmul.f32 %v4735_v38, %v10099_v45 }
 0xb23   : > { %v4966_v25 = vsel %vm2456_vm4, %v9051_v56, %v4950_v37  ;;  %v9414_v8 = vsel %vm2456_vm4, %v8961_v60, %v4940_v57  ;;  %v4850_v56 = vmul.f32 %v9124_v50, %v4826_v52  ;;  %v4965_v60 = vsel %vm2456_vm4, %v9023_v15, %v4949_v18  ;;  %v10100_v18 = vld [vmem:[#allocation60_spill] sm:$0xff]  ;;  %v10101_v52 = vld [vmem:[#allocation58_spill] sm:$0xff] }
 0xb24   : > { %v4975_v21 = vpack.c.bf16 %v4967_v5, %v4966_v25  ;;  %v4970_v41 = vpack.c.bf16 %v9418_v51, %v9414_v8  ;;  %v4945_v15 = vmul.f32 %v9313_v59, %v4849_v19  ;;  %v4974_v26 = vpack.c.bf16 %v4965_v60, %v4964_v62  ;;  %v10093_v59 = vld [vmem:[#allocation57_spill] sm:$0xff]  ;;  %v10102_v5 = vld [vmem:[#allocation39_spill] sm:$0xff]  ;;  %v10105_v60 = vld [vmem:[#allocation38_spill] sm:$0xff] }
 0xb25   : > { %v4946_v4 = vmul.f32 %v9208_v23, %v4850_v56  ;;  %v4963_v46 = vsel %vm2456_vm4, %v10093_v59, %v4947_v34  ;;  %vm4683_vm14 = vweird.f32 %v10100_v18  ;;  %v4669_v57 = vmul.f32 0.5, %v4668_v44  ;;  %v10109_v59 = vld [vmem:[#allocation50_spill] sm:$0xff] }
 0xb26   : > { %4992 = vmatpush.bf16.msra.mxu0 %v4975_v21  ;;  %v4961_v55 = vsel %vm2456_vm4, %v10098_v61, %v4945_v15  ;;  %v4681_v37 = vmul.f32 %v10100_v18, %v4680_v20  ;;  %v4942_v30 = vmul.f32 %v9272_v39, %v4846_v58  ;;  %v4847_v27 = vmul.f32 %v9124_v50, %v4823_v32  ;;  %v10103_v21 = vld [vmem:[#allocation52_spill] sm:$0xff]  ;;  %v10104_v39 = vld [vmem:[#allocation53_spill] sm:$0xff]  ;;  %v5007_v61 = vld [vmem:[#allocation6 + $0x8] sm:$0xff] }
 0xb27   : > { %v4962_v40 = vsel %vm2456_vm4, %v10096_v33, %v4946_v4  ;;  %vm4682_vm12 = vweird.f32 %v10101_v52  ;;  %v4670_v25 = vsub.f32 1.5, %v4669_v57  ;;  %v4819_v53 = vmul.f32 %v4695_v10, %v10102_v5  ;;  %v10110_v20 = vld [vmem:[#allocation37_spill] sm:$0xff] }
 0xb28   : > { %v4899_v2 = vpop.permute.xlu0 %4898  ;;  %v4973_v24 = vpack.c.bf16 %v4963_v46, %v4962_v40  ;;  %vm4684_vm3 = vmor %vm4682_vm12, %vm4683_vm14  ;;  %v4958_v17 = vsel %vm2456_vm4, %v10103_v21, %v4942_v30  ;;  %v4661_v56 = vmul.f32 %v9158_v35, %v4660_v11  ;;  %v4874_v29 = vpop.permute.xlu2 %4873  ;;  %v5006_v40 = vld [vmem:[#allocation6] sm:$0xff] }
 0xb29   : > { %v4944_v23 = vmul.f32 %v4899_v2, %v4848_v0  ;;  %v4685_v13 = vsel %vm4684_vm3, %v10100_v18, %v4681_v37  ;;  %v4843_v19 = vmul.f32 %v9124_v50, %v4819_v53  ;;  %v4671_v36 = vmul.f32 %v9302_v54, %v4670_v25  ;;  %v10107_v2 = vld [vmem:[#allocation36_spill] sm:$0xff] }
 0xb2a   : > { %4993 = vmatpush.bf16.msra.mxu0 %v4974_v26  ;;  %v4818_v43 = vmul.f32 %v4685_v13, %v10105_v60  ;;  %v4665_v0 = vsel %vm4664_vm5, %v9158_v35, %v4661_v56 }
 0xb2b   : > { %v4960_v47 = vsel %vm2456_vm4, %v10097_v63, %v4944_v23  ;;  %v4939_v4 = vmul.f32 %v4874_v29, %v4843_v19  ;;  %v4675_v22 = vsel %vm4674_vm1, %v9302_v54, %v4671_v36  ;;  %v4816_v26 = vmul.f32 %v4665_v0, %v10107_v2 }
 0xb2c   : > { %v4972_v1 = vpack.c.bf16 %v4961_v55, %v4960_v47  ;;  %v4842_v15 = vmul.f32 %v9124_v50, %v4818_v43  ;;  %v4817_v42 = vmul.f32 %v4675_v22, %v10110_v20 }
 0xb2d   : > { %v4955_v46 = vsel %vm2456_vm4, %v10109_v59, %v4939_v4  ;;  %v4840_v35 = vmul.f32 %v9124_v50, %v4816_v26 }
 0xb2e   : > { %4994 = vmatpush.bf16.msra.mxu0 %v4973_v24  ;;  %v4841_v8 = vmul.f32 %v9124_v50, %v4817_v42 }
 0xb2f   : > { %v4936_v44 = vmul.f32 %v4859_v12, %v4840_v35 }
 0xb30   : > { %v4894_v7 = vpop.permute.xlu0 %4893 }
 0xb31   : > { %v4943_v14 = vmul.f32 %v4894_v7, %v4847_v27 }
 0xb32   : > { %4995 = vmatpush.bf16.msra.mxu0 %v4972_v1 }
 0xb33   : > { %v4959_v48 = vsel %vm2456_vm4, %v10104_v39, %v4943_v14 }
 0xb34   : > { %v4971_v34 = vpack.c.bf16 %v4959_v48, %v4958_v17 }
 0xb36   : > { %4996 = vmatpush.bf16.msra.mxu0 %v4971_v34 }
 0xb38   : > { %v4869_v62 = vpop.permute.xlu0 %4868 }
 0xb39   : > { %v4938_v9 = vmul.f32 %v4869_v62, %v4842_v15 }
 0xb3a   : > { %4997 = vmatpush.bf16.msra.mxu0 %v4970_v41  ;;  %v10111_v41 = vld [vmem:[#allocation48_spill] sm:$0xff] }
 0xb3b   : > { %v4954_v23 = vsel %vm2456_vm4, %v10108_v31, %v4938_v9  ;;  %v4952_v38 = vsel %vm2456_vm4, %v10111_v41, %v4936_v44 }
 0xb3c   : > { %v4969_v6 = vpack.c.bf16 %v4955_v46, %v4954_v23 }
 0xb3e   : > { %4998 = vmatpush.bf16.msra.mxu0 %v4969_v6 }
 0xb40   : > { %v4864_v51 = vpop.permute.xlu0 %4863 }
 0xb41   : > { %v4937_v54 = vmul.f32 %v4864_v51, %v4841_v8 }
 0xb43   : > { %v4953_v28 = vsel %vm2456_vm4, %v10112_v3, %v4937_v54 }
 0xb44   : > { %v4968_v33 = vpack.c.bf16 %v4953_v28, %v4952_v38 }
 0xb46   : > { %4999 = vmatpush.bf16.msra.mxu0 %v4968_v33 }
 0xb49   : > { %7008 = vmatmul.lmr.bf16.vlgmr.msra.gmra.2.mxu0 }
 0xb51   : > { %7009 = vmatmul.lmr.bf16.gmra.2.mxu0 }
 0xbc6   : > { %v5001_v63 = vpop.f32.mrf.mxu0 }
 0xbc7   : > { %v5008_v47 = vadd.f32 %v5006_v40, %v5001_v63 }
 0xbc9   : > { %5011 = vst.msk [vmem:[#allocation6] sm:$0xff] %vm5010_vm10, %v5008_v47 }
 0xbce   : > { %v5003_v55 = vpop.f32.mrf.mxu0 }
 0xbcf   : > { %v5009_v50 = vadd.f32 %v5007_v61, %v5003_v55 }
 0xbd1   : > { %5012 = vst.msk [vmem:[#allocation6 + $0x8] sm:$0xff] %vm5010_vm10, %v5009_v50 }
 0xbd2 PF: > { %5014 = sbr.rel (!%p1669_p5) target bundleno = 3450 (0xd7a), region = 216  ;;  %s10113_s18 = sld [smem:[#allocation29_spill]] (%p1669_p5)  ;;  %v9522_v45 = vld [vmem:[#allocation6] sm:$0xff] (%p1669_p5)  ;;  %v7555_v52 = vmov (%p1669_p5), 0   ;;  %v9527_v10 = vld [vmem:[#allocation3 + $0x8] sm:$0xff] (%p1669_p5)  ;;  %vm5027_vm4 = vcmask (%p1669_p5), 261120  }
 0xbd3   : > { %s10114_s22 = sld [smem:[#allocation30_spill]] (%p1669_p5)  ;;  %s6791_s26 = sshll.u32 (%p1669_p5), %s7491_s7, 6  ;;  %7417 = vset.pattern.permute.xlu1 (%p1669_p5), %v7555_v52  ;;  %7418 = vset.pattern.permute.xlu0 (%p1669_p5), %v7555_v52  ;;  %vm5045_vm2 = vcmask (%p1669_p5), 523264   ;;  %v9532_v25 = vld [vmem:[#allocation3] sm:$0xff] (%p1669_p5)  ;;  %vm5190_vm9 = vcmask (%p1669_p5), 64512  }
 0xbd4   : > { %s7554_s1 = smov (%p1669_p5), 32   ;;  %s10115_s2 = sld [smem:[#allocation12_spill]] (%p1669_p5) }
 0xbd8   : > { %v9513_v16 = vld [vmem:[#allocation6 + $0x8] sm:$0xff]  ;;  %s5031_s15 = scalar_lea.vmem %s10113_s18, %s6791_s26  ;;  %s10116_s18 = sld [smem:[#allocation31_spill]] }
 0xbd9   : > { %5023 = vrot.lane.b32.xlu0 %v9513_v16, %s7554_s1  ;;  %v5039_v24 = vld [vmem:[%s5031_s15 + $0x38] sm:$0xff]  ;;  %v5038_v1 = vld [vmem:[%s5031_s15 + $0x30] sm:$0xff]  ;;  %s5040_s14 = scalar_lea.vmem %s10114_s22, %s7491_s7  ;;  %v5037_v58 = vld [vmem:[%s5031_s15 + $0x28] sm:$0xff] }
 0xbda   : > { %6979 = vmatpush.msra.mxu2 %v5039_v24  ;;  %5060 = vmatpush.msra.mxu0 %v5039_v24  ;;  %v5036_v32 = vld [vmem:[%s5031_s15 + $0x20] sm:$0xff]  ;;  %v5035_v18 = vld [vmem:[%s5031_s15 + $0x18] sm:$0xff]  ;;  %v5034_v57 = vld [vmem:[%s5031_s15 + $0x10] sm:$0xff] }
 0xbdb   : > { %v5033_v37 = vld [vmem:[%s5031_s15 + $0x8] sm:$0xff]  ;;  %v5032_v30 = vld [vmem:[%s5031_s15] sm:$0xff]  ;;  %s10117_s15 = sld [smem:[#allocation32_spill]] }
 0xbdc   : > { %6980 = vmatpush.msra.mxu2 %v5038_v1  ;;  %5061 = vmatpush.msra.mxu0 %v5038_v1  ;;  %v5166_v27 = vld [vmem:[%s10115_s2] sm:$0xff]  ;;  %v5167_v11 = vld [vmem:[%s10115_s2 + $0x8] sm:$0xff] }
 0xbdd   : > { %5170 = vperm.xlu1 %7417, %v5166_v27   ;;  %v7419_v29 = vld [vmem:[%s5040_s14] ss:$0 sm:$0xff] }
 0xbde   : > { %6981 = vmatpush.msra.mxu2 %v5037_v58  ;;  %5062 = vmatpush.msra.mxu0 %v5037_v58  ;;  %v5165_v58 = vld [vmem:[#allocation4 + $0x8] sm:$0xff] }
 0xbe0   : > { %6982 = vmatpush.msra.mxu2 %v5036_v32  ;;  %5063 = vmatpush.msra.mxu0 %v5036_v32 }
 0xbe1   : > { %5021 = vrot.lane.b32.xlu0 %v9522_v45, %s7554_s1  ;;  %s5115_s1 = scalar_lea.vmem %s10116_s18, %s6791_s26  ;;  %s7556_s26 = smov 96  }
 0xbe2   : > { %6983 = vmatpush.msra.mxu2 %v5035_v18  ;;  %5064 = vmatpush.msra.mxu0 %v5035_v18  ;;  %v5123_v53 = vld [vmem:[%s5115_s1 + $0x38] sm:$0xff]  ;;  %v5122_v21 = vld [vmem:[%s5115_s1 + $0x30] sm:$0xff]  ;;  %v5121_v17 = vld [vmem:[%s5115_s1 + $0x28] sm:$0xff]  ;;  %s5155_s14 = scalar_lea.vmem %s10117_s15, %s7491_s7 }
 0xbe3   : > { %6987 = vmatpush.msra.mxu3 %v5123_v53  ;;  %5138 = vmatpush.msra.mxu1 %v5123_v53  ;;  %v5120_v39 = vld [vmem:[%s5115_s1 + $0x20] sm:$0xff]  ;;  %v5119_v48 = vld [vmem:[%s5115_s1 + $0x18] sm:$0xff]  ;;  %v5118_v56 = vld [vmem:[%s5115_s1 + $0x10] sm:$0xff] }
 0xbe4   : > { %6984 = vmatpush.msra.mxu2 %v5034_v57  ;;  %5065 = vmatpush.msra.mxu0 %v5034_v57  ;;  %v5117_v34 = vld [vmem:[%s5115_s1 + $0x8] sm:$0xff]  ;;  %v5116_v60 = vld [vmem:[%s5115_s1] sm:$0xff] }
 0xbe5   : > { %5175 = vperm.xlu1 %7417, %v5167_v11   ;;  %6988 = vmatpush.msra.mxu3 %v5122_v21  ;;  %v7420_v18 = vld [vmem:[%s5155_s14] ss:$0 sm:$0xff] }
 0xbe6   : > { %6985 = vmatpush.msra.mxu2 %v5033_v37  ;;  %5066 = vmatpush.msra.mxu0 %v5033_v37 }
 0xbe7   : > { %5139 = vmatpush.msra.mxu1 %v5122_v21  ;;  %6989 = vmatpush.msra.mxu3 %v5121_v17 }
 0xbe8   : > { %6986 = vmatpush.msra.mxu2 %v5032_v30  ;;  %5067 = vmatpush.msra.mxu0 %v5032_v30 }
 0xbe9   : > { %5140 = vmatpush.msra.mxu1 %v5121_v17  ;;  %6990 = vmatpush.msra.mxu3 %v5120_v39 }
 0xbeb   : > { %5141 = vmatpush.msra.mxu1 %v5120_v39  ;;  %6991 = vmatpush.msra.mxu3 %v5119_v48 }
 0xbed   : > { %5142 = vmatpush.msra.mxu1 %v5119_v48  ;;  %6992 = vmatpush.msra.mxu3 %v5118_v56 }
 0xbef   : > { %5143 = vmatpush.msra.mxu1 %v5118_v56  ;;  %6993 = vmatpush.msra.mxu3 %v5117_v34 }
 0xbf1   : > { %5144 = vmatpush.msra.mxu1 %v5117_v34  ;;  %6994 = vmatpush.msra.mxu3 %v5116_v60 }
 0xbf3   : > { %5145 = vmatpush.msra.mxu1 %v5116_v60 }
 0xc4b   : > { %v5024_v7 = vpop.permute.xlu0 %5023 }
 0xc4c   : > { %v5029_v14 = vsel %vm5027_vm4, %v9527_v10, %v5024_v7 }
 0xc4d   : > { %6793 = vmatmul.msk.f32.vlgmr.msra.gmra.mxu2 %vm5045_vm2, %v5029_v14 }
 0xc4f   : > { %v5171_v15 = vpop.permute.xlu1 %5170 }
 0xc50   : > { %v5178_v62 = vmul.f32 %v5171_v15, %v9522_v45 }
 0xc52   : > { %5182 = vrot.lane.b32.xlu2 %v5178_v62, %s7556_s26 }
 0xc53   : > { %v5022_v13 = vpop.permute.xlu0 %5021 }
 0xc54   : > { %v5028_v5 = vsel %vm5027_vm4, %v9532_v25, %v5022_v13 }
 0xc55   : > { %6792 = vmatmul.msk.f32.vlgmr.msra.gmra.mxu0 %vm5045_vm2, %v5028_v5 }
 0xc57   : > { %v5176_v2 = vpop.permute.xlu1 %5175 }
 0xc58   : > { %v5179_v31 = vmul.f32 %v5176_v2, %v9513_v16  ;;  %v5164_v16 = vld [vmem:[#allocation4] sm:$0xff] }
 0xc5a   : > { %5184 = vrot.lane.b32.xlu2 %v5179_v31, %s7556_s26 }
 0xcac   : > { %v5183_v24 = vpop.permute.xlu2 %5182 }
 0xcad   : > { %v5188_v1 = vadd.f32 %v5183_v24, %v5164_v16 }
 0xcaf   : > { %5191 = vst.msk [vmem:[#allocation4] sm:$0xff] %vm5190_vm9, %v5188_v1 }
 0xcb4   : > { %v5185_v45 = vpop.permute.xlu2 %5184 }
 0xcb5   : > { %v5189_v32 = vadd.f32 %v5185_v45, %v5165_v58 }
 0xcb7   : > { %5192 = vst.msk [vmem:[#allocation4 + $0x8] sm:$0xff] %vm5190_vm9, %v5189_v32 }
 0xcd0   : > { %v5072_v19 = vpop.f32.mrf.mxu2 }
 0xcd1   : > { %v5073_v43 = vadd.f32 %v7419_v29, %v5072_v19 }
 0xcd2   : > { %v5069_v49 = vpop.f32.mrf.mxu0 }
 0xcd3   : > { %v6795_v36 = vmul.f32 -1.442695, %v5073_v43  ;;  %v5070_v4 = vadd.f32 %v7419_v29, %v5069_v49 }
 0xcd5   : > { %7421 = vpow2.f32 %v6795_v36  ;;  %v6794_v0 = vmul.f32 -1.442695, %v5070_v4 }
 0xcd7   : > { %7423 = vpow2.f32 %v6794_v0 }
 0xcdb   : > { %v7422_v9 = vpop.eup %7421 }
 0xcdc   : > { %v5082_v22 = vadd.f32 1.0, %v7422_v9 }
 0xcdd   : > { %v7424_v26 = vpop.eup %7423 }
 0xcde   : > { %7425 = vrcp.f32 %v5082_v22  ;;  %v5081_v23 = vadd.f32 1.0, %v7424_v26  ;;  %v5109_v35 = vand.u32 2147483648, %v5082_v22  ;;  %v5107_v44 = vand.u32 2147483647, %v5082_v22 }
 0xcdf   : > { %vm5103_vm15 = vweird.f32 %v5082_v22 }
 0xce0   : > { %7427 = vrcp.f32 %v5081_v23  ;;  %v5094_v54 = vand.u32 2147483648, %v5081_v23  ;;  %v5110_v41 = vor.u32 1.1754944e-38, %v5109_v35  ;;  %v5092_v3 = vand.u32 2147483647, %v5081_v23 }
 0xce1   : > { %vm5108_vm11 = vcmp.eq.f32.partialorder %v5107_v44, 8.507059e+37  ;;  %vm5088_vm12 = vweird.f32 %v5081_v23 }
 0xce2   : > { %v5095_v47 = vor.u32 1.1754944e-38, %v5094_v54  ;;  %vm5093_vm13 = vcmp.eq.f32.partialorder %v5092_v3, 8.507059e+37 }
 0xce4   : > { %v7426_v59 = vpop.eup %7425 }
 0xce5   : > { %v5099_v46 = vmul.f32 %v7426_v59, %v5082_v22  ;;  %vm5104_vm7 = vweird.f32 %v7426_v59 }
 0xce6   : > { %v7428_v12 = vpop.eup %7427  ;;  %vm5105_vm14 = vmor %vm5103_vm15, %vm5104_vm7 }
 0xce7   : > { %v5100_v6 = vsub.f32 1.0, %v5099_v46  ;;  %v5084_v20 = vmul.f32 %v7428_v12, %v5081_v23  ;;  %vm5089_vm8 = vweird.f32 %v7428_v12 }
 0xce8   : > { %vm5090_vm3 = vmor %vm5088_vm12, %vm5089_vm8 }
 0xce9   : > { %v5101_v42 = vmul.f32 %v7426_v59, %v5100_v6  ;;  %v5085_v8 = vsub.f32 1.0, %v5084_v20 }
 0xceb   : > { %v5102_v51 = vadd.f32 %v7426_v59, %v5101_v42  ;;  %v5086_v38 = vmul.f32 %v7428_v12, %v5085_v8 }
 0xced   : > { %v5106_v28 = vsel %vm5105_vm14, %v7426_v59, %v5102_v51  ;;  %v5087_v40 = vadd.f32 %v7428_v12, %v5086_v38 }
 0xcee   : > { %v5111_v33 = vsel %vm5108_vm11, %v5110_v41, %v5106_v28 }
 0xcef   : > { %v5114_v63 = vmul.f32 %v5111_v33, %v5073_v43  ;;  %v5091_v61 = vsel %vm5090_vm3, %v7428_v12, %v5087_v40 }
 0xcf0   : > { %v5096_v55 = vsel %vm5093_vm13, %v5095_v47, %v5091_v61 }
 0xcf1   : > { %6797 = vmatmul.msk.f32.vlgmr.msra.gmra.mxu3 %vm5045_vm2, %v5114_v63  ;;  %v5113_v50 = vmul.f32 %v5096_v55, %v5070_v4 }
 0xcf3   : > { %6796 = vmatmul.msk.f32.vlgmr.msra.gmra.mxu1 %vm5045_vm2, %v5113_v50 }
 0xd70   : > { %v5147_v57 = vpop.f32.mrf.mxu1 }
 0xd71   : > { %v5153_v37 = vadd.f32 %v5147_v57, %v9532_v25 }
 0xd73   : > { %v5160_v30 = vadd.f32 %v7420_v18, %v5153_v37 }
 0xd74   : > { %v5150_v27 = vpop.f32.mrf.mxu3 }
 0xd75   : > { %v5154_v52 = vadd.f32 %v5150_v27, %v9527_v10  ;;  %5162 = vst.msk [vmem:[#allocation3] sm:$0xff] %vm5027_vm4, %v5160_v30 }
 0xd77   : > { %v5161_v11 = vadd.f32 %v7420_v18, %v5154_v52 }
 0xd79   : > { %5163 = vst.msk [vmem:[#allocation3 + $0x8] sm:$0xff] %vm5027_vm4, %v5161_v11 }
 0xd7a PF: > { %p6798_p7 = scmp.ne.s32.totalorder %s7491_s7, 2 }
 0xd7b   : > { %s10118_s18 = sld [smem:[#allocation8_spill]] (!%p6798_p7) }
 0xd7c   : > { %5196 = sbr.rel (%p6798_p7) target bundleno = 4499 (0x1193), region = 220  ;;  %s10119_s7 = sld [smem:[#allocation9_spill]] (!%p6798_p7) }
 0xd7d   : > { %s10120_s1 = sld [smem:[#allocation15_spill]] (!%p6798_p7) }
 0xd7e   : > { %s10121_s26 = sld [smem:[#allocation13_spill]] (!%p6798_p7) }
 0xd7f   : > { %s10122_s15 = sld [smem:[#allocation14_spill]] (!%p6798_p7) }
 0xd80   : > { %s10123_s14 = sld [smem:[#allocation11_spill]] (!%p6798_p7) }
 0xd81   : > { %v5211_v7 = vld [vmem:[%s10118_s18 + $0x70] sm:$0xff]  ;;  %v5209_v14 = vld [vmem:[%s10118_s18 + $0x60] sm:$0xff]  ;;  %v7557_v25 = vmov 0   ;;  %v5212_v13 = vld [vmem:[%s10118_s18 + $0x78] sm:$0xff]  ;;  %v5213_v24 = vlaneseq  ;;  %v7558_v11 = vmov 0.0   ;;  %vm5442_vm6 = vcmask 130048  }
 0xd82   : > { %v5207_v10 = vld [vmem:[%s10118_s18 + $0x50] sm:$0xff]  ;;  %7431 = vset.pattern.permute.xlu2 %v7557_v25  ;;  %7430 = vset.pattern.permute.xlu1 %v7557_v25  ;;  %v5210_v5 = vld [vmem:[%s10118_s18 + $0x68] sm:$0xff]  ;;  %v5208_v53 = vld [vmem:[%s10118_s18 + $0x58] sm:$0xff]  ;;  %vm5899_vm4 = vcmask 1041408   ;;  %vm5850_vm2 = vcmask 15360  }
 0xd83   : > { %7429 = vset.pattern.permute.xlu0 %v7557_v25  ;;  %5258 = vperm.xlu2 %7431, %v5211_v7   ;;  %v5591_v21 = vld [vmem:[%s7579_s13 + $0x10] sm:$0xff]  ;;  %v5590_v17 = vld [vmem:[%s7579_s13 + $0x8] sm:$0xff]  ;;  %v5589_v39 = vld [vmem:[%s7579_s13] sm:$0xff]  ;;  %v9608_v18 = vand.u32 127, %v5213_v24 }
 0xd84   : > { %5252 = vperm.xlu1 %7430, %v5209_v14   ;;  %5246 = vperm.xlu0 %7429, %v5207_v10   ;;  %v5594_v48 = vld [vmem:[%s7579_s13 + $0x28] sm:$0xff]  ;;  %v5593_v56 = vld [vmem:[%s7579_s13 + $0x20] sm:$0xff]  ;;  %v5592_v29 = vld [vmem:[%s7579_s13 + $0x18] sm:$0xff] }
 0xd85   : > { %v5197_v34 = vld [vmem:[%s10118_s18] sm:$0xff]  ;;  %v5596_v19 = vld [vmem:[%s7579_s13 + $0x38] sm:$0xff]  ;;  %v5595_v60 = vld [vmem:[%s7579_s13 + $0x30] sm:$0xff] }
 0xd86   : > { %v5320_v43 = vld [vmem:[%s10119_s7 + $0x8] sm:$0xff]  ;;  %v5319_v49 = vld [vmem:[%s10119_s7] sm:$0xff]  ;;  %v5199_v4 = vld [vmem:[%s10118_s18 + $0x10] sm:$0xff] }
 0xd87   : > { %v5198_v36 = vld [vmem:[%s10118_s18 + $0x8] sm:$0xff]  ;;  %v5597_v0 = vld [vmem:[%s7579_s13 + $0x40] sm:$0xff]  ;;  %v5322_v62 = vld [vmem:[%s10119_s7 + $0x18] sm:$0xff] }
 0xd88   : > { %v5598_v15 = vld [vmem:[%s7579_s13 + $0x48] sm:$0xff]  ;;  %v5321_v9 = vld [vmem:[%s10119_s7 + $0x10] sm:$0xff]  ;;  %v5200_v22 = vld [vmem:[%s10118_s18 + $0x18] sm:$0xff] }
 0xd89   : > { %v5201_v2 = vld [vmem:[%s10118_s18 + $0x20] sm:$0xff]  ;;  %v5600_v26 = vld [vmem:[%s7579_s13 + $0x58] sm:$0xff]  ;;  %v5599_v31 = vld [vmem:[%s7579_s13 + $0x50] sm:$0xff] }
 0xd8a   : > { %v5324_v23 = vld [vmem:[%s10119_s7 + $0x28] sm:$0xff]  ;;  %v5323_v59 = vld [vmem:[%s10119_s7 + $0x20] sm:$0xff]  ;;  %v5203_v12 = vld [vmem:[%s10118_s18 + $0x30] sm:$0xff] }
 0xd8b   : > { %5261 = vperm.xlu2 %7431, %v5212_v13   ;;  %v5202_v46 = vld [vmem:[%s10118_s18 + $0x28] sm:$0xff]  ;;  %v5601_v35 = vld [vmem:[%s7579_s13 + $0x60] sm:$0xff]  ;;  %v5326_v20 = vld [vmem:[%s10119_s7 + $0x38] sm:$0xff] }
 0xd8c   : > { %5255 = vperm.xlu1 %7430, %v5210_v5   ;;  %5249 = vperm.xlu0 %7429, %v5208_v53   ;;  %v5602_v6 = vld [vmem:[%s7579_s13 + $0x68] sm:$0xff]  ;;  %v5325_v42 = vld [vmem:[%s10119_s7 + $0x30] sm:$0xff]  ;;  %v5204_v44 = vld [vmem:[%s10118_s18 + $0x38] sm:$0xff] }
 0xd8d   : > { %v5439_v51 = vld [vmem:[#allocation3] sm:$0xff]  ;;  %v5440_v54 = vld [vmem:[#allocation3 + $0x8] sm:$0xff]  ;;  %v5604_v3 = vld [vmem:[%s7579_s13 + $0x78] sm:$0xff] }
 0xd8e   : > { %v5441_v41 = vpack.c.bf16 %v5440_v54, %v5439_v51  ;;  %v5205_v38 = vld [vmem:[%s10118_s18 + $0x40] sm:$0xff]  ;;  %v5603_v28 = vld [vmem:[%s7579_s13 + $0x70] sm:$0xff]  ;;  %v5328_v40 = vld [vmem:[%s10119_s7 + $0x48] sm:$0xff] }
 0xd8f   : > { %v5327_v63 = vld [vmem:[%s10119_s7 + $0x40] sm:$0xff]  ;;  %v5206_v47 = vld [vmem:[%s10118_s18 + $0x48] sm:$0xff]  ;;  %v5330_v50 = vld [vmem:[%s10119_s7 + $0x58] sm:$0xff]  ;;  %s10124_s18 = sld [smem:[#allocation16_spill]] }
 0xd90   : > { %6995 = vmatpush.bf16.msra.mxu2 %v5441_v41  ;;  %5474 = vmatpush.bf16.msra.mxu0 %v5441_v41  ;;  %v5331_v55 = vld [vmem:[%s10119_s7 + $0x60] sm:$0xff]  ;;  %v5329_v16 = vld [vmem:[%s10119_s7 + $0x50] sm:$0xff]  ;;  %v5334_v32 = vld [vmem:[%s10119_s7 + $0x78] sm:$0xff] }
 0xd91   : > { %5547 = vmatpush.bf16.msra.mxu1 %v5441_v41  ;;  %v5333_v57 = vld [vmem:[%s10119_s7 + $0x70] sm:$0xff]  ;;  %v5332_v37 = vld [vmem:[%s10119_s7 + $0x68] sm:$0xff]  ;;  %s10125_s7 = sld [smem:[#allocation10_spill]] }
 0xd92   : > { %v5743_v53 = vld [vmem:[%s10120_s1 + $0x10] sm:$0xff] }
 0xd93   : > { %5618 = vperm.xlu2 %7431, %v5591_v21   ;;  %v5744_v21 = vld [vmem:[%s10120_s1 + $0x18] sm:$0xff]  ;;  %v5835_v24 = vld [vmem:[%s10123_s14 + $0x10] sm:$0xff] }
 0xd94   : > { %5613 = vperm.xlu1 %7430, %v5590_v17   ;;  %5608 = vperm.xlu0 %7429, %v5589_v39   ;;  %v5754_v17 = vpack.c.bf16 %v5744_v21, %v5743_v53 }
 0xd96   : > { %5790 = vmatpush.bf16.msrb.mxu2 %v5754_v17 }
 0xd9b   : > { %5633 = vperm.xlu2 %7431, %v5594_v48  }
 0xd9c   : > { %5628 = vperm.xlu1 %7430, %v5593_v56   ;;  %5623 = vperm.xlu0 %7429, %v5592_v29  }
 0xda3   : > { %5216 = vperm.xlu2 %7431, %v5197_v34   ;;  %v5741_v34 = vld [vmem:[%s10120_s1] sm:$0xff] }
 0xda4   : > { %5643 = vperm.xlu1 %7430, %v5596_v19   ;;  %5638 = vperm.xlu0 %7429, %v5595_v60   ;;  %v5742_v19 = vld [vmem:[%s10120_s1 + $0x8] sm:$0xff]  ;;  %s7559_s1 = smov 32  }
 0xda5   : > { %v5753_v60 = vpack.c.bf16 %v5742_v19, %v5741_v34 }
 0xda7   : > { %5791 = vmatpush.bf16.msrb.mxu2 %v5753_v60 }
 0xdab   : > { %5339 = vperm.xlu2 %7431, %v5320_v43  }
 0xdac   : > { %5336 = vperm.xlu1 %7430, %v5319_v49   ;;  %5219 = vperm.xlu0 %7429, %v5198_v36   ;;  %v5849_v36 = vld [vmem:[#allocation2] sm:$0x3] }
 0xdad   : > { %6855 = vmatpush.msk.msra.mxu3 %vm5899_vm4, %v5849_v36 }
 0xdb3   : > { %5222 = vperm.xlu2 %7431, %v5199_v4   ;;  %v9633_v4 = vld [vmem:[%s10121_s26] ss:$0 sm:$0xff]  ;;  %s10126_s26 = sld [smem:[#allocation33_spill]] }
 0xdb4   : > { %5653 = vperm.xlu1 %7430, %v5598_v15   ;;  %5648 = vperm.xlu0 %7429, %v5597_v0  }
 0xdbb   : > { %5345 = vperm.xlu2 %7431, %v5322_v62   ;;  %v9636_v62 = vld [vmem:[%s10122_s15] ss:$0 sm:$0xff]  ;;  %s10127_s15 = sld [smem:[#allocation35_spill]] }
 0xdbc   : > { %5342 = vperm.xlu1 %7430, %v5321_v9   ;;  %5225 = vperm.xlu0 %7429, %v5200_v22  }
 0xdc3   : > { %5228 = vperm.xlu2 %7431, %v5201_v2   ;;  %v5833_v2 = vld [vmem:[%s10123_s14] sm:$0xff] }
 0xdc4   : > { %5663 = vperm.xlu1 %7430, %v5600_v26   ;;  %5658 = vperm.xlu0 %7429, %v5599_v31  }
 0xdc5   : > { %6856 = vmatmul.msk.f32.vlgmr.msra.gmra.mxu3 %vm5850_vm2, %v5833_v2 }
 0xdcb   : > { %5351 = vperm.xlu2 %7431, %v5324_v23  }
 0xdcc   : > { %5348 = vperm.xlu1 %7430, %v5323_v59   ;;  %5231 = vperm.xlu0 %7429, %v5202_v46  }
 0xdd3   : > { %5234 = vperm.xlu2 %7431, %v5203_v12  }
 0xdd4   : > { %5673 = vperm.xlu1 %7430, %v5602_v6   ;;  %5668 = vperm.xlu0 %7429, %v5601_v35  }
 0xddb   : > { %5357 = vperm.xlu2 %7431, %v5326_v20  }
 0xddc   : > { %5354 = vperm.xlu1 %7430, %v5325_v42   ;;  %5237 = vperm.xlu0 %7429, %v5204_v44   ;;  %v5834_v44 = vld [vmem:[%s10123_s14 + $0x8] sm:$0xff] }
 0xddd   : > { %v9590_v8 = vpop.permute.xlu2 %5258  ;;  %6857 = vmatmul.msk.f32.gmra.mxu3 %vm5850_vm2, %v5834_v44 }
 0xdde   : > { %vm5277_vm7 = vcmp.eq.s32.totalorder %v9590_v8, %v9608_v18 }
 0xddf   : > { %v6813_v6 = vsel %vm5277_vm7, 1.0, %v7558_v11 }
 0xde3   : > { %5240 = vperm.xlu2 %7431, %v5205_v38  }
 0xde4   : > { %5683 = vperm.xlu1 %7430, %v5604_v3   ;;  %5678 = vperm.xlu0 %7429, %v5603_v28  }
 0xde5   : > { %v9595_v33 = vpop.permute.xlu2 %5261  ;;  %6858 = vmatmul.msk.f32.gmra.mxu3 %vm5850_vm2, %v5835_v24 }
 0xde6   : > { %vm5278_vm15 = vcmp.eq.s32.totalorder %v9595_v33, %v9608_v18 }
 0xde7   : > { %v6814_v35 = vsel %vm5278_vm15, 1.0, %v7558_v11 }
 0xde8   : > { %v5318_v38 = vpack.c.bf16 %v6814_v35, %v6813_v6 }
 0xdeb   : > { %5363 = vperm.xlu2 %7431, %v5328_v40  }
 0xdec   : > { %5360 = vperm.xlu1 %7430, %v5327_v63   ;;  %5243 = vperm.xlu0 %7429, %v5206_v47  }
 0xded   : > { %v9600_v61 = vpop.permute.xlu2 %5618 }
 0xdee   : > { %v5691_v19 = vmul.f32 %v9633_v4, %v9600_v61 }
 0xdf3   : > { %5372 = vperm.xlu2 %7431, %v5331_v55  }
 0xdf4   : > { %5369 = vperm.xlu1 %7430, %v5330_v50   ;;  %5366 = vperm.xlu0 %7429, %v5329_v16  }
 0xdf5   : > { %v9605_v1 = vpop.permute.xlu2 %5633 }
 0xdf6   : > { %v5253_v58 = vpop.permute.xlu1 %5252  ;;  %v5247_v45 = vpop.permute.xlu0 %5246 }
 0xdf7   : > { %vm5273_vm0 = vcmp.eq.s32.totalorder %v5247_v45, %v9608_v18  ;;  %vm5275_vm1 = vcmp.eq.s32.totalorder %v5253_v58, %v9608_v18 }
 0xdf8   : > { %v6809_v7 = vsel %vm5273_vm0, 1.0, %v7558_v11  ;;  %v6811_v39 = vsel %vm5275_vm1, 1.0, %v7558_v11 }
 0xdfb   : > { %5381 = vperm.xlu2 %7431, %v5334_v32  }
 0xdfc   : > { %5378 = vperm.xlu1 %7430, %v5333_v57   ;;  %5375 = vperm.xlu0 %7429, %v5332_v37  }
 0xdfd   : > { %v5217_v52 = vpop.permute.xlu2 %5216 }
 0xdfe   : > { %v5256_v30 = vpop.permute.xlu1 %5255  ;;  %v5250_v27 = vpop.permute.xlu0 %5249  ;;  %vm5263_vm14 = vcmp.eq.s32.totalorder %v5217_v52, %v9608_v18 }
 0xdff   : > { %vm5274_vm5 = vcmp.eq.s32.totalorder %v5250_v27, %v9608_v18  ;;  %vm5276_vm10 = vcmp.eq.s32.totalorder %v5256_v30, %v9608_v18  ;;  %v6799_v8 = vsel %vm5263_vm14, 1.0, %v7558_v11 }
 0xe00   : > { %v6810_v14 = vsel %vm5274_vm5, 1.0, %v7558_v11  ;;  %v6812_v48 = vsel %vm5276_vm10, 1.0, %v7558_v11  ;;  %vm5759_vm5 = vcmask 261120  }
 0xe01   : > { %v5316_v10 = vpack.c.bf16 %v6810_v14, %v6809_v7  ;;  %v5317_v43 = vpack.c.bf16 %v6812_v48, %v6811_v39 }
 0xe03   : > { %6836 = vmatmul.msk.bf16.vlgmr.msra.gmra.mxu2 %vm5442_vm6, %v5316_v10 }
 0xe05   : > { %v5340_v5 = vpop.permute.xlu2 %5339 }
 0xe06   : > { %v5614_v25 = vpop.permute.xlu1 %5613  ;;  %v5609_v13 = vpop.permute.xlu0 %5608  ;;  %vm5384_vm8 = vcmp.eq.s32.totalorder %v5340_v5, %v9608_v18 }
 0xe07   : > { %v6816_v51 = vsel %vm5384_vm8, 1.0, %v7558_v11  ;;  %v5690_v33 = vmul.f32 %v9633_v4, %v5614_v25  ;;  %v5689_v40 = vmul.f32 %v9633_v4, %v5609_v13  ;;  %v5836_v13 = vld [vmem:[%s10123_s14 + $0x18] sm:$0xff] }
 0xe08   : > { %6859 = vmatmul.msk.f32.gmra.mxu3 %vm5850_vm2, %v5836_v13 }
 0xe09   : > { %v5710_v58 = vadd.f32 %v9636_v62, %v5690_v33  ;;  %v5709_v45 = vadd.f32 %v9636_v62, %v5689_v40 }
 0xe0b   : > { %v5726_v27 = vmax.f32 %v5710_v58, 0.0  ;;  %v5725_v52 = vmax.f32 %v5709_v45, 0.0 }
 0xe0d   : > { %v9629_v49 = vpop.permute.xlu2 %5222  ;;  %v5745_v17 = vpack.c.bf16 %v5726_v27, %v5725_v52  ;;  %v5840_v52 = vld [vmem:[%s10123_s14 + $0x38] sm:$0xff] }
 0xe0e   : > { %v9623_v56 = vpop.permute.xlu1 %5628  ;;  %v9625_v29 = vpop.permute.xlu0 %5623  ;;  %vm5265_vm3 = vcmp.eq.s32.totalorder %v9629_v49, %v9608_v18 }
 0xe0f   : > { %v6801_v25 = vsel %vm5265_vm3, 1.0, %v7558_v11  ;;  %v5692_v60 = vmul.f32 %v9633_v4, %v9625_v29 }
 0xe13   : > { %6837 = vmatmul.msk.bf16.gmra.mxu2 %vm5442_vm6, %v5317_v43 }
 0xe15   : > { %v5346_v46 = vpop.permute.xlu2 %5345 }
 0xe16   : > { %v5644_v15 = vpop.permute.xlu1 %5643  ;;  %v5639_v0 = vpop.permute.xlu0 %5638  ;;  %vm5386_vm13 = vcmp.eq.s32.totalorder %v5346_v46, %v9608_v18 }
 0xe17   : > { %v5696_v9 = vmul.f32 %v9633_v4, %v5644_v15  ;;  %v5695_v22 = vmul.f32 %v9633_v4, %v5639_v0  ;;  %v6818_v5 = vsel %vm5386_vm13, 1.0, %v7558_v11  ;;  %v5837_v0 = vld [vmem:[%s10123_s14 + $0x20] sm:$0xff] }
 0xe18   : > { %6860 = vmatmul.msk.f32.gmra.mxu3 %vm5850_vm2, %v5837_v0 }
 0xe19   : > { %v5716_v26 = vadd.f32 %v9636_v62, %v5696_v9  ;;  %v5715_v31 = vadd.f32 %v9636_v62, %v5695_v22  ;;  %v5711_v9 = vadd.f32 %v9636_v62, %v5691_v19  ;;  %v5712_v22 = vadd.f32 %v9636_v62, %v5692_v60 }
 0xe1b   : > { %v5732_v23 = vmax.f32 %v5716_v26, 0.0  ;;  %v5731_v59 = vmax.f32 %v5715_v31, 0.0 }
 0xe1d   : > { %v9650_v12 = vpack.c.bf16 %v5732_v23, %v5731_v59  ;;  %v5229_v55 = vpop.permute.xlu2 %5228  ;;  %v5727_v23 = vmax.f32 %v5711_v9, 0.0  ;;  %v5728_v59 = vmax.f32 %v5712_v22, 0.0  ;;  %v5842_v9 = vld [vmem:[%s10123_s14 + $0x48] sm:$0xff] }
 0xe1e   : > { %v5337_v20 = vpop.permute.xlu1 %5336  ;;  %v5220_v42 = vpop.permute.xlu0 %5219  ;;  %vm5267_vm1 = vcmp.eq.s32.totalorder %v5229_v55, %v9608_v18 }
 0xe1f   : > { %vm5383_vm11 = vcmp.eq.s32.totalorder %v5337_v20, %v9608_v18  ;;  %vm5264_vm12 = vcmp.eq.s32.totalorder %v5220_v42, %v9608_v18  ;;  %v5838_v20 = vld [vmem:[%s10123_s14 + $0x28] sm:$0xff]  ;;  %v6803_v42 = vsel %vm5267_vm1, 1.0, %v7558_v11 }
 0xe20   : > { %v6815_v54 = vsel %vm5383_vm11, 1.0, %v7558_v11  ;;  %v6800_v41 = vsel %vm5264_vm12, 1.0, %v7558_v11  ;;  %6861 = vmatmul.msk.f32.gmra.mxu3 %vm5850_vm2, %v5838_v20  ;;  %v5844_v20 = vld [vmem:[%s10123_s14 + $0x58] sm:$0xff] }
 0xe21   : > { %v5431_v3 = vpack.c.bf16 %v6816_v51, %v6815_v54  ;;  %v5311_v28 = vpack.c.bf16 %v6800_v41, %v6799_v8 }
 0xe23   : > { %6831 = vmatmul.msk.bf16.vlgmr.msra.gmra.mxu0 %vm5442_vm6, %v5311_v28  ;;  %6838 = vmatmul.msk.bf16.gmra.mxu2 %vm5442_vm6, %v5318_v38  ;;  %v5746_v38 = vpack.c.bf16 %v5728_v59, %v5727_v23  ;;  %v5693_v28 = vmul.f32 %v9633_v4, %v9623_v56  ;;  %v5843_v59 = vld [vmem:[%s10123_s14 + $0x50] sm:$0xff] }
 0xe24   : > { %6839 = vmatmul.msk.bf16.vlgmr.msra.gmra.mxu1 %vm5442_vm6, %v5431_v3  ;;  %v5694_v3 = vmul.f32 %v9633_v4, %v9605_v1 }
 0xe25   : > { %v5352_v39 = vpop.permute.xlu2 %5351  ;;  %v5713_v1 = vadd.f32 %v9636_v62, %v5693_v28 }
 0xe26   : > { %v5654_v63 = vpop.permute.xlu1 %5653  ;;  %v5649_v47 = vpop.permute.xlu0 %5648  ;;  %vm5388_vm10 = vcmp.eq.s32.totalorder %v5352_v39, %v9608_v18  ;;  %v5841_v39 = vld [vmem:[%s10123_s14 + $0x40] sm:$0xff] }
 0xe27   : > { %v5698_v50 = vmul.f32 %v9633_v4, %v5654_v63  ;;  %v5697_v16 = vmul.f32 %v9633_v4, %v5649_v47  ;;  %v6820_v44 = vsel %vm5388_vm10, 1.0, %v7558_v11 }
 0xe29   : > { %v5718_v32 = vadd.f32 %v9636_v62, %v5698_v50  ;;  %v5717_v57 = vadd.f32 %v9636_v62, %v5697_v16  ;;  %v5839_v50 = vld [vmem:[%s10123_s14 + $0x30] sm:$0xff]  ;;  %v5714_v16 = vadd.f32 %v9636_v62, %v5694_v3 }
 0xe2a   : > { %6862 = vmatmul.msk.f32.gmra.mxu3 %vm5850_vm2, %v5839_v50 }
 0xe2b   : > { %v5734_v37 = vmax.f32 %v5718_v32, 0.0  ;;  %v5733_v30 = vmax.f32 %v5717_v57, 0.0  ;;  %v5730_v32 = vmax.f32 %v5714_v16, 0.0  ;;  %v5729_v57 = vmax.f32 %v5713_v1, 0.0 }
 0xe2d   : > { %v9678_v7 = vpack.c.bf16 %v5734_v37, %v5733_v30  ;;  %v5235_v26 = vpop.permute.xlu2 %5234 }
 0xe2e   : > { %v5343_v14 = vpop.permute.xlu1 %5342  ;;  %v5226_v10 = vpop.permute.xlu0 %5225  ;;  %vm5269_vm15 = vcmp.eq.s32.totalorder %v5235_v26, %v9608_v18 }
 0xe2f   : > { %vm5385_vm9 = vcmp.eq.s32.totalorder %v5343_v14, %v9608_v18  ;;  %vm5266_vm0 = vcmp.eq.s32.totalorder %v5226_v10, %v9608_v18  ;;  %v6805_v14 = vsel %vm5269_vm15, 1.0, %v7558_v11 }
 0xe30   : > { %v6817_v53 = vsel %vm5385_vm9, 1.0, %v7558_v11  ;;  %v6802_v21 = vsel %vm5266_vm0, 1.0, %v7558_v11 }
 0xe31   : > { %v5432_v48 = vpack.c.bf16 %v6818_v5, %v6817_v53  ;;  %v5312_v34 = vpack.c.bf16 %v6802_v21, %v6801_v25 }
 0xe32   : > { %6863 = vmatmul.msk.f32.gmra.mxu3 %vm5850_vm2, %v5840_v52 }
 0xe33   : > { %6832 = vmatmul.msk.bf16.gmra.mxu0 %vm5442_vm6, %v5312_v34  ;;  %6847 = vmatmul.msk.bf16.vlgmr.msrb.gmra.mxu2 %vm5759_vm5, %v5745_v17  ;;  %v5747_v17 = vpack.c.bf16 %v5730_v32, %v5729_v57  ;;  %v9812_v57 = vld [vmem:[%s10124_s18] ss:$0 sm:$0xff] }
 0xe34   : > { %6840 = vmatmul.msk.bf16.gmra.mxu1 %vm5442_vm6, %v5432_v48 }
 0xe35   : > { %v5358_v33 = vpop.permute.xlu2 %5357 }
 0xe36   : > { %v5664_v43 = vpop.permute.xlu1 %5663  ;;  %v5659_v49 = vpop.permute.xlu0 %5658  ;;  %vm5390_vm14 = vcmp.eq.s32.totalorder %v5358_v33, %v9608_v18  ;;  %v5847_v33 = vld [vmem:[%s10123_s14 + $0x70] sm:$0xff] }
 0xe37   : > { %v5700_v36 = vmul.f32 %v9633_v4, %v5664_v43  ;;  %v5699_v15 = vmul.f32 %v9633_v4, %v5659_v49  ;;  %v6822_v10 = vsel %vm5390_vm14, 1.0, %v7558_v11 }
 0xe39   : > { %v5720_v61 = vadd.f32 %v9636_v62, %v5700_v36  ;;  %v5719_v2 = vadd.f32 %v9636_v62, %v5699_v15 }
 0xe3a   : > { %6864 = vmatmul.msk.f32.gmra.mxu3 %vm5850_vm2, %v5841_v39 }
 0xe3b   : > { %v5736_v29 = vmax.f32 %v5720_v61, 0.0  ;;  %v5735_v31 = vmax.f32 %v5719_v2, 0.0 }
 0xe3d   : > { %v9705_v46 = vpack.c.bf16 %v5736_v29, %v5735_v31  ;;  %v5241_v25 = vpop.permute.xlu2 %5240 }
 0xe3e   : > { %v5349_v6 = vpop.permute.xlu1 %5348  ;;  %v5232_v35 = vpop.permute.xlu0 %5231  ;;  %vm5271_vm12 = vcmp.eq.s32.totalorder %v5241_v25, %v9608_v18 }
 0xe3f   : > { %vm5387_vm4 = vcmp.eq.s32.totalorder %v5349_v6, %v9608_v18  ;;  %vm5268_vm7 = vcmp.eq.s32.totalorder %v5232_v35, %v9608_v18 }
 0xe40   : > { %v6819_v8 = vsel %vm5387_vm4, 1.0, %v7558_v11  ;;  %v6804_v51 = vsel %vm5268_vm7, 1.0, %v7558_v11 }
 0xe41   : > { %v5433_v54 = vpack.c.bf16 %v6820_v44, %v6819_v8  ;;  %v5313_v41 = vpack.c.bf16 %v6804_v51, %v6803_v42  ;;  %v5845_v8 = vld [vmem:[%s10123_s14 + $0x60] sm:$0xff] }
 0xe42   : > { %6865 = vmatmul.msk.f32.gmra.mxu3 %vm5850_vm2, %v5842_v9 }
 0xe43   : > { %6833 = vmatmul.msk.bf16.gmra.mxu0 %vm5442_vm6, %v5313_v41  ;;  %6848 = vmatmul.msk.bf16.gmra.mxu2 %vm5759_vm5, %v5746_v38  ;;  %v5846_v41 = vld [vmem:[%s10123_s14 + $0x68] sm:$0xff] }
 0xe44   : > { %6841 = vmatmul.msk.bf16.gmra.mxu1 %vm5442_vm6, %v5433_v54 }
 0xe45   : > { %v5364_v36 = vpop.permute.xlu2 %5363 }
 0xe46   : > { %v5674_v40 = vpop.permute.xlu1 %5673  ;;  %v5669_v63 = vpop.permute.xlu0 %5668  ;;  %vm5392_vm3 = vcmp.eq.s32.totalorder %v5364_v36, %v9608_v18 }
 0xe47   : > { %v5702_v47 = vmul.f32 %v9633_v4, %v5674_v40  ;;  %v5701_v55 = vmul.f32 %v9633_v4, %v5669_v63 }
 0xe49   : > { %v5722_v24 = vadd.f32 %v9636_v62, %v5702_v47  ;;  %v5721_v58 = vadd.f32 %v9636_v62, %v5701_v55  ;;  %v5848_v55 = vld [vmem:[%s10123_s14 + $0x78] sm:$0xff]  ;;  %s10128_s14 = sld [smem:[#allocation34_spill]] }
 0xe4a   : > { %6866 = vmatmul.msk.f32.gmra.mxu3 %vm5850_vm2, %v5843_v59 }
 0xe4b   : > { %v5738_v56 = vmax.f32 %v5722_v24, 0.0  ;;  %v5737_v45 = vmax.f32 %v5721_v58, 0.0 }
 0xe4d   : > { %v9732_v37 = vpack.c.bf16 %v5738_v56, %v5737_v45  ;;  %v5373_v54 = vpop.permute.xlu2 %5372 }
 0xe4e   : > { %v5355_v30 = vpop.permute.xlu1 %5354  ;;  %v5238_v27 = vpop.permute.xlu0 %5237  ;;  %vm5395_vm4 = vcmp.eq.s32.totalorder %v5373_v54, %v9608_v18 }
 0xe4f   : > { %vm5389_vm8 = vcmp.eq.s32.totalorder %v5355_v30, %v9608_v18  ;;  %vm5270_vm11 = vcmp.eq.s32.totalorder %v5238_v27, %v9608_v18  ;;  %v6927_v30 = vld [vmem:[%s10125_s7] sm:$0xff]  }
 0xe50   : > { %v6821_v13 = vsel %vm5389_vm8, 1.0, %v7558_v11  ;;  %v6806_v5 = vsel %vm5270_vm11, 1.0, %v7558_v11  ;;  %v6928_v52 = vunpack.c.l.bf16 %v6927_v30 }
 0xe51   : > { %v5434_v53 = vpack.c.bf16 %v6822_v10, %v6821_v13  ;;  %v5314_v21 = vpack.c.bf16 %v6806_v5, %v6805_v14  ;;  %v6929_v14 = vunpack.c.h.bf16 %v6927_v30 }
 0xe52   : > { %6867 = vmatmul.msk.f32.gmra.mxu3 %vm5850_vm2, %v5844_v20 }
 0xe53   : > { %6834 = vmatmul.msk.bf16.gmra.mxu0 %vm5442_vm6, %v5314_v21  ;;  %6849 = vmatmul.msk.bf16.gmra.mxu2 %vm5759_vm5, %v5747_v17 }
 0xe54   : > { %6842 = vmatmul.msk.bf16.gmra.mxu1 %vm5442_vm6, %v5434_v53 }
 0xe55   : > { %v5382_v63 = vpop.permute.xlu2 %5381 }
 0xe56   : > { %v5684_v48 = vpop.permute.xlu1 %5683  ;;  %v5679_v34 = vpop.permute.xlu0 %5678  ;;  %vm5398_vm15 = vcmp.eq.s32.totalorder %v5382_v63, %v9608_v18 }
 0xe57   : > { %v5704_v19 = vmul.f32 %v9633_v4, %v5684_v48  ;;  %v5703_v60 = vmul.f32 %v9633_v4, %v5679_v34  ;;  %v6807_v4 = vsel %vm5271_vm12, 1.0, %v7558_v11  ;;  %v6965_v34 = vld [vmem:[%s10125_s7 + $0x8] sm:$0xff]  }
 0xe59   : > { %v5724_v43 = vadd.f32 %v9636_v62, %v5704_v19  ;;  %v5723_v49 = vadd.f32 %v9636_v62, %v5703_v60  ;;  %v6824_v62 = vsel %vm5392_vm3, 1.0, %v7558_v11  ;;  %v6932_v60 = vunpack.c.l.bf16 %v6965_v34 }
 0xe5a   : > { %6868 = vmatmul.msk.f32.gmra.mxu3 %vm5850_vm2, %v5845_v8 }
 0xe5b   : > { %v5740_v15 = vmax.f32 %v5724_v43, 0.0  ;;  %v5739_v0 = vmax.f32 %v5723_v49, 0.0  ;;  %v6933_v49 = vunpack.c.h.bf16 %v6965_v34 }
 0xe5d   : > { %v5752_v22 = vpack.c.bf16 %v5740_v15, %v5739_v0 }
 0xe5e   : > { %v5361_v61 = vpop.permute.xlu1 %5360  ;;  %v5244_v2 = vpop.permute.xlu0 %5243 }
 0xe5f   : > { %vm5391_vm13 = vcmp.eq.s32.totalorder %v5361_v61, %v9608_v18  ;;  %vm5272_vm9 = vcmp.eq.s32.totalorder %v5244_v2, %v9608_v18 }
 0xe60   : > { %v6823_v26 = vsel %vm5391_vm13, 1.0, %v7558_v11  ;;  %v6808_v29 = vsel %vm5272_vm9, 1.0, %v7558_v11 }
 0xe61   : > { %v5435_v31 = vpack.c.bf16 %v6824_v62, %v6823_v26  ;;  %v5315_v23 = vpack.c.bf16 %v6808_v29, %v6807_v4  ;;  %v6966_v26 = vld [vmem:[%s10125_s7 + $0x10] sm:$0xff]  }
 0xe62   : > { %6869 = vmatmul.msk.f32.gmra.mxu3 %vm5850_vm2, %v5846_v41 }
 0xe63   : > { %6835 = vmatmul.msk.bf16.gmra.mxu0 %vm5442_vm6, %v5315_v23  ;;  %6850 = vmatmul.msk.bf16.gmra.mxu2 %vm5759_vm5, %v9650_v12  ;;  %v6937_v23 = vunpack.c.h.bf16 %v6966_v26 }
 0xe64   : > { %6843 = vmatmul.msk.bf16.gmra.mxu1 %vm5442_vm6, %v5435_v31  ;;  %v6936_v31 = vunpack.c.l.bf16 %v6966_v26 }
 0xe66   : > { %v5370_v6 = vpop.permute.xlu1 %5369  ;;  %v5367_v35 = vpop.permute.xlu0 %5366 }
 0xe67   : > { %vm5394_vm0 = vcmp.eq.s32.totalorder %v5370_v6, %v9608_v18  ;;  %vm5393_vm1 = vcmp.eq.s32.totalorder %v5367_v35, %v9608_v18 }
 0xe68   : > { %v6826_v42 = vsel %vm5394_vm0, 1.0, %v7558_v11  ;;  %v6825_v44 = vsel %vm5393_vm1, 1.0, %v7558_v11 }
 0xe69   : > { %v5436_v12 = vpack.c.bf16 %v6826_v42, %v6825_v44  ;;  %v6134_v44 = vld [vmem:[%s10126_s26 + $0x30] sm:$0xff] }
 0xe6a   : > { %6870 = vmatmul.msk.f32.gmra.mxu3 %vm5850_vm2, %v5847_v33 }
 0xe6e   : > { %v5376_v51 = vpop.permute.xlu0 %5375  ;;  %v5379_v40 = vpop.permute.xlu1 %5378 }
 0xe6f   : > { %vm5396_vm10 = vcmp.eq.s32.totalorder %v5376_v51, %v9608_v18  ;;  %vm5397_vm7 = vcmp.eq.s32.totalorder %v5379_v40, %v9608_v18  ;;  %v5920_v18 = vpop.f32.mrf.mxu3 }
 0xe70   : > { %v6828_v38 = vsel %vm5396_vm10, 1.0, %v7558_v11  ;;  %v6829_v50 = vsel %vm5397_vm7, 1.0, %v7558_v11 }
 0xe72   : > { %6871 = vmatmul.msk.f32.gmra.mxu3 %vm5850_vm2, %v5848_v55  ;;  %vm6152_vm2 = vcmask 523264  }
 0xe73   : > { %6851 = vmatmul.msk.bf16.gmra.mxu2 %vm5759_vm5, %v9678_v7  ;;  %v6827_v7 = vsel %vm5395_vm4, 1.0, %v7558_v11 }
 0xe74   : > { %6844 = vmatmul.msk.bf16.gmra.mxu1 %vm5442_vm6, %v5436_v12  ;;  %v5437_v3 = vpack.c.bf16 %v6828_v38, %v6827_v7  ;;  %v6135_v12 = vld [vmem:[%s10126_s26 + $0x38] sm:$0xff] }
 0xe75   : > { %v6147_v54 = vpack.c.bf16 %v6135_v12, %v6134_v44  ;;  %v6967_v7 = vld [vmem:[%s10125_s7 + $0x18] sm:$0xff]   ;;  %v6129_v44 = vld [vmem:[%s10126_s26 + $0x8] sm:$0xff] }
 0xe76   : > { %v6940_v40 = vunpack.c.l.bf16 %v6967_v7  ;;  %v6941_v63 = vunpack.c.h.bf16 %v6967_v7 }
 0xe77   : > { %v5923_v58 = vpop.f32.mrf.mxu3  ;;  %6181 = vmatpush.bf16.msrb.mxu3 %v6147_v54 }
 0xe7f   : > { %v5926_v32 = vpop.f32.mrf.mxu3 }
 0xe83   : > { %6852 = vmatmul.msk.bf16.gmra.mxu2 %vm5759_vm5, %v9705_v46  ;;  %v6830_v46 = vsel %vm5398_vm15, 1.0, %v7558_v11 }
 0xe84   : > { %6845 = vmatmul.msk.bf16.gmra.mxu1 %vm5442_vm6, %v5437_v3  ;;  %v5438_v16 = vpack.c.bf16 %v6830_v46, %v6829_v50 }
 0xe86   : > { %v9787_v28 = vpop.f32.mrf.mxu2 }
 0xe8e   : > { %v9793_v47 = vpop.f32.mrf.mxu2 }
 0xe93   : > { %6853 = vmatmul.msk.bf16.gmra.mxu2 %vm5759_vm5, %v9732_v37  ;;  %v5929_v37 = vpop.f32.mrf.mxu3 }
 0xe94   : > { %6846 = vmatmul.msk.bf16.gmra.mxu1 %vm5442_vm6, %v5438_v16 }
 0xe96   : > { %v9802_v1 = vpop.f32.mrf.mxu2 }
 0xe9b   : > { %v5932_v53 = vpop.f32.mrf.mxu3 }
 0xe9e   : > { %v9804_v24 = vpop.f32.mrf.mxu2 }
 0xea0   : > { %v5476_v7 = vpop.f32.mrf.mxu0 }
 0xea3   : > { %6854 = vmatmul.msk.bf16.gmra.mxu2 %vm5759_vm5, %v5752_v22  ;;  %v5935_v43 = vpop.f32.mrf.mxu3 }
 0xea6   : > { %v9807_v56 = vpop.f32.mrf.mxu2 }
 0xead   : > { %v5938_v62 = vpop.f32.mrf.mxu3 }
 0xeae   : > { %v9809_v45 = vpop.f32.mrf.mxu2 }
 0xeb5   : > { %v5941_v20 = vpop.f32.mrf.mxu3 }
 0xeb6   : > { %v5793_v11 = vpop.f32.mrf.mxu2 }
 0xeb7   : > { %v5794_v27 = vadd.f32 %v9812_v57, %v5793_v11 }
 0xeb9   : > { %v6000_v25 = vmul.f32 %v6928_v52, %v5794_v27 }
 0xebb   : > { %v6016_v21 = vadd.f32 %v6000_v25, %v5920_v18 }
 0xebd   : > { %v5944_v3 = vpop.f32.mrf.mxu3 }
 0xebe   : > { %v5795_v10 = vpop.f32.mrf.mxu2 }
 0xebf   : > { %v5796_v13 = vadd.f32 %v9812_v57, %v5795_v10 }
 0xec1   : > { %v6001_v5 = vmul.f32 %v6929_v14, %v5796_v13 }
 0xec3   : > { %v6017_v17 = vadd.f32 %v6001_v5, %v5923_v58 }
 0xec5   : > { %v7432_v39 = vpack.i.bf16 %v6017_v17, %v6016_v21  ;;  %v6133_v21 = vld [vmem:[%s10126_s26 + $0x28] sm:$0xff] }
 0xec6   : > { %v5798_v48 = vpop.f32.mrf.mxu2 }
 0xec7   : > { %7433 = vrot.lane.b32.xlu0 %v7432_v39, %s7559_s1  ;;  %v5799_v19 = vadd.f32 %v9812_v57, %v5798_v48 }
 0xec9   : > { %v6002_v15 = vmul.f32 %v6932_v60, %v5799_v19 }
 0xecb   : > { %v6018_v22 = vadd.f32 %v6002_v15, %v5926_v32  ;;  %v5947_v32 = vpop.f32.mrf.mxu3 }
 0xece   : > { %v5800_v36 = vpop.f32.mrf.mxu2 }
 0xecf   : > { %v5801_v0 = vadd.f32 %v9812_v57, %v5800_v36 }
 0xed1   : > { %v6003_v9 = vmul.f32 %v6933_v49, %v5801_v0 }
 0xed3   : > { %v6019_v61 = vadd.f32 %v6003_v9, %v5929_v37  ;;  %v6968_v37 = vld [vmem:[%s10125_s7 + $0x20] sm:$0xff]   ;;  %v5950_v25 = vpop.f32.mrf.mxu3 }
 0xed4   : > { %v6944_v52 = vunpack.c.l.bf16 %v6968_v37  ;;  %v6945_v14 = vunpack.c.h.bf16 %v6968_v37 }
 0xed5   : > { %v7437_v2 = vpack.i.bf16 %v6019_v61, %v6018_v22 }
 0xed6   : > { %v5803_v4 = vpop.f32.mrf.mxu2 }
 0xed7   : > { %7438 = vrot.lane.b32.xlu1 %v7437_v2, %s7559_s1  ;;  %v5804_v29 = vadd.f32 %v9812_v57, %v5803_v4  ;;  %v5549_v2 = vpop.f32.mrf.mxu1 }
 0xed9   : > { %v6004_v6 = vmul.f32 %v6936_v31, %v5804_v29 }
 0xedb   : > { %v6020_v8 = vadd.f32 %v6004_v6, %v5932_v53  ;;  %v6132_v53 = vld [vmem:[%s10126_s26 + $0x20] sm:$0xff]  ;;  %v5953_v49 = vpop.f32.mrf.mxu3  ;;  %v6131_v6 = vld [vmem:[%s10126_s26 + $0x18] sm:$0xff] }
 0xedc   : > { %v6146_v17 = vpack.c.bf16 %v6133_v21, %v6132_v53 }
 0xede   : > { %v5805_v59 = vpop.f32.mrf.mxu2  ;;  %6182 = vmatpush.bf16.msrb.mxu3 %v6146_v17 }
 0xedf   : > { %v5806_v35 = vadd.f32 %v9812_v57, %v5805_v59  ;;  %v6130_v59 = vld [vmem:[%s10126_s26 + $0x10] sm:$0xff]  ;;  %v5551_v12 = vpop.f32.mrf.mxu1 }
 0xee1   : > { %v6005_v42 = vmul.f32 %v6937_v23, %v5806_v35  ;;  %v6145_v35 = vpack.c.bf16 %v6131_v6, %v6130_v59 }
 0xee3   : > { %v6021_v51 = vadd.f32 %v6005_v42, %v5935_v43  ;;  %v6969_v43 = vld [vmem:[%s10125_s7 + $0x28] sm:$0xff]   ;;  %6183 = vmatpush.bf16.msrb.mxu3 %v6145_v35  ;;  %v6128_v42 = vld [vmem:[%s10126_s26] sm:$0xff] }
 0xee4   : > { %v6948_v15 = vunpack.c.l.bf16 %v6969_v43  ;;  %v6949_v0 = vunpack.c.h.bf16 %v6969_v43  ;;  %v6144_v54 = vpack.c.bf16 %v6129_v44, %v6128_v42 }
 0xee5   : > { %v7442_v41 = vpack.i.bf16 %v6021_v51, %v6020_v8 }
 0xee6   : > { %v5808_v38 = vpop.f32.mrf.mxu2 }
 0xee7   : > { %7443 = vrot.lane.b32.xlu2 %v7442_v41, %s7559_s1  ;;  %v5809_v33 = vadd.f32 %v9812_v57, %v5808_v38  ;;  %v6359_v41 = vld [vmem:[#allocation7] sm:$0x1]  ;;  %6184 = vmatpush.bf16.msrb.mxu3 %v6144_v54 }
 0xee9   : > { %v6006_v50 = vmul.f32 %v6940_v40, %v5809_v33 }
 0xeeb   : > { %v6022_v18 = vadd.f32 %v6006_v50, %v5938_v62  ;;  %v5956_v62 = vpop.f32.mrf.mxu3 }
 0xeee   : > { %v5810_v55 = vpop.f32.mrf.mxu2 }
 0xeef   : > { %v5811_v46 = vadd.f32 %v9812_v57, %v5810_v55 }
 0xef1   : > { %v6007_v16 = vmul.f32 %v6941_v63, %v5811_v46 }
 0xef3   : > { %v6023_v58 = vadd.f32 %v6007_v16, %v5941_v20  ;;  %v6970_v20 = vld [vmem:[%s10125_s7 + $0x30] sm:$0xff]   ;;  %v5959_v38 = vpop.f32.mrf.mxu3  ;;  %v5554_v16 = vpop.f32.mrf.mxu1 }
 0xef4   : > { %v6952_v51 = vunpack.c.l.bf16 %v6970_v20 }
 0xef5   : > { %v7447_v11 = vpack.i.bf16 %v6023_v58, %v6022_v18 }
 0xef6   : > { %v5813_v30 = vpop.f32.mrf.mxu2 }
 0xef7   : > { %7448 = vrot.lane.b32.xlu0 %v7447_v11, %s7559_s1  ;;  %v5814_v27 = vadd.f32 %v9812_v57, %v5813_v30  ;;  %v5478_v11 = vpop.f32.mrf.mxu0  ;;  %v6971_v30 = vld [vmem:[%s10125_s7 + $0x38] sm:$0xff]  }
 0xef8   : > { %v6033_v43 = vmul.f32 %v5551_v12, %v5478_v11 }
 0xef9   : > { %v6008_v13 = vmul.f32 %v6944_v52, %v5814_v27  ;;  %v6956_v27 = vunpack.c.l.bf16 %v6971_v30  ;;  %v6957_v52 = vunpack.c.h.bf16 %v6971_v30 }
 0xefb   : > { %v6024_v48 = vadd.f32 %v6008_v13, %v5944_v3  ;;  %v6953_v3 = vunpack.c.h.bf16 %v6970_v20 }
 0xefe   : > { %v5815_v10 = vpop.f32.mrf.mxu2 }
 0xeff   : > { %v5816_v5 = vadd.f32 %v9812_v57, %v5815_v10  ;;  %v5556_v10 = vpop.f32.mrf.mxu1  ;;  %v5481_v53 = vpop.f32.mrf.mxu0 }
 0xf01   : > { %v6009_v39 = vmul.f32 %v6945_v14, %v5816_v5 }
 0xf03   : > { %v6025_v34 = vadd.f32 %v6009_v39, %v5947_v32  ;;  %v5962_v32 = vpop.f32.mrf.mxu3 }
 0xf05   : > { %v7452_v19 = vpack.i.bf16 %v6025_v34, %v6024_v48 }
 0xf06   : > { %v5818_v60 = vpop.f32.mrf.mxu2 }
 0xf07   : > { %7453 = vrot.lane.b32.xlu1 %v7452_v19, %s7559_s1  ;;  %v5819_v36 = vadd.f32 %v9812_v57, %v5818_v60  ;;  %v5559_v34 = vpop.f32.mrf.mxu1  ;;  %v6032_v60 = vmul.f32 %v5549_v2, %v5476_v7 }
 0xf09   : > { %v6010_v22 = vmul.f32 %v6948_v15, %v5819_v36  ;;  %v5483_v15 = vpop.f32.mrf.mxu0 }
 0xf0b   : > { %v6026_v26 = vadd.f32 %v6010_v22, %v5950_v25  ;;  %v5965_v5 = vpop.f32.mrf.mxu3 }
 0xf0e   : > { %v5820_v9 = vpop.f32.mrf.mxu2 }
 0xf0f   : > { %v5821_v61 = vadd.f32 %v9812_v57, %v5820_v9  ;;  %v5561_v22 = vpop.f32.mrf.mxu1 }
 0xf11   : > { %v6011_v4 = vmul.f32 %v6949_v0, %v5821_v61  ;;  %v5486_v61 = vpop.f32.mrf.mxu0 }
 0xf13   : > { %v6027_v29 = vadd.f32 %v6011_v4, %v5953_v49 }
 0xf15   : > { %v7457_v31 = vpack.i.bf16 %v6027_v29, %v6026_v26  ;;  %v6035_v26 = vmul.f32 %v5556_v10, %v5483_v15 }
 0xf16   : > { %v5823_v23 = vpop.f32.mrf.mxu2 }
 0xf17   : > { %7458 = vrot.lane.b32.xlu2 %v7457_v31, %s7559_s1  ;;  %v5824_v8 = vadd.f32 %v9812_v57, %v5823_v23  ;;  %v5564_v59 = vpop.f32.mrf.mxu1 }
 0xf19   : > { %v6012_v40 = vmul.f32 %v6952_v51, %v5824_v8  ;;  %v5488_v35 = vpop.f32.mrf.mxu0  ;;  %v6036_v8 = vmul.f32 %v5559_v34, %v5486_v61 }
 0xf1a   : > { %v6037_v51 = vmul.f32 %v5561_v22, %v5488_v35 }
 0xf1b   : > { %v6028_v50 = vadd.f32 %v6012_v40, %v5956_v62  ;;  %v6034_v62 = vmul.f32 %v5554_v16, %v5481_v53 }
 0xf1e   : > { %v5825_v33 = vpop.f32.mrf.mxu2 }
 0xf1f   : > { %v5826_v63 = vadd.f32 %v9812_v57, %v5825_v33  ;;  %6362 = vperm.xlu2 %7431, %v6359_v41   ;;  %v5566_v12 = vpop.f32.mrf.mxu1 }
 0xf21   : > { %v6013_v55 = vmul.f32 %v6953_v3, %v5826_v63  ;;  %v5491_v54 = vpop.f32.mrf.mxu0 }
 0xf22   : > { %v6038_v63 = vmul.f32 %v5564_v59, %v5491_v54  ;;  %v7475_v54 = vld [vmem:[%s10128_s14] ss:$0 sm:$0xff] }
 0xf23   : > { %v6029_v46 = vadd.f32 %v6013_v55, %v5959_v38 }
 0xf25   : > { %v7462_v18 = vpack.i.bf16 %v6029_v46, %v6028_v50 }
 0xf26   : > { %v5828_v58 = vpop.f32.mrf.mxu2 }
 0xf27   : > { %7463 = vrot.lane.b32.xlu0 %v7462_v18, %s7559_s1  ;;  %v5829_v37 = vadd.f32 %v9812_v57, %v5828_v58  ;;  %v5569_v3 = vpop.f32.mrf.mxu1 }
 0xf29   : > { %v6014_v25 = vmul.f32 %v6956_v27, %v5829_v37  ;;  %v5493_v33 = vpop.f32.mrf.mxu0 }
 0xf2a   : > { %v6039_v55 = vmul.f32 %v5566_v12, %v5493_v33 }
 0xf2b   : > { %v6030_v17 = vadd.f32 %v6014_v25, %v5962_v32 }
 0xf2e   : > { %v5830_v14 = vpop.f32.mrf.mxu2 }
 0xf2f   : > { %v5831_v13 = vadd.f32 %v9812_v57, %v5830_v14  ;;  %v5571_v16 = vpop.f32.mrf.mxu1 }
 0xf31   : > { %v6015_v21 = vmul.f32 %v6957_v52, %v5831_v13  ;;  %v5496_v32 = vpop.f32.mrf.mxu0 }
 0xf32   : > { %v6040_v52 = vmul.f32 %v5569_v3, %v5496_v32 }
 0xf33   : > { %v6031_v39 = vadd.f32 %v6015_v21, %v5965_v5 }
 0xf35   : > { %v7467_v48 = vpack.i.bf16 %v6031_v39, %v6030_v17 }
 0xf37   : > { %7468 = vrot.lane.b32.xlu1 %v7467_v48, %s7559_s1  ;;  %v5574_v30 = vpop.f32.mrf.mxu1 }
 0xf38   : > { %v6042_v34 = vmul.f32 %v5574_v30, %v9787_v28 }
 0xf39   : > { %v7434_v19 = vpop.permute.xlu0 %7433  ;;  %v5498_v37 = vpop.f32.mrf.mxu0 }
 0xf3a   : > { %v7436_v49 = vunpack.i.h.bf16 %v7434_v19  ;;  %v7435_v36 = vunpack.i.l.bf16 %v7434_v19  ;;  %v6041_v14 = vmul.f32 %v5571_v16, %v5498_v37 }
 0xf3c   : > { %v6112_v0 = vsel %vm5759_vm5, %v6032_v60, %v7435_v36  ;;  %v6113_v9 = vsel %vm5759_vm5, %v6033_v43, %v7436_v49 }
 0xf3d   : > { %v6136_v57 = vpack.c.bf16 %v6113_v9, %v6112_v0 }
 0xf3f   : > { %6872 = vmatmul.msk.bf16.vlgmr.msrb.gmra.mxu3 %vm6152_vm2, %v6136_v57  ;;  %v5576_v21 = vpop.f32.mrf.mxu1 }
 0xf40   : > { %v6043_v19 = vmul.f32 %v5576_v21, %v9793_v47 }
 0xf41   : > { %v7444_v20 = vpop.permute.xlu2 %7443 }
 0xf42   : > { %v7446_v42 = vunpack.i.h.bf16 %v7444_v20  ;;  %v7445_v44 = vunpack.i.l.bf16 %v7444_v20 }
 0xf44   : > { %v6116_v41 = vsel %vm5759_vm5, %v6036_v8, %v7445_v44  ;;  %v6117_v38 = vsel %vm5759_vm5, %v6037_v51, %v7446_v42  ;;  %v6242_v42 = vld [vmem:[%s10127_s15] sm:$0xff]  ;;  %v6243_v44 = vld [vmem:[%s10127_s15 + $0x8] sm:$0xff] }
 0xf45   : > { %v6138_v7 = vpack.c.bf16 %v6117_v38, %v6116_v41  ;;  %v6254_v8 = vpack.c.bf16 %v6243_v44, %v6242_v42 }
 0xf47   : > { %v5579_v60 = vpop.f32.mrf.mxu1 }
 0xf48   : > { %v6044_v9 = vmul.f32 %v5579_v60, %v9802_v1 }
 0xf49   : > { %v7439_v4 = vpop.permute.xlu1 %7438 }
 0xf4a   : > { %v7441_v29 = vunpack.i.h.bf16 %v7439_v4  ;;  %v7440_v31 = vunpack.i.l.bf16 %v7439_v4 }
 0xf4c   : > { %v6114_v2 = vsel %vm5759_vm5, %v6034_v62, %v7440_v31  ;;  %v6115_v23 = vsel %vm5759_vm5, %v6035_v26, %v7441_v29  ;;  %v6244_v26 = vld [vmem:[%s10127_s15 + $0x10] sm:$0xff]  ;;  %v6245_v29 = vld [vmem:[%s10127_s15 + $0x18] sm:$0xff] }
 0xf4d   : > { %v6137_v6 = vpack.c.bf16 %v6115_v23, %v6114_v2  ;;  %v6255_v31 = vpack.c.bf16 %v6245_v29, %v6244_v26 }
 0xf4f   : > { %6873 = vmatmul.msk.bf16.gmra.mxu3 %vm6152_vm2, %v6137_v6  ;;  %v5581_v15 = vpop.f32.mrf.mxu1  ;;  %6290 = vmatpush.bf16.msrb.mxu0 %v6255_v31 }
 0xf50   : > { %v6045_v57 = vmul.f32 %v5581_v15, %v9804_v24 }
 0xf53   : > { %6291 = vmatpush.bf16.msrb.mxu0 %v6254_v8 }
 0xf57   : > { %v5584_v4 = vpop.f32.mrf.mxu1 }
 0xf58   : > { %v6046_v24 = vmul.f32 %v5584_v4, %v9807_v56 }
 0xf5f   : > { %6874 = vmatmul.msk.bf16.gmra.mxu3 %vm6152_vm2, %v6138_v7  ;;  %v5586_v2 = vpop.f32.mrf.mxu1 }
 0xf60   : > { %v6047_v23 = vmul.f32 %v5586_v2, %v9809_v45 }
 0xf69   : > { %v7449_v40 = vpop.permute.xlu0 %7448 }
 0xf6a   : > { %v7451_v50 = vunpack.i.h.bf16 %v7449_v40  ;;  %v7450_v46 = vunpack.i.l.bf16 %v7449_v40 }
 0xf6c   : > { %v6118_v18 = vsel %vm5759_vm5, %v6038_v63, %v7450_v46  ;;  %v6119_v58 = vsel %vm5759_vm5, %v6039_v55, %v7451_v50 }
 0xf6d   : > { %v6139_v11 = vpack.c.bf16 %v6119_v58, %v6118_v18 }
 0xf6f   : > { %6875 = vmatmul.msk.bf16.gmra.mxu3 %vm6152_vm2, %v6139_v11 }
 0xf71   : > { %v7459_v17 = vpop.permute.xlu2 %7458 }
 0xf72   : > { %v7461_v39 = vunpack.i.h.bf16 %v7459_v17  ;;  %v7460_v48 = vunpack.i.l.bf16 %v7459_v17 }
 0xf74   : > { %v6123_v43 = vsel %vm5759_vm5, %v6043_v19, %v7461_v39  ;;  %v6122_v49 = vsel %vm5759_vm5, %v6042_v34, %v7460_v48 }
 0xf75   : > { %v6141_v36 = vpack.c.bf16 %v6123_v43, %v6122_v49 }
 0xf79   : > { %v7454_v27 = vpop.permute.xlu1 %7453 }
 0xf7a   : > { %v7456_v10 = vunpack.i.h.bf16 %v7454_v27  ;;  %v7455_v25 = vunpack.i.l.bf16 %v7454_v27 }
 0xf7c   : > { %v6120_v13 = vsel %vm5759_vm5, %v6040_v52, %v7455_v25  ;;  %v6121_v5 = vsel %vm5759_vm5, %v6041_v14, %v7456_v10 }
 0xf7d   : > { %v6140_v53 = vpack.c.bf16 %v6121_v5, %v6120_v13 }
 0xf7f   : > { %6876 = vmatmul.msk.bf16.gmra.mxu3 %vm6152_vm2, %v6140_v53 }
 0xf8f   : > { %6877 = vmatmul.msk.bf16.gmra.mxu3 %vm6152_vm2, %v6141_v36 }
 0xf99   : > { %v7464_v0 = vpop.permute.xlu0 %7463 }
 0xf9a   : > { %v7466_v22 = vunpack.i.h.bf16 %v7464_v0  ;;  %v7465_v28 = vunpack.i.l.bf16 %v7464_v0 }
 0xf9c   : > { %v6124_v47 = vsel %vm5759_vm5, %v6044_v9, %v7465_v28  ;;  %v6125_v61 = vsel %vm5759_vm5, %v6045_v57, %v7466_v22 }
 0xf9d   : > { %v6142_v62 = vpack.c.bf16 %v6125_v61, %v6124_v47 }
 0xf9f   : > { %6878 = vmatmul.msk.bf16.gmra.mxu3 %vm6152_vm2, %v6142_v62 }
 0xfa9   : > { %v7469_v1 = vpop.permute.xlu1 %7468 }
 0xfaa   : > { %v7471_v59 = vunpack.i.h.bf16 %v7469_v1  ;;  %v7470_v6 = vunpack.i.l.bf16 %v7469_v1 }
 0xfac   : > { %v6126_v35 = vsel %vm5759_vm5, %v6046_v24, %v7470_v6  ;;  %v6127_v20 = vsel %vm5759_vm5, %v6047_v23, %v7471_v59 }
 0xfad   : > { %v6143_v12 = vpack.c.bf16 %v6127_v20, %v6126_v35  ;;  %v7476_v35 = vld [vmem:[%s7779_s9] ss:$0 sm:$0xff] }
 0xfaf   : > { %6879 = vmatmul.msk.bf16.gmra.mxu3 %vm6152_vm2, %v6143_v12 }
 0xfc2   : > { %v6186_v51 = vpop.f32.mrf.mxu3 }
 0xfc3   : > { %v6187_v41 = vadd.f32 %v7475_v54, %v6186_v51 }
 0xfc5   : > { %v6226_v7 = vmax.f32 %v6187_v41, 0.0 }
 0xfca   : > { %v6188_v38 = vpop.f32.mrf.mxu3 }
 0xfcb   : > { %v6189_v56 = vadd.f32 %v7475_v54, %v6188_v38 }
 0xfcd   : > { %v6227_v45 = vmax.f32 %v6189_v56, 0.0 }
 0xfcf   : > { %v6246_v3 = vpack.c.bf16 %v6227_v45, %v6226_v7 }
 0xfd1   : > { %6880 = vmatmul.msk.bf16.vlgmr.msrb.gmra.mxu0 %vm5759_vm5, %v6246_v3 }
 0xfd2   : > { %v6191_v33 = vpop.f32.mrf.mxu3 }
 0xfd3   : > { %v6192_v40 = vadd.f32 %v7475_v54, %v6191_v33 }
 0xfd5   : > { %v6228_v50 = vmax.f32 %v6192_v40, 0.0 }
 0xfda   : > { %v6193_v63 = vpop.f32.mrf.mxu3 }
 0xfdb   : > { %v6194_v55 = vadd.f32 %v7475_v54, %v6193_v63 }
 0xfdd   : > { %v6229_v46 = vmax.f32 %v6194_v55, 0.0 }
 0xfdf   : > { %v6247_v16 = vpack.c.bf16 %v6229_v46, %v6228_v50 }
 0xfe1   : > { %6881 = vmatmul.msk.bf16.gmra.mxu0 %vm5759_vm5, %v6247_v16 }
 0xfe2   : > { %v6196_v18 = vpop.f32.mrf.mxu3 }
 0xfe3   : > { %v6197_v58 = vadd.f32 %v7475_v54, %v6196_v18 }
 0xfe5   : > { %v6230_v30 = vmax.f32 %v6197_v58, 0.0 }
 0xfea   : > { %v6198_v32 = vpop.f32.mrf.mxu3 }
 0xfeb   : > { %v6199_v11 = vadd.f32 %v7475_v54, %v6198_v32 }
 0xfed   : > { %v6231_v37 = vmax.f32 %v6199_v11, 0.0 }
 0xfef   : > { %v6248_v27 = vpack.c.bf16 %v6231_v37, %v6230_v30 }
 0xff1   : > { %6882 = vmatmul.msk.bf16.gmra.mxu0 %vm5759_vm5, %v6248_v27 }
 0xff2   : > { %v6201_v52 = vpop.f32.mrf.mxu3 }
 0xff3   : > { %v6202_v14 = vadd.f32 %v7475_v54, %v6201_v52 }
 0xff5   : > { %v6232_v13 = vmax.f32 %v6202_v14, 0.0 }
 0xffa   : > { %v6203_v10 = vpop.f32.mrf.mxu3 }
 0xffb   : > { %v6204_v25 = vadd.f32 %v7475_v54, %v6203_v10 }
 0xffd   : > { %v6233_v5 = vmax.f32 %v6204_v25, 0.0 }
 0xfff   : > { %v6249_v53 = vpack.c.bf16 %v6233_v5, %v6232_v13 }
0x1001   : > { %6883 = vmatmul.msk.bf16.gmra.mxu0 %vm5759_vm5, %v6249_v53 }
0x1002   : > { %v6206_v21 = vpop.f32.mrf.mxu3 }
0x1003   : > { %v6207_v17 = vadd.f32 %v7475_v54, %v6206_v21 }
0x1005   : > { %v6234_v34 = vmax.f32 %v6207_v17, 0.0 }
0x100a   : > { %v6208_v39 = vpop.f32.mrf.mxu3 }
0x100b   : > { %v6209_v48 = vadd.f32 %v7475_v54, %v6208_v39 }
0x100d   : > { %v6235_v19 = vmax.f32 %v6209_v48, 0.0 }
0x100f   : > { %v6250_v60 = vpack.c.bf16 %v6235_v19, %v6234_v34 }
0x1011   : > { %6884 = vmatmul.msk.bf16.gmra.mxu0 %vm5759_vm5, %v6250_v60 }
0x1012   : > { %v6211_v43 = vpop.f32.mrf.mxu3 }
0x1013   : > { %v6212_v49 = vadd.f32 %v7475_v54, %v6211_v43 }
0x1015   : > { %v6236_v0 = vmax.f32 %v6212_v49, 0.0 }
0x101a   : > { %v6213_v36 = vpop.f32.mrf.mxu3 }
0x101b   : > { %v6214_v15 = vadd.f32 %v7475_v54, %v6213_v36 }
0x101d   : > { %v6237_v9 = vmax.f32 %v6214_v15, 0.0 }
0x101f   : > { %v6251_v57 = vpack.c.bf16 %v6237_v9, %v6236_v0 }
0x1021   : > { %6885 = vmatmul.msk.bf16.gmra.mxu0 %vm5759_vm5, %v6251_v57 }
0x1022   : > { %v6216_v22 = vpop.f32.mrf.mxu3 }
0x1023   : > { %v6217_v28 = vadd.f32 %v7475_v54, %v6216_v22 }
0x1025   : > { %v6238_v4 = vmax.f32 %v6217_v28, 0.0 }
0x102a   : > { %v6218_v47 = vpop.f32.mrf.mxu3 }
0x102b   : > { %v6219_v61 = vadd.f32 %v7475_v54, %v6218_v47 }
0x102d   : > { %v6239_v62 = vmax.f32 %v6219_v61, 0.0 }
0x102f   : > { %v6252_v26 = vpack.c.bf16 %v6239_v62, %v6238_v4 }
0x1031   : > { %6886 = vmatmul.msk.bf16.gmra.mxu0 %vm5759_vm5, %v6252_v26 }
0x1032   : > { %v6221_v29 = vpop.f32.mrf.mxu3 }
0x1033   : > { %v6222_v31 = vadd.f32 %v7475_v54, %v6221_v29 }
0x1035   : > { %v6240_v24 = vmax.f32 %v6222_v31, 0.0 }
0x103a   : > { %v6223_v2 = vpop.f32.mrf.mxu3 }
0x103b   : > { %v6224_v1 = vadd.f32 %v7475_v54, %v6223_v2 }
0x103d   : > { %v6241_v23 = vmax.f32 %v6224_v1, 0.0 }
0x103f   : > { %v6253_v59 = vpack.c.bf16 %v6241_v23, %v6240_v24 }
0x1041   : > { %6887 = vmatmul.msk.bf16.gmra.mxu0 %vm5759_vm5, %v6253_v59 }
0x104e   : > { %v6293_v6 = vpop.f32.mrf.mxu0 }
0x104f   : > { %v6294_v20 = vadd.f32 %v7476_v35, %v6293_v6 }
0x1051   : > { %v6333_v12 = vmax.f32 %v6294_v20, 0.0 }
0x1056   : > { %v6295_v42 = vpop.f32.mrf.mxu0 }
0x1057   : > { %v6296_v44 = vadd.f32 %v7476_v35, %v6295_v42  ;;  %v6363_v42 = vpop.permute.xlu2 %6362 }
0x1059   : > { %v6334_v8 = vmax.f32 %v6296_v44, 0.0  ;;  %v6365_v44 = vperm.slane %v6363_v42, 0 }
0x105b   : > { %v9898_v51 = vpack.c.bf16 %v6334_v8, %v6333_v12 }
0x105d   : > { %v6370_v6 = vsel %vm5442_vm6, %v9898_v51, 0 }
0x105e   : > { %v6298_v41 = vpop.f32.mrf.mxu0 }
0x105f   : > { %v6299_v38 = vadd.f32 %v7476_v35, %v6298_v41 }
0x1061   : > { %v6335_v45 = vmax.f32 %v6299_v38, 0.0 }
0x1066   : > { %v6300_v56 = vpop.f32.mrf.mxu0 }
0x1067   : > { %v6301_v7 = vadd.f32 %v7476_v35, %v6300_v56 }
0x1069   : > { %v6336_v54 = vmax.f32 %v6301_v7, 0.0 }
0x106b   : > { %v6352_v3 = vpack.c.bf16 %v6336_v54, %v6335_v45 }
0x106d   : > { %v6373_v59 = vsel %vm5442_vm6, %v6352_v3, 0 }
0x106e   : > { %v6303_v33 = vpop.f32.mrf.mxu0 }
0x106f   : > { %v6304_v40 = vadd.f32 %v7476_v35, %v6303_v33 }
0x1071   : > { %v6337_v50 = vmax.f32 %v6304_v40, 0.0 }
0x1076   : > { %v6305_v63 = vpop.f32.mrf.mxu0 }
0x1077   : > { %v6306_v55 = vadd.f32 %v7476_v35, %v6305_v63 }
0x1079   : > { %v6338_v46 = vmax.f32 %v6306_v55, 0.0 }
0x107b   : > { %v6353_v16 = vpack.c.bf16 %v6338_v46, %v6337_v50 }
0x107d   : > { %v6376_v23 = vsel %vm5442_vm6, %v6353_v16, 0 }
0x107e   : > { %v6308_v18 = vpop.f32.mrf.mxu0 }
0x107f   : > { %v6309_v58 = vadd.f32 %v7476_v35, %v6308_v18 }
0x1081   : > { %v6339_v30 = vmax.f32 %v6309_v58, 0.0 }
0x1086   : > { %v6310_v32 = vpop.f32.mrf.mxu0 }
0x1087   : > { %v6311_v11 = vadd.f32 %v7476_v35, %v6310_v32 }
0x1089   : > { %v6340_v37 = vmax.f32 %v6311_v11, 0.0 }
0x108b   : > { %v6354_v27 = vpack.c.bf16 %v6340_v37, %v6339_v30 }
0x108d   : > { %v6379_v24 = vsel %vm5442_vm6, %v6354_v27, 0 }
0x108e   : > { %v6313_v52 = vpop.f32.mrf.mxu0 }
0x108f   : > { %v6314_v14 = vadd.f32 %v7476_v35, %v6313_v52 }
0x1091   : > { %v6341_v13 = vmax.f32 %v6314_v14, 0.0 }
0x1096   : > { %v6315_v10 = vpop.f32.mrf.mxu0 }
0x1097   : > { %v6316_v25 = vadd.f32 %v7476_v35, %v6315_v10 }
0x1099   : > { %v6342_v5 = vmax.f32 %v6316_v25, 0.0 }
0x109b   : > { %v6355_v53 = vpack.c.bf16 %v6342_v5, %v6341_v13 }
0x109d   : > { %v6382_v1 = vsel %vm5442_vm6, %v6355_v53, 0 }
0x109e   : > { %v6318_v21 = vpop.f32.mrf.mxu0 }
0x109f   : > { %v6319_v4 = vadd.f32 %v7476_v35, %v6318_v21 }
0x10a1   : > { %v6343_v29 = vmax.f32 %v6319_v4, 0.0 }
0x10a6   : > { %v6320_v17 = vpop.f32.mrf.mxu0 }
0x10a7   : > { %v6321_v47 = vadd.f32 %v7476_v35, %v6320_v17 }
0x10a9   : > { %v6344_v62 = vmax.f32 %v6321_v47, 0.0 }
0x10ab   : > { %v6356_v31 = vpack.c.bf16 %v6344_v62, %v6343_v29 }
0x10ad   : > { %v6385_v2 = vsel %vm5442_vm6, %v6356_v31, 0 }
0x10ae   : > { %v6323_v39 = vpop.f32.mrf.mxu0 }
0x10af   : > { %v6324_v0 = vadd.f32 %v7476_v35, %v6323_v39 }
0x10b1   : > { %v6345_v28 = vmax.f32 %v6324_v0, 0.0 }
0x10b6   : > { %v6325_v48 = vpop.f32.mrf.mxu0 }
0x10b7   : > { %v6326_v49 = vadd.f32 %v7476_v35, %v6325_v48 }
0x10b9   : > { %v6346_v57 = vmax.f32 %v6326_v49, 0.0 }
0x10bb   : > { %v6357_v61 = vpack.c.bf16 %v6346_v57, %v6345_v28 }
0x10bd   : > { %v6388_v26 = vsel %vm5442_vm6, %v6357_v61, 0 }
0x10be   : > { %v6328_v34 = vpop.f32.mrf.mxu0 }
0x10bf   : > { %v6329_v19 = vadd.f32 %v7476_v35, %v6328_v34 }
0x10c1   : > { %v6347_v36 = vmax.f32 %v6329_v19, 0.0 }
0x10c6   : > { %v6330_v60 = vpop.f32.mrf.mxu0 }
0x10c7   : > { %v6331_v43 = vadd.f32 %v7476_v35, %v6330_v60  ;;  %v6349_v35 = vld [vmem:[%s7784_s17] sm:$0x1] }
0x10c8   : > { %v6350_v20 = vpack.c.bf16 %v6349_v35, %v6349_v35 }
0x10c9   : > { %v6348_v15 = vmax.f32 %v6331_v43, 0.0 }
0x10cb   : > { %v6358_v9 = vpack.c.bf16 %v6348_v15, %v6347_v36 }
0x10cd   : > { %v6391_v22 = vsel %vm5442_vm6, %v6358_v9, 0 }
0x10ce   : > { %6393 = vmatpush.bf16.xpose.msrb.mxu1 %v6391_v22 }
0x10d6   : > { %6394 = vmatpush.bf16.xpose.msrb.mxu1 %v6388_v26 }
0x10de   : > { %6395 = vmatpush.bf16.xpose.msrb.mxu1 %v6385_v2 }
0x10e6   : > { %6396 = vmatpush.bf16.xpose.msrb.mxu1 %v6382_v1 }
0x10ee   : > { %6397 = vmatpush.bf16.xpose.msrb.mxu1 %v6379_v24 }
0x10f6   : > { %6398 = vmatpush.bf16.xpose.msrb.mxu1 %v6376_v23 }
0x10fe   : > { %6399 = vmatpush.bf16.xpose.msrb.mxu1 %v6373_v59 }
0x1106   : > { %6400 = vmatpush.bf16.xpose.msrb.mxu1 %v6370_v6 }
0x110d   : > { %6888 = vmatmul.msk.bf16.vlgmr.msrb.gmra.mxu1 %vm5442_vm6, %v6350_v20 }
0x118a   : > { %v6402_v12 = vpop.f32.mrf.mxu1 }
0x118b   : > { %v6403_v8 = vadd.f32 %v6402_v12, %v6365_v44 }
0x118d   : > { %6406 = vst [vmem:[%s7792_s5] sm:$0x1] %v6403_v8 }
0x1192   : > { %v6404_v41 = vpop.f32.mrf.mxu1 }
0x1193 PF: > { %s103_s11 = sadd.s32 1, %s7499_s11   ;;  %s10129_s7 = smov %s7495_s10 }
0x1194   : > { %p100_p8 = scmp.ge.s32.totalorder %s103_s11, 5   ;;  %s10130_s10 = smov %s10132_s0 }
0x1196   :  { %102 = sbr.rel (!%p100_p8) target bundleno = 88 (0x58), region = 326 }

</bundles_post_ra>
